<compile_context>
chip_gen: v5e
topology: v5e:2x2
jax: 0.10.0
libtpu: 0.0.40
codegen_flags: <defaults>
</compile_context>

<pallas_src>
import functools

import jax
import jax.numpy as jnp
from jax.experimental import pallas as pl
from jax.experimental.pallas import tpu as pltpu

EPS = 1e-5                              # nn.BatchNorm2d default eps
SLOPE = 0.01                            # nn.LeakyReLU default negative_slope
VMEM_LIMIT_BYTES = 48 * 1024 * 1024     # headroom under v7x's 64 MiB/TC physical VMEM


# ============================================================================
# Kernels
# ============================================================================
def _conv3x3_tile(xb_ref, w_ref):
    """3x3 'VALID' conv of one halo'd row-block as 9 shifted MXU matmuls.

    xb_ref: (1, tile_h+2, W+2, Cin) bf16 halo block (reflection-padded outside).
    w_ref:  (9, Cin, Cout) bf16 filter taps, k = 3*dy + dx.
    Returns (tile_h*W, Cout) f32.  No im2col matrix ever touches HBM.
    """
    x = xb_ref[0]                                   # (tile_h+2, W+2, Cin) bf16
    th = x.shape[0] - 2
    tw = x.shape[1] - 2
    cin = x.shape[2]
    cout = w_ref.shape[2]
    acc = jnp.zeros((th * tw, cout), jnp.float32)
    for k in range(9):                              # unrolled at trace time
        dy, dx = divmod(k, 3)
        col = x[dy:dy + th, dx:dx + tw, :].reshape(th * tw, cin)
        acc = acc + jnp.dot(col, w_ref[k], preferred_element_type=jnp.float32)
    return acc                                      # (rows, Cout) f32


def _conv_stats_kernel(xb_ref, w_ref, sum_ref, sq_ref):
    """Pass 1: global BatchNorm statistics (per-channel sum / sum of squares).

    Both outputs use a constant index_map, so they stay resident in VMEM across
    the whole ('arbitrary') grid axis and act as accumulators (init at step 0).
    """
    step = pl.program_id(0)

    @pl.when(step == 0)
    def _init():
        sum_ref[...] = jnp.zeros_like(sum_ref)
        sq_ref[...] = jnp.zeros_like(sq_ref)

    y = _conv3x3_tile(xb_ref, w_ref)                      # (rows, Cout) f32
    sum_ref[...] += jnp.sum(y, axis=0, keepdims=True)     # single sweep: sum
    sq_ref[...] += jnp.sum(y * y, axis=0, keepdims=True)  #               sum of squares


def _conv_apply_kernel(xb_ref, w_ref, scale_ref, shift_ref, *rest, act):
    """Pass 2: conv -> folded BN (y*scale + shift) -> [+residual] -> [LeakyReLU]."""
    if len(rest) == 2:
        res_ref, o_ref = rest
    else:
        (o_ref,) = rest
        res_ref = None

    y = _conv3x3_tile(xb_ref, w_ref)                 # (rows, Cout) f32
    y = y * scale_ref[...] + shift_ref[...]          # BatchNorm folded to scale/shift
    if res_ref is not None:
        y = y + res_ref[0]                           # fused residual add: x + conv1(x)
    if act:
        y = jnp.where(y >= 0, y, SLOPE * y)          # LeakyReLU
    o_ref[0] = y.astype(o_ref.dtype)                 # bf16 for intermediates, f32 final


# ============================================================================
# JAX glue: tiling heuristics, reflection pad + overlapping halo row-blocks
# ============================================================================
def _pick_tile_h(H, W, target_rows=2048):
    """Largest divisor of H giving <= target_rows rows per tile, preferring >=2 blocks."""
    divs = [d for d in range(1, H + 1) if H % d == 0]
    cands = [d for d in divs if d < H] or divs
    fitting = [d for d in cands if d * W <= target_rows]
    return max(fitting) if fitting else min(cands)


def _halo_row_blocks(z_nhwc, tile_h):
    """Reflection-pad by 1 and gather overlapping (tile_h+2)-row halo blocks (bf16)."""
    N, H, W, C = z_nhwc.shape
    nb = H // tile_h
    if z_nhwc.dtype != jnp.bfloat16:
        z_nhwc = z_nhwc.astype(jnp.bfloat16)
    zp = jnp.pad(z_nhwc, ((0, 0), (1, 1), (1, 1), (0, 0)), mode="reflect")
    rows = jnp.arange(nb)[:, None] * tile_h + jnp.arange(tile_h + 2)[None, :]
    zb = zp[:, rows]                                  # (N, nb, tile_h+2, W+2, C)
    return zb.reshape(N * nb, tile_h + 2, W + 2, C)


def _conv_bn_stage(z_nhwc, w9, gamma, beta, *, tile_h, residual=None, act=True,
                   out_dtype=jnp.float32):
    """One (reflection-pad -> 3x3 conv -> train-mode BN -> [+residual] -> [LeakyReLU])."""
    N, H, W, Cin = z_nhwc.shape
    Cout = w9.shape[-1]
    nb = H // tile_h
    NB = N * nb
    rows = tile_h * W
    M = N * H * W

    # bf16 MXU operands; halo duplication costs (tile_h+2)/tile_h, not 9x.
    xb = _halo_row_blocks(z_nhwc, tile_h)             # (NB, th+2, W+2, Cin) bf16

    x_spec = pl.BlockSpec((1, tile_h + 2, W + 2, Cin), lambda i: (i, 0, 0, 0))
    w_spec = pl.BlockSpec((9, Cin, Cout), lambda i: (0, 0, 0))
    vec_spec = pl.BlockSpec((1, Cout), lambda i: (0, 0))

    conv_flops = 2 * M * 9 * Cin * Cout
    xb_bytes = int(xb.size) * 2
    w_bytes = int(w9.size) * 2
    out_itemsize = jnp.dtype(out_dtype).itemsize

    # ---- pass 1: global BatchNorm statistics -------------------------------
    col_sum, col_sq = pl.pallas_call(
        _conv_stats_kernel,
        grid=(NB,),
        in_specs=[x_spec, w_spec],
        out_specs=(vec_spec, vec_spec),
        out_shape=(jax.ShapeDtypeStruct((1, Cout), jnp.float32),
                   jax.ShapeDtypeStruct((1, Cout), jnp.float32)),
        compiler_params=pltpu.CompilerParams(
            dimension_semantics=("arbitrary",),          # outputs are accumulators
            vmem_limit_bytes=VMEM_LIMIT_BYTES),
        cost_estimate=pl.CostEstimate(
            flops=conv_flops, transcendentals=0,
            bytes_accessed=xb_bytes + w_bytes + 8 * Cout),
    )(xb, w9)

    # Fold training-mode BN (batch mean, biased variance) + gamma/beta.
    mean = col_sum / M
    var = col_sq / M - mean * mean
    scale = (gamma.reshape(1, Cout) * jax.lax.rsqrt(var + EPS)).astype(jnp.float32)
    shift = (beta.reshape(1, Cout) - mean * scale).astype(jnp.float32)

    # ---- pass 2: conv -> BN -> [+residual] -> [LeakyReLU] -> store ----------
    in_specs = [x_spec, w_spec, vec_spec, vec_spec]
    args = [xb, w9, scale, shift]
    out_bytes = NB * rows * Cout * out_itemsize
    io_bytes = xb_bytes + w_bytes + out_bytes
    if residual is not None:
        res_b = residual.reshape(NB, rows, Cout).astype(jnp.float32)
        in_specs.append(pl.BlockSpec((1, rows, Cout), lambda i: (i, 0, 0)))
        args.append(res_b)
        io_bytes += NB * rows * Cout * 4

    out = pl.pallas_call(
        functools.partial(_conv_apply_kernel, act=act),
        grid=(NB,),
        in_specs=in_specs,
        out_specs=pl.BlockSpec((1, rows, Cout), lambda i: (i, 0, 0)),
        out_shape=jax.ShapeDtypeStruct((NB, rows, Cout), out_dtype),
        compiler_params=pltpu.CompilerParams(
            dimension_semantics=("parallel",),           # megacore-shardable
            vmem_limit_bytes=VMEM_LIMIT_BYTES),
        cost_estimate=pl.CostEstimate(
            flops=conv_flops + 4 * M * Cout, transcendentals=0,
            bytes_accessed=io_bytes),
    )(*args)

    return out.reshape(N, H, W, Cout)


def double_conv_forward(x_nchw, params, *, tile_h=None):
    """double_conv forward: (N, in_ch, H, W) -> (N, out_ch, H, W)."""
    x = jnp.transpose(x_nchw, (0, 2, 3, 1)).astype(jnp.float32)    # NCHW -> NHWC
    N, H, W, _ = x.shape
    if tile_h is None:
        tile_h = _pick_tile_h(H, W)

    # conv1 first half: pad -> conv(in->out) -> BN -> LeakyReLU.
    # Intermediate stored directly in bf16 (next stage's MXU operand dtype).
    h = _conv_bn_stage(x, params["w1"], params["g1"], params["be1"],
                       tile_h=tile_h, act=True, out_dtype=jnp.bfloat16)
    # conv1 second half (pad -> conv(out->in) -> BN), plus the residual add
    # x + conv1(x) and conv2's leading LeakyReLU, all fused into one epilogue.
    a = _conv_bn_stage(h, params["w2"], params["g2"], params["be2"],
                       tile_h=tile_h, residual=x, act=True, out_dtype=jnp.bfloat16)
    # conv2 tail: pad -> conv(in->out) -> BN -> LeakyReLU (final output in f32).
    y = _conv_bn_stage(a, params["w3"], params["g3"], params["be3"],
                       tile_h=tile_h, act=True, out_dtype=jnp.float32)
    return jnp.transpose(y, (0, 3, 1, 2))                           # NHWC -> NCHW


# ============================================================================
# Deterministic parameters (PyTorch OIHW weights -> kernel (9, Cin, Cout) bf16)
# ============================================================================
def _torch_w_to_kernel(w_oihw):
    # (Cout, Cin, 3, 3) -> (9, Cin, Cout) with rows ordered (ky, kx); bf16 for MXU.
    w = jnp.transpose(w_oihw, (2, 3, 1, 0)).reshape(9, w_oihw.shape[1], w_oihw.shape[0])
    return w.astype(jnp.bfloat16)


def make_params(key, in_ch, out_ch):
    ks = jax.random.split(key, 12)

    def conv_w(k, cout, cin):
        return 0.1 * jax.random.normal(k, (cout, cin, 3, 3), jnp.float32)

    def vec(k, c, scale=0.1, base=0.0):
        return base + scale * jax.random.normal(k, (1, c), jnp.float32)

    torch_params = dict(
        w1=conv_w(ks[0], out_ch, in_ch), b1=vec(ks[1], out_ch),
        g1=vec(ks[2], out_ch, base=1.0), be1=vec(ks[3], out_ch),
        w2=conv_w(ks[4], in_ch, out_ch), b2=vec(ks[5], in_ch),
        g2=vec(ks[6], in_ch, base=1.0), be2=vec(ks[7], in_ch),
        w3=conv_w(ks[8], out_ch, in_ch), b3=vec(ks[9], out_ch),
        g3=vec(ks[10], out_ch, base=1.0), be3=vec(ks[11], out_ch),
    )
    # Kernel params drop the conv biases: a bias before training-mode BatchNorm is
    # exactly cancelled by the mean subtraction (reference below keeps the bias).
    kernel_params = dict(
        w1=_torch_w_to_kernel(torch_params["w1"]),
        w2=_torch_w_to_kernel(torch_params["w2"]),
        w3=_torch_w_to_kernel(torch_params["w3"]),
        g1=torch_params["g1"], be1=torch_params["be1"],
        g2=torch_params["g2"], be2=torch_params["be2"],
        g3=torch_params["g3"], be3=torch_params["be3"],
    )
    return kernel_params, torch_params


# ============================================================================
# Pure-JAX reference (lax.conv, training-mode BN, includes the conv biases)
# ============================================================================
def _ref_forward(x, tp, *, emulate_bf16=True):
    """f32 reference.  With emulate_bf16=True the conv inputs/weights are rounded to
    bf16 (matching the kernel's MXU operand dtype) but all math is done in f32."""
    if emulate_bf16:
        rnd = lambda a: a.astype(jnp.bfloat16).astype(jnp.float32)
    else:
        rnd = lambda a: a

    def conv(z, w, b):
        zp = jnp.pad(rnd(z), ((0, 0), (0, 0), (1, 1), (1, 1)), mode="reflect")
        y = jax.lax.conv_general_dilated(
            zp, rnd(w), (1, 1), "VALID",
            dimension_numbers=("NCHW", "OIHW", "NCHW"),
            precision=jax.lax.Precision.HIGHEST)
        return y + b.reshape(1, -1, 1, 1)

    def bn(z, g, be):
        m = jnp.mean(z, axis=(0, 2, 3), keepdims=True)
        v = jnp.mean((z - m) ** 2, axis=(0, 2, 3), keepdims=True)
        return (z - m) * jax.lax.rsqrt(v + EPS) * g.reshape(1, -1, 1, 1) + be.reshape(1, -1, 1, 1)

    lrelu = lambda z: jnp.where(z >= 0, z, SLOPE * z)

    y = lrelu(bn(conv(x, tp["w1"], tp["b1"]), tp["g1"], tp["be1"]))
    y = bn(conv(y, tp["w2"], tp["b2"]), tp["g2"], tp["be2"])
    z = lrelu(x + y)
    z = lrelu(bn(conv(z, tp["w3"], tp["b3"]), tp["g3"], tp["be3"]))
    return z


if __name__ == "__main__":
    N, in_ch, out_ch, H, W = 2, 4, 8, 16, 16
    key = jax.random.PRNGKey(0)
    kx, kp = jax.random.split(key)
    x = jax.random.normal(kx, (N, in_ch, H, W), jnp.float32)

    kernel_params, torch_params = make_params(kp, in_ch, out_ch)

    out = jax.block_until_ready(jax.jit(double_conv_forward)(x, kernel_params))
    assert out.shape == (N, out_ch, H, W), out.shape

    # Compare against an f32 reference that emulates the kernel's bf16 MXU operands,
    # so the check isolates real bugs rather than dtype rounding differences.
    ref = jax.block_until_ready(_ref_forward(x, torch_params, emulate_bf16=True))
    err = float(jnp.max(jnp.abs(out - ref)))
    assert err < 1e-2, f"max abs err {err}"
    print("KERNEL_OK")
</pallas_src>

<mosaic_0001>
module attributes {stable_mosaic.version = 11 : i64} {
  func.func @_conv_stats_kernel(%arg0: i32, %arg1: memref<1x10x18x4xbf16, #tpu.memory_space<vmem>>, %arg2: memref<9x4x8xbf16, #tpu.memory_space<vmem>>, %arg3: memref<1x8xf32, #tpu.memory_space<vmem>>, %arg4: memref<1x8xf32, #tpu.memory_space<vmem>>) attributes {dimension_semantics = [#tpu.dimension_semantics<arbitrary>], iteration_bounds = array<i64: 4>, scalar_prefetch = 0 : i64, scratch_operands = 0 : i64, tpu.core_type = #tpu.core_type<tc>, window_params = [{transform_indices = @transform_0, window_bounds = array<i64: 1, 10, 18, 4>}, {pipeline_mode = #tpu.pipeline_mode<synchronous>, transform_indices = @transform_1, window_bounds = array<i64: 9, 4, 8>}, {pipeline_mode = #tpu.pipeline_mode<synchronous>, transform_indices = @transform_2, window_bounds = array<i64: 1, 8>}, {pipeline_mode = #tpu.pipeline_mode<synchronous>, transform_indices = @transform_3, window_bounds = array<i64: 1, 8>}]} {
    %c0_i32 = arith.constant 0 : i32
    %0 = arith.cmpi eq, %arg0, %c0_i32 : i32
    %1 = arith.extui %0 : i1 to i32
    %c0_i32_0 = arith.constant 0 : i32
    %2 = arith.cmpi ne, %1, %c0_i32_0 : i32
    scf.if %2 {
      %cst_42 = arith.constant 0.000000e+00 : f32
      %71 = vector.broadcast %cst_42 : f32 to vector<1x8xf32>
      %c0_43 = arith.constant 0 : index
      %c0_44 = arith.constant 0 : index
      %72 = vector.load %arg3[%c0_43, %c0_44] : memref<1x8xf32, #tpu.memory_space<vmem>>, vector<1x8xf32>
      tpu.vector_store %arg3[%c0_43, %c0_44], %71 {strides = array<i32>} : memref<1x8xf32, #tpu.memory_space<vmem>>, vector<1x8xf32>,
      %cst_45 = arith.constant 0.000000e+00 : f32
      %73 = vector.broadcast %cst_45 : f32 to vector<1x8xf32>
      %c0_46 = arith.constant 0 : index
      %c0_47 = arith.constant 0 : index
      %74 = vector.load %arg4[%c0_46, %c0_47] : memref<1x8xf32, #tpu.memory_space<vmem>>, vector<1x8xf32>
      tpu.vector_store %arg4[%c0_46, %c0_47], %73 {strides = array<i32>} : memref<1x8xf32, #tpu.memory_space<vmem>>, vector<1x8xf32>,
    } else {
    }
    %c0 = arith.constant 0 : index
    %c0_1 = arith.constant 0 : index
    %c0_2 = arith.constant 0 : index
    %c0_3 = arith.constant 0 : index
    %3 = vector.load %arg1[%c0, %c0_1, %c0_2, %c0_3] : memref<1x10x18x4xbf16, #tpu.memory_space<vmem>>, vector<1x10x18x4xbf16>
    %4 = vector.shape_cast %3 : vector<1x10x18x4xbf16> to vector<10x18x4xbf16>
    %cst = arith.constant 0.000000e+00 : f32
    %5 = vector.broadcast %cst : f32 to vector<128x8xf32>
    %6 = vector.extract_strided_slice %4 {offsets = [0, 0, 0], sizes = [8, 16, 4], strides = [1, 1, 1]} : vector<10x18x4xbf16> to vector<8x16x4xbf16>
    %7 = vector.shape_cast %6 : vector<8x16x4xbf16> to vector<128x4xbf16>
    %c0_4 = arith.constant 0 : index
    %c0_5 = arith.constant 0 : index
    %c0_6 = arith.constant 0 : index
    %8 = vector.load %arg2[%c0_4, %c0_5, %c0_6] : memref<9x4x8xbf16, #tpu.memory_space<vmem>>, vector<1x4x8xbf16>
    %9 = vector.shape_cast %8 : vector<1x4x8xbf16> to vector<4x8xbf16>
    %cst_7 = arith.constant dense<0.000000e+00> : vector<128x8xf32>
    %10 = tpu.matmul %7, %9, %cst_7 {dimension_numbers = #tpu.dot_dimension_numbers<[1], [0], [0], [1], [0, 0, 1, 1], [], []>} : vector<128x4xbf16>, vector<4x8xbf16>, vector<128x8xf32> -> vector<128x8xf32>
    %11 = arith.addf %5, %10 : vector<128x8xf32>
    %12 = vector.extract_strided_slice %4 {offsets = [0, 1, 0], sizes = [8, 16, 4], strides = [1, 1, 1]} : vector<10x18x4xbf16> to vector<8x16x4xbf16>
    %13 = vector.shape_cast %12 : vector<8x16x4xbf16> to vector<128x4xbf16>
    %c1 = arith.constant 1 : index
    %c0_8 = arith.constant 0 : index
    %c0_9 = arith.constant 0 : index
    %14 = vector.load %arg2[%c1, %c0_8, %c0_9] : memref<9x4x8xbf16, #tpu.memory_space<vmem>>, vector<1x4x8xbf16>
    %15 = vector.shape_cast %14 : vector<1x4x8xbf16> to vector<4x8xbf16>
    %cst_10 = arith.constant dense<0.000000e+00> : vector<128x8xf32>
    %16 = tpu.matmul %13, %15, %cst_10 {dimension_numbers = #tpu.dot_dimension_numbers<[1], [0], [0], [1], [0, 0, 1, 1], [], []>} : vector<128x4xbf16>, vector<4x8xbf16>, vector<128x8xf32> -> vector<128x8xf32>
    %17 = arith.addf %11, %16 : vector<128x8xf32>
    %18 = vector.extract_strided_slice %4 {offsets = [0, 2, 0], sizes = [8, 16, 4], strides = [1, 1, 1]} : vector<10x18x4xbf16> to vector<8x16x4xbf16>
    %19 = vector.shape_cast %18 : vector<8x16x4xbf16> to vector<128x4xbf16>
    %c2 = arith.constant 2 : index
    %c0_11 = arith.constant 0 : index
    %c0_12 = arith.constant 0 : index
    %20 = vector.load %arg2[%c2, %c0_11, %c0_12] : memref<9x4x8xbf16, #tpu.memory_space<vmem>>, vector<1x4x8xbf16>
    %21 = vector.shape_cast %20 : vector<1x4x8xbf16> to vector<4x8xbf16>
    %cst_13 = arith.constant dense<0.000000e+00> : vector<128x8xf32>
    %22 = tpu.matmul %19, %21, %cst_13 {dimension_numbers = #tpu.dot_dimension_numbers<[1], [0], [0], [1], [0, 0, 1, 1], [], []>} : vector<128x4xbf16>, vector<4x8xbf16>, vector<128x8xf32> -> vector<128x8xf32>
    %23 = arith.addf %17, %22 : vector<128x8xf32>
    %24 = vector.extract_strided_slice %4 {offsets = [1, 0, 0], sizes = [8, 16, 4], strides = [1, 1, 1]} : vector<10x18x4xbf16> to vector<8x16x4xbf16>
    %25 = vector.shape_cast %24 : vector<8x16x4xbf16> to vector<128x4xbf16>
    %c3 = arith.constant 3 : index
    %c0_14 = arith.constant 0 : index
    %c0_15 = arith.constant 0 : index
    %26 = vector.load %arg2[%c3, %c0_14, %c0_15] : memref<9x4x8xbf16, #tpu.memory_space<vmem>>, vector<1x4x8xbf16>
    %27 = vector.shape_cast %26 : vector<1x4x8xbf16> to vector<4x8xbf16>
    %cst_16 = arith.constant dense<0.000000e+00> : vector<128x8xf32>
    %28 = tpu.matmul %25, %27, %cst_16 {dimension_numbers = #tpu.dot_dimension_numbers<[1], [0], [0], [1], [0, 0, 1, 1], [], []>} : vector<128x4xbf16>, vector<4x8xbf16>, vector<128x8xf32> -> vector<128x8xf32>
    %29 = arith.addf %23, %28 : vector<128x8xf32>
    %30 = vector.extract_strided_slice %4 {offsets = [1, 1, 0], sizes = [8, 16, 4], strides = [1, 1, 1]} : vector<10x18x4xbf16> to vector<8x16x4xbf16>
    %31 = vector.shape_cast %30 : vector<8x16x4xbf16> to vector<128x4xbf16>
    %c4 = arith.constant 4 : index
    %c0_17 = arith.constant 0 : index
    %c0_18 = arith.constant 0 : index
    %32 = vector.load %arg2[%c4, %c0_17, %c0_18] : memref<9x4x8xbf16, #tpu.memory_space<vmem>>, vector<1x4x8xbf16>
    %33 = vector.shape_cast %32 : vector<1x4x8xbf16> to vector<4x8xbf16>
    %cst_19 = arith.constant dense<0.000000e+00> : vector<128x8xf32>
    %34 = tpu.matmul %31, %33, %cst_19 {dimension_numbers = #tpu.dot_dimension_numbers<[1], [0], [0], [1], [0, 0, 1, 1], [], []>} : vector<128x4xbf16>, vector<4x8xbf16>, vector<128x8xf32> -> vector<128x8xf32>
    %35 = arith.addf %29, %34 : vector<128x8xf32>
    %36 = vector.extract_strided_slice %4 {offsets = [1, 2, 0], sizes = [8, 16, 4], strides = [1, 1, 1]} : vector<10x18x4xbf16> to vector<8x16x4xbf16>
    %37 = vector.shape_cast %36 : vector<8x16x4xbf16> to vector<128x4xbf16>
    %c5 = arith.constant 5 : index
    %c0_20 = arith.constant 0 : index
    %c0_21 = arith.constant 0 : index
    %38 = vector.load %arg2[%c5, %c0_20, %c0_21] : memref<9x4x8xbf16, #tpu.memory_space<vmem>>, vector<1x4x8xbf16>
    %39 = vector.shape_cast %38 : vector<1x4x8xbf16> to vector<4x8xbf16>
    %cst_22 = arith.constant dense<0.000000e+00> : vector<128x8xf32>
    %40 = tpu.matmul %37, %39, %cst_22 {dimension_numbers = #tpu.dot_dimension_numbers<[1], [0], [0], [1], [0, 0, 1, 1], [], []>} : vector<128x4xbf16>, vector<4x8xbf16>, vector<128x8xf32> -> vector<128x8xf32>
    %41 = arith.addf %35, %40 : vector<128x8xf32>
    %42 = vector.extract_strided_slice %4 {offsets = [2, 0, 0], sizes = [8, 16, 4], strides = [1, 1, 1]} : vector<10x18x4xbf16> to vector<8x16x4xbf16>
    %43 = vector.shape_cast %42 : vector<8x16x4xbf16> to vector<128x4xbf16>
    %c6 = arith.constant 6 : index
    %c0_23 = arith.constant 0 : index
    %c0_24 = arith.constant 0 : index
    %44 = vector.load %arg2[%c6, %c0_23, %c0_24] : memref<9x4x8xbf16, #tpu.memory_space<vmem>>, vector<1x4x8xbf16>
    %45 = vector.shape_cast %44 : vector<1x4x8xbf16> to vector<4x8xbf16>
    %cst_25 = arith.constant dense<0.000000e+00> : vector<128x8xf32>
    %46 = tpu.matmul %43, %45, %cst_25 {dimension_numbers = #tpu.dot_dimension_numbers<[1], [0], [0], [1], [0, 0, 1, 1], [], []>} : vector<128x4xbf16>, vector<4x8xbf16>, vector<128x8xf32> -> vector<128x8xf32>
    %47 = arith.addf %41, %46 : vector<128x8xf32>
    %48 = vector.extract_strided_slice %4 {offsets = [2, 1, 0], sizes = [8, 16, 4], strides = [1, 1, 1]} : vector<10x18x4xbf16> to vector<8x16x4xbf16>
    %49 = vector.shape_cast %48 : vector<8x16x4xbf16> to vector<128x4xbf16>
    %c7 = arith.constant 7 : index
    %c0_26 = arith.constant 0 : index
    %c0_27 = arith.constant 0 : index
    %50 = vector.load %arg2[%c7, %c0_26, %c0_27] : memref<9x4x8xbf16, #tpu.memory_space<vmem>>, vector<1x4x8xbf16>
    %51 = vector.shape_cast %50 : vector<1x4x8xbf16> to vector<4x8xbf16>
    %cst_28 = arith.constant dense<0.000000e+00> : vector<128x8xf32>
    %52 = tpu.matmul %49, %51, %cst_28 {dimension_numbers = #tpu.dot_dimension_numbers<[1], [0], [0], [1], [0, 0, 1, 1], [], []>} : vector<128x4xbf16>, vector<4x8xbf16>, vector<128x8xf32> -> vector<128x8xf32>
    %53 = arith.addf %47, %52 : vector<128x8xf32>
    %54 = vector.extract_strided_slice %4 {offsets = [2, 2, 0], sizes = [8, 16, 4], strides = [1, 1, 1]} : vector<10x18x4xbf16> to vector<8x16x4xbf16>
    %55 = vector.shape_cast %54 : vector<8x16x4xbf16> to vector<128x4xbf16>
    %c8 = arith.constant 8 : index
    %c0_29 = arith.constant 0 : index
    %c0_30 = arith.constant 0 : index
    %56 = vector.load %arg2[%c8, %c0_29, %c0_30] : memref<9x4x8xbf16, #tpu.memory_space<vmem>>, vector<1x4x8xbf16>
    %57 = vector.shape_cast %56 : vector<1x4x8xbf16> to vector<4x8xbf16>
    %cst_31 = arith.constant dense<0.000000e+00> : vector<128x8xf32>
    %58 = tpu.matmul %55, %57, %cst_31 {dimension_numbers = #tpu.dot_dimension_numbers<[1], [0], [0], [1], [0, 0, 1, 1], [], []>} : vector<128x4xbf16>, vector<4x8xbf16>, vector<128x8xf32> -> vector<128x8xf32>
    %59 = arith.addf %53, %58 : vector<128x8xf32>
    %c0_32 = arith.constant 0 : index
    %c0_33 = arith.constant 0 : index
    %60 = vector.load %arg3[%c0_32, %c0_33] : memref<1x8xf32, #tpu.memory_space<vmem>>, vector<1x8xf32>
    %cst_34 = arith.constant dense<0.000000e+00> : vector<8xf32>
    %61 = vector.multi_reduction <add>, %59, %cst_34 [0] : vector<128x8xf32> to vector<8xf32>
    %62 = vector.shape_cast %61 : vector<8xf32> to vector<1x8xf32>
    %63 = arith.addf %60, %62 : vector<1x8xf32>
    %c0_35 = arith.constant 0 : index
    %c0_36 = arith.constant 0 : index
    %64 = vector.load %arg3[%c0_35, %c0_36] : memref<1x8xf32, #tpu.memory_space<vmem>>, vector<1x8xf32>
    tpu.vector_store %arg3[%c0_35, %c0_36], %63 {strides = array<i32>} : memref<1x8xf32, #tpu.memory_space<vmem>>, vector<1x8xf32>,
    %c0_37 = arith.constant 0 : index
    %c0_38 = arith.constant 0 : index
    %65 = vector.load %arg4[%c0_37, %c0_38] : memref<1x8xf32, #tpu.memory_space<vmem>>, vector<1x8xf32>
    %66 = arith.mulf %59, %59 : vector<128x8xf32>
    %cst_39 = arith.constant dense<0.000000e+00> : vector<8xf32>
    %67 = vector.multi_reduction <add>, %66, %cst_39 [0] : vector<128x8xf32> to vector<8xf32>
    %68 = vector.shape_cast %67 : vector<8xf32> to vector<1x8xf32>
    %69 = arith.addf %65, %68 : vector<1x8xf32>
    %c0_40 = arith.constant 0 : index
    %c0_41 = arith.constant 0 : index
    %70 = vector.load %arg4[%c0_40, %c0_41] : memref<1x8xf32, #tpu.memory_space<vmem>>, vector<1x8xf32>
    tpu.vector_store %arg4[%c0_40, %c0_41], %69 {strides = array<i32>} : memref<1x8xf32, #tpu.memory_space<vmem>>, vector<1x8xf32>,
    return
  }
  func.func @transform_0(%arg0: i32) -> (i32, i32, i32, i32) {
    %c0_i32 = arith.constant 0 : i32
    %c0_i32_0 = arith.constant 0 : i32
    %c0_i32_1 = arith.constant 0 : i32
    %c0_i32_2 = arith.constant 0 : i32
    return %arg0, %c0_i32, %c0_i32_0, %c0_i32_1 : i32, i32, i32, i32
  }
  func.func @transform_1(%arg0: i32) -> (i32, i32, i32) {
    %c0_i32 = arith.constant 0 : i32
    %c0_i32_0 = arith.constant 0 : i32
    %c0_i32_1 = arith.constant 0 : i32
    %c0_i32_2 = arith.constant 0 : i32
    return %c0_i32, %c0_i32_0, %c0_i32_1 : i32, i32, i32
  }
  func.func @transform_2(%arg0: i32) -> (i32, i32) {
    %c0_i32 = arith.constant 0 : i32
    %c0_i32_0 = arith.constant 0 : i32
    %c0_i32_1 = arith.constant 0 : i32
    return %c0_i32, %c0_i32_0 : i32, i32
  }
  func.func @transform_3(%arg0: i32) -> (i32, i32) {
    %c0_i32 = arith.constant 0 : i32
    %c0_i32_0 = arith.constant 0 : i32
    %c0_i32_1 = arith.constant 0 : i32
    return %c0_i32, %c0_i32_0 : i32, i32
  }
}

module attributes {stable_mosaic.version = 11 : i64} {
  func.func @_conv_apply_kernel(%arg0: i32, %arg1: memref<1x10x18x4xbf16, #tpu.memory_space<vmem>>, %arg2: memref<9x4x8xbf16, #tpu.memory_space<vmem>>, %arg3: memref<1x8xf32, #tpu.memory_space<vmem>>, %arg4: memref<1x8xf32, #tpu.memory_space<vmem>>, %arg5: memref<1x128x8xbf16, #tpu.memory_space<vmem>>) attributes {dimension_semantics = [#tpu.dimension_semantics<parallel>], iteration_bounds = array<i64: 4>, scalar_prefetch = 0 : i64, scratch_operands = 0 : i64, tpu.core_type = #tpu.core_type<tc>, window_params = [{transform_indices = @transform_0, window_bounds = array<i64: 1, 10, 18, 4>}, {pipeline_mode = #tpu.pipeline_mode<synchronous>, transform_indices = @transform_1, window_bounds = array<i64: 9, 4, 8>}, {pipeline_mode = #tpu.pipeline_mode<synchronous>, transform_indices = @transform_2, window_bounds = array<i64: 1, 8>}, {pipeline_mode = #tpu.pipeline_mode<synchronous>, transform_indices = @transform_3, window_bounds = array<i64: 1, 8>}, {transform_indices = @transform_4, window_bounds = array<i64: 1, 128, 8>}]} {
    %c0 = arith.constant 0 : index
    %c0_0 = arith.constant 0 : index
    %c0_1 = arith.constant 0 : index
    %c0_2 = arith.constant 0 : index
    %0 = vector.load %arg1[%c0, %c0_0, %c0_1, %c0_2] : memref<1x10x18x4xbf16, #tpu.memory_space<vmem>>, vector<1x10x18x4xbf16>
    %1 = vector.shape_cast %0 : vector<1x10x18x4xbf16> to vector<10x18x4xbf16>
    %cst = arith.constant 0.000000e+00 : f32
    %2 = vector.broadcast %cst : f32 to vector<128x8xf32>
    %3 = vector.extract_strided_slice %1 {offsets = [0, 0, 0], sizes = [8, 16, 4], strides = [1, 1, 1]} : vector<10x18x4xbf16> to vector<8x16x4xbf16>
    %4 = vector.shape_cast %3 : vector<8x16x4xbf16> to vector<128x4xbf16>
    %c0_3 = arith.constant 0 : index
    %c0_4 = arith.constant 0 : index
    %c0_5 = arith.constant 0 : index
    %5 = vector.load %arg2[%c0_3, %c0_4, %c0_5] : memref<9x4x8xbf16, #tpu.memory_space<vmem>>, vector<1x4x8xbf16>
    %6 = vector.shape_cast %5 : vector<1x4x8xbf16> to vector<4x8xbf16>
    %cst_6 = arith.constant dense<0.000000e+00> : vector<128x8xf32>
    %7 = tpu.matmul %4, %6, %cst_6 {dimension_numbers = #tpu.dot_dimension_numbers<[1], [0], [0], [1], [0, 0, 1, 1], [], []>} : vector<128x4xbf16>, vector<4x8xbf16>, vector<128x8xf32> -> vector<128x8xf32>
    %8 = arith.addf %2, %7 : vector<128x8xf32>
    %9 = vector.extract_strided_slice %1 {offsets = [0, 1, 0], sizes = [8, 16, 4], strides = [1, 1, 1]} : vector<10x18x4xbf16> to vector<8x16x4xbf16>
    %10 = vector.shape_cast %9 : vector<8x16x4xbf16> to vector<128x4xbf16>
    %c1 = arith.constant 1 : index
    %c0_7 = arith.constant 0 : index
    %c0_8 = arith.constant 0 : index
    %11 = vector.load %arg2[%c1, %c0_7, %c0_8] : memref<9x4x8xbf16, #tpu.memory_space<vmem>>, vector<1x4x8xbf16>
    %12 = vector.shape_cast %11 : vector<1x4x8xbf16> to vector<4x8xbf16>
    %cst_9 = arith.constant dense<0.000000e+00> : vector<128x8xf32>
    %13 = tpu.matmul %10, %12, %cst_9 {dimension_numbers = #tpu.dot_dimension_numbers<[1], [0], [0], [1], [0, 0, 1, 1], [], []>} : vector<128x4xbf16>, vector<4x8xbf16>, vector<128x8xf32> -> vector<128x8xf32>
    %14 = arith.addf %8, %13 : vector<128x8xf32>
    %15 = vector.extract_strided_slice %1 {offsets = [0, 2, 0], sizes = [8, 16, 4], strides = [1, 1, 1]} : vector<10x18x4xbf16> to vector<8x16x4xbf16>
    %16 = vector.shape_cast %15 : vector<8x16x4xbf16> to vector<128x4xbf16>
    %c2 = arith.constant 2 : index
    %c0_10 = arith.constant 0 : index
    %c0_11 = arith.constant 0 : index
    %17 = vector.load %arg2[%c2, %c0_10, %c0_11] : memref<9x4x8xbf16, #tpu.memory_space<vmem>>, vector<1x4x8xbf16>
    %18 = vector.shape_cast %17 : vector<1x4x8xbf16> to vector<4x8xbf16>
    %cst_12 = arith.constant dense<0.000000e+00> : vector<128x8xf32>
    %19 = tpu.matmul %16, %18, %cst_12 {dimension_numbers = #tpu.dot_dimension_numbers<[1], [0], [0], [1], [0, 0, 1, 1], [], []>} : vector<128x4xbf16>, vector<4x8xbf16>, vector<128x8xf32> -> vector<128x8xf32>
    %20 = arith.addf %14, %19 : vector<128x8xf32>
    %21 = vector.extract_strided_slice %1 {offsets = [1, 0, 0], sizes = [8, 16, 4], strides = [1, 1, 1]} : vector<10x18x4xbf16> to vector<8x16x4xbf16>
    %22 = vector.shape_cast %21 : vector<8x16x4xbf16> to vector<128x4xbf16>
    %c3 = arith.constant 3 : index
    %c0_13 = arith.constant 0 : index
    %c0_14 = arith.constant 0 : index
    %23 = vector.load %arg2[%c3, %c0_13, %c0_14] : memref<9x4x8xbf16, #tpu.memory_space<vmem>>, vector<1x4x8xbf16>
    %24 = vector.shape_cast %23 : vector<1x4x8xbf16> to vector<4x8xbf16>
    %cst_15 = arith.constant dense<0.000000e+00> : vector<128x8xf32>
    %25 = tpu.matmul %22, %24, %cst_15 {dimension_numbers = #tpu.dot_dimension_numbers<[1], [0], [0], [1], [0, 0, 1, 1], [], []>} : vector<128x4xbf16>, vector<4x8xbf16>, vector<128x8xf32> -> vector<128x8xf32>
    %26 = arith.addf %20, %25 : vector<128x8xf32>
    %27 = vector.extract_strided_slice %1 {offsets = [1, 1, 0], sizes = [8, 16, 4], strides = [1, 1, 1]} : vector<10x18x4xbf16> to vector<8x16x4xbf16>
    %28 = vector.shape_cast %27 : vector<8x16x4xbf16> to vector<128x4xbf16>
    %c4 = arith.constant 4 : index
    %c0_16 = arith.constant 0 : index
    %c0_17 = arith.constant 0 : index
    %29 = vector.load %arg2[%c4, %c0_16, %c0_17] : memref<9x4x8xbf16, #tpu.memory_space<vmem>>, vector<1x4x8xbf16>
    %30 = vector.shape_cast %29 : vector<1x4x8xbf16> to vector<4x8xbf16>
    %cst_18 = arith.constant dense<0.000000e+00> : vector<128x8xf32>
    %31 = tpu.matmul %28, %30, %cst_18 {dimension_numbers = #tpu.dot_dimension_numbers<[1], [0], [0], [1], [0, 0, 1, 1], [], []>} : vector<128x4xbf16>, vector<4x8xbf16>, vector<128x8xf32> -> vector<128x8xf32>
    %32 = arith.addf %26, %31 : vector<128x8xf32>
    %33 = vector.extract_strided_slice %1 {offsets = [1, 2, 0], sizes = [8, 16, 4], strides = [1, 1, 1]} : vector<10x18x4xbf16> to vector<8x16x4xbf16>
    %34 = vector.shape_cast %33 : vector<8x16x4xbf16> to vector<128x4xbf16>
    %c5 = arith.constant 5 : index
    %c0_19 = arith.constant 0 : index
    %c0_20 = arith.constant 0 : index
    %35 = vector.load %arg2[%c5, %c0_19, %c0_20] : memref<9x4x8xbf16, #tpu.memory_space<vmem>>, vector<1x4x8xbf16>
    %36 = vector.shape_cast %35 : vector<1x4x8xbf16> to vector<4x8xbf16>
    %cst_21 = arith.constant dense<0.000000e+00> : vector<128x8xf32>
    %37 = tpu.matmul %34, %36, %cst_21 {dimension_numbers = #tpu.dot_dimension_numbers<[1], [0], [0], [1], [0, 0, 1, 1], [], []>} : vector<128x4xbf16>, vector<4x8xbf16>, vector<128x8xf32> -> vector<128x8xf32>
    %38 = arith.addf %32, %37 : vector<128x8xf32>
    %39 = vector.extract_strided_slice %1 {offsets = [2, 0, 0], sizes = [8, 16, 4], strides = [1, 1, 1]} : vector<10x18x4xbf16> to vector<8x16x4xbf16>
    %40 = vector.shape_cast %39 : vector<8x16x4xbf16> to vector<128x4xbf16>
    %c6 = arith.constant 6 : index
    %c0_22 = arith.constant 0 : index
    %c0_23 = arith.constant 0 : index
    %41 = vector.load %arg2[%c6, %c0_22, %c0_23] : memref<9x4x8xbf16, #tpu.memory_space<vmem>>, vector<1x4x8xbf16>
    %42 = vector.shape_cast %41 : vector<1x4x8xbf16> to vector<4x8xbf16>
    %cst_24 = arith.constant dense<0.000000e+00> : vector<128x8xf32>
    %43 = tpu.matmul %40, %42, %cst_24 {dimension_numbers = #tpu.dot_dimension_numbers<[1], [0], [0], [1], [0, 0, 1, 1], [], []>} : vector<128x4xbf16>, vector<4x8xbf16>, vector<128x8xf32> -> vector<128x8xf32>
    %44 = arith.addf %38, %43 : vector<128x8xf32>
    %45 = vector.extract_strided_slice %1 {offsets = [2, 1, 0], sizes = [8, 16, 4], strides = [1, 1, 1]} : vector<10x18x4xbf16> to vector<8x16x4xbf16>
    %46 = vector.shape_cast %45 : vector<8x16x4xbf16> to vector<128x4xbf16>
    %c7 = arith.constant 7 : index
    %c0_25 = arith.constant 0 : index
    %c0_26 = arith.constant 0 : index
    %47 = vector.load %arg2[%c7, %c0_25, %c0_26] : memref<9x4x8xbf16, #tpu.memory_space<vmem>>, vector<1x4x8xbf16>
    %48 = vector.shape_cast %47 : vector<1x4x8xbf16> to vector<4x8xbf16>
    %cst_27 = arith.constant dense<0.000000e+00> : vector<128x8xf32>
    %49 = tpu.matmul %46, %48, %cst_27 {dimension_numbers = #tpu.dot_dimension_numbers<[1], [0], [0], [1], [0, 0, 1, 1], [], []>} : vector<128x4xbf16>, vector<4x8xbf16>, vector<128x8xf32> -> vector<128x8xf32>
    %50 = arith.addf %44, %49 : vector<128x8xf32>
    %51 = vector.extract_strided_slice %1 {offsets = [2, 2, 0], sizes = [8, 16, 4], strides = [1, 1, 1]} : vector<10x18x4xbf16> to vector<8x16x4xbf16>
    %52 = vector.shape_cast %51 : vector<8x16x4xbf16> to vector<128x4xbf16>
    %c8 = arith.constant 8 : index
    %c0_28 = arith.constant 0 : index
    %c0_29 = arith.constant 0 : index
    %53 = vector.load %arg2[%c8, %c0_28, %c0_29] : memref<9x4x8xbf16, #tpu.memory_space<vmem>>, vector<1x4x8xbf16>
    %54 = vector.shape_cast %53 : vector<1x4x8xbf16> to vector<4x8xbf16>
    %cst_30 = arith.constant dense<0.000000e+00> : vector<128x8xf32>
    %55 = tpu.matmul %52, %54, %cst_30 {dimension_numbers = #tpu.dot_dimension_numbers<[1], [0], [0], [1], [0, 0, 1, 1], [], []>} : vector<128x4xbf16>, vector<4x8xbf16>, vector<128x8xf32> -> vector<128x8xf32>
    %56 = arith.addf %50, %55 : vector<128x8xf32>
    %c0_31 = arith.constant 0 : index
    %c0_32 = arith.constant 0 : index
    %57 = vector.load %arg3[%c0_31, %c0_32] : memref<1x8xf32, #tpu.memory_space<vmem>>, vector<1x8xf32>
    %58 = vector.broadcast %57 : vector<1x8xf32> to vector<128x8xf32>
    %59 = arith.mulf %56, %58 : vector<128x8xf32>
    %c0_33 = arith.constant 0 : index
    %c0_34 = arith.constant 0 : index
    %60 = vector.load %arg4[%c0_33, %c0_34] : memref<1x8xf32, #tpu.memory_space<vmem>>, vector<1x8xf32>
    %61 = vector.broadcast %60 : vector<1x8xf32> to vector<128x8xf32>
    %62 = arith.addf %59, %61 : vector<128x8xf32>
    %cst_35 = arith.constant 0.000000e+00 : f32
    %63 = vector.broadcast %cst_35 : f32 to vector<128x8xf32>
    %64 = arith.cmpf oge, %62, %63 : vector<128x8xf32>
    %cst_36 = arith.constant 0.00999999977 : f32
    %65 = vector.broadcast %cst_36 : f32 to vector<128x8xf32>
    %66 = arith.mulf %65, %62 : vector<128x8xf32>
    %67 = arith.select %64, %62, %66 : vector<128x8xi1>, vector<128x8xf32>
    %68 = arith.truncf %67 : vector<128x8xf32> to vector<128x8xbf16>
    %c0_37 = arith.constant 0 : index
    %c0_38 = arith.constant 0 : index
    %c0_39 = arith.constant 0 : index
    %69 = vector.load %arg5[%c0_37, %c0_38, %c0_39] : memref<1x128x8xbf16, #tpu.memory_space<vmem>>, vector<1x128x8xbf16>
    %70 = vector.shape_cast %69 : vector<1x128x8xbf16> to vector<128x8xbf16>
    %71 = vector.shape_cast %68 : vector<128x8xbf16> to vector<1x128x8xbf16>
    tpu.vector_store %arg5[%c0_37, %c0_38, %c0_39], %71 {strides = array<i32>} : memref<1x128x8xbf16, #tpu.memory_space<vmem>>, vector<1x128x8xbf16>,
    return
  }
  func.func @transform_0(%arg0: i32) -> (i32, i32, i32, i32) {
    %c0_i32 = arith.constant 0 : i32
    %c0_i32_0 = arith.constant 0 : i32
    %c0_i32_1 = arith.constant 0 : i32
    %c0_i32_2 = arith.constant 0 : i32
    return %arg0, %c0_i32, %c0_i32_0, %c0_i32_1 : i32, i32, i32, i32
  }
  func.func @transform_1(%arg0: i32) -> (i32, i32, i32) {
    %c0_i32 = arith.constant 0 : i32
    %c0_i32_0 = arith.constant 0 : i32
    %c0_i32_1 = arith.constant 0 : i32
    %c0_i32_2 = arith.constant 0 : i32
    return %c0_i32, %c0_i32_0, %c0_i32_1 : i32, i32, i32
  }
  func.func @transform_2(%arg0: i32) -> (i32, i32) {
    %c0_i32 = arith.constant 0 : i32
    %c0_i32_0 = arith.constant 0 : i32
    %c0_i32_1 = arith.constant 0 : i32
    return %c0_i32, %c0_i32_0 : i32, i32
  }
  func.func @transform_3(%arg0: i32) -> (i32, i32) {
    %c0_i32 = arith.constant 0 : i32
    %c0_i32_0 = arith.constant 0 : i32
    %c0_i32_1 = arith.constant 0 : i32
    return %c0_i32, %c0_i32_0 : i32, i32
  }
  func.func @transform_4(%arg0: i32) -> (i32, i32, i32) {
    %c0_i32 = arith.constant 0 : i32
    %c0_i32_0 = arith.constant 0 : i32
    %c0_i32_1 = arith.constant 0 : i32
    return %arg0, %c0_i32, %c0_i32_0 : i32, i32, i32
  }
}

module attributes {stable_mosaic.version = 11 : i64} {
  func.func @_conv_stats_kernel(%arg0: i32, %arg1: memref<1x10x18x8xbf16, #tpu.memory_space<vmem>>, %arg2: memref<9x8x4xbf16, #tpu.memory_space<vmem>>, %arg3: memref<1x4xf32, #tpu.memory_space<vmem>>, %arg4: memref<1x4xf32, #tpu.memory_space<vmem>>) attributes {dimension_semantics = [#tpu.dimension_semantics<arbitrary>], iteration_bounds = array<i64: 4>, scalar_prefetch = 0 : i64, scratch_operands = 0 : i64, tpu.core_type = #tpu.core_type<tc>, window_params = [{transform_indices = @transform_0, window_bounds = array<i64: 1, 10, 18, 8>}, {pipeline_mode = #tpu.pipeline_mode<synchronous>, transform_indices = @transform_1, window_bounds = array<i64: 9, 8, 4>}, {pipeline_mode = #tpu.pipeline_mode<synchronous>, transform_indices = @transform_2, window_bounds = array<i64: 1, 4>}, {pipeline_mode = #tpu.pipeline_mode<synchronous>, transform_indices = @transform_3, window_bounds = array<i64: 1, 4>}]} {
    %c0_i32 = arith.constant 0 : i32
    %0 = arith.cmpi eq, %arg0, %c0_i32 : i32
    %1 = arith.extui %0 : i1 to i32
    %c0_i32_0 = arith.constant 0 : i32
    %2 = arith.cmpi ne, %1, %c0_i32_0 : i32
    scf.if %2 {
      %cst_42 = arith.constant 0.000000e+00 : f32
      %71 = vector.broadcast %cst_42 : f32 to vector<1x4xf32>
      %c0_43 = arith.constant 0 : index
      %c0_44 = arith.constant 0 : index
      %72 = vector.load %arg3[%c0_43, %c0_44] : memref<1x4xf32, #tpu.memory_space<vmem>>, vector<1x4xf32>
      tpu.vector_store %arg3[%c0_43, %c0_44], %71 {strides = array<i32>} : memref<1x4xf32, #tpu.memory_space<vmem>>, vector<1x4xf32>,
      %cst_45 = arith.constant 0.000000e+00 : f32
      %73 = vector.broadcast %cst_45 : f32 to vector<1x4xf32>
      %c0_46 = arith.constant 0 : index
      %c0_47 = arith.constant 0 : index
      %74 = vector.load %arg4[%c0_46, %c0_47] : memref<1x4xf32, #tpu.memory_space<vmem>>, vector<1x4xf32>
      tpu.vector_store %arg4[%c0_46, %c0_47], %73 {strides = array<i32>} : memref<1x4xf32, #tpu.memory_space<vmem>>, vector<1x4xf32>,
    } else {
    }
    %c0 = arith.constant 0 : index
    %c0_1 = arith.constant 0 : index
    %c0_2 = arith.constant 0 : index
    %c0_3 = arith.constant 0 : index
    %3 = vector.load %arg1[%c0, %c0_1, %c0_2, %c0_3] : memref<1x10x18x8xbf16, #tpu.memory_space<vmem>>, vector<1x10x18x8xbf16>
    %4 = vector.shape_cast %3 : vector<1x10x18x8xbf16> to vector<10x18x8xbf16>
    %cst = arith.constant 0.000000e+00 : f32
    %5 = vector.broadcast %cst : f32 to vector<128x4xf32>
    %6 = vector.extract_strided_slice %4 {offsets = [0, 0, 0], sizes = [8, 16, 8], strides = [1, 1, 1]} : vector<10x18x8xbf16> to vector<8x16x8xbf16>
    %7 = vector.shape_cast %6 : vector<8x16x8xbf16> to vector<128x8xbf16>
    %c0_4 = arith.constant 0 : index
    %c0_5 = arith.constant 0 : index
    %c0_6 = arith.constant 0 : index
    %8 = vector.load %arg2[%c0_4, %c0_5, %c0_6] : memref<9x8x4xbf16, #tpu.memory_space<vmem>>, vector<1x8x4xbf16>
    %9 = vector.shape_cast %8 : vector<1x8x4xbf16> to vector<8x4xbf16>
    %cst_7 = arith.constant dense<0.000000e+00> : vector<128x4xf32>
    %10 = tpu.matmul %7, %9, %cst_7 {dimension_numbers = #tpu.dot_dimension_numbers<[1], [0], [0], [1], [0, 0, 1, 1], [], []>} : vector<128x8xbf16>, vector<8x4xbf16>, vector<128x4xf32> -> vector<128x4xf32>
    %11 = arith.addf %5, %10 : vector<128x4xf32>
    %12 = vector.extract_strided_slice %4 {offsets = [0, 1, 0], sizes = [8, 16, 8], strides = [1, 1, 1]} : vector<10x18x8xbf16> to vector<8x16x8xbf16>
    %13 = vector.shape_cast %12 : vector<8x16x8xbf16> to vector<128x8xbf16>
    %c1 = arith.constant 1 : index
    %c0_8 = arith.constant 0 : index
    %c0_9 = arith.constant 0 : index
    %14 = vector.load %arg2[%c1, %c0_8, %c0_9] : memref<9x8x4xbf16, #tpu.memory_space<vmem>>, vector<1x8x4xbf16>
    %15 = vector.shape_cast %14 : vector<1x8x4xbf16> to vector<8x4xbf16>
    %cst_10 = arith.constant dense<0.000000e+00> : vector<128x4xf32>
    %16 = tpu.matmul %13, %15, %cst_10 {dimension_numbers = #tpu.dot_dimension_numbers<[1], [0], [0], [1], [0, 0, 1, 1], [], []>} : vector<128x8xbf16>, vector<8x4xbf16>, vector<128x4xf32> -> vector<128x4xf32>
    %17 = arith.addf %11, %16 : vector<128x4xf32>
    %18 = vector.extract_strided_slice %4 {offsets = [0, 2, 0], sizes = [8, 16, 8], strides = [1, 1, 1]} : vector<10x18x8xbf16> to vector<8x16x8xbf16>
    %19 = vector.shape_cast %18 : vector<8x16x8xbf16> to vector<128x8xbf16>
    %c2 = arith.constant 2 : index
    %c0_11 = arith.constant 0 : index
    %c0_12 = arith.constant 0 : index
    %20 = vector.load %arg2[%c2, %c0_11, %c0_12] : memref<9x8x4xbf16, #tpu.memory_space<vmem>>, vector<1x8x4xbf16>
    %21 = vector.shape_cast %20 : vector<1x8x4xbf16> to vector<8x4xbf16>
    %cst_13 = arith.constant dense<0.000000e+00> : vector<128x4xf32>
    %22 = tpu.matmul %19, %21, %cst_13 {dimension_numbers = #tpu.dot_dimension_numbers<[1], [0], [0], [1], [0, 0, 1, 1], [], []>} : vector<128x8xbf16>, vector<8x4xbf16>, vector<128x4xf32> -> vector<128x4xf32>
    %23 = arith.addf %17, %22 : vector<128x4xf32>
    %24 = vector.extract_strided_slice %4 {offsets = [1, 0, 0], sizes = [8, 16, 8], strides = [1, 1, 1]} : vector<10x18x8xbf16> to vector<8x16x8xbf16>
    %25 = vector.shape_cast %24 : vector<8x16x8xbf16> to vector<128x8xbf16>
    %c3 = arith.constant 3 : index
    %c0_14 = arith.constant 0 : index
    %c0_15 = arith.constant 0 : index
    %26 = vector.load %arg2[%c3, %c0_14, %c0_15] : memref<9x8x4xbf16, #tpu.memory_space<vmem>>, vector<1x8x4xbf16>
    %27 = vector.shape_cast %26 : vector<1x8x4xbf16> to vector<8x4xbf16>
    %cst_16 = arith.constant dense<0.000000e+00> : vector<128x4xf32>
    %28 = tpu.matmul %25, %27, %cst_16 {dimension_numbers = #tpu.dot_dimension_numbers<[1], [0], [0], [1], [0, 0, 1, 1], [], []>} : vector<128x8xbf16>, vector<8x4xbf16>, vector<128x4xf32> -> vector<128x4xf32>
    %29 = arith.addf %23, %28 : vector<128x4xf32>
    %30 = vector.extract_strided_slice %4 {offsets = [1, 1, 0], sizes = [8, 16, 8], strides = [1, 1, 1]} : vector<10x18x8xbf16> to vector<8x16x8xbf16>
    %31 = vector.shape_cast %30 : vector<8x16x8xbf16> to vector<128x8xbf16>
    %c4 = arith.constant 4 : index
    %c0_17 = arith.constant 0 : index
    %c0_18 = arith.constant 0 : index
    %32 = vector.load %arg2[%c4, %c0_17, %c0_18] : memref<9x8x4xbf16, #tpu.memory_space<vmem>>, vector<1x8x4xbf16>
    %33 = vector.shape_cast %32 : vector<1x8x4xbf16> to vector<8x4xbf16>
    %cst_19 = arith.constant dense<0.000000e+00> : vector<128x4xf32>
    %34 = tpu.matmul %31, %33, %cst_19 {dimension_numbers = #tpu.dot_dimension_numbers<[1], [0], [0], [1], [0, 0, 1, 1], [], []>} : vector<128x8xbf16>, vector<8x4xbf16>, vector<128x4xf32> -> vector<128x4xf32>
    %35 = arith.addf %29, %34 : vector<128x4xf32>
    %36 = vector.extract_strided_slice %4 {offsets = [1, 2, 0], sizes = [8, 16, 8], strides = [1, 1, 1]} : vector<10x18x8xbf16> to vector<8x16x8xbf16>
    %37 = vector.shape_cast %36 : vector<8x16x8xbf16> to vector<128x8xbf16>
    %c5 = arith.constant 5 : index
    %c0_20 = arith.constant 0 : index
    %c0_21 = arith.constant 0 : index
    %38 = vector.load %arg2[%c5, %c0_20, %c0_21] : memref<9x8x4xbf16, #tpu.memory_space<vmem>>, vector<1x8x4xbf16>
    %39 = vector.shape_cast %38 : vector<1x8x4xbf16> to vector<8x4xbf16>
    %cst_22 = arith.constant dense<0.000000e+00> : vector<128x4xf32>
    %40 = tpu.matmul %37, %39, %cst_22 {dimension_numbers = #tpu.dot_dimension_numbers<[1], [0], [0], [1], [0, 0, 1, 1], [], []>} : vector<128x8xbf16>, vector<8x4xbf16>, vector<128x4xf32> -> vector<128x4xf32>
    %41 = arith.addf %35, %40 : vector<128x4xf32>
    %42 = vector.extract_strided_slice %4 {offsets = [2, 0, 0], sizes = [8, 16, 8], strides = [1, 1, 1]} : vector<10x18x8xbf16> to vector<8x16x8xbf16>
    %43 = vector.shape_cast %42 : vector<8x16x8xbf16> to vector<128x8xbf16>
    %c6 = arith.constant 6 : index
    %c0_23 = arith.constant 0 : index
    %c0_24 = arith.constant 0 : index
    %44 = vector.load %arg2[%c6, %c0_23, %c0_24] : memref<9x8x4xbf16, #tpu.memory_space<vmem>>, vector<1x8x4xbf16>
    %45 = vector.shape_cast %44 : vector<1x8x4xbf16> to vector<8x4xbf16>
    %cst_25 = arith.constant dense<0.000000e+00> : vector<128x4xf32>
    %46 = tpu.matmul %43, %45, %cst_25 {dimension_numbers = #tpu.dot_dimension_numbers<[1], [0], [0], [1], [0, 0, 1, 1], [], []>} : vector<128x8xbf16>, vector<8x4xbf16>, vector<128x4xf32> -> vector<128x4xf32>
    %47 = arith.addf %41, %46 : vector<128x4xf32>
    %48 = vector.extract_strided_slice %4 {offsets = [2, 1, 0], sizes = [8, 16, 8], strides = [1, 1, 1]} : vector<10x18x8xbf16> to vector<8x16x8xbf16>
    %49 = vector.shape_cast %48 : vector<8x16x8xbf16> to vector<128x8xbf16>
    %c7 = arith.constant 7 : index
    %c0_26 = arith.constant 0 : index
    %c0_27 = arith.constant 0 : index
    %50 = vector.load %arg2[%c7, %c0_26, %c0_27] : memref<9x8x4xbf16, #tpu.memory_space<vmem>>, vector<1x8x4xbf16>
    %51 = vector.shape_cast %50 : vector<1x8x4xbf16> to vector<8x4xbf16>
    %cst_28 = arith.constant dense<0.000000e+00> : vector<128x4xf32>
    %52 = tpu.matmul %49, %51, %cst_28 {dimension_numbers = #tpu.dot_dimension_numbers<[1], [0], [0], [1], [0, 0, 1, 1], [], []>} : vector<128x8xbf16>, vector<8x4xbf16>, vector<128x4xf32> -> vector<128x4xf32>
    %53 = arith.addf %47, %52 : vector<128x4xf32>
    %54 = vector.extract_strided_slice %4 {offsets = [2, 2, 0], sizes = [8, 16, 8], strides = [1, 1, 1]} : vector<10x18x8xbf16> to vector<8x16x8xbf16>
    %55 = vector.shape_cast %54 : vector<8x16x8xbf16> to vector<128x8xbf16>
    %c8 = arith.constant 8 : index
    %c0_29 = arith.constant 0 : index
    %c0_30 = arith.constant 0 : index
    %56 = vector.load %arg2[%c8, %c0_29, %c0_30] : memref<9x8x4xbf16, #tpu.memory_space<vmem>>, vector<1x8x4xbf16>
    %57 = vector.shape_cast %56 : vector<1x8x4xbf16> to vector<8x4xbf16>
    %cst_31 = arith.constant dense<0.000000e+00> : vector<128x4xf32>
    %58 = tpu.matmul %55, %57, %cst_31 {dimension_numbers = #tpu.dot_dimension_numbers<[1], [0], [0], [1], [0, 0, 1, 1], [], []>} : vector<128x8xbf16>, vector<8x4xbf16>, vector<128x4xf32> -> vector<128x4xf32>
    %59 = arith.addf %53, %58 : vector<128x4xf32>
    %c0_32 = arith.constant 0 : index
    %c0_33 = arith.constant 0 : index
    %60 = vector.load %arg3[%c0_32, %c0_33] : memref<1x4xf32, #tpu.memory_space<vmem>>, vector<1x4xf32>
    %cst_34 = arith.constant dense<0.000000e+00> : vector<4xf32>
    %61 = vector.multi_reduction <add>, %59, %cst_34 [0] : vector<128x4xf32> to vector<4xf32>
    %62 = vector.shape_cast %61 : vector<4xf32> to vector<1x4xf32>
    %63 = arith.addf %60, %62 : vector<1x4xf32>
    %c0_35 = arith.constant 0 : index
    %c0_36 = arith.constant 0 : index
    %64 = vector.load %arg3[%c0_35, %c0_36] : memref<1x4xf32, #tpu.memory_space<vmem>>, vector<1x4xf32>
    tpu.vector_store %arg3[%c0_35, %c0_36], %63 {strides = array<i32>} : memref<1x4xf32, #tpu.memory_space<vmem>>, vector<1x4xf32>,
    %c0_37 = arith.constant 0 : index
    %c0_38 = arith.constant 0 : index
    %65 = vector.load %arg4[%c0_37, %c0_38] : memref<1x4xf32, #tpu.memory_space<vmem>>, vector<1x4xf32>
    %66 = arith.mulf %59, %59 : vector<128x4xf32>
    %cst_39 = arith.constant dense<0.000000e+00> : vector<4xf32>
    %67 = vector.multi_reduction <add>, %66, %cst_39 [0] : vector<128x4xf32> to vector<4xf32>
    %68 = vector.shape_cast %67 : vector<4xf32> to vector<1x4xf32>
    %69 = arith.addf %65, %68 : vector<1x4xf32>
    %c0_40 = arith.constant 0 : index
    %c0_41 = arith.constant 0 : index
    %70 = vector.load %arg4[%c0_40, %c0_41] : memref<1x4xf32, #tpu.memory_space<vmem>>, vector<1x4xf32>
    tpu.vector_store %arg4[%c0_40, %c0_41], %69 {strides = array<i32>} : memref<1x4xf32, #tpu.memory_space<vmem>>, vector<1x4xf32>,
    return
  }
  func.func @transform_0(%arg0: i32) -> (i32, i32, i32, i32) {
    %c0_i32 = arith.constant 0 : i32
    %c0_i32_0 = arith.constant 0 : i32
    %c0_i32_1 = arith.constant 0 : i32
    %c0_i32_2 = arith.constant 0 : i32
    return %arg0, %c0_i32, %c0_i32_0, %c0_i32_1 : i32, i32, i32, i32
  }
  func.func @transform_1(%arg0: i32) -> (i32, i32, i32) {
    %c0_i32 = arith.constant 0 : i32
    %c0_i32_0 = arith.constant 0 : i32
    %c0_i32_1 = arith.constant 0 : i32
    %c0_i32_2 = arith.constant 0 : i32
    return %c0_i32, %c0_i32_0, %c0_i32_1 : i32, i32, i32
  }
  func.func @transform_2(%arg0: i32) -> (i32, i32) {
    %c0_i32 = arith.constant 0 : i32
    %c0_i32_0 = arith.constant 0 : i32
    %c0_i32_1 = arith.constant 0 : i32
    return %c0_i32, %c0_i32_0 : i32, i32
  }
  func.func @transform_3(%arg0: i32) -> (i32, i32) {
    %c0_i32 = arith.constant 0 : i32
    %c0_i32_0 = arith.constant 0 : i32
    %c0_i32_1 = arith.constant 0 : i32
    return %c0_i32, %c0_i32_0 : i32, i32
  }
}

module attributes {stable_mosaic.version = 11 : i64} {
  func.func @_conv_apply_kernel(%arg0: i32, %arg1: memref<1x10x18x8xbf16, #tpu.memory_space<vmem>>, %arg2: memref<9x8x4xbf16, #tpu.memory_space<vmem>>, %arg3: memref<1x4xf32, #tpu.memory_space<vmem>>, %arg4: memref<1x4xf32, #tpu.memory_space<vmem>>, %arg5: memref<1x128x4xf32, #tpu.memory_space<vmem>>, %arg6: memref<1x128x4xbf16, #tpu.memory_space<vmem>>) attributes {dimension_semantics = [#tpu.dimension_semantics<parallel>], iteration_bounds = array<i64: 4>, scalar_prefetch = 0 : i64, scratch_operands = 0 : i64, tpu.core_type = #tpu.core_type<tc>, window_params = [{transform_indices = @transform_0, window_bounds = array<i64: 1, 10, 18, 8>}, {pipeline_mode = #tpu.pipeline_mode<synchronous>, transform_indices = @transform_1, window_bounds = array<i64: 9, 8, 4>}, {pipeline_mode = #tpu.pipeline_mode<synchronous>, transform_indices = @transform_2, window_bounds = array<i64: 1, 4>}, {pipeline_mode = #tpu.pipeline_mode<synchronous>, transform_indices = @transform_3, window_bounds = array<i64: 1, 4>}, {transform_indices = @transform_4, window_bounds = array<i64: 1, 128, 4>}, {transform_indices = @transform_5, window_bounds = array<i64: 1, 128, 4>}]} {
    %c0 = arith.constant 0 : index
    %c0_0 = arith.constant 0 : index
    %c0_1 = arith.constant 0 : index
    %c0_2 = arith.constant 0 : index
    %0 = vector.load %arg1[%c0, %c0_0, %c0_1, %c0_2] : memref<1x10x18x8xbf16, #tpu.memory_space<vmem>>, vector<1x10x18x8xbf16>
    %1 = vector.shape_cast %0 : vector<1x10x18x8xbf16> to vector<10x18x8xbf16>
    %cst = arith.constant 0.000000e+00 : f32
    %2 = vector.broadcast %cst : f32 to vector<128x4xf32>
    %3 = vector.extract_strided_slice %1 {offsets = [0, 0, 0], sizes = [8, 16, 8], strides = [1, 1, 1]} : vector<10x18x8xbf16> to vector<8x16x8xbf16>
    %4 = vector.shape_cast %3 : vector<8x16x8xbf16> to vector<128x8xbf16>
    %c0_3 = arith.constant 0 : index
    %c0_4 = arith.constant 0 : index
    %c0_5 = arith.constant 0 : index
    %5 = vector.load %arg2[%c0_3, %c0_4, %c0_5] : memref<9x8x4xbf16, #tpu.memory_space<vmem>>, vector<1x8x4xbf16>
    %6 = vector.shape_cast %5 : vector<1x8x4xbf16> to vector<8x4xbf16>
    %cst_6 = arith.constant dense<0.000000e+00> : vector<128x4xf32>
    %7 = tpu.matmul %4, %6, %cst_6 {dimension_numbers = #tpu.dot_dimension_numbers<[1], [0], [0], [1], [0, 0, 1, 1], [], []>} : vector<128x8xbf16>, vector<8x4xbf16>, vector<128x4xf32> -> vector<128x4xf32>
    %8 = arith.addf %2, %7 : vector<128x4xf32>
    %9 = vector.extract_strided_slice %1 {offsets = [0, 1, 0], sizes = [8, 16, 8], strides = [1, 1, 1]} : vector<10x18x8xbf16> to vector<8x16x8xbf16>
    %10 = vector.shape_cast %9 : vector<8x16x8xbf16> to vector<128x8xbf16>
    %c1 = arith.constant 1 : index
    %c0_7 = arith.constant 0 : index
    %c0_8 = arith.constant 0 : index
    %11 = vector.load %arg2[%c1, %c0_7, %c0_8] : memref<9x8x4xbf16, #tpu.memory_space<vmem>>, vector<1x8x4xbf16>
    %12 = vector.shape_cast %11 : vector<1x8x4xbf16> to vector<8x4xbf16>
    %cst_9 = arith.constant dense<0.000000e+00> : vector<128x4xf32>
    %13 = tpu.matmul %10, %12, %cst_9 {dimension_numbers = #tpu.dot_dimension_numbers<[1], [0], [0], [1], [0, 0, 1, 1], [], []>} : vector<128x8xbf16>, vector<8x4xbf16>, vector<128x4xf32> -> vector<128x4xf32>
    %14 = arith.addf %8, %13 : vector<128x4xf32>
    %15 = vector.extract_strided_slice %1 {offsets = [0, 2, 0], sizes = [8, 16, 8], strides = [1, 1, 1]} : vector<10x18x8xbf16> to vector<8x16x8xbf16>
    %16 = vector.shape_cast %15 : vector<8x16x8xbf16> to vector<128x8xbf16>
    %c2 = arith.constant 2 : index
    %c0_10 = arith.constant 0 : index
    %c0_11 = arith.constant 0 : index
    %17 = vector.load %arg2[%c2, %c0_10, %c0_11] : memref<9x8x4xbf16, #tpu.memory_space<vmem>>, vector<1x8x4xbf16>
    %18 = vector.shape_cast %17 : vector<1x8x4xbf16> to vector<8x4xbf16>
    %cst_12 = arith.constant dense<0.000000e+00> : vector<128x4xf32>
    %19 = tpu.matmul %16, %18, %cst_12 {dimension_numbers = #tpu.dot_dimension_numbers<[1], [0], [0], [1], [0, 0, 1, 1], [], []>} : vector<128x8xbf16>, vector<8x4xbf16>, vector<128x4xf32> -> vector<128x4xf32>
    %20 = arith.addf %14, %19 : vector<128x4xf32>
    %21 = vector.extract_strided_slice %1 {offsets = [1, 0, 0], sizes = [8, 16, 8], strides = [1, 1, 1]} : vector<10x18x8xbf16> to vector<8x16x8xbf16>
    %22 = vector.shape_cast %21 : vector<8x16x8xbf16> to vector<128x8xbf16>
    %c3 = arith.constant 3 : index
    %c0_13 = arith.constant 0 : index
    %c0_14 = arith.constant 0 : index
    %23 = vector.load %arg2[%c3, %c0_13, %c0_14] : memref<9x8x4xbf16, #tpu.memory_space<vmem>>, vector<1x8x4xbf16>
    %24 = vector.shape_cast %23 : vector<1x8x4xbf16> to vector<8x4xbf16>
    %cst_15 = arith.constant dense<0.000000e+00> : vector<128x4xf32>
    %25 = tpu.matmul %22, %24, %cst_15 {dimension_numbers = #tpu.dot_dimension_numbers<[1], [0], [0], [1], [0, 0, 1, 1], [], []>} : vector<128x8xbf16>, vector<8x4xbf16>, vector<128x4xf32> -> vector<128x4xf32>
    %26 = arith.addf %20, %25 : vector<128x4xf32>
    %27 = vector.extract_strided_slice %1 {offsets = [1, 1, 0], sizes = [8, 16, 8], strides = [1, 1, 1]} : vector<10x18x8xbf16> to vector<8x16x8xbf16>
    %28 = vector.shape_cast %27 : vector<8x16x8xbf16> to vector<128x8xbf16>
    %c4 = arith.constant 4 : index
    %c0_16 = arith.constant 0 : index
    %c0_17 = arith.constant 0 : index
    %29 = vector.load %arg2[%c4, %c0_16, %c0_17] : memref<9x8x4xbf16, #tpu.memory_space<vmem>>, vector<1x8x4xbf16>
    %30 = vector.shape_cast %29 : vector<1x8x4xbf16> to vector<8x4xbf16>
    %cst_18 = arith.constant dense<0.000000e+00> : vector<128x4xf32>
    %31 = tpu.matmul %28, %30, %cst_18 {dimension_numbers = #tpu.dot_dimension_numbers<[1], [0], [0], [1], [0, 0, 1, 1], [], []>} : vector<128x8xbf16>, vector<8x4xbf16>, vector<128x4xf32> -> vector<128x4xf32>
    %32 = arith.addf %26, %31 : vector<128x4xf32>
    %33 = vector.extract_strided_slice %1 {offsets = [1, 2, 0], sizes = [8, 16, 8], strides = [1, 1, 1]} : vector<10x18x8xbf16> to vector<8x16x8xbf16>
    %34 = vector.shape_cast %33 : vector<8x16x8xbf16> to vector<128x8xbf16>
    %c5 = arith.constant 5 : index
    %c0_19 = arith.constant 0 : index
    %c0_20 = arith.constant 0 : index
    %35 = vector.load %arg2[%c5, %c0_19, %c0_20] : memref<9x8x4xbf16, #tpu.memory_space<vmem>>, vector<1x8x4xbf16>
    %36 = vector.shape_cast %35 : vector<1x8x4xbf16> to vector<8x4xbf16>
    %cst_21 = arith.constant dense<0.000000e+00> : vector<128x4xf32>
    %37 = tpu.matmul %34, %36, %cst_21 {dimension_numbers = #tpu.dot_dimension_numbers<[1], [0], [0], [1], [0, 0, 1, 1], [], []>} : vector<128x8xbf16>, vector<8x4xbf16>, vector<128x4xf32> -> vector<128x4xf32>
    %38 = arith.addf %32, %37 : vector<128x4xf32>
    %39 = vector.extract_strided_slice %1 {offsets = [2, 0, 0], sizes = [8, 16, 8], strides = [1, 1, 1]} : vector<10x18x8xbf16> to vector<8x16x8xbf16>
    %40 = vector.shape_cast %39 : vector<8x16x8xbf16> to vector<128x8xbf16>
    %c6 = arith.constant 6 : index
    %c0_22 = arith.constant 0 : index
    %c0_23 = arith.constant 0 : index
    %41 = vector.load %arg2[%c6, %c0_22, %c0_23] : memref<9x8x4xbf16, #tpu.memory_space<vmem>>, vector<1x8x4xbf16>
    %42 = vector.shape_cast %41 : vector<1x8x4xbf16> to vector<8x4xbf16>
    %cst_24 = arith.constant dense<0.000000e+00> : vector<128x4xf32>
    %43 = tpu.matmul %40, %42, %cst_24 {dimension_numbers = #tpu.dot_dimension_numbers<[1], [0], [0], [1], [0, 0, 1, 1], [], []>} : vector<128x8xbf16>, vector<8x4xbf16>, vector<128x4xf32> -> vector<128x4xf32>
    %44 = arith.addf %38, %43 : vector<128x4xf32>
    %45 = vector.extract_strided_slice %1 {offsets = [2, 1, 0], sizes = [8, 16, 8], strides = [1, 1, 1]} : vector<10x18x8xbf16> to vector<8x16x8xbf16>
    %46 = vector.shape_cast %45 : vector<8x16x8xbf16> to vector<128x8xbf16>
    %c7 = arith.constant 7 : index
    %c0_25 = arith.constant 0 : index
    %c0_26 = arith.constant 0 : index
    %47 = vector.load %arg2[%c7, %c0_25, %c0_26] : memref<9x8x4xbf16, #tpu.memory_space<vmem>>, vector<1x8x4xbf16>
    %48 = vector.shape_cast %47 : vector<1x8x4xbf16> to vector<8x4xbf16>
    %cst_27 = arith.constant dense<0.000000e+00> : vector<128x4xf32>
    %49 = tpu.matmul %46, %48, %cst_27 {dimension_numbers = #tpu.dot_dimension_numbers<[1], [0], [0], [1], [0, 0, 1, 1], [], []>} : vector<128x8xbf16>, vector<8x4xbf16>, vector<128x4xf32> -> vector<128x4xf32>
    %50 = arith.addf %44, %49 : vector<128x4xf32>
    %51 = vector.extract_strided_slice %1 {offsets = [2, 2, 0], sizes = [8, 16, 8], strides = [1, 1, 1]} : vector<10x18x8xbf16> to vector<8x16x8xbf16>
    %52 = vector.shape_cast %51 : vector<8x16x8xbf16> to vector<128x8xbf16>
    %c8 = arith.constant 8 : index
    %c0_28 = arith.constant 0 : index
    %c0_29 = arith.constant 0 : index
    %53 = vector.load %arg2[%c8, %c0_28, %c0_29] : memref<9x8x4xbf16, #tpu.memory_space<vmem>>, vector<1x8x4xbf16>
    %54 = vector.shape_cast %53 : vector<1x8x4xbf16> to vector<8x4xbf16>
    %cst_30 = arith.constant dense<0.000000e+00> : vector<128x4xf32>
    %55 = tpu.matmul %52, %54, %cst_30 {dimension_numbers = #tpu.dot_dimension_numbers<[1], [0], [0], [1], [0, 0, 1, 1], [], []>} : vector<128x8xbf16>, vector<8x4xbf16>, vector<128x4xf32> -> vector<128x4xf32>
    %56 = arith.addf %50, %55 : vector<128x4xf32>
    %c0_31 = arith.constant 0 : index
    %c0_32 = arith.constant 0 : index
    %57 = vector.load %arg3[%c0_31, %c0_32] : memref<1x4xf32, #tpu.memory_space<vmem>>, vector<1x4xf32>
    %58 = vector.broadcast %57 : vector<1x4xf32> to vector<128x4xf32>
    %59 = arith.mulf %56, %58 : vector<128x4xf32>
    %c0_33 = arith.constant 0 : index
    %c0_34 = arith.constant 0 : index
    %60 = vector.load %arg4[%c0_33, %c0_34] : memref<1x4xf32, #tpu.memory_space<vmem>>, vector<1x4xf32>
    %61 = vector.broadcast %60 : vector<1x4xf32> to vector<128x4xf32>
    %62 = arith.addf %59, %61 : vector<128x4xf32>
    %c0_35 = arith.constant 0 : index
    %c0_36 = arith.constant 0 : index
    %c0_37 = arith.constant 0 : index
    %63 = vector.load %arg5[%c0_35, %c0_36, %c0_37] : memref<1x128x4xf32, #tpu.memory_space<vmem>>, vector<1x128x4xf32>
    %64 = vector.shape_cast %63 : vector<1x128x4xf32> to vector<128x4xf32>
    %65 = arith.addf %62, %64 : vector<128x4xf32>
    %cst_38 = arith.constant 0.000000e+00 : f32
    %66 = vector.broadcast %cst_38 : f32 to vector<128x4xf32>
    %67 = arith.cmpf oge, %65, %66 : vector<128x4xf32>
    %cst_39 = arith.constant 0.00999999977 : f32
    %68 = vector.broadcast %cst_39 : f32 to vector<128x4xf32>
    %69 = arith.mulf %68, %65 : vector<128x4xf32>
    %70 = arith.select %67, %65, %69 : vector<128x4xi1>, vector<128x4xf32>
    %71 = arith.truncf %70 : vector<128x4xf32> to vector<128x4xbf16>
    %c0_40 = arith.constant 0 : index
    %c0_41 = arith.constant 0 : index
    %c0_42 = arith.constant 0 : index
    %72 = vector.load %arg6[%c0_40, %c0_41, %c0_42] : memref<1x128x4xbf16, #tpu.memory_space<vmem>>, vector<1x128x4xbf16>
    %73 = vector.shape_cast %72 : vector<1x128x4xbf16> to vector<128x4xbf16>
    %74 = vector.shape_cast %71 : vector<128x4xbf16> to vector<1x128x4xbf16>
    tpu.vector_store %arg6[%c0_40, %c0_41, %c0_42], %74 {strides = array<i32>} : memref<1x128x4xbf16, #tpu.memory_space<vmem>>, vector<1x128x4xbf16>,
    return
  }
  func.func @transform_0(%arg0: i32) -> (i32, i32, i32, i32) {
    %c0_i32 = arith.constant 0 : i32
    %c0_i32_0 = arith.constant 0 : i32
    %c0_i32_1 = arith.constant 0 : i32
    %c0_i32_2 = arith.constant 0 : i32
    return %arg0, %c0_i32, %c0_i32_0, %c0_i32_1 : i32, i32, i32, i32
  }
  func.func @transform_1(%arg0: i32) -> (i32, i32, i32) {
    %c0_i32 = arith.constant 0 : i32
    %c0_i32_0 = arith.constant 0 : i32
    %c0_i32_1 = arith.constant 0 : i32
    %c0_i32_2 = arith.constant 0 : i32
    return %c0_i32, %c0_i32_0, %c0_i32_1 : i32, i32, i32
  }
  func.func @transform_2(%arg0: i32) -> (i32, i32) {
    %c0_i32 = arith.constant 0 : i32
    %c0_i32_0 = arith.constant 0 : i32
    %c0_i32_1 = arith.constant 0 : i32
    return %c0_i32, %c0_i32_0 : i32, i32
  }
  func.func @transform_3(%arg0: i32) -> (i32, i32) {
    %c0_i32 = arith.constant 0 : i32
    %c0_i32_0 = arith.constant 0 : i32
    %c0_i32_1 = arith.constant 0 : i32
    return %c0_i32, %c0_i32_0 : i32, i32
  }
  func.func @transform_4(%arg0: i32) -> (i32, i32, i32) {
    %c0_i32 = arith.constant 0 : i32
    %c0_i32_0 = arith.constant 0 : i32
    %c0_i32_1 = arith.constant 0 : i32
    return %arg0, %c0_i32, %c0_i32_0 : i32, i32, i32
  }
  func.func @transform_5(%arg0: i32) -> (i32, i32, i32) {
    %c0_i32 = arith.constant 0 : i32
    %c0_i32_0 = arith.constant 0 : i32
    %c0_i32_1 = arith.constant 0 : i32
    return %arg0, %c0_i32, %c0_i32_0 : i32, i32, i32
  }
}

module attributes {stable_mosaic.version = 11 : i64} {
  func.func @_conv_apply_kernel(%arg0: i32, %arg1: memref<1x10x18x4xbf16, #tpu.memory_space<vmem>>, %arg2: memref<9x4x8xbf16, #tpu.memory_space<vmem>>, %arg3: memref<1x8xf32, #tpu.memory_space<vmem>>, %arg4: memref<1x8xf32, #tpu.memory_space<vmem>>, %arg5: memref<1x128x8xf32, #tpu.memory_space<vmem>>) attributes {dimension_semantics = [#tpu.dimension_semantics<parallel>], iteration_bounds = array<i64: 4>, scalar_prefetch = 0 : i64, scratch_operands = 0 : i64, tpu.core_type = #tpu.core_type<tc>, window_params = [{transform_indices = @transform_0, window_bounds = array<i64: 1, 10, 18, 4>}, {pipeline_mode = #tpu.pipeline_mode<synchronous>, transform_indices = @transform_1, window_bounds = array<i64: 9, 4, 8>}, {pipeline_mode = #tpu.pipeline_mode<synchronous>, transform_indices = @transform_2, window_bounds = array<i64: 1, 8>}, {pipeline_mode = #tpu.pipeline_mode<synchronous>, transform_indices = @transform_3, window_bounds = array<i64: 1, 8>}, {transform_indices = @transform_4, window_bounds = array<i64: 1, 128, 8>}]} {
    %c0 = arith.constant 0 : index
    %c0_0 = arith.constant 0 : index
    %c0_1 = arith.constant 0 : index
    %c0_2 = arith.constant 0 : index
    %0 = vector.load %arg1[%c0, %c0_0, %c0_1, %c0_2] : memref<1x10x18x4xbf16, #tpu.memory_space<vmem>>, vector<1x10x18x4xbf16>
    %1 = vector.shape_cast %0 : vector<1x10x18x4xbf16> to vector<10x18x4xbf16>
    %cst = arith.constant 0.000000e+00 : f32
    %2 = vector.broadcast %cst : f32 to vector<128x8xf32>
    %3 = vector.extract_strided_slice %1 {offsets = [0, 0, 0], sizes = [8, 16, 4], strides = [1, 1, 1]} : vector<10x18x4xbf16> to vector<8x16x4xbf16>
    %4 = vector.shape_cast %3 : vector<8x16x4xbf16> to vector<128x4xbf16>
    %c0_3 = arith.constant 0 : index
    %c0_4 = arith.constant 0 : index
    %c0_5 = arith.constant 0 : index
    %5 = vector.load %arg2[%c0_3, %c0_4, %c0_5] : memref<9x4x8xbf16, #tpu.memory_space<vmem>>, vector<1x4x8xbf16>
    %6 = vector.shape_cast %5 : vector<1x4x8xbf16> to vector<4x8xbf16>
    %cst_6 = arith.constant dense<0.000000e+00> : vector<128x8xf32>
    %7 = tpu.matmul %4, %6, %cst_6 {dimension_numbers = #tpu.dot_dimension_numbers<[1], [0], [0], [1], [0, 0, 1, 1], [], []>} : vector<128x4xbf16>, vector<4x8xbf16>, vector<128x8xf32> -> vector<128x8xf32>
    %8 = arith.addf %2, %7 : vector<128x8xf32>
    %9 = vector.extract_strided_slice %1 {offsets = [0, 1, 0], sizes = [8, 16, 4], strides = [1, 1, 1]} : vector<10x18x4xbf16> to vector<8x16x4xbf16>
    %10 = vector.shape_cast %9 : vector<8x16x4xbf16> to vector<128x4xbf16>
    %c1 = arith.constant 1 : index
    %c0_7 = arith.constant 0 : index
    %c0_8 = arith.constant 0 : index
    %11 = vector.load %arg2[%c1, %c0_7, %c0_8] : memref<9x4x8xbf16, #tpu.memory_space<vmem>>, vector<1x4x8xbf16>
    %12 = vector.shape_cast %11 : vector<1x4x8xbf16> to vector<4x8xbf16>
    %cst_9 = arith.constant dense<0.000000e+00> : vector<128x8xf32>
    %13 = tpu.matmul %10, %12, %cst_9 {dimension_numbers = #tpu.dot_dimension_numbers<[1], [0], [0], [1], [0, 0, 1, 1], [], []>} : vector<128x4xbf16>, vector<4x8xbf16>, vector<128x8xf32> -> vector<128x8xf32>
    %14 = arith.addf %8, %13 : vector<128x8xf32>
    %15 = vector.extract_strided_slice %1 {offsets = [0, 2, 0], sizes = [8, 16, 4], strides = [1, 1, 1]} : vector<10x18x4xbf16> to vector<8x16x4xbf16>
    %16 = vector.shape_cast %15 : vector<8x16x4xbf16> to vector<128x4xbf16>
    %c2 = arith.constant 2 : index
    %c0_10 = arith.constant 0 : index
    %c0_11 = arith.constant 0 : index
    %17 = vector.load %arg2[%c2, %c0_10, %c0_11] : memref<9x4x8xbf16, #tpu.memory_space<vmem>>, vector<1x4x8xbf16>
    %18 = vector.shape_cast %17 : vector<1x4x8xbf16> to vector<4x8xbf16>
    %cst_12 = arith.constant dense<0.000000e+00> : vector<128x8xf32>
    %19 = tpu.matmul %16, %18, %cst_12 {dimension_numbers = #tpu.dot_dimension_numbers<[1], [0], [0], [1], [0, 0, 1, 1], [], []>} : vector<128x4xbf16>, vector<4x8xbf16>, vector<128x8xf32> -> vector<128x8xf32>
    %20 = arith.addf %14, %19 : vector<128x8xf32>
    %21 = vector.extract_strided_slice %1 {offsets = [1, 0, 0], sizes = [8, 16, 4], strides = [1, 1, 1]} : vector<10x18x4xbf16> to vector<8x16x4xbf16>
    %22 = vector.shape_cast %21 : vector<8x16x4xbf16> to vector<128x4xbf16>
    %c3 = arith.constant 3 : index
    %c0_13 = arith.constant 0 : index
    %c0_14 = arith.constant 0 : index
    %23 = vector.load %arg2[%c3, %c0_13, %c0_14] : memref<9x4x8xbf16, #tpu.memory_space<vmem>>, vector<1x4x8xbf16>
    %24 = vector.shape_cast %23 : vector<1x4x8xbf16> to vector<4x8xbf16>
    %cst_15 = arith.constant dense<0.000000e+00> : vector<128x8xf32>
    %25 = tpu.matmul %22, %24, %cst_15 {dimension_numbers = #tpu.dot_dimension_numbers<[1], [0], [0], [1], [0, 0, 1, 1], [], []>} : vector<128x4xbf16>, vector<4x8xbf16>, vector<128x8xf32> -> vector<128x8xf32>
    %26 = arith.addf %20, %25 : vector<128x8xf32>
    %27 = vector.extract_strided_slice %1 {offsets = [1, 1, 0], sizes = [8, 16, 4], strides = [1, 1, 1]} : vector<10x18x4xbf16> to vector<8x16x4xbf16>
    %28 = vector.shape_cast %27 : vector<8x16x4xbf16> to vector<128x4xbf16>
    %c4 = arith.constant 4 : index
    %c0_16 = arith.constant 0 : index
    %c0_17 = arith.constant 0 : index
    %29 = vector.load %arg2[%c4, %c0_16, %c0_17] : memref<9x4x8xbf16, #tpu.memory_space<vmem>>, vector<1x4x8xbf16>
    %30 = vector.shape_cast %29 : vector<1x4x8xbf16> to vector<4x8xbf16>
    %cst_18 = arith.constant dense<0.000000e+00> : vector<128x8xf32>
    %31 = tpu.matmul %28, %30, %cst_18 {dimension_numbers = #tpu.dot_dimension_numbers<[1], [0], [0], [1], [0, 0, 1, 1], [], []>} : vector<128x4xbf16>, vector<4x8xbf16>, vector<128x8xf32> -> vector<128x8xf32>
    %32 = arith.addf %26, %31 : vector<128x8xf32>
    %33 = vector.extract_strided_slice %1 {offsets = [1, 2, 0], sizes = [8, 16, 4], strides = [1, 1, 1]} : vector<10x18x4xbf16> to vector<8x16x4xbf16>
    %34 = vector.shape_cast %33 : vector<8x16x4xbf16> to vector<128x4xbf16>
    %c5 = arith.constant 5 : index
    %c0_19 = arith.constant 0 : index
    %c0_20 = arith.constant 0 : index
    %35 = vector.load %arg2[%c5, %c0_19, %c0_20] : memref<9x4x8xbf16, #tpu.memory_space<vmem>>, vector<1x4x8xbf16>
    %36 = vector.shape_cast %35 : vector<1x4x8xbf16> to vector<4x8xbf16>
    %cst_21 = arith.constant dense<0.000000e+00> : vector<128x8xf32>
    %37 = tpu.matmul %34, %36, %cst_21 {dimension_numbers = #tpu.dot_dimension_numbers<[1], [0], [0], [1], [0, 0, 1, 1], [], []>} : vector<128x4xbf16>, vector<4x8xbf16>, vector<128x8xf32> -> vector<128x8xf32>
    %38 = arith.addf %32, %37 : vector<128x8xf32>
    %39 = vector.extract_strided_slice %1 {offsets = [2, 0, 0], sizes = [8, 16, 4], strides = [1, 1, 1]} : vector<10x18x4xbf16> to vector<8x16x4xbf16>
    %40 = vector.shape_cast %39 : vector<8x16x4xbf16> to vector<128x4xbf16>
    %c6 = arith.constant 6 : index
    %c0_22 = arith.constant 0 : index
    %c0_23 = arith.constant 0 : index
    %41 = vector.load %arg2[%c6, %c0_22, %c0_23] : memref<9x4x8xbf16, #tpu.memory_space<vmem>>, vector<1x4x8xbf16>
    %42 = vector.shape_cast %41 : vector<1x4x8xbf16> to vector<4x8xbf16>
    %cst_24 = arith.constant dense<0.000000e+00> : vector<128x8xf32>
    %43 = tpu.matmul %40, %42, %cst_24 {dimension_numbers = #tpu.dot_dimension_numbers<[1], [0], [0], [1], [0, 0, 1, 1], [], []>} : vector<128x4xbf16>, vector<4x8xbf16>, vector<128x8xf32> -> vector<128x8xf32>
    %44 = arith.addf %38, %43 : vector<128x8xf32>
    %45 = vector.extract_strided_slice %1 {offsets = [2, 1, 0], sizes = [8, 16, 4], strides = [1, 1, 1]} : vector<10x18x4xbf16> to vector<8x16x4xbf16>
    %46 = vector.shape_cast %45 : vector<8x16x4xbf16> to vector<128x4xbf16>
    %c7 = arith.constant 7 : index
    %c0_25 = arith.constant 0 : index
    %c0_26 = arith.constant 0 : index
    %47 = vector.load %arg2[%c7, %c0_25, %c0_26] : memref<9x4x8xbf16, #tpu.memory_space<vmem>>, vector<1x4x8xbf16>
    %48 = vector.shape_cast %47 : vector<1x4x8xbf16> to vector<4x8xbf16>
    %cst_27 = arith.constant dense<0.000000e+00> : vector<128x8xf32>
    %49 = tpu.matmul %46, %48, %cst_27 {dimension_numbers = #tpu.dot_dimension_numbers<[1], [0], [0], [1], [0, 0, 1, 1], [], []>} : vector<128x4xbf16>, vector<4x8xbf16>, vector<128x8xf32> -> vector<128x8xf32>
    %50 = arith.addf %44, %49 : vector<128x8xf32>
    %51 = vector.extract_strided_slice %1 {offsets = [2, 2, 0], sizes = [8, 16, 4], strides = [1, 1, 1]} : vector<10x18x4xbf16> to vector<8x16x4xbf16>
    %52 = vector.shape_cast %51 : vector<8x16x4xbf16> to vector<128x4xbf16>
    %c8 = arith.constant 8 : index
    %c0_28 = arith.constant 0 : index
    %c0_29 = arith.constant 0 : index
    %53 = vector.load %arg2[%c8, %c0_28, %c0_29] : memref<9x4x8xbf16, #tpu.memory_space<vmem>>, vector<1x4x8xbf16>
    %54 = vector.shape_cast %53 : vector<1x4x8xbf16> to vector<4x8xbf16>
    %cst_30 = arith.constant dense<0.000000e+00> : vector<128x8xf32>
    %55 = tpu.matmul %52, %54, %cst_30 {dimension_numbers = #tpu.dot_dimension_numbers<[1], [0], [0], [1], [0, 0, 1, 1], [], []>} : vector<128x4xbf16>, vector<4x8xbf16>, vector<128x8xf32> -> vector<128x8xf32>
    %56 = arith.addf %50, %55 : vector<128x8xf32>
    %c0_31 = arith.constant 0 : index
    %c0_32 = arith.constant 0 : index
    %57 = vector.load %arg3[%c0_31, %c0_32] : memref<1x8xf32, #tpu.memory_space<vmem>>, vector<1x8xf32>
    %58 = vector.broadcast %57 : vector<1x8xf32> to vector<128x8xf32>
    %59 = arith.mulf %56, %58 : vector<128x8xf32>
    %c0_33 = arith.constant 0 : index
    %c0_34 = arith.constant 0 : index
    %60 = vector.load %arg4[%c0_33, %c0_34] : memref<1x8xf32, #tpu.memory_space<vmem>>, vector<1x8xf32>
    %61 = vector.broadcast %60 : vector<1x8xf32> to vector<128x8xf32>
    %62 = arith.addf %59, %61 : vector<128x8xf32>
    %cst_35 = arith.constant 0.000000e+00 : f32
    %63 = vector.broadcast %cst_35 : f32 to vector<128x8xf32>
    %64 = arith.cmpf oge, %62, %63 : vector<128x8xf32>
    %cst_36 = arith.constant 0.00999999977 : f32
    %65 = vector.broadcast %cst_36 : f32 to vector<128x8xf32>
    %66 = arith.mulf %65, %62 : vector<128x8xf32>
    %67 = arith.select %64, %62, %66 : vector<128x8xi1>, vector<128x8xf32>
    %c0_37 = arith.constant 0 : index
    %c0_38 = arith.constant 0 : index
    %c0_39 = arith.constant 0 : index
    %68 = vector.load %arg5[%c0_37, %c0_38, %c0_39] : memref<1x128x8xf32, #tpu.memory_space<vmem>>, vector<1x128x8xf32>
    %69 = vector.shape_cast %68 : vector<1x128x8xf32> to vector<128x8xf32>
    %70 = vector.shape_cast %67 : vector<128x8xf32> to vector<1x128x8xf32>
    tpu.vector_store %arg5[%c0_37, %c0_38, %c0_39], %70 {strides = array<i32>} : memref<1x128x8xf32, #tpu.memory_space<vmem>>, vector<1x128x8xf32>,
    return
  }
  func.func @transform_0(%arg0: i32) -> (i32, i32, i32, i32) {
    %c0_i32 = arith.constant 0 : i32
    %c0_i32_0 = arith.constant 0 : i32
    %c0_i32_1 = arith.constant 0 : i32
    %c0_i32_2 = arith.constant 0 : i32
    return %arg0, %c0_i32, %c0_i32_0, %c0_i32_1 : i32, i32, i32, i32
  }
  func.func @transform_1(%arg0: i32) -> (i32, i32, i32) {
    %c0_i32 = arith.constant 0 : i32
    %c0_i32_0 = arith.constant 0 : i32
    %c0_i32_1 = arith.constant 0 : i32
    %c0_i32_2 = arith.constant 0 : i32
    return %c0_i32, %c0_i32_0, %c0_i32_1 : i32, i32, i32
  }
  func.func @transform_2(%arg0: i32) -> (i32, i32) {
    %c0_i32 = arith.constant 0 : i32
    %c0_i32_0 = arith.constant 0 : i32
    %c0_i32_1 = arith.constant 0 : i32
    return %c0_i32, %c0_i32_0 : i32, i32
  }
  func.func @transform_3(%arg0: i32) -> (i32, i32) {
    %c0_i32 = arith.constant 0 : i32
    %c0_i32_0 = arith.constant 0 : i32
    %c0_i32_1 = arith.constant 0 : i32
    return %c0_i32, %c0_i32_0 : i32, i32
  }
  func.func @transform_4(%arg0: i32) -> (i32, i32, i32) {
    %c0_i32 = arith.constant 0 : i32
    %c0_i32_0 = arith.constant 0 : i32
    %c0_i32_1 = arith.constant 0 : i32
    return %arg0, %c0_i32, %c0_i32_0 : i32, i32, i32
  }
}

</mosaic_0001>

<bundles_post_ra>
// kernel: double_conv_forward.7
= control target key start
LH: loop header
LB: loop body
LE: loop exit
PB: predicated region body
PF: predicated region fallthrough
CT: control target
= control target key end

     0   :  { %s1728_s15 = smov 0   ;;  %s2390_s0 = inlined_call_operand.vmem [shape: bf16[4,10,18,4], index: 0, kind: input, shape index: {}]   ;;  %s2391_s1 = inlined_call_operand.vmem [shape: bf16[9,4,8], index: 1, kind: input, shape index: {}]   ;;  %s2392_s2 = inlined_call_operand.vmem [shape: f32[1,8], index: 2, kind: input, shape index: {}]   ;;  %s2393_s3 = inlined_call_operand.vmem [shape: f32[1,8], index: 3, kind: input, shape index: {}]   ;;  %s2394_s4 = inlined_call_operand.vmem [shape: bf16[4,128,8], index: 4, kind: output, shape index: {}]  }
   0x1 LB: > { %s1530_s16 = sadd.s32 4294967295, %s1701_s15   ;;  %p1534_p0 = scmp.ge.s32.totalorder %s1701_s15, 1  ;;  %s1701_s15 = sphi %s1728_s15, %s14_s15  }
   0x2   : > { %p162_p1 = scmp.lt.s32.totalorder %s1701_s15, 5 }
   0x4   : > { %p163_p2 = pnand %p1534_p0, %p162_p1 }
   0x5   : > { %p188_p3 = scmp.lt.s32.totalorder (!%p163_p2), %s1530_s16, 3 }
   0x6   : > { %166 = sbr.rel (%p163_p2) target bundleno = 468 (0x1d4), region = 36 }
   0xb   : > { %v1538_v0 = vld [vmem:[%s2391_s1 + $0x2] sm:$0x3]  ;;  %vm476_vm0 = vcmask 1041408   ;;  %v1595_v2 = vld [vmem:[%s2391_s1 + $0x4] sm:$0x3]  ;;  %s2400_s16 = smov (!%p188_p3, %s1530_s16), 3 }
   0xc   : > { %v478_v1 = vsel %vm476_vm0, %v1538_v0, 0  ;;  %v763_v3 = vsel %vm476_vm0, %v1595_v2, 0  ;;  %v1604_v4 = vld [vmem:[%s2391_s1 + $0x6] sm:$0x3]  ;;  %v229_v5 = vld [vmem:[%s2391_s1] sm:$0x3] }
   0xd   : > { %1681 = vmatpush.bf16.msra.mxu1 %v478_v1  ;;  %1682 = vmatpush.bf16.msra.mxu2 %v478_v1  ;;  %v1617_v6 = vld [vmem:[%s2391_s1 + $0x8] sm:$0x3]  ;;  %s1684_s27 = smul.u32 120, %s2400_s16  ;;  %v841_v7 = vsel %vm476_vm0, %v1604_v4, 0  ;;  %v594_v8 = vsel %vm476_vm0, %v229_v5, 0  ;;  %vm451_vm3 = vcmask 31744  }
   0xe   : > { %1683 = vmatpush.bf16.msra.mxu3 %v478_v1  ;;  %487 = vmatpush.bf16.msra.mxu0 %v478_v1  ;;  %v941_v9 = vsel %vm476_vm0, %v1617_v6, 0  ;;  %vm230_vm1 = vsmask.f32 3328  ;;  %vm231_vm2 = vsmask.f32 7440  ;;  %vm653_vm5 = vcmask 1042432  }
   0xf   : > { %s1762_s30 = scalar_lea.vmem %s2390_s0, %s1684_s27  ;;  %vm1800_vm4 = vmor %vm230_vm1, %vm231_vm2  ;;  %vm654_vm6 = vcmask 1046532   ;;  %s1670_s19 = sshll.u32 %s2400_s16, 6  ;;  %vm1458_vm9 = vcmask 60416  }
  0x10   : > { %v1765_v10 = vld [vmem:[%s1762_s30 + $0x18] sm:$0xf]  ;;  %v1768_v11 = vld [vmem:[%s1762_s30 + $0x1c] sm:$0xf]  ;;  %v1771_v12 = vld [vmem:[%s1762_s30 + $0x20] sm:$0x1]  ;;  %s2309_s22 = scalar_lea.vmem %s2394_s4, %s1670_s19 }
  0x11   : > { %772 = vmatpush.bf16.msrb.mxu2 %v763_v3  ;;  %603 = vmatpush.bf16.msrb.mxu1 %v594_v8  ;;  %v282_v13 = vshrl.u32 %v1765_v10, 16  ;;  %v285_v14 = vshll.u32 %v1765_v10, 16  ;;  %v291_v15 = vshll.u32 %v1768_v11, 16  ;;  %v295_v16 = vshrl.u32 %v1768_v11, 16  ;;  %v1778_v17 = vld [vmem:[%s1762_s30 + $0x30] sm:$0xf]  ;;  %vm1954_vm7 = vmor %vm653_vm5, %vm654_vm6 }
  0x12   : > { %850 = vmatpush.bf16.msrb.mxu3 %v841_v7  ;;  %950 = vmatpush.bf16.msrb.mxu0 %v941_v9  ;;  %v301_v18 = vshll.u32 %v1771_v12, 16  ;;  %v1782_v19 = vld [vmem:[%s1762_s30 + $0x34] sm:$0xf]  ;;  %v1785_v20 = vld [vmem:[%s1762_s30 + $0x38] sm:$0x1]  ;;  %v330_v21 = vshrl.u32 %v1778_v17, 16 }
  0x13   : > { %v284_v22 = vrot.slane %v282_v13, 4  ;;  %v287_v23 = vrot.slane %v285_v14, 5  ;;  %v293_v24 = vrot.slane %v291_v15, 5  ;;  %v297_v25 = vrot.slane %v295_v16, 4  ;;  %v1789_v26 = vld [vmem:[%s1762_s30 + $0x48] sm:$0xf] }
  0x14   : > { %v303_v27 = vrot.slane %v301_v18, 5  ;;  %v332_v28 = vrot.slane %v330_v21, 4  ;;  %v333_v29 = vshll.u32 %v1778_v17, 16  ;;  %v339_v30 = vshll.u32 %v1782_v19, 16  ;;  %v1796_v35 = vld [vmem:[%s1762_s30 + $0x4c] sm:$0xf] }
  0x15   : > { %v288_v31 = vor.u32 %v287_v23, %v284_v22  ;;  %v298_v32 = vor.u32 %v297_v25, %v293_v24  ;;  %v343_v33 = vshrl.u32 %v1782_v19, 16  ;;  %v349_v34 = vshll.u32 %v1785_v20, 16  ;;  %v1807_v46 = vld [vmem:[%s1762_s30 + $0x50] sm:$0x1]  ;;  %v1816_v54 = vld [vmem:[%s1762_s30] sm:$0xf] }
  0x16   : > { %v335_v37 = vrot.slane %v333_v29, 5  ;;  %v341_v38 = vrot.slane %v339_v30, 5  ;;  %v378_v39 = vshrl.u32 %v1789_v26, 16  ;;  %v381_v40 = vshll.u32 %v1789_v26, 16  ;;  %v1824_v2 = vld [vmem:[%s1762_s30 + $0x4] sm:$0xf] }
  0x17   : > { %v289_v41 = vrot.slane %v288_v31, 4  ;;  %v299_v42 = vrot.slane %v298_v32, 4  ;;  %v345_v43 = vrot.slane %v343_v33, 4  ;;  %v351_v44 = vrot.slane %v349_v34, 5  ;;  %v1830_v8 = vld [vmem:[%s1762_s30 + $0x8] sm:$0x1] }
  0x18   : > { %v336_v45 = vor.u32 %v335_v37, %v332_v28  ;;  %v380_v47 = vrot.slane %v378_v39, 4  ;;  %v383_v48 = vrot.slane %v381_v40, 5  ;;  %v387_v49 = vshll.u32 %v1796_v35, 16  ;;  %v1838_v16 = vld [vmem:[%s1762_s30 + $0x24] sm:$0xf] }
  0x19   : > { %v294_v50 = vsel %vm1800_vm4, %v289_v41, %v293_v24  ;;  %v304_v51 = vsel %vm1800_vm4, %v299_v42, %v303_v27  ;;  %v346_v52 = vor.u32 %v345_v43, %v341_v38  ;;  %v391_v53 = vshrl.u32 %v1796_v35, 16  ;;  %v1847_v29 = vld [vmem:[%s1762_s30 + $0x28] sm:$0xf]  ;;  %v1852_v33 = vld [vmem:[%s1762_s30 + $0x2c] sm:$0x1] }
  0x1a   : > { %v431_v55 = vunpack.c.l.b16 %v294_v50  ;;  %v432_v56 = vunpack.c.l.b16 %v304_v51  ;;  %v337_v57 = vrot.slane %v336_v45, 4  ;;  %v384_v58 = vor.u32 %v383_v48, %v380_v47  ;;  %v1859_v41 = vld [vmem:[%s1762_s30 + $0x3c] sm:$0xf] }
  0x1b   : > { %v347_v59 = vrot.slane %v346_v52, 4  ;;  %v389_v60 = vrot.slane %v387_v49, 5  ;;  %v393_v61 = vrot.slane %v391_v53, 4  ;;  %v397_v62 = vshll.u32 %v1807_v46, 16 }
  0x1c   : > { %v1819_v63 = vpack.c.b16 %v432_v56, %v431_v55  ;;  %v342_v0 = vsel %vm1800_vm4, %v337_v57, %v341_v38  ;;  %v385_v1 = vrot.slane %v384_v58, 4  ;;  %v234_v3 = vshrl.u32 %v1816_v54, 16  ;;  %v1867_v55 = vld [vmem:[%s1762_s30 + $0x40] sm:$0xf] }
  0x1d   : > { %v352_v4 = vsel %vm1800_vm4, %v347_v59, %v351_v44  ;;  %v435_v5 = vunpack.c.l.b16 %v342_v0  ;;  %v394_v6 = vor.u32 %v393_v61, %v389_v60  ;;  %v399_v7 = vrot.slane %v397_v62, 5  ;;  %v1879_v62 = vld [vmem:[%s1762_s30 + $0x54] sm:$0xf] }
  0x1e   : > { %1541 = vmatmul.msk.bf16.vlgmr.msra.gmra.mxu1 %vm451_vm3, %v1819_v63  ;;  %v436_v9 = vunpack.c.l.b16 %v352_v4  ;;  %v390_v13 = vsel %vm1800_vm4, %v385_v1, %v389_v60  ;;  %v236_v14 = vrot.slane %v234_v3, 4  ;;  %v237_v15 = vshll.u32 %v1816_v54, 16  ;;  %v1875_v60 = vld [vmem:[%s1762_s30 + $0x44] sm:$0x1] }
  0x1f   : > { %v395_v18 = vrot.slane %v394_v6, 4  ;;  %v439_v21 = vunpack.c.l.b16 %v390_v13  ;;  %v243_v22 = vshll.u32 %v1824_v2, 16  ;;  %v247_v23 = vshrl.u32 %v1824_v2, 16 }
  0x20   : > { %v1842_v24 = vpack.c.b16 %v436_v9, %v435_v5  ;;  %v239_v25 = vrot.slane %v237_v15, 5  ;;  %v253_v27 = vshll.u32 %v1830_v8, 16  ;;  %v661_v28 = vrot.slane %v1830_v8, 5 }
  0x21   : > { %v400_v30 = vsel %vm1800_vm4, %v395_v18, %v399_v7  ;;  %v245_v31 = vrot.slane %v243_v22, 5  ;;  %v249_v32 = vrot.slane %v247_v23, 4  ;;  %v306_v34 = vshrl.u32 %v1838_v16, 16 }
  0x22   : > { %1543 = vmatmul.msk.bf16.vlgmr.msra.gmra.mxu2 %vm451_vm3, %v1842_v24  ;;  %v440_v37 = vunpack.c.l.b16 %v400_v30  ;;  %v240_v38 = vor.u32 %v239_v25, %v236_v14  ;;  %v255_v39 = vrot.slane %v253_v27, 5  ;;  %v309_v40 = vshll.u32 %v1838_v16, 16  ;;  %v1890_v27 = vld [vmem:[%s1762_s30 + $0x58] sm:$0xf]  ;;  %v1893_v30 = vld [vmem:[%s1762_s30 + $0x5c] sm:$0x1] }
  0x23   : > { %v250_v42 = vor.u32 %v249_v32, %v245_v31  ;;  %v308_v43 = vrot.slane %v306_v34, 4  ;;  %v315_v44 = vshll.u32 %v1847_v29, 16  ;;  %v319_v45 = vshrl.u32 %v1847_v29, 16 }
  0x24   : > { %v1863_v47 = vpack.c.b16 %v440_v37, %v439_v21  ;;  %v241_v48 = vrot.slane %v240_v38, 4  ;;  %v311_v49 = vrot.slane %v309_v40, 5  ;;  %v325_v50 = vshll.u32 %v1852_v33, 16  ;;  %v1898_v38 = vld [vmem:[%s1762_s30 + $0xc] sm:$0xf] }
  0x25   : > { %v251_v51 = vrot.slane %v250_v42, 4  ;;  %v317_v52 = vrot.slane %v315_v44, 5  ;;  %v321_v53 = vrot.slane %v319_v45, 4  ;;  %v354_v56 = vshrl.u32 %v1859_v41, 16 }
  0x26   : > { %1545 = vmatmul.msk.bf16.vlgmr.msra.gmra.mxu3 %vm451_vm3, %v1863_v47  ;;  %v246_v57 = vsel %vm1800_vm4, %v241_v48, %v245_v31  ;;  %v312_v58 = vor.u32 %v311_v49, %v308_v43  ;;  %v327_v59 = vrot.slane %v325_v50, 5  ;;  %v357_v61 = vshll.u32 %v1859_v41, 16 }
  0x27   : > { %v256_v0 = vsel %vm1800_vm4, %v251_v51, %v255_v39  ;;  %v427_v1 = vunpack.c.l.b16 %v246_v57  ;;  %v322_v3 = vor.u32 %v321_v53, %v317_v52  ;;  %v356_v4 = vrot.slane %v354_v56, 4  ;;  %v1910_v53 = vld [vmem:[%s1762_s30 + $0x10] sm:$0xf] }
  0x28   : > { %v428_v5 = vunpack.c.l.b16 %v256_v0  ;;  %v313_v6 = vrot.slane %v312_v58, 4  ;;  %v359_v7 = vrot.slane %v357_v61, 5  ;;  %v363_v9 = vshll.u32 %v1867_v55, 16  ;;  %v1914_v0 = vld [vmem:[%s1762_s30 + $0x14] sm:$0x1] }
  0x29   : > { %v323_v13 = vrot.slane %v322_v3, 4  ;;  %v367_v14 = vshrl.u32 %v1867_v55, 16  ;;  %v373_v15 = vshll.u32 %v1875_v60, 16  ;;  %v402_v18 = vshrl.u32 %v1879_v62, 16 }
  0x2a   : > { %v443_v21 = vpack.c.b16 %v428_v5, %v427_v1  ;;  %v318_v22 = vsel %vm1800_vm4, %v313_v6, %v317_v52  ;;  %v360_v23 = vor.u32 %v359_v7, %v356_v4  ;;  %v365_v25 = vrot.slane %v363_v9, 5 }
  0x2b   : > { %v328_v31 = vsel %vm1800_vm4, %v323_v13, %v327_v59  ;;  %v433_v32 = vunpack.c.l.b16 %v318_v22  ;;  %v369_v34 = vrot.slane %v367_v14, 4  ;;  %v375_v37 = vrot.slane %v373_v15, 5 }
  0x2c   : > { %1539 = vmatmul.msk.bf16.vlgmr.msra.gmra.mxu0 %vm451_vm3, %v443_v21  ;;  %v434_v39 = vunpack.c.l.b16 %v328_v31  ;;  %v361_v40 = vrot.slane %v360_v23, 4  ;;  %v404_v42 = vrot.slane %v402_v18, 4  ;;  %v405_v43 = vshll.u32 %v1879_v62, 16  ;;  %v1636_v31 = vld [vmem:[%s2391_s1 + $0xc] sm:$0x3] }
  0x2d   : > { %v370_v44 = vor.u32 %v369_v34, %v365_v25  ;;  %v411_v45 = vshll.u32 %v1890_v27, 16  ;;  %v415_v48 = vshrl.u32 %v1890_v27, 16  ;;  %v421_v49 = vshll.u32 %v1893_v30, 16 }
  0x2e   : > { %v1905_v50 = vpack.c.b16 %v434_v39, %v433_v32  ;;  %v366_v51 = vsel %vm1800_vm4, %v361_v40, %v365_v25  ;;  %v407_v52 = vrot.slane %v405_v43, 5  ;;  %v258_v56 = vshrl.u32 %v1898_v38, 16  ;;  %v1649_v40 = vld [vmem:[%s2391_s1 + $0xe] sm:$0x3] }
  0x2f   : > { %v371_v57 = vrot.slane %v370_v44, 4  ;;  %v437_v58 = vunpack.c.l.b16 %v366_v51  ;;  %v413_v59 = vrot.slane %v411_v45, 5  ;;  %v417_v61 = vrot.slane %v415_v48, 4 }
  0x30   : > { %1542 = vmatmul.msk.bf16.gmra.mxu1 %vm451_vm3, %v1905_v50  ;;  %v408_v1 = vor.u32 %v407_v52, %v404_v42  ;;  %v423_v3 = vrot.slane %v421_v49, 5  ;;  %v260_v4 = vrot.slane %v258_v56, 4  ;;  %v261_v5 = vshll.u32 %v1898_v38, 16  ;;  %v1627_v42 = vld [vmem:[%s2391_s1 + $0xa] sm:$0x3] }
  0x31   : > { %v376_v6 = vsel %vm1800_vm4, %v371_v57, %v375_v37  ;;  %v418_v7 = vor.u32 %v417_v61, %v413_v59  ;;  %v267_v9 = vshll.u32 %v1910_v53, 16  ;;  %v271_v13 = vshrl.u32 %v1910_v53, 16  ;;  %v1659_v56 = vld [vmem:[%s2391_s1 + $0x10] sm:$0x3] }
  0x32   : > { %v438_v14 = vunpack.c.l.b16 %v376_v6  ;;  %v409_v15 = vrot.slane %v408_v1, 4  ;;  %v263_v18 = vrot.slane %v261_v5, 5  ;;  %v277_v21 = vshll.u32 %v1914_v0, 16 }
  0x33   : > { %v419_v22 = vrot.slane %v418_v7, 4  ;;  %v269_v23 = vrot.slane %v267_v9, 5  ;;  %v273_v25 = vrot.slane %v271_v13, 4  ;;  %v1587_v51 = vrot.slane %v1816_v54, 9 }
  0x34   : > { %v1927_v32 = vpack.c.b16 %v438_v14, %v437_v58  ;;  %v414_v34 = vsel %vm1800_vm4, %v409_v15, %v413_v59  ;;  %v264_v37 = vor.u32 %v263_v18, %v260_v4  ;;  %v279_v39 = vrot.slane %v277_v21, 5  ;;  %v1671_v15 = vld [vmem:[%s1762_s30] sm:$0xff] }
  0x35   : > { %v424_v43 = vsel %vm1800_vm4, %v419_v22, %v423_v3  ;;  %v441_v44 = vunpack.c.l.b16 %v414_v34  ;;  %v274_v45 = vor.u32 %v273_v25, %v269_v23  ;;  %v658_v52 = vrot.slane %v1824_v2, 5 }
  0x36   : > { %1544 = vmatmul.msk.bf16.gmra.mxu2 %vm451_vm3, %v1927_v32  ;;  %v442_v48 = vunpack.c.l.b16 %v424_v43  ;;  %v265_v49 = vrot.slane %v264_v37, 4  ;;  %v1103_v58 = vsel %vm476_vm0, %v1636_v31, 0  ;;  %v1203_v59 = vsel %vm476_vm0, %v1649_v40, 0 }
  0x37   : > { %v275_v57 = vrot.slane %v274_v45, 4  ;;  %v1025_v61 = vsel %vm476_vm0, %v1627_v42, 0  ;;  %v660_v2 = vrot.slane %v658_v52, 4  ;;  %1112 = vmatpush.bf16.msra.mxu2 %v1103_v58  ;;  %1212 = vmatpush.bf16.msra.mxu3 %v1203_v59  ;;  %v1287_v6 = vsel %vm476_vm0, %v1659_v56, 0  ;;  %v1672_v42 = vld [vmem:[%s1762_s30 + $0xc] sm:$0xff] }
  0x38   : > { %v1949_v1 = vpack.c.b16 %v442_v48, %v441_v44  ;;  %v270_v3 = vsel %vm1800_vm4, %v265_v49, %v269_v23  ;;  %1034 = vmatpush.bf16.msra.mxu1 %v1025_v61  ;;  %1296 = vmatpush.bf16.msra.mxu0 %v1287_v6  ;;  %v659_v9 = vsel %vm1954_vm7, %v1587_v51, %v658_v52  ;;  %v1589_v22 = vrot.slane %v1765_v10, 9 }
  0x39   : > { %v280_v4 = vsel %vm1800_vm4, %v275_v57, %v279_v39  ;;  %v429_v5 = vunpack.c.l.b16 %v270_v3  ;;  %v662_v13 = vsel %vm1954_vm7, %v660_v2, %v661_v28  ;;  %v714_v18 = vunpack.c.l.b16 %v659_v9  ;;  %v2030_v3 = vld [vmem:[%s1762_s30 + $0x30] sm:$0xff] }
  0x3a   : > { %1546 = vmatmul.msk.bf16.gmra.mxu3 %vm451_vm3, %v1949_v1  ;;  %v430_v7 = vunpack.c.l.b16 %v280_v4  ;;  %v715_v21 = vunpack.c.l.b16 %v662_v13  ;;  %v672_v23 = vrot.slane %v1768_v11, 5  ;;  %v675_v25 = vrot.slane %v1771_v12, 5  ;;  %v2050_v13 = vld [vmem:[%s1762_s30 + $0x3c] sm:$0xff] }
  0x3b   : > { %v665_v34 = vrot.slane %v1910_v53, 5  ;;  %v1588_v10 = vrot.slane %v1898_v38, 9  ;;  %v668_v12 = vrot.slane %v1914_v0, 5  ;;  %v1590_v38 = vrot.slane %v1838_v16, 9  ;;  %v2005_v16 = vld [vmem:[%s1762_s30 + $0x18] sm:$0xff] }
  0x3c   : > { %v444_v14 = vpack.c.b16 %v430_v7, %v429_v5  ;;  %v730_v31 = vpack.c.b16 %v715_v21, %v714_v18  ;;  %v673_v8 = vsel %vm1954_vm7, %v1589_v22, %v672_v23  ;;  %v674_v28 = vrot.slane %v672_v23, 4 }
  0x3d   : > { %v718_v37 = vunpack.c.l.b16 %v673_v8  ;;  %v667_v11 = vrot.slane %v665_v34, 4  ;;  %v666_v53 = vsel %vm1954_vm7, %v1588_v10, %v665_v34  ;;  %v679_v0 = vrot.slane %v1847_v29, 5 }
  0x3e   : > { %1540 = vmatmul.msk.bf16.gmra.mxu0 %vm451_vm3, %v444_v14  ;;  %v676_v39 = vsel %vm1954_vm7, %v674_v28, %v675_v25  ;;  %v716_v45 = vunpack.c.l.b16 %v666_v53  ;;  %v682_v49 = vrot.slane %v1852_v33, 5  ;;  %v2018_v33 = vld [vmem:[%s1762_s30 + $0x24] sm:$0xff]  ;;  %v686_v61 = vrot.slane %v1782_v19, 5 }
  0x3f   : > { %v719_v40 = vunpack.c.l.b16 %v676_v39  ;;  %v669_v44 = vsel %vm1954_vm7, %v667_v11, %v668_v12  ;;  %v680_v52 = vsel %vm1954_vm7, %v1590_v38, %v679_v0  ;;  %v681_v56 = vrot.slane %v679_v0, 4  ;;  %v2070_v25 = vld [vmem:[%s1762_s30 + $0x48] sm:$0xff]  ;;  %v2106_v38 = vld [vmem:[%s1762_s30 + $0x54] sm:$0xff] }
  0x40   : > { %1579 = vmatmul.msk.bf16.vlgmr.msrb.gmra.mxu1 %vm451_vm3, %v1671_v15  ;;  %v717_v48 = vunpack.c.l.b16 %v669_v44  ;;  %v720_v57 = vunpack.c.l.b16 %v680_v52  ;;  %v1591_v2 = vrot.slane %v1778_v17, 9  ;;  %v688_v4 = vrot.slane %v686_v61, 4 }
  0x41   : > { %v1984_v43 = vpack.c.b16 %v719_v40, %v718_v37  ;;  %v683_v58 = vsel %vm1954_vm7, %v681_v56, %v682_v49  ;;  %v689_v5 = vrot.slane %v1785_v20, 5  ;;  %v693_v20 = vrot.slane %v1867_v55, 5  ;;  %v2085_v40 = vld [vmem:[%s1762_s30 + $0x60] sm:$0xf] }
  0x42   : > { %v1996_v51 = vpack.c.b16 %v717_v48, %v716_v45  ;;  %v721_v59 = vunpack.c.l.b16 %v683_v58  ;;  %v687_v6 = vsel %vm1954_vm7, %v1591_v2, %v686_v61  ;;  %v696_v18 = vrot.slane %v1875_v60, 5  ;;  %v2111_v61 = vld [vmem:[%s1762_s30 + $0x68] sm:$0x1] }
  0x43   : > { %v690_v19 = vsel %vm1954_vm7, %v688_v4, %v689_v5  ;;  %v722_v7 = vunpack.c.l.b16 %v687_v6  ;;  %v695_v15 = vrot.slane %v693_v20, 4  ;;  %v700_v60 = vrot.slane %v1796_v35, 5 }
  0x44   : > { %v2007_v29 = vpack.c.b16 %v721_v59, %v720_v57  ;;  %v723_v9 = vunpack.c.l.b16 %v690_v19  ;;  %v703_v28 = vrot.slane %v1807_v46, 5  ;;  %v2088_v46 = vld [vmem:[%s1762_s30 + $0x64] sm:$0xf]  ;;  %v909_v10 = vshrl.u32 %v2085_v40, 16 }
  0x45   : > { %v697_v55 = vsel %vm1954_vm7, %v695_v15, %v696_v18  ;;  %v702_v8 = vrot.slane %v700_v60, 4  ;;  %v912_v11 = vshll.u32 %v2085_v40, 16  ;;  %v918_v12 = vshll.u32 %v2088_v46, 16 }
  0x46   : > { %1596 = vmatmul.msk.bf16.vlgmr.msrb.gmra.mxu2 %vm451_vm3, %v730_v31  ;;  %v2044_v17 = vpack.c.b16 %v723_v9, %v722_v7  ;;  %v725_v23 = vunpack.c.l.b16 %v697_v55  ;;  %v1593_v31 = vrot.slane %v1789_v26, 9  ;;  %v707_v44 = vrot.slane %v1890_v27, 5 }
  0x47   : > { %v704_v35 = vsel %vm1954_vm7, %v702_v8, %v703_v28  ;;  %v922_v45 = vshrl.u32 %v2088_v46, 16  ;;  %v911_v0 = vrot.slane %v909_v10, 4  ;;  %v914_v49 = vrot.slane %v912_v11, 5  ;;  %v2143_v8 = vld [vmem:[%s1762_s30 + $0x60] sm:$0xff] }
  0x48   : > { %v701_v37 = vsel %vm1954_vm7, %v1593_v31, %v700_v60  ;;  %v727_v26 = vunpack.c.l.b16 %v704_v35  ;;  %v920_v52 = vrot.slane %v918_v12, 5  ;;  %v1594_v56 = vrot.slane %v1879_v62, 9 }
  0x49   : > { %v726_v39 = vunpack.c.l.b16 %v701_v37  ;;  %v709_v57 = vrot.slane %v707_v44, 4  ;;  %v710_v58 = vrot.slane %v1893_v30, 5  ;;  %v924_v59 = vrot.slane %v922_v45, 4 }
  0x4a   : > { %1609 = vmatmul.msk.bf16.vlgmr.msrb.gmra.mxu3 %vm451_vm3, %v1672_v42  ;;  %v915_v4 = vor.u32 %v914_v49, %v911_v0  ;;  %v708_v5 = vsel %vm1954_vm7, %v1594_v56, %v707_v44  ;;  %v928_v19 = vshll.u32 %v2111_v61, 16 }
  0x4b   : > { %v711_v6 = vsel %vm1954_vm7, %v709_v57, %v710_v58  ;;  %v925_v62 = vor.u32 %v924_v59, %v920_v52  ;;  %v728_v7 = vunpack.c.l.b16 %v708_v5 }
  0x4c   : > { %v729_v9 = vunpack.c.l.b16 %v711_v6  ;;  %v930_v18 = vrot.slane %v928_v19, 5 }
  0x4d   : > { %v926_v15 = vrot.slane %v925_v62, 4 }
  0x4e   : > { %1618 = vmatmul.msk.bf16.vlgmr.msrb.gmra.mxu0 %vm451_vm3, %v444_v14  ;;  %v1592_v14 = vrot.slane %v1859_v41, 9  ;;  %v2130_v55 = vpack.c.b16 %v729_v9, %v728_v7 }
  0x4f   : > { %v931_v60 = vsel %vm1800_vm4, %v926_v15, %v930_v18 }
  0x50   : > { %1580 = vmatmul.msk.bf16.gmra.mxu1 %vm451_vm3, %v1672_v42  ;;  %v694_v21 = vsel %vm1954_vm7, %v1592_v14, %v693_v20  ;;  %v2092_v42 = vpack.c.b16 %v727_v26, %v726_v39  ;;  %v916_v14 = vrot.slane %v915_v4, 4  ;;  %v935_v37 = vunpack.c.l.b16 %v931_v60 }
  0x51   : > { %v724_v22 = vunpack.c.l.b16 %v694_v21 }
  0x53   : > { %v2064_v41 = vpack.c.b16 %v725_v23, %v724_v22  ;;  %v921_v23 = vsel %vm1800_vm4, %v916_v14, %v920_v52 }
  0x54   : > { %v934_v28 = vunpack.c.l.b16 %v921_v23 }
  0x56   : > { %1597 = vmatmul.msk.bf16.gmra.mxu2 %vm451_vm3, %v1996_v51  ;;  %v2149_v39 = vpack.c.b16 %v935_v37, %v934_v28 }
  0x5a   : > { %1610 = vmatmul.msk.bf16.gmra.mxu3 %vm451_vm3, %v2005_v16 }
  0x5e   : > { %1619 = vmatmul.msk.bf16.gmra.mxu0 %vm451_vm3, %v1819_v63 }
  0x60   : > { %1581 = vmatmul.msk.bf16.gmra.mxu1 %vm451_vm3, %v2005_v16 }
  0x66   : > { %1598 = vmatmul.msk.bf16.gmra.mxu2 %vm451_vm3, %v1984_v43 }
  0x6a   : > { %1611 = vmatmul.msk.bf16.gmra.mxu3 %vm451_vm3, %v2018_v33 }
  0x6e   : > { %1620 = vmatmul.msk.bf16.gmra.mxu0 %vm451_vm3, %v1905_v50 }
  0x70   : > { %1582 = vmatmul.msk.bf16.gmra.mxu1 %vm451_vm3, %v2018_v33 }
  0x76   : > { %1599 = vmatmul.msk.bf16.gmra.mxu2 %vm451_vm3, %v2007_v29 }
  0x7a   : > { %1612 = vmatmul.msk.bf16.gmra.mxu3 %vm451_vm3, %v2030_v3 }
  0x7e   : > { %1621 = vmatmul.msk.bf16.gmra.mxu0 %vm451_vm3, %v1842_v24 }
  0x80   : > { %1583 = vmatmul.msk.bf16.gmra.mxu1 %vm451_vm3, %v2030_v3 }
  0x86   : > { %1600 = vmatmul.msk.bf16.gmra.mxu2 %vm451_vm3, %v2044_v17 }
  0x8a   : > { %1613 = vmatmul.msk.bf16.gmra.mxu3 %vm451_vm3, %v2050_v13 }
  0x8e   : > { %1622 = vmatmul.msk.bf16.gmra.mxu0 %vm451_vm3, %v1927_v32 }
  0x90   : > { %1584 = vmatmul.msk.bf16.gmra.mxu1 %vm451_vm3, %v2050_v13 }
  0x96   : > { %1601 = vmatmul.msk.bf16.gmra.mxu2 %vm451_vm3, %v2064_v41 }
  0x9a   : > { %1614 = vmatmul.msk.bf16.gmra.mxu3 %vm451_vm3, %v2070_v25 }
  0x9b   : > { %v2076_v34 = vpop.f32.mrf.mxu1 }
  0x9e   : > { %1623 = vmatmul.msk.bf16.gmra.mxu0 %vm451_vm3, %v1863_v47 }
  0xa0   : > { %1585 = vmatmul.msk.bf16.gmra.mxu1 %vm451_vm3, %v2070_v25 }
  0xa3   : > { %v2097_v53 = vpop.f32.mrf.mxu1 }
  0xa5   : > { %v2101_v48 = vpop.f32.mrf.mxu2 }
  0xa6   : > { %1602 = vmatmul.msk.bf16.gmra.mxu2 %vm451_vm3, %v2092_v42 }
  0xa9   : > { %v489_v27 = vpop.f32.mrf.mxu0  ;;  %v2113_v2 = vpop.f32.mrf.mxu3 }
  0xaa   : > { %1615 = vmatmul.msk.bf16.gmra.mxu3 %vm451_vm3, %v2106_v38 }
  0xad   : > { %v2122_v30 = vpop.f32.mrf.mxu1  ;;  %v2126_v20 = vpop.f32.mrf.mxu2 }
  0xae   : > { %1624 = vmatmul.msk.bf16.gmra.mxu0 %vm451_vm3, %v1949_v1 }
  0xb0   : > { %1586 = vmatmul.msk.bf16.gmra.mxu1 %vm451_vm3, %v2106_v38 }
  0xb1   : > { %v491_v21 = vpop.f32.mrf.mxu0  ;;  %v2132_v22 = vpop.f32.mrf.mxu3 }
  0xb5   : > { %v2138_v31 = vpop.f32.mrf.mxu1 }
  0xb6   : > { %1603 = vmatmul.msk.bf16.gmra.mxu2 %vm451_vm3, %v2130_v55 }
  0xb9   : > { %v2145_v35 = vpop.f32.mrf.mxu2 }
  0xba   : > { %1616 = vmatmul.msk.bf16.gmra.mxu3 %vm451_vm3, %v2143_v8 }
  0xbb   : > { %v494_v26 = vpop.f32.mrf.mxu0 }
  0xbd   : > { %v2151_v10 = vpop.f32.mrf.mxu3  ;;  %v605_v11 = vpop.f32.mrf.mxu1 }
  0xbe   : > { %1625 = vmatmul.msk.bf16.gmra.mxu0 %vm451_vm3, %v2149_v39  ;;  %v606_v12 = vadd.f32 %v605_v11, %v489_v27 }
  0xc0   : > { %1628 = vmatmul.msk.bf16.vlgmr.msra.gmra.mxu1 %vm451_vm3, %v1996_v51 }
  0xc1   : > { %v2157_v44 = vpop.f32.mrf.mxu2 }
  0xc3   : > { %v496_v45 = vpop.f32.mrf.mxu0 }
  0xc5   : > { %v2159_v0 = vpop.f32.mrf.mxu3  ;;  %v607_v49 = vpop.f32.mrf.mxu1 }
  0xc6   : > { %1641 = vmatmul.msk.bf16.vlgmr.msra.gmra.mxu2 %vm451_vm3, %v2005_v16  ;;  %v608_v52 = vadd.f32 %v607_v49, %v491_v21 }
  0xc9   : > { %v774_v56 = vpop.f32.mrf.mxu2 }
  0xca   : > { %1650 = vmatmul.msk.bf16.vlgmr.msra.gmra.mxu3 %vm451_vm3, %v1819_v63  ;;  %v814_v57 = vadd.f32 %v774_v56, %v606_v12 }
  0xcb   : > { %v952_v58 = vpop.f32.mrf.mxu0 }
  0xcd   : > { %v852_v59 = vpop.f32.mrf.mxu3  ;;  %v610_v27 = vpop.f32.mrf.mxu1 }
  0xce   : > { %1660 = vmatmul.msk.bf16.vlgmr.msra.gmra.mxu0 %vm451_vm3, %v1984_v43  ;;  %v892_v51 = vadd.f32 %v852_v59, %v814_v57  ;;  %v611_v4 = vadd.f32 %v610_v27, %v494_v26 }
  0xd0   : > { %1629 = vmatmul.msk.bf16.gmra.mxu1 %vm451_vm3, %v1984_v43  ;;  %v2169_v5 = vadd.f32 %v952_v58, %v892_v51 }
  0xd1   : > { %v776_v16 = vpop.f32.mrf.mxu2 }
  0xd2   : > { %v815_v6 = vadd.f32 %v776_v16, %v608_v52 }
  0xd3   : > { %v954_v62 = vpop.f32.mrf.mxu0 }
  0xd5   : > { %v854_v19 = vpop.f32.mrf.mxu3  ;;  %v612_v7 = vpop.f32.mrf.mxu1 }
  0xd6   : > { %v893_v63 = vadd.f32 %v854_v19, %v815_v6  ;;  %1642 = vmatmul.msk.bf16.gmra.mxu2 %vm451_vm3, %v2018_v33  ;;  %v613_v9 = vadd.f32 %v612_v7, %v496_v45 }
  0xd8   : > { %v2173_v14 = vadd.f32 %v954_v62, %v893_v63 }
  0xd9   : > { %v779_v15 = vpop.f32.mrf.mxu2 }
  0xda   : > { %1651 = vmatmul.msk.bf16.gmra.mxu3 %vm451_vm3, %v1905_v50  ;;  %v816_v18 = vadd.f32 %v779_v15, %v611_v4 }
  0xdb   : > { %v957_v43 = vpop.f32.mrf.mxu0 }
  0xdd   : > { %v857_v21 = vpop.f32.mrf.mxu3  ;;  %v615_v23 = vpop.f32.mrf.mxu1 }
  0xde   : > { %1661 = vmatmul.msk.bf16.gmra.mxu0 %vm451_vm3, %v2007_v29  ;;  %v894_v60 = vadd.f32 %v857_v21, %v816_v18  ;;  %v616_v28 = vadd.f32 %v615_v23, %v2076_v34 }
  0xe0   : > { %1630 = vmatmul.msk.bf16.gmra.mxu1 %vm451_vm3, %v2007_v29  ;;  %v2182_v33 = vadd.f32 %v957_v43, %v894_v60 }
  0xe1   : > { %v781_v37 = vpop.f32.mrf.mxu2 }
  0xe2   : > { %v817_v26 = vadd.f32 %v781_v37, %v613_v9 }
  0xe3   : > { %v959_v11 = vpop.f32.mrf.mxu0 }
  0xe5   : > { %v859_v12 = vpop.f32.mrf.mxu3  ;;  %v617_v50 = vpop.f32.mrf.mxu1 }
  0xe6   : > { %v895_v45 = vadd.f32 %v859_v12, %v817_v26  ;;  %1643 = vmatmul.msk.bf16.gmra.mxu2 %vm451_vm3, %v2030_v3  ;;  %v618_v49 = vadd.f32 %v617_v50, %v2097_v53 }
  0xe8   : > { %v2187_v52 = vadd.f32 %v959_v11, %v895_v45 }
  0xe9   : > { %v784_v56 = vpop.f32.mrf.mxu2 }
  0xea   : > { %1652 = vmatmul.msk.bf16.gmra.mxu3 %vm451_vm3, %v1842_v24  ;;  %v818_v29 = vadd.f32 %v784_v56, %v616_v28 }
  0xeb   : > { %v962_v34 = vpop.f32.mrf.mxu0 }
  0xed   : > { %v862_v57 = vpop.f32.mrf.mxu3  ;;  %v620_v58 = vpop.f32.mrf.mxu1 }
  0xee   : > { %1662 = vmatmul.msk.bf16.gmra.mxu0 %vm451_vm3, %v2044_v17  ;;  %v896_v59 = vadd.f32 %v862_v57, %v818_v29  ;;  %v621_v27 = vadd.f32 %v620_v58, %v2122_v30 }
  0xf0   : > { %1631 = vmatmul.msk.bf16.gmra.mxu1 %vm451_vm3, %v2044_v17  ;;  %v2196_v3 = vadd.f32 %v962_v34, %v896_v59 }
  0xf1   : > { %v786_v53 = vpop.f32.mrf.mxu2 }
  0xf2   : > { %v819_v51 = vadd.f32 %v786_v53, %v618_v49  ;;  %v2234_v53 = vld [vmem:[%s1762_s30 + $0x6c] sm:$0xf] }
  0xf3   : > { %v964_v4 = vpop.f32.mrf.mxu0 }
  0xf5   : > { %v864_v16 = vpop.f32.mrf.mxu3  ;;  %v622_v24 = vpop.f32.mrf.mxu1 }
  0xf6   : > { %v897_v6 = vadd.f32 %v864_v16, %v819_v51  ;;  %1644 = vmatmul.msk.bf16.gmra.mxu2 %vm451_vm3, %v2050_v13  ;;  %v623_v62 = vadd.f32 %v622_v24, %v2138_v31  ;;  %v2237_v51 = vld [vmem:[%s1762_s30 + $0x70] sm:$0xf]  ;;  %v1171_v24 = vshrl.u32 %v2234_v53, 16 }
  0xf8   : > { %v2201_v19 = vadd.f32 %v964_v4, %v897_v6  ;;  %v1626_v6 = vrot.slane %v2085_v40, 9 }
  0xf9   : > { %v789_v7 = vpop.f32.mrf.mxu2 }
  0xfa   : > { %1653 = vmatmul.msk.bf16.gmra.mxu3 %vm451_vm3, %v1927_v32  ;;  %v820_v17 = vadd.f32 %v789_v7, %v621_v27  ;;  %v1011_v27 = vrot.slane %v2088_v46, 5  ;;  %v1184_v7 = vshrl.u32 %v2237_v51, 16 }
  0xfb   : > { %v967_v30 = vpop.f32.mrf.mxu0 }
  0xfc   : > { %v1013_v46 = vrot.slane %v1011_v27, 4  ;;  %v1012_v40 = vsel %vm1954_vm7, %v1626_v6, %v1011_v27 }
  0xfd   : > { %v867_v63 = vpop.f32.mrf.mxu3  ;;  %v625_v9 = vpop.f32.mrf.mxu1 }
  0xfe   : > { %1663 = vmatmul.msk.bf16.gmra.mxu0 %vm451_vm3, %v2064_v41  ;;  %v898_v15 = vadd.f32 %v867_v63, %v820_v17  ;;  %v626_v32 = vadd.f32 %v625_v9, %v2101_v48  ;;  %v1173_v9 = vrot.slane %v1171_v24, 4  ;;  %v1680_v24 = vld [vmem:[%s1762_s30 + $0x6c] sm:$0xff] }
 0x100   : > { %1632 = vmatmul.msk.bf16.gmra.mxu1 %vm451_vm3, %v2064_v41  ;;  %v2209_v13 = vadd.f32 %v967_v30, %v898_v15 }
 0x101   : > { %v791_v31 = vpop.f32.mrf.mxu2 }
 0x102   : > { %v821_v18 = vadd.f32 %v791_v31, %v623_v62  ;;  %v1180_v62 = vshll.u32 %v2237_v51, 16 }
 0x103   : > { %v969_v43 = vpop.f32.mrf.mxu0 }
 0x105   : > { %v869_v21 = vpop.f32.mrf.mxu3  ;;  %v627_v23 = vpop.f32.mrf.mxu1 }
 0x106   : > { %v899_v60 = vadd.f32 %v869_v21, %v821_v18  ;;  %1645 = vmatmul.msk.bf16.gmra.mxu2 %vm451_vm3, %v2070_v25  ;;  %v628_v45 = vadd.f32 %v627_v23, %v2126_v20  ;;  %v1186_v21 = vrot.slane %v1184_v7, 4  ;;  %v228_v23 = vld [vmem:[%s1762_s30 + $0x74] sm:$0x1] }
 0x108   : > { %v2214_v28 = vadd.f32 %v969_v43, %v899_v60  ;;  %v1182_v43 = vrot.slane %v1180_v62, 5 }
 0x109   : > { %v794_v37 = vpop.f32.mrf.mxu2 }
 0x10a   : > { %1654 = vmatmul.msk.bf16.gmra.mxu3 %vm451_vm3, %v1863_v47  ;;  %v822_v41 = vadd.f32 %v794_v37, %v626_v32 }
 0x10b   : > { %v972_v26 = vpop.f32.mrf.mxu0 }
 0x10d   : > { %v872_v11 = vpop.f32.mrf.mxu3  ;;  %v630_v12 = vpop.f32.mrf.mxu1 }
 0x10e   : > { %1664 = vmatmul.msk.bf16.gmra.mxu0 %vm451_vm3, %v2092_v42  ;;  %v900_v50 = vadd.f32 %v872_v11, %v822_v41  ;;  %v631_v57 = vadd.f32 %v630_v12, %v2145_v35  ;;  %v1190_v11 = vshll.u32 %v228_v23, 16 }
 0x110   : > { %1633 = vmatmul.msk.bf16.gmra.mxu1 %vm451_vm3, %v2092_v42  ;;  %v2223_v25 = vadd.f32 %v972_v26, %v900_v50  ;;  %v1187_v26 = vor.u32 %v1186_v21, %v1182_v43 }
 0x111   : > { %v796_v48 = vpop.f32.mrf.mxu2 }
 0x112   : > { %v823_v49 = vadd.f32 %v796_v48, %v628_v45 }
 0x113   : > { %v974_v47 = vpop.f32.mrf.mxu0 }
 0x115   : > { %v874_v56 = vpop.f32.mrf.mxu3  ;;  %v632_v29 = vpop.f32.mrf.mxu1 }
 0x116   : > { %v901_v34 = vadd.f32 %v874_v56, %v823_v49  ;;  %1646 = vmatmul.msk.bf16.gmra.mxu2 %vm451_vm3, %v2106_v38  ;;  %v1014_v38 = vrot.slane %v2111_v61, 5  ;;  %v633_v17 = vadd.f32 %v632_v29, %v2157_v44  ;;  %v1188_v29 = vrot.slane %v1187_v26, 4 }
 0x118   : > { %v2228_v58 = vadd.f32 %v974_v47, %v901_v34  ;;  %v1015_v18 = vsel %vm1954_vm7, %v1013_v46, %v1014_v38  ;;  %v1192_v34 = vrot.slane %v1190_v11, 5 }
 0x119   : > { %v799_v20 = vpop.f32.mrf.mxu2  ;;  %v1019_v37 = vunpack.c.l.b16 %v1015_v18 }
 0x11a   : > { %1655 = vmatmul.msk.bf16.gmra.mxu3 %vm451_vm3, %v1949_v1  ;;  %v824_v42 = vadd.f32 %v799_v20, %v631_v57  ;;  %v1174_v1 = vshll.u32 %v2234_v53, 16 }
 0x11b   : > { %v977_v59 = vpop.f32.mrf.mxu0 }
 0x11c   : > { %v1176_v15 = vrot.slane %v1174_v1, 5 }
 0x11d   : > { %v877_v4 = vpop.f32.mrf.mxu3  ;;  %v635_v16 = vpop.f32.mrf.mxu1 }
 0x11e   : > { %1665 = vmatmul.msk.bf16.gmra.mxu0 %vm451_vm3, %v2130_v55  ;;  %v902_v35 = vadd.f32 %v877_v4, %v824_v42  ;;  %v1177_v41 = vor.u32 %v1176_v15, %v1173_v9  ;;  %v636_v12 = vadd.f32 %v635_v16, %v2113_v2  ;;  %v1276_v4 = vrot.slane %v228_v23, 5 }
 0x120   : > { %1634 = vmatmul.msk.bf16.gmra.mxu1 %vm451_vm3, %v2130_v55  ;;  %v2250_v61 = vadd.f32 %v977_v59, %v902_v35  ;;  %v1018_v55 = vunpack.c.l.b16 %v1012_v40  ;;  %v1178_v47 = vrot.slane %v1177_v41, 4  ;;  %v1658_v59 = vrot.slane %v2234_v53, 9 }
 0x121   : > { %v801_v30 = vpop.f32.mrf.mxu2 }
 0x122   : > { %v825_v63 = vadd.f32 %v801_v30, %v633_v17  ;;  %v1020_v48 = vpack.c.b16 %v1019_v37, %v1018_v55  ;;  %v1183_v42 = vsel %vm1800_vm4, %v1178_v47, %v1182_v43 }
 0x123   : > { %v979_v31 = vpop.f32.mrf.mxu0  ;;  %v1196_v1 = vunpack.c.l.b16 %v1183_v42 }
 0x125   : > { %v879_v44 = vpop.f32.mrf.mxu3  ;;  %v637_v60 = vpop.f32.mrf.mxu1 }
 0x126   : > { %v903_v32 = vadd.f32 %v879_v44, %v825_v63  ;;  %1647 = vmatmul.msk.bf16.gmra.mxu2 %vm451_vm3, %v2143_v8  ;;  %v1273_v8 = vrot.slane %v2237_v51, 5  ;;  %v638_v16 = vadd.f32 %v637_v60, %v2132_v22 }
 0x128   : > { %v2260_v50 = vadd.f32 %v979_v31, %v903_v32  ;;  %v1275_v27 = vrot.slane %v1273_v8, 4  ;;  %v1274_v36 = vsel %vm1954_vm7, %v1658_v59, %v1273_v8  ;;  %v2300_v8 = vld [vmem:[%s2393_s3] ss:$0 sm:$0xff] }
 0x129   : > { %v804_v45 = vpop.f32.mrf.mxu2  ;;  %v1280_v30 = vunpack.c.l.b16 %v1274_v36 }
 0x12a   : > { %1656 = vmatmul.msk.bf16.gmra.mxu3 %vm451_vm3, %v2149_v39  ;;  %v826_v49 = vadd.f32 %v804_v45, %v636_v12  ;;  %v1193_v39 = vsel %vm1800_vm4, %v1188_v29, %v1192_v34  ;;  %v1277_v53 = vsel %vm1954_vm7, %v1275_v27, %v1276_v4 }
 0x12b   : > { %v982_v56 = vpop.f32.mrf.mxu0  ;;  %v1197_v6 = vunpack.c.l.b16 %v1193_v39  ;;  %v1281_v63 = vunpack.c.l.b16 %v1277_v53 }
 0x12d   : > { %v882_v57 = vpop.f32.mrf.mxu3  ;;  %v640_v20 = vpop.f32.mrf.mxu1  ;;  %v1198_v22 = vpack.c.b16 %v1197_v6, %v1196_v1  ;;  %v1282_v40 = vpack.c.b16 %v1281_v63, %v1280_v30 }
 0x12e   : > { %1666 = vmatmul.msk.bf16.gmra.mxu0 %vm451_vm3, %v1020_v48  ;;  %v904_v2 = vadd.f32 %v882_v57, %v826_v49  ;;  %v641_v9 = vadd.f32 %v640_v20, %v2151_v10 }
 0x130   : > { %1635 = vmatmul.msk.bf16.gmra.mxu1 %vm451_vm3, %v1020_v48  ;;  %v2273_v51 = vadd.f32 %v982_v56, %v904_v2 }
 0x131   : > { %v806_v38 = vpop.f32.mrf.mxu2 }
 0x132   : > { %v827_v35 = vadd.f32 %v806_v38, %v638_v16 }
 0x133   : > { %v984_v46 = vpop.f32.mrf.mxu0 }
 0x135   : > { %v884_v62 = vpop.f32.mrf.mxu3  ;;  %v642_v7 = vpop.f32.mrf.mxu1 }
 0x136   : > { %v905_v17 = vadd.f32 %v884_v62, %v827_v35  ;;  %1648 = vmatmul.msk.bf16.gmra.mxu2 %vm451_vm3, %v1680_v24  ;;  %v643_v44 = vadd.f32 %v642_v7, %v2159_v0  ;;  %v2295_v0 = vld [vmem:[%s2392_s2] ss:$0 sm:$0xff] }
 0x138   : > { %v2282_v15 = vadd.f32 %v984_v46, %v905_v17 }
 0x139   : > { %v809_v31 = vpop.f32.mrf.mxu2 }
 0x13a   : > { %1657 = vmatmul.msk.bf16.gmra.mxu3 %vm451_vm3, %v1198_v22  ;;  %v828_v18 = vadd.f32 %v809_v31, %v641_v9 }
 0x13b   : > { %v987_v43 = vpop.f32.mrf.mxu0 }
 0x13d   : > { %v887_v54 = vpop.f32.mrf.mxu3  ;;  %v1036_v21 = vpop.f32.mrf.mxu1 }
 0x13e   : > { %1667 = vmatmul.msk.bf16.gmra.mxu0 %vm451_vm3, %v1282_v40  ;;  %v906_v23 = vadd.f32 %v887_v54, %v828_v18  ;;  %v1076_v11 = vadd.f32 %v1036_v21, %v2169_v5 }
 0x140   : > { %v2287_v60 = vadd.f32 %v987_v43, %v906_v23 }
 0x141   : > { %v811_v32 = vpop.f32.mrf.mxu2 }
 0x142   : > { %v829_v55 = vadd.f32 %v811_v32, %v643_v44 }
 0x143   : > { %v989_v10 = vpop.f32.mrf.mxu0 }
 0x145   : > { %v889_v37 = vpop.f32.mrf.mxu3  ;;  %v1038_v41 = vpop.f32.mrf.mxu1 }
 0x146   : > { %v907_v26 = vadd.f32 %v889_v37, %v829_v55  ;;  %v1077_v5 = vadd.f32 %v1038_v41, %v2173_v14 }
 0x148   : > { %v2290_v12 = vadd.f32 %v989_v10, %v907_v26 }
 0x149   : > { %v1114_v45 = vpop.f32.mrf.mxu2 }
 0x14a   : > { %v1154_v48 = vadd.f32 %v1114_v45, %v1076_v11 }
 0x14b   : > { %v1298_v49 = vpop.f32.mrf.mxu0 }
 0x14d   : > { %v1214_v47 = vpop.f32.mrf.mxu3  ;;  %v1041_v56 = vpop.f32.mrf.mxu1 }
 0x14e   : > { %v1254_v29 = vadd.f32 %v1214_v47, %v1154_v48  ;;  %v1078_v35 = vadd.f32 %v1041_v56, %v2182_v33 }
 0x150   : > { %v1338_v34 = vadd.f32 %v1298_v49, %v1254_v29 }
 0x151   : > { %v1116_v57 = vpop.f32.mrf.mxu2 }
 0x152   : > { %v1358_v20 = vmul.f32 %v2295_v0, %v1338_v34  ;;  %v1155_v2 = vadd.f32 %v1116_v57, %v1077_v5 }
 0x153   : > { %v1300_v42 = vpop.f32.mrf.mxu0 }
 0x154   : > { %v1378_v39 = vadd.f32 %v2300_v8, %v1358_v20 }
 0x155   : > { %v1216_v59 = vpop.f32.mrf.mxu3  ;;  %v1043_v27 = vpop.f32.mrf.mxu1 }
 0x156   : > { %vm1394_vm8 = vcmp.ge.f32.partialorder %v1378_v39, 0.0  ;;  %v1410_v4 = vmul.f32 0.01, %v1378_v39  ;;  %v1255_v16 = vadd.f32 %v1216_v59, %v1155_v2  ;;  %v1079_v33 = vadd.f32 %v1043_v27, %v2187_v52 }
 0x158   : > { %v1426_v14 = vsel %vm1394_vm8, %v1378_v39, %v1410_v4  ;;  %v1339_v38 = vadd.f32 %v1300_v42, %v1255_v16 }
 0x159   : > { %v1442_v24 = vpack.c.bf16 %v1426_v14, %v1426_v14  ;;  %v1119_v1 = vpop.f32.mrf.mxu2 }
 0x15a   : > { %v1359_v6 = vmul.f32 %v2295_v0, %v1339_v38  ;;  %v1156_v46 = vadd.f32 %v1119_v1, %v1078_v35 }
 0x15b   : > { %1459 = vst.msk [vmem:[%s2309_s22] sm:$0xf] %vm1458_vm9, %v1442_v24  ;;  %v1303_v36 = vpop.f32.mrf.mxu0 }
 0x15c   : > { %v1379_v53 = vadd.f32 %v2300_v8, %v1359_v6 }
 0x15d   : > { %v1219_v62 = vpop.f32.mrf.mxu3  ;;  %v1046_v7 = vpop.f32.mrf.mxu1 }
 0x15e   : > { %vm1395_vm10 = vcmp.ge.f32.partialorder %v1379_v53, 0.0  ;;  %v1411_v17 = vmul.f32 0.01, %v1379_v53  ;;  %v1256_v22 = vadd.f32 %v1219_v62, %v1156_v46  ;;  %v1080_v52 = vadd.f32 %v1046_v7, %v2196_v3 }
 0x160   : > { %v1427_v30 = vsel %vm1395_vm10, %v1379_v53, %v1411_v17  ;;  %v1340_v63 = vadd.f32 %v1303_v36, %v1256_v22 }
 0x161   : > { %v1443_v9 = vpack.c.bf16 %v1427_v30, %v1427_v30  ;;  %v1121_v31 = vpop.f32.mrf.mxu2 }
 0x162   : > { %v1360_v40 = vmul.f32 %v2295_v0, %v1340_v63  ;;  %v1157_v18 = vadd.f32 %v1121_v31, %v1079_v33 }
 0x163   : > { %1460 = vst.msk [vmem:[%s2309_s22 + $0x4] sm:$0xf] %vm1458_vm9, %v1443_v9  ;;  %v1305_v43 = vpop.f32.mrf.mxu0 }
 0x164   : > { %v1380_v54 = vadd.f32 %v2300_v8, %v1360_v40 }
 0x165   : > { %v1221_v21 = vpop.f32.mrf.mxu3  ;;  %v1048_v23 = vpop.f32.mrf.mxu1 }
 0x166   : > { %vm1396_vm11 = vcmp.ge.f32.partialorder %v1380_v54, 0.0  ;;  %v1412_v44 = vmul.f32 0.01, %v1380_v54  ;;  %v1257_v32 = vadd.f32 %v1221_v21, %v1157_v18  ;;  %v1081_v3 = vadd.f32 %v1048_v23, %v2201_v19 }
 0x168   : > { %v1428_v55 = vsel %vm1396_vm11, %v1380_v54, %v1412_v44  ;;  %v1341_v10 = vadd.f32 %v1305_v43, %v1257_v32 }
 0x169   : > { %v1444_v37 = vpack.c.bf16 %v1428_v55, %v1428_v55  ;;  %v1124_v41 = vpop.f32.mrf.mxu2 }
 0x16a   : > { %v1361_v26 = vmul.f32 %v2295_v0, %v1341_v10  ;;  %v1158_v11 = vadd.f32 %v1124_v41, %v1080_v52 }
 0x16b   : > { %1461 = vst.msk [vmem:[%s2309_s22 + $0x8] sm:$0xf] %vm1458_vm9, %v1444_v37  ;;  %v1308_v45 = vpop.f32.mrf.mxu0 }
 0x16c   : > { %v1381_v48 = vadd.f32 %v2300_v8, %v1361_v26 }
 0x16d   : > { %v1224_v49 = vpop.f32.mrf.mxu3  ;;  %v1051_v47 = vpop.f32.mrf.mxu1 }
 0x16e   : > { %vm1397_vm12 = vcmp.ge.f32.partialorder %v1381_v48, 0.0  ;;  %v1413_v56 = vmul.f32 0.01, %v1381_v48  ;;  %v1258_v29 = vadd.f32 %v1224_v49, %v1158_v11  ;;  %v1082_v19 = vadd.f32 %v1051_v47, %v2209_v13 }
 0x170   : > { %v1429_v34 = vsel %vm1397_vm12, %v1381_v48, %v1413_v56  ;;  %v1342_v5 = vadd.f32 %v1308_v45, %v1258_v29 }
 0x171   : > { %v1445_v57 = vpack.c.bf16 %v1429_v34, %v1429_v34  ;;  %v1126_v20 = vpop.f32.mrf.mxu2 }
 0x172   : > { %v1362_v2 = vmul.f32 %v2295_v0, %v1342_v5  ;;  %v1159_v42 = vadd.f32 %v1126_v20, %v1081_v3 }
 0x173   : > { %1462 = vst.msk [vmem:[%s2309_s22 + $0xc] sm:$0xf] %vm1458_vm9, %v1445_v57  ;;  %v1310_v39 = vpop.f32.mrf.mxu0 }
 0x174   : > { %v1382_v59 = vadd.f32 %v2300_v8, %v1362_v2 }
 0x175   : > { %v1226_v27 = vpop.f32.mrf.mxu3  ;;  %v1053_v4 = vpop.f32.mrf.mxu1 }
 0x176   : > { %vm1398_vm13 = vcmp.ge.f32.partialorder %v1382_v59, 0.0  ;;  %v1414_v16 = vmul.f32 0.01, %v1382_v59  ;;  %v1259_v14 = vadd.f32 %v1226_v27, %v1159_v42  ;;  %v1083_v13 = vadd.f32 %v1053_v4, %v2214_v28 }
 0x178   : > { %v1430_v38 = vsel %vm1398_vm13, %v1382_v59, %v1414_v16  ;;  %v1343_v35 = vadd.f32 %v1310_v39, %v1259_v14 }
 0x179   : > { %v1446_v24 = vpack.c.bf16 %v1430_v38, %v1430_v38  ;;  %v1129_v1 = vpop.f32.mrf.mxu2 }
 0x17a   : > { %v1363_v6 = vmul.f32 %v2295_v0, %v1343_v35  ;;  %v1160_v46 = vadd.f32 %v1129_v1, %v1082_v19 }
 0x17b   : > { %1463 = vst.msk [vmem:[%s2309_s22 + $0x10] sm:$0xf] %vm1458_vm9, %v1446_v24  ;;  %v1313_v36 = vpop.f32.mrf.mxu0 }
 0x17c   : > { %v1383_v53 = vadd.f32 %v2300_v8, %v1363_v6 }
 0x17d   : > { %v1229_v62 = vpop.f32.mrf.mxu3  ;;  %v1056_v7 = vpop.f32.mrf.mxu1 }
 0x17e   : > { %vm1399_vm14 = vcmp.ge.f32.partialorder %v1383_v53, 0.0  ;;  %v1415_v17 = vmul.f32 0.01, %v1383_v53  ;;  %v1260_v22 = vadd.f32 %v1229_v62, %v1160_v46  ;;  %v1084_v28 = vadd.f32 %v1056_v7, %v2223_v25 }
 0x180   : > { %v1431_v30 = vsel %vm1399_vm14, %v1383_v53, %v1415_v17  ;;  %v1344_v63 = vadd.f32 %v1313_v36, %v1260_v22 }
 0x181   : > { %v1447_v33 = vpack.c.bf16 %v1431_v30, %v1431_v30  ;;  %v1131_v9 = vpop.f32.mrf.mxu2 }
 0x182   : > { %v1364_v31 = vmul.f32 %v2295_v0, %v1344_v63  ;;  %v1161_v40 = vadd.f32 %v1131_v9, %v1083_v13 }
 0x183   : > { %1464 = vst.msk [vmem:[%s2309_s22 + $0x14] sm:$0xf] %vm1458_vm9, %v1447_v33  ;;  %v1315_v18 = vpop.f32.mrf.mxu0 }
 0x184   : > { %v1384_v43 = vadd.f32 %v2300_v8, %v1364_v31 }
 0x185   : > { %v1231_v54 = vpop.f32.mrf.mxu3  ;;  %v1058_v21 = vpop.f32.mrf.mxu1 }
 0x186   : > { %vm1400_vm15 = vcmp.ge.f32.partialorder %v1384_v43, 0.0  ;;  %v1416_v23 = vmul.f32 0.01, %v1384_v43  ;;  %v1261_v44 = vadd.f32 %v1231_v54, %v1161_v40  ;;  %v1085_v25 = vadd.f32 %v1058_v21, %v2228_v58 }
 0x188   : > { %v1432_v32 = vsel %vm1400_vm15, %v1384_v43, %v1416_v23  ;;  %v1345_v55 = vadd.f32 %v1315_v18, %v1261_v44 }
 0x189   : > { %v1448_v10 = vpack.c.bf16 %v1432_v32, %v1432_v32  ;;  %v1134_v52 = vpop.f32.mrf.mxu2 }
 0x18a   : > { %v1365_v37 = vmul.f32 %v2295_v0, %v1345_v55  ;;  %v1162_v41 = vadd.f32 %v1134_v52, %v1084_v28 }
 0x18b   : > { %1465 = vst.msk [vmem:[%s2309_s22 + $0x18] sm:$0xf] %vm1458_vm9, %v1448_v10  ;;  %v1318_v26 = vpop.f32.mrf.mxu0 }
 0x18c   : > { %v1385_v11 = vadd.f32 %v2300_v8, %v1365_v37 }
 0x18d   : > { %v1234_v45 = vpop.f32.mrf.mxu3  ;;  %v1061_v48 = vpop.f32.mrf.mxu1 }
 0x18e   : > { %vm1401_vm0 = vcmp.ge.f32.partialorder %v1385_v11, 0.0  ;;  %v1417_v49 = vmul.f32 0.01, %v1385_v11  ;;  %v1262_v47 = vadd.f32 %v1234_v45, %v1162_v41  ;;  %v1086_v58 = vadd.f32 %v1061_v48, %v2250_v61 }
 0x190   : > { %v1433_v56 = vsel %vm1401_vm0, %v1385_v11, %v1417_v49  ;;  %v1346_v29 = vadd.f32 %v1318_v26, %v1262_v47 }
 0x191   : > { %v1449_v34 = vpack.c.bf16 %v1433_v56, %v1433_v56  ;;  %v1136_v5 = vpop.f32.mrf.mxu2 }
 0x192   : > { %v1366_v3 = vmul.f32 %v2295_v0, %v1346_v29  ;;  %v1163_v57 = vadd.f32 %v1136_v5, %v1085_v25 }
 0x193   : > { %1466 = vst.msk [vmem:[%s2309_s22 + $0x1c] sm:$0xf] %vm1458_vm9, %v1449_v34  ;;  %v1320_v20 = vpop.f32.mrf.mxu0 }
 0x194   : > { %v1386_v2 = vadd.f32 %v2300_v8, %v1366_v3 }
 0x195   : > { %v1236_v42 = vpop.f32.mrf.mxu3  ;;  %v1063_v39 = vpop.f32.mrf.mxu1 }
 0x196   : > { %vm1402_vm1 = vcmp.ge.f32.partialorder %v1386_v2, 0.0  ;;  %v1418_v59 = vmul.f32 0.01, %v1386_v2  ;;  %v1263_v27 = vadd.f32 %v1236_v42, %v1163_v57  ;;  %v1087_v61 = vadd.f32 %v1063_v39, %v2260_v50 }
 0x198   : > { %v1434_v4 = vsel %vm1402_vm1, %v1386_v2, %v1418_v59  ;;  %v1347_v16 = vadd.f32 %v1320_v20, %v1263_v27 }
 0x199   : > { %v1450_v14 = vpack.c.bf16 %v1434_v4, %v1434_v4  ;;  %v1139_v38 = vpop.f32.mrf.mxu2 }
 0x19a   : > { %v1367_v35 = vmul.f32 %v2295_v0, %v1347_v16  ;;  %v1164_v19 = vadd.f32 %v1139_v38, %v1086_v58 }
 0x19b   : > { %1467 = vst.msk [vmem:[%s2309_s22 + $0x20] sm:$0xf] %vm1458_vm9, %v1450_v14  ;;  %v1323_v24 = vpop.f32.mrf.mxu0 }
 0x19c   : > { %v1387_v1 = vadd.f32 %v2300_v8, %v1367_v35 }
 0x19d   : > { %v1239_v6 = vpop.f32.mrf.mxu3  ;;  %v1066_v53 = vpop.f32.mrf.mxu1 }
 0x19e   : > { %vm1403_vm2 = vcmp.ge.f32.partialorder %v1387_v1, 0.0  ;;  %v1419_v46 = vmul.f32 0.01, %v1387_v1  ;;  %v1264_v36 = vadd.f32 %v1239_v6, %v1164_v19  ;;  %v1088_v54 = vadd.f32 %v1066_v53, %v2273_v51 }
 0x1a0   : > { %v1435_v62 = vsel %vm1403_vm2, %v1387_v1, %v1419_v46  ;;  %v1348_v7 = vadd.f32 %v1323_v24, %v1264_v36 }
 0x1a1   : > { %v1451_v17 = vpack.c.bf16 %v1435_v62, %v1435_v62  ;;  %v1141_v22 = vpop.f32.mrf.mxu2 }
 0x1a2   : > { %v1368_v30 = vmul.f32 %v2295_v0, %v1348_v7  ;;  %v1165_v63 = vadd.f32 %v1141_v22, %v1087_v61 }
 0x1a3   : > { %1468 = vst.msk [vmem:[%s2309_s22 + $0x24] sm:$0xf] %vm1458_vm9, %v1451_v17  ;;  %v1325_v13 = vpop.f32.mrf.mxu0 }
 0x1a4   : > { %v1388_v33 = vadd.f32 %v2300_v8, %v1368_v30 }
 0x1a5   : > { %v1241_v9 = vpop.f32.mrf.mxu3  ;;  %v1068_v50 = vpop.f32.mrf.mxu1 }
 0x1a6   : > { %vm1404_vm3 = vcmp.ge.f32.partialorder %v1388_v33, 0.0  ;;  %v1420_v31 = vmul.f32 0.01, %v1388_v33  ;;  %v1265_v40 = vadd.f32 %v1241_v9, %v1165_v63  ;;  %v1089_v51 = vadd.f32 %v1068_v50, %v2282_v15 }
 0x1a8   : > { %v1436_v18 = vsel %vm1404_vm3, %v1388_v33, %v1420_v31  ;;  %v1349_v43 = vadd.f32 %v1325_v13, %v1265_v40 }
 0x1a9   : > { %v1452_v21 = vpack.c.bf16 %v1436_v18, %v1436_v18  ;;  %v1144_v23 = vpop.f32.mrf.mxu2 }
 0x1aa   : > { %v1369_v44 = vmul.f32 %v2295_v0, %v1349_v43  ;;  %v1166_v32 = vadd.f32 %v1144_v23, %v1088_v54 }
 0x1ab   : > { %1469 = vst.msk [vmem:[%s2309_s22 + $0x28] sm:$0xf] %vm1458_vm9, %v1452_v21  ;;  %v1328_v55 = vpop.f32.mrf.mxu0 }
 0x1ac   : > { %v1389_v28 = vadd.f32 %v2300_v8, %v1369_v44 }
 0x1ad   : > { %v1244_v10 = vpop.f32.mrf.mxu3  ;;  %v1071_v47 = vpop.f32.mrf.mxu1 }
 0x1ae   : > { %vm1405_vm4 = vcmp.ge.f32.partialorder %v1389_v28, 0.0  ;;  %v1421_v52 = vmul.f32 0.01, %v1389_v28  ;;  %v1266_v37 = vadd.f32 %v1244_v10, %v1166_v32  ;;  %v1090_v15 = vadd.f32 %v1071_v47, %v2287_v60 }
 0x1b0   : > { %v1437_v41 = vsel %vm1405_vm4, %v1389_v28, %v1421_v52  ;;  %v1350_v26 = vadd.f32 %v1328_v55, %v1266_v37 }
 0x1b1   : > { %v1453_v11 = vpack.c.bf16 %v1437_v41, %v1437_v41  ;;  %v1146_v45 = vpop.f32.mrf.mxu2 }
 0x1b2   : > { %v1370_v48 = vmul.f32 %v2295_v0, %v1350_v26  ;;  %v1167_v49 = vadd.f32 %v1146_v45, %v1089_v51 }
 0x1b3   : > { %1470 = vst.msk [vmem:[%s2309_s22 + $0x2c] sm:$0xf] %vm1458_vm9, %v1453_v11  ;;  %v1330_v56 = vpop.f32.mrf.mxu0 }
 0x1b4   : > { %v1390_v29 = vadd.f32 %v2300_v8, %v1370_v48 }
 0x1b5   : > { %v1246_v25 = vpop.f32.mrf.mxu3  ;;  %v1073_v27 = vpop.f32.mrf.mxu1 }
 0x1b6   : > { %vm1406_vm5 = vcmp.ge.f32.partialorder %v1390_v29, 0.0  ;;  %v1422_v34 = vmul.f32 0.01, %v1390_v29  ;;  %v1267_v5 = vadd.f32 %v1246_v25, %v1167_v49  ;;  %v1091_v60 = vadd.f32 %v1073_v27, %v2290_v12 }
 0x1b8   : > { %v1438_v3 = vsel %vm1406_vm5, %v1390_v29, %v1422_v34  ;;  %v1351_v57 = vadd.f32 %v1330_v56, %v1267_v5 }
 0x1b9   : > { %v1454_v20 = vpack.c.bf16 %v1438_v3, %v1438_v3  ;;  %v1149_v2 = vpop.f32.mrf.mxu2 }
 0x1ba   : > { %v1371_v42 = vmul.f32 %v2295_v0, %v1351_v57  ;;  %v1168_v39 = vadd.f32 %v1149_v2, %v1090_v15 }
 0x1bb   : > { %1471 = vst.msk [vmem:[%s2309_s22 + $0x30] sm:$0xf] %vm1458_vm9, %v1454_v20  ;;  %v1333_v4 = vpop.f32.mrf.mxu0 }
 0x1bc   : > { %v1391_v59 = vadd.f32 %v2300_v8, %v1371_v42 }
 0x1bd   : > { %v1249_v16 = vpop.f32.mrf.mxu3 }
 0x1be   : > { %vm1407_vm6 = vcmp.ge.f32.partialorder %v1391_v59, 0.0  ;;  %v1423_v58 = vmul.f32 0.01, %v1391_v59  ;;  %v1268_v14 = vadd.f32 %v1249_v16, %v1168_v39 }
 0x1c0   : > { %v1439_v38 = vsel %vm1407_vm6, %v1391_v59, %v1423_v58  ;;  %v1352_v35 = vadd.f32 %v1333_v4, %v1268_v14 }
 0x1c1   : > { %v1455_v19 = vpack.c.bf16 %v1439_v38, %v1439_v38  ;;  %v1151_v24 = vpop.f32.mrf.mxu2 }
 0x1c2   : > { %v1372_v1 = vmul.f32 %v2295_v0, %v1352_v35  ;;  %v1169_v6 = vadd.f32 %v1151_v24, %v1091_v60 }
 0x1c3   : > { %1472 = vst.msk [vmem:[%s2309_s22 + $0x34] sm:$0xf] %vm1458_vm9, %v1455_v19  ;;  %v1335_v7 = vpop.f32.mrf.mxu0 }
 0x1c4   : > { %v1392_v46 = vadd.f32 %v2300_v8, %v1372_v1 }
 0x1c5   : > { %v1251_v36 = vpop.f32.mrf.mxu3 }
 0x1c6   : > { %vm1408_vm7 = vcmp.ge.f32.partialorder %v1392_v46, 0.0  ;;  %v1424_v53 = vmul.f32 0.01, %v1392_v46  ;;  %v1269_v62 = vadd.f32 %v1251_v36, %v1169_v6 }
 0x1c8   : > { %v1440_v61 = vsel %vm1408_vm7, %v1392_v46, %v1424_v53  ;;  %v1353_v17 = vadd.f32 %v1335_v7, %v1269_v62 }
 0x1c9   : > { %v1456_v22 = vpack.c.bf16 %v1440_v61, %v1440_v61 }
 0x1ca   : > { %v1373_v12 = vmul.f32 %v2295_v0, %v1353_v17 }
 0x1cb   : > { %1473 = vst.msk [vmem:[%s2309_s22 + $0x38] sm:$0xf] %vm1458_vm9, %v1456_v22 }
 0x1cc   : > { %v1393_v30 = vadd.f32 %v2300_v8, %v1373_v12 }
 0x1ce   : > { %vm1409_vm8 = vcmp.ge.f32.partialorder %v1393_v30, 0.0  ;;  %v1425_v63 = vmul.f32 0.01, %v1393_v30 }
 0x1d0   : > { %v1441_v13 = vsel %vm1409_vm8, %v1393_v30, %v1425_v63 }
 0x1d1   : > { %v1457_v33 = vpack.c.bf16 %v1441_v13, %v1441_v13 }
 0x1d3   : > { %1474 = vst.msk [vmem:[%s2309_s22 + $0x3c] sm:$0xf] %vm1458_vm9, %v1457_v33 }
 0x1d4 PF: > { %s14_s15 = sadd.s32 1, %s1701_s15  }
 0x1d5   : > { %p11_p4 = scmp.ge.s32.totalorder %s14_s15, 6  }
 0x1d7   :  { %13 = sbr.rel (!%p11_p4) target bundleno = 1 (0x1), region = 74 }

// kernel: double_conv_forward.6
= control target key start
LH: loop header
LB: loop body
LE: loop exit
PB: predicated region body
PF: predicated region fallthrough
CT: control target
= control target key end

     0   :  { %s1639_s12 = smov 0   ;;  %s2268_s0 = inlined_call_operand.vmem [shape: bf16[4,10,18,4], index: 0, kind: input, shape index: {}]   ;;  %s2269_s1 = inlined_call_operand.vmem [shape: bf16[9,4,8], index: 1, kind: input, shape index: {}]   ;;  %s2270_s2 = inlined_call_operand.vmem [shape: f32[1,8], index: 2, kind: output, shape index: {0}]   ;;  %s2271_s3 = inlined_call_operand.vmem [shape: f32[1,8], index: 3, kind: output, shape index: {1}]  }
   0x1 LB: > { %s1449_s13 = sadd.s32 4294967295, %s1616_s12   ;;  %p1452_p0 = scmp.ge.s32.totalorder %s1616_s12, 1  ;;  %s1616_s12 = sphi %s1639_s12, %s14_s12  }
   0x2   : > { %p130_p1 = scmp.lt.s32.totalorder %s1616_s12, 5 }
   0x4   : > { %p131_p2 = pnand %p1452_p0, %p130_p1 }
   0x5   : > { %p149_p3 = scmp.lt.s32.totalorder (!%p131_p2), %s1449_s13, 3  ;;  %p1454_p4 = scmp.ne.s32.totalorder (!%p131_p2), %s1449_s13, 0 }
   0x6   : > { %134 = sbr.rel (%p131_p2) target bundleno = 484 (0x1e4), region = 28 }
   0xb   : > { %s150_s14 = scalar_select %p149_p3, %s1449_s13, 3 }
   0xc   : > { %158 = sbr.rel (%p1454_p4) target bundleno = 20 (0x14), region = 32 }
   0xd   : > { %s1600_s15 = smul.u32 120, %s150_s14 }
   0xf   : > { %s1650_s18 = scalar_lea.vmem %s2268_s0, %s1600_s15 }
  0x11   : > { %vm159_vm0 = vcmask 57344   ;;  %v1618_v0 = vmov 0.0  }
  0x12   : > { %160 = vst.msk [vmem:[%s2270_s2] sm:$0x1] %vm159_vm0, %v1618_v0 }
  0x13   : > { %161 = vst.msk [vmem:[%s2271_s3] sm:$0x1] %vm159_vm0, %v1618_v0 }
  0x14 PF: > { %v1455_v1 = vld [vmem:[%s2269_s1 + $0x2] sm:$0x3]  ;;  %vm439_vm1 = vcmask 1041408   ;;  %v1662_v2 = vld [vmem:[%s1650_s18 + $0x18] sm:$0xf]  ;;  %vm414_vm4 = vcmask 31744  }
  0x15   : > { %v441_v3 = vsel %vm439_vm1, %v1455_v1, 0  ;;  %v1666_v4 = vld [vmem:[%s1650_s18 + $0x1c] sm:$0xf]  ;;  %v1669_v5 = vld [vmem:[%s1650_s18 + $0x20] sm:$0x1]  ;;  %v245_v6 = vshrl.u32 %v1662_v2, 16 }
  0x16   : > { %1597 = vmatpush.bf16.msra.mxu1 %v441_v3  ;;  %1598 = vmatpush.bf16.msra.mxu2 %v441_v3  ;;  %vm193_vm2 = vsmask.f32 3328  ;;  %vm194_vm3 = vsmask.f32 7440  ;;  %v248_v7 = vshll.u32 %v1662_v2, 16  ;;  %v254_v8 = vshll.u32 %v1666_v4, 16 }
  0x17   : > { %1599 = vmatpush.bf16.msra.mxu3 %v441_v3  ;;  %450 = vmatpush.bf16.msra.mxu0 %v441_v3  ;;  %v247_v9 = vrot.slane %v245_v6, 4  ;;  %v258_v10 = vshrl.u32 %v1666_v4, 16  ;;  %v264_v11 = vshll.u32 %v1669_v5, 16  ;;  %v1677_v12 = vld [vmem:[%s1650_s18 + $0x30] sm:$0xf]  ;;  %vm1695_vm5 = vmor %vm193_vm2, %vm194_vm3  ;;  %vm616_vm6 = vcmask 1042432  }
  0x18   : > { %v250_v13 = vrot.slane %v248_v7, 5  ;;  %v256_v14 = vrot.slane %v254_v8, 5  ;;  %v1680_v15 = vld [vmem:[%s1650_s18 + $0x34] sm:$0xf]  ;;  %v1683_v16 = vld [vmem:[%s1650_s18 + $0x38] sm:$0x1] }
  0x19   : > { %v260_v17 = vrot.slane %v258_v10, 4  ;;  %v266_v18 = vrot.slane %v264_v11, 5  ;;  %v293_v19 = vshrl.u32 %v1677_v12, 16  ;;  %v296_v20 = vshll.u32 %v1677_v12, 16  ;;  %v1688_v21 = vld [vmem:[%s1650_s18 + $0x48] sm:$0xf] }
  0x1a   : > { %v251_v22 = vor.u32 %v250_v13, %v247_v9  ;;  %v302_v23 = vshll.u32 %v1680_v15, 16  ;;  %v306_v24 = vshrl.u32 %v1680_v15, 16  ;;  %v312_v25 = vshll.u32 %v1683_v16, 16  ;;  %v1700_v30 = vld [vmem:[%s1650_s18 + $0x4c] sm:$0xf] }
  0x1b   : > { %v261_v27 = vor.u32 %v260_v17, %v256_v14  ;;  %v295_v28 = vrot.slane %v293_v19, 4  ;;  %v298_v29 = vrot.slane %v296_v20, 5  ;;  %v341_v31 = vshrl.u32 %v1688_v21, 16  ;;  %v1707_v42 = vld [vmem:[%s1650_s18 + $0x50] sm:$0x1] }
  0x1c   : > { %v252_v32 = vrot.slane %v251_v22, 4  ;;  %v304_v33 = vrot.slane %v302_v23, 5  ;;  %v308_v34 = vrot.slane %v306_v24, 4  ;;  %v314_v35 = vrot.slane %v312_v25, 5  ;;  %v1512_v45 = vld [vmem:[%s2269_s1 + $0x4] sm:$0x3] }
  0x1d   : > { %v262_v36 = vrot.slane %v261_v27, 4  ;;  %v299_v37 = vor.u32 %v298_v29, %v295_v28  ;;  %v343_v38 = vrot.slane %v341_v31, 4  ;;  %v344_v39 = vshll.u32 %v1688_v21, 16  ;;  %v1717_v54 = vld [vmem:[%s1650_s18] sm:$0xf] }
  0x1e   : > { %v257_v40 = vsel %vm1695_vm5, %v252_v32, %v256_v14  ;;  %v309_v41 = vor.u32 %v308_v34, %v304_v33  ;;  %v350_v43 = vshll.u32 %v1700_v30, 16  ;;  %v354_v44 = vshrl.u32 %v1700_v30, 16  ;;  %v1724_v59 = vld [vmem:[%s1650_s18 + $0x4] sm:$0xf]  ;;  %v1731_v0 = vld [vmem:[%s1650_s18 + $0x8] sm:$0x1] }
  0x1f   : > { %v267_v46 = vsel %vm1695_vm5, %v262_v36, %v266_v18  ;;  %v394_v47 = vunpack.c.l.b16 %v257_v40  ;;  %v300_v48 = vrot.slane %v299_v37, 4  ;;  %v346_v49 = vrot.slane %v344_v39, 5  ;;  %v1521_v13 = vld [vmem:[%s2269_s1 + $0x6] sm:$0x3]  ;;  %v192_v20 = vld [vmem:[%s2269_s1] sm:$0x3] }
  0x20   : > { %v395_v50 = vunpack.c.l.b16 %v267_v46  ;;  %v310_v51 = vrot.slane %v309_v41, 4  ;;  %v352_v52 = vrot.slane %v350_v43, 5  ;;  %v356_v53 = vrot.slane %v354_v44, 4  ;;  %v1534_v22 = vld [vmem:[%s2269_s1 + $0x8] sm:$0x3] }
  0x21   : > { %v305_v55 = vsel %vm1695_vm5, %v300_v48, %v304_v33  ;;  %v347_v56 = vor.u32 %v346_v49, %v343_v38  ;;  %v360_v57 = vshll.u32 %v1707_v42, 16  ;;  %v726_v58 = vsel %vm439_vm1, %v1512_v45, 0  ;;  %v1756_v28 = vld [vmem:[%s1650_s18 + $0x24] sm:$0xf]  ;;  %v1759_v29 = vld [vmem:[%s1650_s18 + $0x28] sm:$0xf] }
  0x22   : > { %v1726_v60 = vpack.c.b16 %v395_v50, %v394_v47  ;;  %v315_v61 = vsel %vm1695_vm5, %v310_v51, %v314_v35  ;;  %v398_v62 = vunpack.c.l.b16 %v305_v55  ;;  %v357_v63 = vor.u32 %v356_v53, %v352_v52  ;;  %735 = vmatpush.bf16.msrb.mxu2 %v726_v58  ;;  %v1765_v35 = vld [vmem:[%s1650_s18 + $0x2c] sm:$0x1]  ;;  %v1771_v40 = vld [vmem:[%s1650_s18 + $0x3c] sm:$0xf]  ;;  %v1781_v50 = vld [vmem:[%s1650_s18 + $0x40] sm:$0xf] }
  0x23   : > { %v399_v1 = vunpack.c.l.b16 %v315_v61  ;;  %v348_v3 = vrot.slane %v347_v56, 4  ;;  %v362_v6 = vrot.slane %v360_v57, 5  ;;  %v197_v7 = vshrl.u32 %v1717_v54, 16  ;;  %v1786_v55 = vld [vmem:[%s1650_s18 + $0x44] sm:$0x1] }
  0x24   : > { %1458 = vmatmul.msk.bf16.vlgmr.msra.gmra.mxu1 %vm414_vm4, %v1726_v60  ;;  %v358_v8 = vrot.slane %v357_v63, 4  ;;  %v200_v9 = vshll.u32 %v1717_v54, 16  ;;  %v206_v10 = vshll.u32 %v1724_v59, 16  ;;  %v210_v11 = vshrl.u32 %v1724_v59, 16  ;;  %v1792_v63 = vld [vmem:[%s1650_s18 + $0x54] sm:$0xf] }
  0x25   : > { %v1742_v14 = vpack.c.b16 %v399_v1, %v398_v62  ;;  %v353_v17 = vsel %vm1695_vm5, %v348_v3, %v352_v52  ;;  %v199_v18 = vrot.slane %v197_v7, 4  ;;  %v216_v19 = vshll.u32 %v1731_v0, 16 }
  0x26   : > { %v363_v23 = vsel %vm1695_vm5, %v358_v8, %v362_v6  ;;  %v402_v24 = vunpack.c.l.b16 %v353_v17  ;;  %v202_v25 = vrot.slane %v200_v9, 5  ;;  %v208_v27 = vrot.slane %v206_v10, 5 }
  0x27   : > { %1460 = vmatmul.msk.bf16.vlgmr.msra.gmra.mxu2 %vm414_vm4, %v1742_v14  ;;  %v403_v31 = vunpack.c.l.b16 %v363_v23  ;;  %v212_v32 = vrot.slane %v210_v11, 4  ;;  %v218_v33 = vrot.slane %v216_v19, 5  ;;  %v624_v34 = vrot.slane %v1731_v0, 5  ;;  %v1801_v19 = vld [vmem:[%s1650_s18 + $0x58] sm:$0xf] }
  0x28   : > { %v203_v36 = vor.u32 %v202_v25, %v199_v18  ;;  %v804_v37 = vsel %vm439_vm1, %v1521_v13, 0  ;;  %v557_v38 = vsel %vm439_vm1, %v192_v20, 0  ;;  %v904_v39 = vsel %vm439_vm1, %v1534_v22, 0 }
  0x29   : > { %v1773_v41 = vpack.c.b16 %v403_v31, %v402_v24  ;;  %v213_v43 = vor.u32 %v212_v32, %v208_v27  ;;  %813 = vmatpush.bf16.msrb.mxu3 %v804_v37  ;;  %566 = vmatpush.bf16.msrb.mxu1 %v557_v38  ;;  %v269_v44 = vshrl.u32 %v1756_v28, 16  ;;  %v272_v45 = vshll.u32 %v1756_v28, 16  ;;  %v1810_v37 = vld [vmem:[%s1650_s18 + $0xc] sm:$0xf] }
  0x2a   : > { %v204_v46 = vrot.slane %v203_v36, 4  ;;  %913 = vmatpush.bf16.msrb.mxu0 %v904_v39  ;;  %v278_v47 = vshll.u32 %v1759_v29, 16  ;;  %v282_v48 = vshrl.u32 %v1759_v29, 16  ;;  %v288_v49 = vshll.u32 %v1765_v35, 16 }
  0x2b   : > { %1462 = vmatmul.msk.bf16.vlgmr.msra.gmra.mxu3 %vm414_vm4, %v1773_v41  ;;  %v214_v51 = vrot.slane %v213_v43, 4  ;;  %v271_v52 = vrot.slane %v269_v44, 4  ;;  %v274_v53 = vrot.slane %v272_v45, 5  ;;  %v317_v56 = vshrl.u32 %v1771_v40, 16 }
  0x2c   : > { %v209_v57 = vsel %vm1695_vm5, %v204_v46, %v208_v27  ;;  %v280_v58 = vrot.slane %v278_v47, 5  ;;  %v284_v61 = vrot.slane %v282_v48, 4  ;;  %v290_v62 = vrot.slane %v288_v49, 5  ;;  %v1805_v27 = vld [vmem:[%s1650_s18 + $0x5c] sm:$0x1] }
  0x2d   : > { %v219_v1 = vsel %vm1695_vm5, %v214_v51, %v218_v33  ;;  %v390_v3 = vunpack.c.l.b16 %v209_v57  ;;  %v275_v6 = vor.u32 %v274_v53, %v271_v52  ;;  %v319_v7 = vrot.slane %v317_v56, 4 }
  0x2e   : > { %v391_v8 = vunpack.c.l.b16 %v219_v1  ;;  %v285_v9 = vor.u32 %v284_v61, %v280_v58  ;;  %v320_v10 = vshll.u32 %v1771_v40, 16  ;;  %v326_v11 = vshll.u32 %v1781_v50, 16 }
  0x2f   : > { %v276_v13 = vrot.slane %v275_v6, 4  ;;  %v330_v17 = vshrl.u32 %v1781_v50, 16  ;;  %v336_v18 = vshll.u32 %v1786_v55, 16  ;;  %v365_v20 = vshrl.u32 %v1792_v63, 16 }
  0x30   : > { %v406_v22 = vpack.c.b16 %v391_v8, %v390_v3  ;;  %v286_v23 = vrot.slane %v285_v9, 4  ;;  %v322_v24 = vrot.slane %v320_v10, 5  ;;  %v328_v25 = vrot.slane %v326_v11, 5 }
  0x31   : > { %v281_v31 = vsel %vm1695_vm5, %v276_v13, %v280_v58  ;;  %v332_v32 = vrot.slane %v330_v17, 4  ;;  %v338_v33 = vrot.slane %v336_v18, 5  ;;  %v367_v36 = vrot.slane %v365_v20, 4 }
  0x32   : > { %1456 = vmatmul.msk.bf16.vlgmr.msra.gmra.mxu0 %vm414_vm4, %v406_v22  ;;  %v291_v38 = vsel %vm1695_vm5, %v286_v23, %v290_v62  ;;  %v396_v39 = vunpack.c.l.b16 %v281_v31  ;;  %v323_v43 = vor.u32 %v322_v24, %v319_v7  ;;  %v368_v44 = vshll.u32 %v1792_v63, 16  ;;  %v1823_v62 = vld [vmem:[%s1650_s18 + $0x10] sm:$0xf]  ;;  %v1828_v7 = vld [vmem:[%s1650_s18 + $0x14] sm:$0x1] }
  0x33   : > { %v397_v45 = vunpack.c.l.b16 %v291_v38  ;;  %v333_v46 = vor.u32 %v332_v32, %v328_v25  ;;  %v374_v47 = vshll.u32 %v1801_v19, 16  ;;  %v378_v48 = vshrl.u32 %v1801_v19, 16  ;;  %v1553_v38 = vld [vmem:[%s2269_s1 + $0xc] sm:$0x3] }
  0x34   : > { %v324_v49 = vrot.slane %v323_v43, 4  ;;  %v370_v51 = vrot.slane %v368_v44, 5  ;;  %v384_v52 = vshll.u32 %v1805_v27, 16  ;;  %v221_v53 = vshrl.u32 %v1810_v37, 16 }
  0x35   : > { %v1820_v56 = vpack.c.b16 %v397_v45, %v396_v39  ;;  %v334_v57 = vrot.slane %v333_v46, 4  ;;  %v376_v58 = vrot.slane %v374_v47, 5  ;;  %v380_v61 = vrot.slane %v378_v48, 4  ;;  %v1566_v39 = vld [vmem:[%s2269_s1 + $0xe] sm:$0x3] }
  0x36   : > { %v329_v1 = vsel %vm1695_vm5, %v324_v49, %v328_v25  ;;  %v371_v3 = vor.u32 %v370_v51, %v367_v36  ;;  %v386_v6 = vrot.slane %v384_v52, 5  ;;  %v223_v8 = vrot.slane %v221_v53, 4  ;;  %v1544_v47 = vld [vmem:[%s2269_s1 + $0xa] sm:$0x3]  ;;  %v1576_v48 = vld [vmem:[%s2269_s1 + $0x10] sm:$0x3] }
  0x37   : > { %1459 = vmatmul.msk.bf16.gmra.mxu1 %vm414_vm4, %v1820_v56  ;;  %v339_v9 = vsel %vm1695_vm5, %v334_v57, %v338_v33  ;;  %v400_v10 = vunpack.c.l.b16 %v329_v1  ;;  %v381_v11 = vor.u32 %v380_v61, %v376_v58  ;;  %v224_v13 = vshll.u32 %v1810_v37, 16 }
  0x38   : > { %v401_v17 = vunpack.c.l.b16 %v339_v9  ;;  %v372_v18 = vrot.slane %v371_v3, 4  ;;  %v230_v20 = vshll.u32 %v1823_v62, 16  ;;  %v234_v22 = vshrl.u32 %v1823_v62, 16 }
  0x39   : > { %v382_v23 = vrot.slane %v381_v11, 4  ;;  %v226_v24 = vrot.slane %v224_v13, 5  ;;  %v240_v25 = vshll.u32 %v1828_v7, 16  ;;  %vm617_vm7 = vcmask 1046532  }
  0x3a   : > { %v1838_v31 = vpack.c.b16 %v401_v17, %v400_v10  ;;  %v377_v32 = vsel %vm1695_vm5, %v372_v18, %v376_v58  ;;  %v232_v33 = vrot.slane %v230_v20, 5  ;;  %v236_v36 = vrot.slane %v234_v22, 4  ;;  %vm1865_vm8 = vmor %vm616_vm6, %vm617_vm7  ;;  %v1587_v22 = vld [vmem:[%s1650_s18] sm:$0xff] }
  0x3b   : > { %v387_v43 = vsel %vm1695_vm5, %v382_v23, %v386_v6  ;;  %v404_v44 = vunpack.c.l.b16 %v377_v32  ;;  %v227_v45 = vor.u32 %v226_v24, %v223_v8  ;;  %v242_v46 = vrot.slane %v240_v25, 5 }
  0x3c   : > { %1461 = vmatmul.msk.bf16.gmra.mxu2 %vm414_vm4, %v1838_v31  ;;  %v405_v49 = vunpack.c.l.b16 %v387_v43  ;;  %v237_v51 = vor.u32 %v236_v36, %v232_v33  ;;  %v1504_v52 = vrot.slane %v1717_v54, 9  ;;  %v621_v57 = vrot.slane %v1724_v59, 5 }
  0x3d   : > { %v228_v53 = vrot.slane %v227_v45, 4  ;;  %v1066_v58 = vsel %vm439_vm1, %v1553_v38, 0  ;;  %v1166_v61 = vsel %vm439_vm1, %v1566_v39, 0  ;;  %v988_v54 = vsel %vm439_vm1, %v1544_v47, 0 }
  0x3e   : > { %v1862_v1 = vpack.c.b16 %v405_v49, %v404_v44  ;;  %v238_v3 = vrot.slane %v237_v51, 4  ;;  %1075 = vmatpush.bf16.msra.mxu2 %v1066_v58  ;;  %1175 = vmatpush.bf16.msra.mxu3 %v1166_v61  ;;  %v1250_v8 = vsel %vm439_vm1, %v1576_v48, 0  ;;  %v623_v9 = vrot.slane %v621_v57, 4  ;;  %v1588_v44 = vld [vmem:[%s1650_s18 + $0xc] sm:$0xff] }
  0x3f   : > { %v233_v59 = vsel %vm1695_vm5, %v228_v53, %v232_v33  ;;  %997 = vmatpush.bf16.msra.mxu1 %v988_v54  ;;  %1259 = vmatpush.bf16.msra.mxu0 %v1250_v8  ;;  %v622_v17 = vsel %vm1865_vm8, %v1504_v52, %v621_v57  ;;  %v1506_v25 = vrot.slane %v1662_v2, 9  ;;  %v635_v32 = vrot.slane %v1666_v4, 5  ;;  %v1944_v8 = vld [vmem:[%s1650_s18 + $0x30] sm:$0xff] }
  0x40   : > { %1463 = vmatmul.msk.bf16.gmra.mxu3 %vm414_vm4, %v1862_v1  ;;  %v243_v10 = vsel %vm1695_vm5, %v238_v3, %v242_v46  ;;  %v392_v11 = vunpack.c.l.b16 %v233_v59  ;;  %v625_v18 = vsel %vm1865_vm8, %v623_v9, %v624_v34  ;;  %v677_v23 = vunpack.c.l.b16 %v622_v17 }
  0x41   : > { %v393_v13 = vunpack.c.l.b16 %v243_v10  ;;  %v678_v24 = vunpack.c.l.b16 %v625_v18  ;;  %v638_v33 = vrot.slane %v1669_v5, 5  ;;  %v628_v0 = vrot.slane %v1823_v62, 5  ;;  %v1964_v18 = vld [vmem:[%s1650_s18 + $0x3c] sm:$0xff] }
  0x42   : > { %v636_v34 = vsel %vm1865_vm8, %v1506_v25, %v635_v32  ;;  %v637_v38 = vrot.slane %v635_v32, 4  ;;  %v1505_v2 = vrot.slane %v1810_v37, 9  ;;  %v631_v5 = vrot.slane %v1828_v7, 5 }
  0x43   : > { %v407_v20 = vpack.c.b16 %v393_v13, %v392_v11  ;;  %v693_v36 = vpack.c.b16 %v678_v24, %v677_v23  ;;  %v681_v39 = vunpack.c.l.b16 %v636_v34  ;;  %v630_v4 = vrot.slane %v628_v0, 4 }
  0x44   : > { %v639_v43 = vsel %vm1865_vm8, %v637_v38, %v638_v33  ;;  %v629_v62 = vsel %vm1865_vm8, %v1505_v2, %v628_v0  ;;  %v1507_v37 = vrot.slane %v1756_v28, 9  ;;  %v642_v7 = vrot.slane %v1759_v29, 5  ;;  %v1919_v28 = vld [vmem:[%s1650_s18 + $0x18] sm:$0xff]  ;;  %v1984_v33 = vld [vmem:[%s1650_s18 + $0x48] sm:$0xff] }
  0x45   : > { %1457 = vmatmul.msk.bf16.gmra.mxu0 %vm414_vm4, %v407_v20  ;;  %v682_v45 = vunpack.c.l.b16 %v639_v43  ;;  %v632_v47 = vsel %vm1865_vm8, %v630_v4, %v631_v5  ;;  %v679_v48 = vunpack.c.l.b16 %v629_v62  ;;  %v645_v51 = vrot.slane %v1765_v35, 5  ;;  %v1932_v35 = vld [vmem:[%s1650_s18 + $0x24] sm:$0xff] }
  0x46   : > { %v680_v49 = vunpack.c.l.b16 %v632_v47  ;;  %v643_v53 = vsel %vm1865_vm8, %v1507_v37, %v642_v7  ;;  %v644_v57 = vrot.slane %v642_v7, 4  ;;  %v649_v54 = vrot.slane %v1680_v15, 5  ;;  %v2020_v37 = vld [vmem:[%s1650_s18 + $0x54] sm:$0xff] }
  0x47   : > { %1496 = vmatmul.msk.bf16.vlgmr.msrb.gmra.mxu1 %vm414_vm4, %v1587_v22  ;;  %v1898_v46 = vpack.c.b16 %v682_v45, %v681_v39  ;;  %v683_v58 = vunpack.c.l.b16 %v643_v53  ;;  %v1508_v59 = vrot.slane %v1677_v12, 9  ;;  %v652_v10 = vrot.slane %v1683_v16, 5 }
  0x48   : > { %v1910_v52 = vpack.c.b16 %v680_v49, %v679_v48  ;;  %v646_v61 = vsel %vm1865_vm8, %v644_v57, %v645_v51  ;;  %v651_v9 = vrot.slane %v649_v54, 4  ;;  %v656_v16 = vrot.slane %v1781_v50, 5 }
  0x49   : > { %v684_v3 = vunpack.c.l.b16 %v646_v61  ;;  %v650_v11 = vsel %vm1865_vm8, %v1508_v59, %v649_v54  ;;  %v659_v23 = vrot.slane %v1786_v55, 5  ;;  %v663_v55 = vrot.slane %v1700_v30, 5  ;;  %v2027_v59 = vld [vmem:[%s1650_s18 + $0x68] sm:$0x1] }
  0x4a   : > { %v653_v15 = vsel %vm1865_vm8, %v651_v9, %v652_v10  ;;  %v685_v13 = vunpack.c.l.b16 %v650_v11  ;;  %v658_v22 = vrot.slane %v656_v16, 4  ;;  %v666_v34 = vrot.slane %v1707_v42, 5  ;;  %v2004_v42 = vld [vmem:[%s1650_s18 + $0x64] sm:$0xf] }
  0x4b   : > { %v1921_v29 = vpack.c.b16 %v684_v3, %v683_v58  ;;  %v686_v17 = vunpack.c.l.b16 %v653_v15  ;;  %v665_v0 = vrot.slane %v663_v55, 4  ;;  %v670_v2 = vrot.slane %v1801_v19, 5 }
  0x4c   : > { %1513 = vmatmul.msk.bf16.vlgmr.msrb.gmra.mxu2 %vm414_vm4, %v693_v36  ;;  %v660_v50 = vsel %vm1865_vm8, %v658_v22, %v659_v23  ;;  %v1510_v36 = vrot.slane %v1688_v21, 9  ;;  %v2001_v21 = vld [vmem:[%s1650_s18 + $0x60] sm:$0xf]  ;;  %v881_v47 = vshll.u32 %v2004_v42, 16  ;;  %v885_v48 = vshrl.u32 %v2004_v42, 16 }
  0x4d   : > { %v1958_v12 = vpack.c.b16 %v686_v17, %v685_v13  ;;  %v688_v32 = vunpack.c.l.b16 %v660_v50  ;;  %v667_v30 = vsel %vm1865_vm8, %v665_v0, %v666_v34  ;;  %v872_v5 = vshrl.u32 %v2001_v21, 16 }
  0x4e   : > { %v664_v39 = vsel %vm1865_vm8, %v1510_v36, %v663_v55  ;;  %v875_v62 = vshll.u32 %v2001_v21, 16  ;;  %v1511_v19 = vrot.slane %v1792_v63, 9  ;;  %v672_v7 = vrot.slane %v670_v2, 4  ;;  %v2055_v36 = vld [vmem:[%s1650_s18 + $0x60] sm:$0xff] }
  0x4f   : > { %v689_v43 = vunpack.c.l.b16 %v664_v39  ;;  %v673_v51 = vrot.slane %v1805_v27, 5  ;;  %v874_v53 = vrot.slane %v872_v5, 4  ;;  %v883_v58 = vrot.slane %v881_v47, 5 }
  0x50   : > { %1526 = vmatmul.msk.bf16.vlgmr.msrb.gmra.mxu3 %vm414_vm4, %v1588_v44  ;;  %v877_v57 = vrot.slane %v875_v62, 5  ;;  %v887_v61 = vrot.slane %v885_v48, 4  ;;  %v671_v9 = vsel %vm1865_vm8, %v1511_v19, %v670_v2  ;;  %v891_v11 = vshll.u32 %v2027_v59, 16 }
  0x51   : > { %v674_v63 = vsel %vm1865_vm8, %v672_v7, %v673_v51  ;;  %v691_v13 = vunpack.c.l.b16 %v671_v9  ;;  %vm1318_vm9 = vcmask 64512   ;;  %vm1357_vm10 = vcmask 57344  }
  0x52   : > { %v878_v10 = vor.u32 %v877_v57, %v874_v53  ;;  %v888_v27 = vor.u32 %v887_v61, %v883_v58  ;;  %v692_v17 = vunpack.c.l.b16 %v674_v63  ;;  %v893_v23 = vrot.slane %v891_v11, 5 }
  0x54   : > { %v889_v22 = vrot.slane %v888_v27, 4  ;;  %v2044_v50 = vpack.c.b16 %v692_v17, %v691_v13 }
  0x55   : > { %1535 = vmatmul.msk.bf16.vlgmr.msrb.gmra.mxu0 %vm414_vm4, %v407_v20  ;;  %v1509_v20 = vrot.slane %v1771_v40, 9 }
  0x56   : > { %v894_v55 = vsel %vm1695_vm5, %v889_v22, %v893_v23 }
  0x57   : > { %1497 = vmatmul.msk.bf16.gmra.mxu1 %vm414_vm4, %v1588_v44  ;;  %v657_v24 = vsel %vm1865_vm8, %v1509_v20, %v656_v16  ;;  %v690_v44 = vunpack.c.l.b16 %v667_v30  ;;  %v879_v20 = vrot.slane %v878_v10, 4  ;;  %v898_v39 = vunpack.c.l.b16 %v894_v55 }
  0x58   : > { %v687_v25 = vunpack.c.l.b16 %v657_v24 }
  0x59   : > { %v2006_v45 = vpack.c.b16 %v690_v44, %v689_v43 }
  0x5a   : > { %v1978_v40 = vpack.c.b16 %v688_v32, %v687_v25  ;;  %v884_v32 = vsel %vm1695_vm5, %v879_v20, %v883_v58 }
  0x5b   : > { %v897_v34 = vunpack.c.l.b16 %v884_v32 }
  0x5c   : > { %1514 = vmatmul.msk.bf16.gmra.mxu2 %vm414_vm4, %v1910_v52 }
  0x5d   : > { %v2063_v43 = vpack.c.b16 %v898_v39, %v897_v34 }
  0x60   : > { %1527 = vmatmul.msk.bf16.gmra.mxu3 %vm414_vm4, %v1919_v28 }
  0x65   : > { %1536 = vmatmul.msk.bf16.gmra.mxu0 %vm414_vm4, %v1726_v60 }
  0x67   : > { %1498 = vmatmul.msk.bf16.gmra.mxu1 %vm414_vm4, %v1919_v28 }
  0x6c   : > { %1515 = vmatmul.msk.bf16.gmra.mxu2 %vm414_vm4, %v1898_v46 }
  0x70   : > { %1528 = vmatmul.msk.bf16.gmra.mxu3 %vm414_vm4, %v1932_v35 }
  0x75   : > { %1537 = vmatmul.msk.bf16.gmra.mxu0 %vm414_vm4, %v1820_v56 }
  0x77   : > { %1499 = vmatmul.msk.bf16.gmra.mxu1 %vm414_vm4, %v1932_v35 }
  0x7c   : > { %1516 = vmatmul.msk.bf16.gmra.mxu2 %vm414_vm4, %v1921_v29 }
  0x80   : > { %1529 = vmatmul.msk.bf16.gmra.mxu3 %vm414_vm4, %v1944_v8 }
  0x85   : > { %1538 = vmatmul.msk.bf16.gmra.mxu0 %vm414_vm4, %v1742_v14 }
  0x87   : > { %1500 = vmatmul.msk.bf16.gmra.mxu1 %vm414_vm4, %v1944_v8 }
  0x8c   : > { %1517 = vmatmul.msk.bf16.gmra.mxu2 %vm414_vm4, %v1958_v12 }
  0x90   : > { %1530 = vmatmul.msk.bf16.gmra.mxu3 %vm414_vm4, %v1964_v18 }
  0x95   : > { %1539 = vmatmul.msk.bf16.gmra.mxu0 %vm414_vm4, %v1838_v31 }
  0x97   : > { %1501 = vmatmul.msk.bf16.gmra.mxu1 %vm414_vm4, %v1964_v18 }
  0x9c   : > { %1518 = vmatmul.msk.bf16.gmra.mxu2 %vm414_vm4, %v1978_v40 }
  0xa0   : > { %1531 = vmatmul.msk.bf16.gmra.mxu3 %vm414_vm4, %v1984_v33 }
  0xa1   : > { %v1990_v38 = vpop.f32.mrf.mxu1 }
  0xa5   : > { %1540 = vmatmul.msk.bf16.gmra.mxu0 %vm414_vm4, %v1773_v41 }
  0xa7   : > { %1502 = vmatmul.msk.bf16.gmra.mxu1 %vm414_vm4, %v1984_v33 }
  0xa9   : > { %v2009_v4 = vpop.f32.mrf.mxu1 }
  0xaa   : > { %v2015_v49 = vpop.f32.mrf.mxu2 }
  0xac   : > { %1519 = vmatmul.msk.bf16.gmra.mxu2 %vm414_vm4, %v2006_v45 }
  0xae   : > { %v2024_v54 = vpop.f32.mrf.mxu3 }
  0xaf   : > { %v452_v3 = vpop.f32.mrf.mxu0 }
  0xb0   : > { %1532 = vmatmul.msk.bf16.gmra.mxu3 %vm414_vm4, %v2020_v37 }
  0xb2   : > { %v2040_v16 = vpop.f32.mrf.mxu2 }
  0xb4   : > { %v2036_v15 = vpop.f32.mrf.mxu1 }
  0xb5   : > { %1541 = vmatmul.msk.bf16.gmra.mxu0 %vm414_vm4, %v1862_v1 }
  0xb6   : > { %v2046_v25 = vpop.f32.mrf.mxu3 }
  0xb7   : > { %1503 = vmatmul.msk.bf16.gmra.mxu1 %vm414_vm4, %v2020_v37  ;;  %v454_v24 = vpop.f32.mrf.mxu0 }
  0xbc   : > { %1520 = vmatmul.msk.bf16.gmra.mxu2 %vm414_vm4, %v2044_v50  ;;  %v2057_v0 = vpop.f32.mrf.mxu1 }
  0xbf   : > { %v2059_v30 = vpop.f32.mrf.mxu2 }
  0xc0   : > { %1533 = vmatmul.msk.bf16.gmra.mxu3 %vm414_vm4, %v2055_v36 }
  0xc2   : > { %v457_v44 = vpop.f32.mrf.mxu0 }
  0xc3   : > { %v2065_v2 = vpop.f32.mrf.mxu3 }
  0xc4   : > { %v568_v5 = vpop.f32.mrf.mxu1 }
  0xc5   : > { %1542 = vmatmul.msk.bf16.gmra.mxu0 %vm414_vm4, %v2063_v43  ;;  %v569_v62 = vadd.f32 %v568_v5, %v452_v3 }
  0xc7   : > { %v2069_v47 = vpop.f32.mrf.mxu2  ;;  %1545 = vmatmul.msk.bf16.vlgmr.msra.gmra.mxu1 %vm414_vm4, %v1910_v52 }
  0xca   : > { %v459_v48 = vpop.f32.mrf.mxu0 }
  0xcb   : > { %v2073_v19 = vpop.f32.mrf.mxu3 }
  0xcc   : > { %1558 = vmatmul.msk.bf16.vlgmr.msra.gmra.mxu2 %vm414_vm4, %v1919_v28  ;;  %v570_v7 = vpop.f32.mrf.mxu1 }
  0xcd   : > { %v571_v51 = vadd.f32 %v570_v7, %v454_v24 }
  0xcf   : > { %v737_v53 = vpop.f32.mrf.mxu2 }
  0xd0   : > { %1567 = vmatmul.msk.bf16.vlgmr.msra.gmra.mxu3 %vm414_vm4, %v1726_v60  ;;  %v777_v57 = vadd.f32 %v737_v53, %v569_v62 }
  0xd2   : > { %v915_v58 = vpop.f32.mrf.mxu0 }
  0xd3   : > { %v815_v61 = vpop.f32.mrf.mxu3 }
  0xd4   : > { %v855_v3 = vadd.f32 %v815_v61, %v777_v57  ;;  %v573_v9 = vpop.f32.mrf.mxu1 }
  0xd5   : > { %1577 = vmatmul.msk.bf16.vlgmr.msra.gmra.mxu0 %vm414_vm4, %v1898_v46  ;;  %v574_v52 = vadd.f32 %v573_v9, %v457_v44 }
  0xd6   : > { %v2081_v63 = vadd.f32 %v915_v58, %v855_v3 }
  0xd7   : > { %v739_v10 = vpop.f32.mrf.mxu2  ;;  %1546 = vmatmul.msk.bf16.gmra.mxu1 %vm414_vm4, %v1898_v46 }
  0xd8   : > { %v778_v28 = vadd.f32 %v739_v10, %v571_v51 }
  0xda   : > { %v917_v27 = vpop.f32.mrf.mxu0 }
  0xdb   : > { %v817_v11 = vpop.f32.mrf.mxu3 }
  0xdc   : > { %v856_v13 = vadd.f32 %v817_v11, %v778_v28  ;;  %1559 = vmatmul.msk.bf16.gmra.mxu2 %vm414_vm4, %v1932_v35  ;;  %v575_v60 = vpop.f32.mrf.mxu1 }
  0xdd   : > { %v576_v17 = vadd.f32 %v575_v60, %v459_v48 }
  0xde   : > { %v2087_v20 = vadd.f32 %v917_v27, %v856_v13 }
  0xdf   : > { %v742_v22 = vpop.f32.mrf.mxu2 }
  0xe0   : > { %1568 = vmatmul.msk.bf16.gmra.mxu3 %vm414_vm4, %v1820_v56  ;;  %v779_v23 = vadd.f32 %v742_v22, %v574_v52 }
  0xe2   : > { %v920_v24 = vpop.f32.mrf.mxu0 }
  0xe3   : > { %v820_v32 = vpop.f32.mrf.mxu3 }
  0xe4   : > { %v857_v55 = vadd.f32 %v820_v32, %v779_v23  ;;  %v578_v46 = vpop.f32.mrf.mxu1 }
  0xe5   : > { %1578 = vmatmul.msk.bf16.gmra.mxu0 %vm414_vm4, %v1921_v29  ;;  %v579_v34 = vadd.f32 %v578_v46, %v1990_v38 }
  0xe6   : > { %v2094_v39 = vadd.f32 %v920_v24, %v857_v55 }
  0xe7   : > { %v744_v35 = vpop.f32.mrf.mxu2  ;;  %1547 = vmatmul.msk.bf16.gmra.mxu1 %vm414_vm4, %v1921_v29 }
  0xe8   : > { %v780_v44 = vadd.f32 %v744_v35, %v576_v17 }
  0xea   : > { %v922_v5 = vpop.f32.mrf.mxu0 }
  0xeb   : > { %v822_v62 = vpop.f32.mrf.mxu3 }
  0xec   : > { %v858_v56 = vadd.f32 %v822_v62, %v780_v44  ;;  %1560 = vmatmul.msk.bf16.gmra.mxu2 %vm414_vm4, %v1944_v8  ;;  %v580_v48 = vpop.f32.mrf.mxu1 }
  0xed   : > { %v581_v7 = vadd.f32 %v580_v48, %v2009_v4 }
  0xee   : > { %v2101_v51 = vadd.f32 %v922_v5, %v858_v56 }
  0xef   : > { %v747_v53 = vpop.f32.mrf.mxu2 }
  0xf0   : > { %1569 = vmatmul.msk.bf16.gmra.mxu3 %vm414_vm4, %v1742_v14  ;;  %v781_v38 = vadd.f32 %v747_v53, %v579_v34 }
  0xf2   : > { %v925_v57 = vpop.f32.mrf.mxu0 }
  0xf3   : > { %v825_v58 = vpop.f32.mrf.mxu3 }
  0xf4   : > { %v859_v29 = vadd.f32 %v825_v58, %v781_v38  ;;  %v583_v61 = vpop.f32.mrf.mxu1 }
  0xf5   : > { %1579 = vmatmul.msk.bf16.gmra.mxu0 %vm414_vm4, %v1958_v12  ;;  %v584_v3 = vadd.f32 %v583_v61, %v2036_v15 }
  0xf6   : > { %v2108_v8 = vadd.f32 %v925_v57, %v859_v29 }
  0xf7   : > { %v749_v9 = vpop.f32.mrf.mxu2  ;;  %1548 = vmatmul.msk.bf16.gmra.mxu1 %vm414_vm4, %v1958_v12 }
  0xf8   : > { %v782_v4 = vadd.f32 %v749_v9, %v581_v7  ;;  %v2148_v9 = vld [vmem:[%s1650_s18 + $0x6c] sm:$0xf] }
  0xfa   : > { %v927_v52 = vpop.f32.mrf.mxu0 }
  0xfb   : > { %v827_v10 = vpop.f32.mrf.mxu3 }
  0xfc   : > { %v860_v14 = vadd.f32 %v827_v10, %v782_v4  ;;  %1561 = vmatmul.msk.bf16.gmra.mxu2 %vm414_vm4, %v1964_v18  ;;  %v585_v28 = vpop.f32.mrf.mxu1  ;;  %v2151_v4 = vld [vmem:[%s1650_s18 + $0x70] sm:$0xf] }
  0xfd   : > { %v586_v27 = vadd.f32 %v585_v28, %v2057_v0  ;;  %v1143_v28 = vshll.u32 %v2151_v4, 16 }
  0xfe   : > { %v2115_v11 = vadd.f32 %v927_v52, %v860_v14  ;;  %v1543_v14 = vrot.slane %v2001_v21, 9 }
  0xff   : > { %v752_v13 = vpop.f32.mrf.mxu2 }
 0x100   : > { %1570 = vmatmul.msk.bf16.gmra.mxu3 %vm414_vm4, %v1838_v31  ;;  %v783_v15 = vadd.f32 %v752_v13, %v584_v3  ;;  %v974_v3 = vrot.slane %v2004_v42, 5  ;;  %v1147_v42 = vshrl.u32 %v2151_v4, 16 }
 0x102   : > { %v930_v60 = vpop.f32.mrf.mxu0 }
 0x103   : > { %v830_v17 = vpop.f32.mrf.mxu3 }
 0x104   : > { %v861_v12 = vadd.f32 %v830_v17, %v783_v15  ;;  %v588_v22 = vpop.f32.mrf.mxu1  ;;  %v976_v15 = vrot.slane %v974_v3, 4 }
 0x105   : > { %1580 = vmatmul.msk.bf16.gmra.mxu0 %vm414_vm4, %v1978_v40  ;;  %v589_v46 = vadd.f32 %v588_v22, %v2015_v49 }
 0x106   : > { %v2121_v23 = vadd.f32 %v930_v60, %v861_v12  ;;  %v975_v12 = vsel %vm1865_vm8, %v1543_v14, %v974_v3 }
 0x107   : > { %v754_v18 = vpop.f32.mrf.mxu2  ;;  %1549 = vmatmul.msk.bf16.gmra.mxu1 %vm414_vm4, %v1978_v40 }
 0x108   : > { %v784_v0 = vadd.f32 %v754_v18, %v586_v27  ;;  %v977_v27 = vrot.slane %v2027_v59, 5 }
 0x10a   : > { %v932_v24 = vpop.f32.mrf.mxu0  ;;  %v978_v59 = vsel %vm1865_vm8, %v976_v15, %v977_v27 }
 0x10b   : > { %v832_v32 = vpop.f32.mrf.mxu3 }
 0x10c   : > { %v862_v55 = vadd.f32 %v832_v32, %v784_v0  ;;  %1562 = vmatmul.msk.bf16.gmra.mxu2 %vm414_vm4, %v1984_v33  ;;  %v590_v31 = vpop.f32.mrf.mxu1  ;;  %v1145_v0 = vrot.slane %v1143_v28, 5 }
 0x10d   : > { %v591_v48 = vadd.f32 %v590_v31, %v2040_v16 }
 0x10e   : > { %v2128_v34 = vadd.f32 %v932_v24, %v862_v55  ;;  %v1149_v24 = vrot.slane %v1147_v42, 4 }
 0x10f   : > { %v757_v35 = vpop.f32.mrf.mxu2 }
 0x110   : > { %1571 = vmatmul.msk.bf16.gmra.mxu3 %vm414_vm4, %v1773_v41  ;;  %v785_v44 = vadd.f32 %v757_v35, %v589_v46  ;;  %v981_v46 = vunpack.c.l.b16 %v975_v12  ;;  %v982_v35 = vunpack.c.l.b16 %v978_v59 }
 0x112   : > { %v935_v5 = vpop.f32.mrf.mxu0 }
 0x113   : > { %v835_v62 = vpop.f32.mrf.mxu3 }
 0x114   : > { %v863_v40 = vadd.f32 %v835_v62, %v785_v44  ;;  %v593_v56 = vpop.f32.mrf.mxu1 }
 0x115   : > { %1581 = vmatmul.msk.bf16.gmra.mxu0 %vm414_vm4, %v2006_v45  ;;  %v594_v58 = vadd.f32 %v593_v56, %v2059_v30  ;;  %v1134_v30 = vshrl.u32 %v2148_v9, 16 }
 0x116   : > { %v2137_v49 = vadd.f32 %v935_v5, %v863_v40  ;;  %v1150_v5 = vor.u32 %v1149_v24, %v1145_v0 }
 0x117   : > { %v759_v33 = vpop.f32.mrf.mxu2  ;;  %1550 = vmatmul.msk.bf16.gmra.mxu1 %vm414_vm4, %v2006_v45  ;;  %v1136_v22 = vrot.slane %v1134_v30, 4  ;;  %v1596_v30 = vld [vmem:[%s1650_s18 + $0x6c] sm:$0xff] }
 0x118   : > { %v786_v7 = vadd.f32 %v759_v33, %v591_v48 }
 0x11a   : > { %v937_v41 = vpop.f32.mrf.mxu0 }
 0x11b   : > { %v837_v53 = vpop.f32.mrf.mxu3 }
 0x11c   : > { %v864_v38 = vadd.f32 %v837_v53, %v786_v7  ;;  %1563 = vmatmul.msk.bf16.gmra.mxu2 %vm414_vm4, %v2020_v37  ;;  %v595_v57 = vpop.f32.mrf.mxu1  ;;  %v983_v7 = vpack.c.b16 %v982_v35, %v981_v46  ;;  %v1151_v53 = vrot.slane %v1150_v5, 4 }
 0x11d   : > { %v596_v13 = vadd.f32 %v595_v57, %v2069_v47  ;;  %v191_v47 = vld [vmem:[%s1650_s18 + $0x74] sm:$0x1]  ;;  %v1236_v57 = vrot.slane %v2151_v4, 5 }
 0x11e   : > { %v2142_v16 = vadd.f32 %v937_v41, %v864_v38  ;;  %v1153_v62 = vshll.u32 %v191_v47, 16 }
 0x11f   : > { %v762_v29 = vpop.f32.mrf.mxu2 }
 0x120   : > { %1572 = vmatmul.msk.bf16.gmra.mxu3 %vm414_vm4, %v1862_v1  ;;  %v787_v45 = vadd.f32 %v762_v29, %v594_v58  ;;  %v1137_v1 = vshll.u32 %v2148_v9, 16  ;;  %v1155_v38 = vrot.slane %v1153_v62, 5 }
 0x122   : > { %v940_v61 = vpop.f32.mrf.mxu0  ;;  %v1139_v18 = vrot.slane %v1137_v1, 5 }
 0x123   : > { %v840_v52 = vpop.f32.mrf.mxu3 }
 0x124   : > { %v865_v10 = vadd.f32 %v840_v52, %v787_v45  ;;  %v598_v37 = vpop.f32.mrf.mxu1  ;;  %v1140_v44 = vor.u32 %v1139_v18, %v1136_v22  ;;  %v1238_v52 = vrot.slane %v1236_v57, 4 }
 0x125   : > { %1582 = vmatmul.msk.bf16.gmra.mxu0 %vm414_vm4, %v2044_v50  ;;  %v599_v40 = vadd.f32 %v598_v37, %v2024_v54 }
 0x126   : > { %v2162_v60 = vadd.f32 %v940_v61, %v865_v10  ;;  %v1141_v41 = vrot.slane %v1140_v44, 4  ;;  %v1575_v61 = vrot.slane %v2148_v9, 9  ;;  %v1239_v10 = vrot.slane %v191_v47, 5 }
 0x127   : > { %v764_v21 = vpop.f32.mrf.mxu2  ;;  %1551 = vmatmul.msk.bf16.gmra.mxu1 %vm414_vm4, %v2044_v50 }
 0x128   : > { %v788_v17 = vadd.f32 %v764_v21, %v596_v13  ;;  %v1146_v54 = vsel %vm1695_vm5, %v1141_v41, %v1145_v0  ;;  %v1237_v26 = vsel %vm1865_vm8, %v1575_v61, %v1236_v57  ;;  %v1240_v9 = vsel %vm1865_vm8, %v1238_v52, %v1239_v10 }
 0x129   : > { %v1159_v1 = vunpack.c.l.b16 %v1146_v54  ;;  %v1243_v21 = vunpack.c.l.b16 %v1237_v26 }
 0x12a   : > { %v942_v32 = vpop.f32.mrf.mxu0 }
 0x12b   : > { %v842_v55 = vpop.f32.mrf.mxu3 }
 0x12c   : > { %v866_v31 = vadd.f32 %v842_v55, %v788_v17  ;;  %1564 = vmatmul.msk.bf16.gmra.mxu2 %vm414_vm4, %v2055_v36  ;;  %v600_v50 = vpop.f32.mrf.mxu1  ;;  %v1244_v17 = vunpack.c.l.b16 %v1240_v9 }
 0x12d   : > { %v601_v3 = vadd.f32 %v600_v50, %v2046_v25 }
 0x12e   : > { %v2174_v56 = vadd.f32 %v942_v32, %v866_v31  ;;  %v1245_v24 = vpack.c.b16 %v1244_v17, %v1243_v21 }
 0x12f   : > { %v767_v48 = vpop.f32.mrf.mxu2 }
 0x130   : > { %1573 = vmatmul.msk.bf16.gmra.mxu3 %vm414_vm4, %v2063_v43  ;;  %v789_v33 = vadd.f32 %v767_v48, %v599_v40  ;;  %v1156_v43 = vsel %vm1695_vm5, %v1151_v53, %v1155_v38 }
 0x131   : > { %v1160_v28 = vunpack.c.l.b16 %v1156_v43 }
 0x132   : > { %v945_v36 = vpop.f32.mrf.mxu0 }
 0x133   : > { %v845_v58 = vpop.f32.mrf.mxu3  ;;  %v1161_v13 = vpack.c.b16 %v1160_v28, %v1159_v1 }
 0x134   : > { %v867_v29 = vadd.f32 %v845_v58, %v789_v33  ;;  %v603_v45 = vpop.f32.mrf.mxu1 }
 0x135   : > { %1583 = vmatmul.msk.bf16.gmra.mxu0 %vm414_vm4, %v983_v7  ;;  %v604_v12 = vadd.f32 %v603_v45, %v2065_v2 }
 0x136   : > { %v2186_v37 = vadd.f32 %v945_v36, %v867_v29 }
 0x137   : > { %v769_v4 = vpop.f32.mrf.mxu2  ;;  %1552 = vmatmul.msk.bf16.gmra.mxu1 %vm414_vm4, %v983_v7 }
 0x138   : > { %v790_v14 = vadd.f32 %v769_v4, %v601_v3 }
 0x13a   : > { %v947_v42 = vpop.f32.mrf.mxu0 }
 0x13b   : > { %v847_v27 = vpop.f32.mrf.mxu3 }
 0x13c   : > { %v868_v25 = vadd.f32 %v847_v27, %v790_v14  ;;  %1565 = vmatmul.msk.bf16.gmra.mxu2 %vm414_vm4, %v1596_v30  ;;  %v605_v15 = vpop.f32.mrf.mxu1 }
 0x13d   : > { %v606_v31 = vadd.f32 %v605_v15, %v2073_v19 }
 0x13e   : > { %v2196_v22 = vadd.f32 %v947_v42, %v868_v25 }
 0x13f   : > { %v772_v18 = vpop.f32.mrf.mxu2 }
 0x140   : > { %1574 = vmatmul.msk.bf16.gmra.mxu3 %vm414_vm4, %v1161_v13  ;;  %v791_v0 = vadd.f32 %v772_v18, %v604_v12 }
 0x142   : > { %v950_v32 = vpop.f32.mrf.mxu0 }
 0x143   : > { %v850_v6 = vpop.f32.mrf.mxu3 }
 0x144   : > { %v869_v59 = vadd.f32 %v850_v6, %v791_v0  ;;  %v999_v47 = vpop.f32.mrf.mxu1 }
 0x145   : > { %1584 = vmatmul.msk.bf16.gmra.mxu0 %vm414_vm4, %v1245_v24  ;;  %v1039_v55 = vadd.f32 %v999_v47, %v2081_v63 }
 0x146   : > { %v2202_v46 = vadd.f32 %v950_v32, %v869_v59 }
 0x147   : > { %v774_v2 = vpop.f32.mrf.mxu2 }
 0x148   : > { %v792_v50 = vadd.f32 %v774_v2, %v606_v31 }
 0x14a   : > { %v952_v35 = vpop.f32.mrf.mxu0 }
 0x14b   : > { %v852_v44 = vpop.f32.mrf.mxu3 }
 0x14c   : > { %v870_v5 = vadd.f32 %v852_v44, %v792_v50  ;;  %v1001_v62 = vpop.f32.mrf.mxu1 }
 0x14d   : > { %v1040_v40 = vadd.f32 %v1001_v62, %v2087_v20 }
 0x14e   : > { %v2205_v48 = vadd.f32 %v952_v35, %v870_v5 }
 0x14f   : > { %v1077_v33 = vpop.f32.mrf.mxu2 }
 0x150   : > { %v1117_v7 = vadd.f32 %v1077_v33, %v1039_v55 }
 0x152   : > { %v1261_v41 = vpop.f32.mrf.mxu0 }
 0x153   : > { %v1177_v53 = vpop.f32.mrf.mxu3 }
 0x154   : > { %v1217_v38 = vadd.f32 %v1177_v53, %v1117_v7  ;;  %v1004_v63 = vpop.f32.mrf.mxu1 }
 0x155   : > { %v1041_v19 = vadd.f32 %v1004_v63, %v2094_v39 }
 0x156   : > { %v1301_v36 = vadd.f32 %v1261_v41, %v1217_v38 }
 0x157   : > { %v1079_v57 = vpop.f32.mrf.mxu2 }
 0x158   : > { %v1118_v58 = vadd.f32 %v1079_v57, %v1040_v40  ;;  %v1360_v61 = vmul.f32 %v1301_v36, %v1301_v36  ;;  %v1319_v10 = vsel %vm1318_vm9, %v1301_v36, 0.0 }
 0x15a   : > { %v1263_v29 = vpop.f32.mrf.mxu0  ;;  %v1376_v1 = vsel %vm1318_vm9, %v1360_v61, 0.0 }
 0x15b   : > { %v1179_v45 = vpop.f32.mrf.mxu3 }
 0x15c   : > { %v1218_v54 = vadd.f32 %v1179_v45, %v1118_v58  ;;  %v1006_v43 = vpop.f32.mrf.mxu1 }
 0x15d   : > { %v1042_v20 = vadd.f32 %v1006_v43, %v2101_v51 }
 0x15e   : > { %v1302_v3 = vadd.f32 %v1263_v29, %v1218_v54 }
 0x15f   : > { %v1082_v52 = vpop.f32.mrf.mxu2 }
 0x160   : > { %v1320_v4 = vsel %vm1318_vm9, %v1302_v3, 0.0  ;;  %v1361_v14 = vmul.f32 %v1302_v3, %v1302_v3  ;;  %v1119_v30 = vadd.f32 %v1082_v52, %v1041_v19 }
 0x161   : > { %v1321_v39 = vadd.f32 %v1320_v4, %v1319_v10 }
 0x162   : > { %v1377_v28 = vsel %vm1318_vm9, %v1361_v14, 0.0  ;;  %v1266_v42 = vpop.f32.mrf.mxu0 }
 0x163   : > { %v1378_v26 = vadd.f32 %v1377_v28, %v1376_v1  ;;  %v1182_v9 = vpop.f32.mrf.mxu3 }
 0x164   : > { %v1219_v27 = vadd.f32 %v1182_v9, %v1119_v30  ;;  %v1009_v25 = vpop.f32.mrf.mxu1 }
 0x165   : > { %v1043_v51 = vadd.f32 %v1009_v25, %v2108_v8 }
 0x166   : > { %v1303_v13 = vadd.f32 %v1266_v42, %v1219_v27 }
 0x167   : > { %v1084_v15 = vpop.f32.mrf.mxu2 }
 0x168   : > { %v1322_v21 = vsel %vm1318_vm9, %v1303_v13, 0.0  ;;  %v1362_v17 = vmul.f32 %v1303_v13, %v1303_v13  ;;  %v1120_v12 = vadd.f32 %v1084_v15, %v1042_v20 }
 0x169   : > { %v1323_v18 = vadd.f32 %v1322_v21, %v1321_v39 }
 0x16a   : > { %v1379_v0 = vsel %vm1318_vm9, %v1362_v17, 0.0  ;;  %v1268_v24 = vpop.f32.mrf.mxu0 }
 0x16b   : > { %v1380_v32 = vadd.f32 %v1379_v0, %v1378_v26  ;;  %v1184_v6 = vpop.f32.mrf.mxu3 }
 0x16c   : > { %v1220_v59 = vadd.f32 %v1184_v6, %v1120_v12  ;;  %v1011_v47 = vpop.f32.mrf.mxu1 }
 0x16d   : > { %v1044_v53 = vadd.f32 %v1011_v47, %v2115_v11 }
 0x16e   : > { %v1304_v55 = vadd.f32 %v1268_v24, %v1220_v59 }
 0x16f   : > { %v1087_v31 = vpop.f32.mrf.mxu2 }
 0x170   : > { %v1324_v2 = vsel %vm1318_vm9, %v1304_v55, 0.0  ;;  %v1363_v50 = vmul.f32 %v1304_v55, %v1304_v55  ;;  %v1121_v8 = vadd.f32 %v1087_v31, %v1043_v51 }
 0x171   : > { %v1325_v35 = vadd.f32 %v1324_v2, %v1323_v18 }
 0x172   : > { %v1381_v44 = vsel %vm1318_vm9, %v1363_v50, 0.0  ;;  %v1271_v5 = vpop.f32.mrf.mxu0 }
 0x173   : > { %v1382_v62 = vadd.f32 %v1381_v44, %v1380_v32  ;;  %v1187_v40 = vpop.f32.mrf.mxu3 }
 0x174   : > { %v1221_v33 = vadd.f32 %v1187_v40, %v1121_v8  ;;  %v1014_v7 = vpop.f32.mrf.mxu1 }
 0x175   : > { %v1045_v3 = vadd.f32 %v1014_v7, %v2121_v23 }
 0x176   : > { %v1305_v41 = vadd.f32 %v1271_v5, %v1221_v33 }
 0x177   : > { %v1089_v38 = vpop.f32.mrf.mxu2 }
 0x178   : > { %v1326_v63 = vsel %vm1318_vm9, %v1305_v41, 0.0  ;;  %v1364_v19 = vmul.f32 %v1305_v41, %v1305_v41  ;;  %v1122_v36 = vadd.f32 %v1089_v38, %v1044_v53 }
 0x179   : > { %v1327_v57 = vadd.f32 %v1326_v63, %v1325_v35 }
 0x17a   : > { %v1383_v58 = vsel %vm1318_vm9, %v1364_v19, 0.0  ;;  %v1273_v29 = vpop.f32.mrf.mxu0 }
 0x17b   : > { %v1384_v45 = vadd.f32 %v1383_v58, %v1382_v62  ;;  %v1189_v54 = vpop.f32.mrf.mxu3 }
 0x17c   : > { %v1222_v43 = vadd.f32 %v1189_v54, %v1122_v36  ;;  %v1016_v20 = vpop.f32.mrf.mxu1 }
 0x17d   : > { %v1046_v27 = vadd.f32 %v1016_v20, %v2128_v34 }
 0x17e   : > { %v1306_v61 = vadd.f32 %v1273_v29, %v1222_v43 }
 0x17f   : > { %v1092_v52 = vpop.f32.mrf.mxu2 }
 0x180   : > { %v1328_v10 = vsel %vm1318_vm9, %v1306_v61, 0.0  ;;  %v1365_v11 = vmul.f32 %v1306_v61, %v1306_v61  ;;  %v1123_v4 = vadd.f32 %v1092_v52, %v1045_v3 }
 0x181   : > { %v1329_v14 = vadd.f32 %v1328_v10, %v1327_v57 }
 0x182   : > { %v1385_v30 = vsel %vm1318_vm9, %v1365_v11, 0.0  ;;  %v1276_v39 = vpop.f32.mrf.mxu0 }
 0x183   : > { %v1386_v1 = vadd.f32 %v1385_v30, %v1384_v45  ;;  %v1192_v28 = vpop.f32.mrf.mxu3 }
 0x184   : > { %v1223_v42 = vadd.f32 %v1192_v28, %v1123_v4  ;;  %v1019_v26 = vpop.f32.mrf.mxu1 }
 0x185   : > { %v1047_v6 = vadd.f32 %v1019_v26, %v2137_v49 }
 0x186   : > { %v1307_v9 = vadd.f32 %v1276_v39, %v1223_v42 }
 0x187   : > { %v1094_v25 = vpop.f32.mrf.mxu2 }
 0x188   : > { %v1330_v51 = vsel %vm1318_vm9, %v1307_v9, 0.0  ;;  %v1366_v23 = vmul.f32 %v1307_v9, %v1307_v9  ;;  %v1124_v13 = vadd.f32 %v1094_v25, %v1046_v27 }
 0x189   : > { %v1331_v15 = vadd.f32 %v1330_v51, %v1329_v14 }
 0x18a   : > { %v1387_v21 = vsel %vm1318_vm9, %v1366_v23, 0.0  ;;  %v1278_v17 = vpop.f32.mrf.mxu0 }
 0x18b   : > { %v1388_v12 = vadd.f32 %v1387_v21, %v1386_v1  ;;  %v1194_v18 = vpop.f32.mrf.mxu3 }
 0x18c   : > { %v1224_v0 = vadd.f32 %v1194_v18, %v1124_v13  ;;  %v1021_v24 = vpop.f32.mrf.mxu1 }
 0x18d   : > { %v1048_v40 = vadd.f32 %v1021_v24, %v2142_v16 }
 0x18e   : > { %v1308_v32 = vadd.f32 %v1278_v17, %v1224_v0 }
 0x18f   : > { %v1097_v59 = vpop.f32.mrf.mxu2 }
 0x190   : > { %v1332_v47 = vsel %vm1318_vm9, %v1308_v32, 0.0  ;;  %v1367_v34 = vmul.f32 %v1308_v32, %v1308_v32  ;;  %v1125_v55 = vadd.f32 %v1097_v59, %v1047_v6 }
 0x191   : > { %v1333_v31 = vadd.f32 %v1332_v47, %v1331_v15 }
 0x192   : > { %v1389_v2 = vsel %vm1318_vm9, %v1367_v34, 0.0  ;;  %v1281_v50 = vpop.f32.mrf.mxu0 }
 0x193   : > { %v1390_v8 = vadd.f32 %v1389_v2, %v1388_v12  ;;  %v1197_v35 = vpop.f32.mrf.mxu3 }
 0x194   : > { %v1225_v44 = vadd.f32 %v1197_v35, %v1125_v55  ;;  %v1024_v5 = vpop.f32.mrf.mxu1 }
 0x195   : > { %v1049_v45 = vadd.f32 %v1024_v5, %v2162_v60 }
 0x196   : > { %v1309_v62 = vadd.f32 %v1281_v50, %v1225_v44 }
 0x197   : > { %v1099_v33 = vpop.f32.mrf.mxu2 }
 0x198   : > { %v1334_v7 = vsel %vm1318_vm9, %v1309_v62, 0.0  ;;  %v1368_v49 = vmul.f32 %v1309_v62, %v1309_v62  ;;  %v1126_v41 = vadd.f32 %v1099_v33, %v1048_v40 }
 0x199   : > { %v1335_v53 = vadd.f32 %v1334_v7, %v1333_v31 }
 0x19a   : > { %v1391_v38 = vsel %vm1318_vm9, %v1368_v49, 0.0  ;;  %v1283_v63 = vpop.f32.mrf.mxu0 }
 0x19b   : > { %v1392_v19 = vadd.f32 %v1391_v38, %v1390_v8  ;;  %v1199_v36 = vpop.f32.mrf.mxu3 }
 0x19c   : > { %v1226_v57 = vadd.f32 %v1199_v36, %v1126_v41  ;;  %v1026_v58 = vpop.f32.mrf.mxu1 }
 0x19d   : > { %v1050_v39 = vadd.f32 %v1026_v58, %v2174_v56 }
 0x19e   : > { %v1310_v29 = vadd.f32 %v1283_v63, %v1226_v57 }
 0x19f   : > { %v1102_v54 = vpop.f32.mrf.mxu2 }
 0x1a0   : > { %v1336_v43 = vsel %vm1318_vm9, %v1310_v29, 0.0  ;;  %v1369_v16 = vmul.f32 %v1310_v29, %v1310_v29  ;;  %v1127_v20 = vadd.f32 %v1102_v54, %v1049_v45 }
 0x1a1   : > { %v1337_v61 = vadd.f32 %v1336_v43, %v1335_v53 }
 0x1a2   : > { %v1393_v3 = vsel %vm1318_vm9, %v1369_v16, 0.0  ;;  %v1286_v52 = vpop.f32.mrf.mxu0 }
 0x1a3   : > { %v1394_v10 = vadd.f32 %v1393_v3, %v1392_v19  ;;  %v1202_v11 = vpop.f32.mrf.mxu3 }
 0x1a4   : > { %v1227_v4 = vadd.f32 %v1202_v11, %v1127_v20  ;;  %v1029_v14 = vpop.f32.mrf.mxu1 }
 0x1a5   : > { %v1051_v15 = vadd.f32 %v1029_v14, %v2186_v37 }
 0x1a6   : > { %v1311_v30 = vadd.f32 %v1286_v52, %v1227_v4 }
 0x1a7   : > { %v1104_v1 = vpop.f32.mrf.mxu2 }
 0x1a8   : > { %v1338_v28 = vsel %vm1318_vm9, %v1311_v30, 0.0  ;;  %v1370_v60 = vmul.f32 %v1311_v30, %v1311_v30  ;;  %v1128_v42 = vadd.f32 %v1104_v1, %v1050_v39 }
 0x1a9   : > { %v1339_v26 = vadd.f32 %v1338_v28, %v1337_v61 }
 0x1aa   : > { %v1395_v9 = vsel %vm1318_vm9, %v1370_v60, 0.0  ;;  %v1288_v27 = vpop.f32.mrf.mxu0 }
 0x1ab   : > { %v1396_v25 = vadd.f32 %v1395_v9, %v1394_v10  ;;  %v1204_v51 = vpop.f32.mrf.mxu3 }
 0x1ac   : > { %v1228_v23 = vadd.f32 %v1204_v51, %v1128_v42  ;;  %v1031_v21 = vpop.f32.mrf.mxu1 }
 0x1ad   : > { %v1052_v55 = vadd.f32 %v1031_v21, %v2196_v22  ;;  %v1317_v21 = vld [vmem:[%s2270_s2] sm:$0x1] }
 0x1ae   : > { %v1312_v13 = vadd.f32 %v1288_v27, %v1228_v23 }
 0x1af   : > { %v1107_v17 = vpop.f32.mrf.mxu2 }
 0x1b0   : > { %v1340_v12 = vsel %vm1318_vm9, %v1312_v13, 0.0  ;;  %v1371_v56 = vmul.f32 %v1312_v13, %v1312_v13  ;;  %v1129_v18 = vadd.f32 %v1107_v17, %v1051_v15 }
 0x1b1   : > { %v1341_v0 = vadd.f32 %v1340_v12, %v1339_v26 }
 0x1b2   : > { %v1397_v24 = vsel %vm1318_vm9, %v1371_v56, 0.0  ;;  %v1291_v32 = vpop.f32.mrf.mxu0  ;;  %v1359_v56 = vld [vmem:[%s2271_s3] sm:$0x1] }
 0x1b3   : > { %v1398_v6 = vadd.f32 %v1397_v24, %v1396_v25  ;;  %v1207_v59 = vpop.f32.mrf.mxu3 }
 0x1b4   : > { %v1229_v47 = vadd.f32 %v1207_v59, %v1129_v18  ;;  %v1034_v8 = vpop.f32.mrf.mxu1 }
 0x1b5   : > { %v1053_v49 = vadd.f32 %v1034_v8, %v2202_v46 }
 0x1b6   : > { %v1313_v34 = vadd.f32 %v1291_v32, %v1229_v47 }
 0x1b7   : > { %v1109_v31 = vpop.f32.mrf.mxu2 }
 0x1b8   : > { %v1342_v2 = vsel %vm1318_vm9, %v1313_v34, 0.0  ;;  %v1372_v37 = vmul.f32 %v1313_v34, %v1313_v34  ;;  %v1130_v50 = vadd.f32 %v1109_v31, %v1052_v55 }
 0x1b9   : > { %v1343_v35 = vadd.f32 %v1342_v2, %v1341_v0 }
 0x1ba   : > { %v1399_v44 = vsel %vm1318_vm9, %v1372_v37, 0.0  ;;  %v1293_v5 = vpop.f32.mrf.mxu0 }
 0x1bb   : > { %v1400_v62 = vadd.f32 %v1399_v44, %v1398_v6  ;;  %v1209_v40 = vpop.f32.mrf.mxu3 }
 0x1bc   : > { %v1230_v33 = vadd.f32 %v1209_v40, %v1130_v50  ;;  %v1036_v36 = vpop.f32.mrf.mxu1 }
 0x1bd   : > { %v1054_v43 = vadd.f32 %v1036_v36, %v2205_v48 }
 0x1be   : > { %v1314_v7 = vadd.f32 %v1293_v5, %v1230_v33 }
 0x1bf   : > { %v1112_v41 = vpop.f32.mrf.mxu2 }
 0x1c0   : > { %v1344_v53 = vsel %vm1318_vm9, %v1314_v7, 0.0  ;;  %v1373_v22 = vmul.f32 %v1314_v7, %v1314_v7  ;;  %v1131_v38 = vadd.f32 %v1112_v41, %v1053_v49 }
 0x1c1   : > { %v1345_v63 = vadd.f32 %v1344_v53, %v1343_v35 }
 0x1c2   : > { %v1401_v19 = vsel %vm1318_vm9, %v1373_v22, 0.0  ;;  %v1296_v58 = vpop.f32.mrf.mxu0 }
 0x1c3   : > { %v1402_v57 = vadd.f32 %v1401_v19, %v1400_v62  ;;  %v1212_v29 = vpop.f32.mrf.mxu3 }
 0x1c4   : > { %v1231_v45 = vadd.f32 %v1212_v29, %v1131_v38 }
 0x1c6   : > { %v1315_v54 = vadd.f32 %v1296_v58, %v1231_v45 }
 0x1c7   : > { %v1114_v16 = vpop.f32.mrf.mxu2 }
 0x1c8   : > { %v1346_v20 = vsel %vm1318_vm9, %v1315_v54, 0.0  ;;  %v1374_v46 = vmul.f32 %v1315_v54, %v1315_v54  ;;  %v1132_v61 = vadd.f32 %v1114_v16, %v1054_v43 }
 0x1c9   : > { %v1347_v3 = vadd.f32 %v1346_v20, %v1345_v63 }
 0x1ca   : > { %v1403_v52 = vsel %vm1318_vm9, %v1374_v46, 0.0  ;;  %v1298_v14 = vpop.f32.mrf.mxu0 }
 0x1cb   : > { %v1404_v10 = vadd.f32 %v1403_v52, %v1402_v57  ;;  %v1214_v11 = vpop.f32.mrf.mxu3 }
 0x1cc   : > { %v1232_v4 = vadd.f32 %v1214_v11, %v1132_v61 }
 0x1ce   : > { %v1316_v30 = vadd.f32 %v1298_v14, %v1232_v4 }
 0x1d0   : > { %v1348_v39 = vsel %vm1318_vm9, %v1316_v30, 0.0  ;;  %v1375_v1 = vmul.f32 %v1316_v30, %v1316_v30 }
 0x1d1   : > { %v1349_v28 = vadd.f32 %v1348_v39, %v1347_v3 }
 0x1d2   : > { %v1405_v60 = vsel %vm1318_vm9, %v1375_v1, 0.0 }
 0x1d3   : > { %v1350_v48 = vrot.slane %v1349_v28, 4  ;;  %v1406_v42 = vadd.f32 %v1405_v60, %v1404_v10 }
 0x1d5   : > { %v1351_v26 = vadd.f32 %v1350_v48, %v1349_v28  ;;  %v1407_v9 = vrot.slane %v1406_v42, 4 }
 0x1d7   : > { %v1352_v27 = vrot.slane %v1351_v26, 2  ;;  %v1408_v25 = vadd.f32 %v1407_v9, %v1406_v42 }
 0x1d9   : > { %v1353_v51 = vadd.f32 %v1352_v27, %v1351_v26  ;;  %v1409_v23 = vrot.slane %v1408_v25, 2 }
 0x1db   : > { %v1354_v13 = vrot.slane %v1353_v51, 1  ;;  %v1410_v15 = vadd.f32 %v1409_v23, %v1408_v25 }
 0x1dd   : > { %v1355_v17 = vadd.f32 %v1354_v13, %v1353_v51  ;;  %v1411_v12 = vrot.slane %v1410_v15, 1 }
 0x1df   : > { %v1356_v18 = vadd.f32 %v1355_v17, %v1317_v21  ;;  %v1412_v0 = vadd.f32 %v1411_v12, %v1410_v15 }
 0x1e1   : > { %1358 = vst.msk [vmem:[%s2270_s2] sm:$0x1] %vm1357_vm10, %v1356_v18  ;;  %v1413_v24 = vadd.f32 %v1412_v0, %v1359_v56 }
 0x1e3   : > { %1414 = vst.msk [vmem:[%s2271_s3] sm:$0x1] %vm1357_vm10, %v1413_v24 }
 0x1e4 PF: > { %s14_s12 = sadd.s32 1, %s1616_s12  }
 0x1e5   : > { %p11_p5 = scmp.ge.s32.totalorder %s14_s12, 6  }
 0x1e7   :  { %13 = sbr.rel (!%p11_p5) target bundleno = 1 (0x1), region = 74 }

// kernel: double_conv_forward.8
= control target key start
LH: loop header
LB: loop body
LE: loop exit
PB: predicated region body
PF: predicated region fallthrough
CT: control target
= control target key end

     0   :  { %s1639_s12 = smov 0   ;;  %s2268_s0 = inlined_call_operand.vmem [shape: bf16[4,10,18,8], index: 0, kind: input, shape index: {}]   ;;  %s2269_s1 = inlined_call_operand.vmem [shape: bf16[9,8,4], index: 1, kind: input, shape index: {}]   ;;  %s2270_s2 = inlined_call_operand.vmem [shape: f32[1,4], index: 2, kind: output, shape index: {0}]   ;;  %s2271_s3 = inlined_call_operand.vmem [shape: f32[1,4], index: 3, kind: output, shape index: {1}]  }
   0x1 LB: > { %s1449_s13 = sadd.s32 4294967295, %s1616_s12   ;;  %p1452_p0 = scmp.ge.s32.totalorder %s1616_s12, 1  ;;  %s1616_s12 = sphi %s1639_s12, %s14_s12  }
   0x2   : > { %p130_p1 = scmp.lt.s32.totalorder %s1616_s12, 5 }
   0x4   : > { %p131_p2 = pnand %p1452_p0, %p130_p1 }
   0x5   : > { %p149_p3 = scmp.lt.s32.totalorder (!%p131_p2), %s1449_s13, 3  ;;  %p1454_p4 = scmp.ne.s32.totalorder (!%p131_p2), %s1449_s13, 0 }
   0x6   : > { %134 = sbr.rel (%p131_p2) target bundleno = 484 (0x1e4), region = 28 }
   0xb   : > { %s150_s14 = scalar_select %p149_p3, %s1449_s13, 3 }
   0xc   : > { %158 = sbr.rel (%p1454_p4) target bundleno = 20 (0x14), region = 32 }
   0xd   : > { %s1600_s15 = smul.u32 120, %s150_s14 }
   0xf   : > { %s1650_s18 = scalar_lea.vmem %s2268_s0, %s1600_s15 }
  0x11   : > { %vm159_vm0 = vcmask 24576   ;;  %v1618_v0 = vmov 0.0  }
  0x12   : > { %160 = vst.msk [vmem:[%s2270_s2] sm:$0x1] %vm159_vm0, %v1618_v0 }
  0x13   : > { %161 = vst.msk [vmem:[%s2271_s3] sm:$0x1] %vm159_vm0, %v1618_v0 }
  0x14 PF: > { %v1455_v1 = vld [vmem:[%s2269_s1 + $0x4] sm:$0xf]  ;;  %vm439_vm1 = vcmask 1043456   ;;  %v1662_v2 = vld [vmem:[%s1650_s18 + $0x18] sm:$0xf]  ;;  %vm414_vm4 = vcmask 64512  }
  0x15   : > { %v441_v3 = vsel %vm439_vm1, %v1455_v1, 0  ;;  %v1666_v4 = vld [vmem:[%s1650_s18 + $0x1c] sm:$0xf]  ;;  %v1669_v5 = vld [vmem:[%s1650_s18 + $0x20] sm:$0x1]  ;;  %v245_v6 = vshrl.u32 %v1662_v2, 16 }
  0x16   : > { %1597 = vmatpush.bf16.msra.mxu1 %v441_v3  ;;  %1598 = vmatpush.bf16.msra.mxu2 %v441_v3  ;;  %vm193_vm2 = vsmask.f32 3328  ;;  %vm194_vm3 = vsmask.f32 7440  ;;  %v248_v7 = vshll.u32 %v1662_v2, 16  ;;  %v254_v8 = vshll.u32 %v1666_v4, 16 }
  0x17   : > { %1599 = vmatpush.bf16.msra.mxu3 %v441_v3  ;;  %450 = vmatpush.bf16.msra.mxu0 %v441_v3  ;;  %v247_v9 = vrot.slane %v245_v6, 4  ;;  %v258_v10 = vshrl.u32 %v1666_v4, 16  ;;  %v264_v11 = vshll.u32 %v1669_v5, 16  ;;  %v1677_v12 = vld [vmem:[%s1650_s18 + $0x30] sm:$0xf]  ;;  %vm1695_vm5 = vmor %vm193_vm2, %vm194_vm3  ;;  %vm616_vm6 = vcmask 1042432  }
  0x18   : > { %v250_v13 = vrot.slane %v248_v7, 5  ;;  %v256_v14 = vrot.slane %v254_v8, 5  ;;  %v1680_v15 = vld [vmem:[%s1650_s18 + $0x34] sm:$0xf]  ;;  %v1683_v16 = vld [vmem:[%s1650_s18 + $0x38] sm:$0x1] }
  0x19   : > { %v260_v17 = vrot.slane %v258_v10, 4  ;;  %v266_v18 = vrot.slane %v264_v11, 5  ;;  %v293_v19 = vshrl.u32 %v1677_v12, 16  ;;  %v296_v20 = vshll.u32 %v1677_v12, 16  ;;  %v1688_v21 = vld [vmem:[%s1650_s18 + $0x48] sm:$0xf] }
  0x1a   : > { %v251_v22 = vor.u32 %v250_v13, %v247_v9  ;;  %v302_v23 = vshll.u32 %v1680_v15, 16  ;;  %v306_v24 = vshrl.u32 %v1680_v15, 16  ;;  %v312_v25 = vshll.u32 %v1683_v16, 16  ;;  %v1700_v30 = vld [vmem:[%s1650_s18 + $0x4c] sm:$0xf] }
  0x1b   : > { %v261_v27 = vor.u32 %v260_v17, %v256_v14  ;;  %v295_v28 = vrot.slane %v293_v19, 4  ;;  %v298_v29 = vrot.slane %v296_v20, 5  ;;  %v341_v31 = vshrl.u32 %v1688_v21, 16  ;;  %v1707_v42 = vld [vmem:[%s1650_s18 + $0x50] sm:$0x1] }
  0x1c   : > { %v252_v32 = vrot.slane %v251_v22, 4  ;;  %v304_v33 = vrot.slane %v302_v23, 5  ;;  %v308_v34 = vrot.slane %v306_v24, 4  ;;  %v314_v35 = vrot.slane %v312_v25, 5  ;;  %v1512_v45 = vld [vmem:[%s2269_s1 + $0x8] sm:$0xf] }
  0x1d   : > { %v262_v36 = vrot.slane %v261_v27, 4  ;;  %v299_v37 = vor.u32 %v298_v29, %v295_v28  ;;  %v343_v38 = vrot.slane %v341_v31, 4  ;;  %v344_v39 = vshll.u32 %v1688_v21, 16  ;;  %v1717_v54 = vld [vmem:[%s1650_s18] sm:$0xf] }
  0x1e   : > { %v257_v40 = vsel %vm1695_vm5, %v252_v32, %v256_v14  ;;  %v309_v41 = vor.u32 %v308_v34, %v304_v33  ;;  %v350_v43 = vshll.u32 %v1700_v30, 16  ;;  %v354_v44 = vshrl.u32 %v1700_v30, 16  ;;  %v1724_v59 = vld [vmem:[%s1650_s18 + $0x4] sm:$0xf]  ;;  %v1731_v0 = vld [vmem:[%s1650_s18 + $0x8] sm:$0x1] }
  0x1f   : > { %v267_v46 = vsel %vm1695_vm5, %v262_v36, %v266_v18  ;;  %v394_v47 = vunpack.c.l.b16 %v257_v40  ;;  %v300_v48 = vrot.slane %v299_v37, 4  ;;  %v346_v49 = vrot.slane %v344_v39, 5  ;;  %v1521_v13 = vld [vmem:[%s2269_s1 + $0xc] sm:$0xf]  ;;  %v192_v20 = vld [vmem:[%s2269_s1] sm:$0xf] }
  0x20   : > { %v395_v50 = vunpack.c.l.b16 %v267_v46  ;;  %v310_v51 = vrot.slane %v309_v41, 4  ;;  %v352_v52 = vrot.slane %v350_v43, 5  ;;  %v356_v53 = vrot.slane %v354_v44, 4  ;;  %v1534_v22 = vld [vmem:[%s2269_s1 + $0x10] sm:$0xf] }
  0x21   : > { %v305_v55 = vsel %vm1695_vm5, %v300_v48, %v304_v33  ;;  %v347_v56 = vor.u32 %v346_v49, %v343_v38  ;;  %v360_v57 = vshll.u32 %v1707_v42, 16  ;;  %v726_v58 = vsel %vm439_vm1, %v1512_v45, 0  ;;  %v1756_v28 = vld [vmem:[%s1650_s18 + $0x24] sm:$0xf]  ;;  %v1759_v29 = vld [vmem:[%s1650_s18 + $0x28] sm:$0xf] }
  0x22   : > { %v1726_v60 = vpack.c.b16 %v395_v50, %v394_v47  ;;  %v315_v61 = vsel %vm1695_vm5, %v310_v51, %v314_v35  ;;  %v398_v62 = vunpack.c.l.b16 %v305_v55  ;;  %v357_v63 = vor.u32 %v356_v53, %v352_v52  ;;  %735 = vmatpush.bf16.msrb.mxu2 %v726_v58  ;;  %v1765_v35 = vld [vmem:[%s1650_s18 + $0x2c] sm:$0x1]  ;;  %v1771_v40 = vld [vmem:[%s1650_s18 + $0x3c] sm:$0xf]  ;;  %v1781_v50 = vld [vmem:[%s1650_s18 + $0x40] sm:$0xf] }
  0x23   : > { %v399_v1 = vunpack.c.l.b16 %v315_v61  ;;  %v348_v3 = vrot.slane %v347_v56, 4  ;;  %v362_v6 = vrot.slane %v360_v57, 5  ;;  %v197_v7 = vshrl.u32 %v1717_v54, 16  ;;  %v1786_v55 = vld [vmem:[%s1650_s18 + $0x44] sm:$0x1] }
  0x24   : > { %1458 = vmatmul.msk.bf16.vlgmr.msra.gmra.mxu1 %vm414_vm4, %v1726_v60  ;;  %v358_v8 = vrot.slane %v357_v63, 4  ;;  %v200_v9 = vshll.u32 %v1717_v54, 16  ;;  %v206_v10 = vshll.u32 %v1724_v59, 16  ;;  %v210_v11 = vshrl.u32 %v1724_v59, 16  ;;  %v1792_v63 = vld [vmem:[%s1650_s18 + $0x54] sm:$0xf] }
  0x25   : > { %v1742_v14 = vpack.c.b16 %v399_v1, %v398_v62  ;;  %v353_v17 = vsel %vm1695_vm5, %v348_v3, %v352_v52  ;;  %v199_v18 = vrot.slane %v197_v7, 4  ;;  %v216_v19 = vshll.u32 %v1731_v0, 16 }
  0x26   : > { %v363_v23 = vsel %vm1695_vm5, %v358_v8, %v362_v6  ;;  %v402_v24 = vunpack.c.l.b16 %v353_v17  ;;  %v202_v25 = vrot.slane %v200_v9, 5  ;;  %v208_v27 = vrot.slane %v206_v10, 5 }
  0x27   : > { %1460 = vmatmul.msk.bf16.vlgmr.msra.gmra.mxu2 %vm414_vm4, %v1742_v14  ;;  %v403_v31 = vunpack.c.l.b16 %v363_v23  ;;  %v212_v32 = vrot.slane %v210_v11, 4  ;;  %v218_v33 = vrot.slane %v216_v19, 5  ;;  %v624_v34 = vrot.slane %v1731_v0, 5  ;;  %v1801_v19 = vld [vmem:[%s1650_s18 + $0x58] sm:$0xf] }
  0x28   : > { %v203_v36 = vor.u32 %v202_v25, %v199_v18  ;;  %v804_v37 = vsel %vm439_vm1, %v1521_v13, 0  ;;  %v557_v38 = vsel %vm439_vm1, %v192_v20, 0  ;;  %v904_v39 = vsel %vm439_vm1, %v1534_v22, 0 }
  0x29   : > { %v1773_v41 = vpack.c.b16 %v403_v31, %v402_v24  ;;  %v213_v43 = vor.u32 %v212_v32, %v208_v27  ;;  %813 = vmatpush.bf16.msrb.mxu3 %v804_v37  ;;  %566 = vmatpush.bf16.msrb.mxu1 %v557_v38  ;;  %v269_v44 = vshrl.u32 %v1756_v28, 16  ;;  %v272_v45 = vshll.u32 %v1756_v28, 16  ;;  %v1810_v37 = vld [vmem:[%s1650_s18 + $0xc] sm:$0xf] }
  0x2a   : > { %v204_v46 = vrot.slane %v203_v36, 4  ;;  %913 = vmatpush.bf16.msrb.mxu0 %v904_v39  ;;  %v278_v47 = vshll.u32 %v1759_v29, 16  ;;  %v282_v48 = vshrl.u32 %v1759_v29, 16  ;;  %v288_v49 = vshll.u32 %v1765_v35, 16 }
  0x2b   : > { %1462 = vmatmul.msk.bf16.vlgmr.msra.gmra.mxu3 %vm414_vm4, %v1773_v41  ;;  %v214_v51 = vrot.slane %v213_v43, 4  ;;  %v271_v52 = vrot.slane %v269_v44, 4  ;;  %v274_v53 = vrot.slane %v272_v45, 5  ;;  %v317_v56 = vshrl.u32 %v1771_v40, 16 }
  0x2c   : > { %v209_v57 = vsel %vm1695_vm5, %v204_v46, %v208_v27  ;;  %v280_v58 = vrot.slane %v278_v47, 5  ;;  %v284_v61 = vrot.slane %v282_v48, 4  ;;  %v290_v62 = vrot.slane %v288_v49, 5  ;;  %v1805_v27 = vld [vmem:[%s1650_s18 + $0x5c] sm:$0x1] }
  0x2d   : > { %v219_v1 = vsel %vm1695_vm5, %v214_v51, %v218_v33  ;;  %v390_v3 = vunpack.c.l.b16 %v209_v57  ;;  %v275_v6 = vor.u32 %v274_v53, %v271_v52  ;;  %v319_v7 = vrot.slane %v317_v56, 4 }
  0x2e   : > { %v391_v8 = vunpack.c.l.b16 %v219_v1  ;;  %v285_v9 = vor.u32 %v284_v61, %v280_v58  ;;  %v320_v10 = vshll.u32 %v1771_v40, 16  ;;  %v326_v11 = vshll.u32 %v1781_v50, 16 }
  0x2f   : > { %v276_v13 = vrot.slane %v275_v6, 4  ;;  %v330_v17 = vshrl.u32 %v1781_v50, 16  ;;  %v336_v18 = vshll.u32 %v1786_v55, 16  ;;  %v365_v20 = vshrl.u32 %v1792_v63, 16 }
  0x30   : > { %v406_v22 = vpack.c.b16 %v391_v8, %v390_v3  ;;  %v286_v23 = vrot.slane %v285_v9, 4  ;;  %v322_v24 = vrot.slane %v320_v10, 5  ;;  %v328_v25 = vrot.slane %v326_v11, 5 }
  0x31   : > { %v281_v31 = vsel %vm1695_vm5, %v276_v13, %v280_v58  ;;  %v332_v32 = vrot.slane %v330_v17, 4  ;;  %v338_v33 = vrot.slane %v336_v18, 5  ;;  %v367_v36 = vrot.slane %v365_v20, 4 }
  0x32   : > { %1456 = vmatmul.msk.bf16.vlgmr.msra.gmra.mxu0 %vm414_vm4, %v406_v22  ;;  %v291_v38 = vsel %vm1695_vm5, %v286_v23, %v290_v62  ;;  %v396_v39 = vunpack.c.l.b16 %v281_v31  ;;  %v323_v43 = vor.u32 %v322_v24, %v319_v7  ;;  %v368_v44 = vshll.u32 %v1792_v63, 16  ;;  %v1823_v62 = vld [vmem:[%s1650_s18 + $0x10] sm:$0xf]  ;;  %v1828_v7 = vld [vmem:[%s1650_s18 + $0x14] sm:$0x1] }
  0x33   : > { %v397_v45 = vunpack.c.l.b16 %v291_v38  ;;  %v333_v46 = vor.u32 %v332_v32, %v328_v25  ;;  %v374_v47 = vshll.u32 %v1801_v19, 16  ;;  %v378_v48 = vshrl.u32 %v1801_v19, 16  ;;  %v1553_v38 = vld [vmem:[%s2269_s1 + $0x18] sm:$0xf] }
  0x34   : > { %v324_v49 = vrot.slane %v323_v43, 4  ;;  %v370_v51 = vrot.slane %v368_v44, 5  ;;  %v384_v52 = vshll.u32 %v1805_v27, 16  ;;  %v221_v53 = vshrl.u32 %v1810_v37, 16 }
  0x35   : > { %v1820_v56 = vpack.c.b16 %v397_v45, %v396_v39  ;;  %v334_v57 = vrot.slane %v333_v46, 4  ;;  %v376_v58 = vrot.slane %v374_v47, 5  ;;  %v380_v61 = vrot.slane %v378_v48, 4  ;;  %v1566_v39 = vld [vmem:[%s2269_s1 + $0x1c] sm:$0xf] }
  0x36   : > { %v329_v1 = vsel %vm1695_vm5, %v324_v49, %v328_v25  ;;  %v371_v3 = vor.u32 %v370_v51, %v367_v36  ;;  %v386_v6 = vrot.slane %v384_v52, 5  ;;  %v223_v8 = vrot.slane %v221_v53, 4  ;;  %v1544_v47 = vld [vmem:[%s2269_s1 + $0x14] sm:$0xf]  ;;  %v1576_v48 = vld [vmem:[%s2269_s1 + $0x20] sm:$0xf] }
  0x37   : > { %1459 = vmatmul.msk.bf16.gmra.mxu1 %vm414_vm4, %v1820_v56  ;;  %v339_v9 = vsel %vm1695_vm5, %v334_v57, %v338_v33  ;;  %v400_v10 = vunpack.c.l.b16 %v329_v1  ;;  %v381_v11 = vor.u32 %v380_v61, %v376_v58  ;;  %v224_v13 = vshll.u32 %v1810_v37, 16 }
  0x38   : > { %v401_v17 = vunpack.c.l.b16 %v339_v9  ;;  %v372_v18 = vrot.slane %v371_v3, 4  ;;  %v230_v20 = vshll.u32 %v1823_v62, 16  ;;  %v234_v22 = vshrl.u32 %v1823_v62, 16 }
  0x39   : > { %v382_v23 = vrot.slane %v381_v11, 4  ;;  %v226_v24 = vrot.slane %v224_v13, 5  ;;  %v240_v25 = vshll.u32 %v1828_v7, 16  ;;  %vm617_vm7 = vcmask 1046532  }
  0x3a   : > { %v1838_v31 = vpack.c.b16 %v401_v17, %v400_v10  ;;  %v377_v32 = vsel %vm1695_vm5, %v372_v18, %v376_v58  ;;  %v232_v33 = vrot.slane %v230_v20, 5  ;;  %v236_v36 = vrot.slane %v234_v22, 4  ;;  %vm1865_vm8 = vmor %vm616_vm6, %vm617_vm7  ;;  %v1587_v22 = vld [vmem:[%s1650_s18] sm:$0xff] }
  0x3b   : > { %v387_v43 = vsel %vm1695_vm5, %v382_v23, %v386_v6  ;;  %v404_v44 = vunpack.c.l.b16 %v377_v32  ;;  %v227_v45 = vor.u32 %v226_v24, %v223_v8  ;;  %v242_v46 = vrot.slane %v240_v25, 5 }
  0x3c   : > { %1461 = vmatmul.msk.bf16.gmra.mxu2 %vm414_vm4, %v1838_v31  ;;  %v405_v49 = vunpack.c.l.b16 %v387_v43  ;;  %v237_v51 = vor.u32 %v236_v36, %v232_v33  ;;  %v1504_v52 = vrot.slane %v1717_v54, 9  ;;  %v621_v57 = vrot.slane %v1724_v59, 5 }
  0x3d   : > { %v228_v53 = vrot.slane %v227_v45, 4  ;;  %v1066_v58 = vsel %vm439_vm1, %v1553_v38, 0  ;;  %v1166_v61 = vsel %vm439_vm1, %v1566_v39, 0  ;;  %v988_v54 = vsel %vm439_vm1, %v1544_v47, 0 }
  0x3e   : > { %v1862_v1 = vpack.c.b16 %v405_v49, %v404_v44  ;;  %v238_v3 = vrot.slane %v237_v51, 4  ;;  %1075 = vmatpush.bf16.msra.mxu2 %v1066_v58  ;;  %1175 = vmatpush.bf16.msra.mxu3 %v1166_v61  ;;  %v1250_v8 = vsel %vm439_vm1, %v1576_v48, 0  ;;  %v623_v9 = vrot.slane %v621_v57, 4  ;;  %v1588_v44 = vld [vmem:[%s1650_s18 + $0xc] sm:$0xff] }
  0x3f   : > { %v233_v59 = vsel %vm1695_vm5, %v228_v53, %v232_v33  ;;  %997 = vmatpush.bf16.msra.mxu1 %v988_v54  ;;  %1259 = vmatpush.bf16.msra.mxu0 %v1250_v8  ;;  %v622_v17 = vsel %vm1865_vm8, %v1504_v52, %v621_v57  ;;  %v1506_v25 = vrot.slane %v1662_v2, 9  ;;  %v635_v32 = vrot.slane %v1666_v4, 5  ;;  %v1944_v8 = vld [vmem:[%s1650_s18 + $0x30] sm:$0xff] }
  0x40   : > { %1463 = vmatmul.msk.bf16.gmra.mxu3 %vm414_vm4, %v1862_v1  ;;  %v243_v10 = vsel %vm1695_vm5, %v238_v3, %v242_v46  ;;  %v392_v11 = vunpack.c.l.b16 %v233_v59  ;;  %v625_v18 = vsel %vm1865_vm8, %v623_v9, %v624_v34  ;;  %v677_v23 = vunpack.c.l.b16 %v622_v17 }
  0x41   : > { %v393_v13 = vunpack.c.l.b16 %v243_v10  ;;  %v678_v24 = vunpack.c.l.b16 %v625_v18  ;;  %v638_v33 = vrot.slane %v1669_v5, 5  ;;  %v628_v0 = vrot.slane %v1823_v62, 5  ;;  %v1964_v18 = vld [vmem:[%s1650_s18 + $0x3c] sm:$0xff] }
  0x42   : > { %v636_v34 = vsel %vm1865_vm8, %v1506_v25, %v635_v32  ;;  %v637_v38 = vrot.slane %v635_v32, 4  ;;  %v1505_v2 = vrot.slane %v1810_v37, 9  ;;  %v631_v5 = vrot.slane %v1828_v7, 5 }
  0x43   : > { %v407_v20 = vpack.c.b16 %v393_v13, %v392_v11  ;;  %v693_v36 = vpack.c.b16 %v678_v24, %v677_v23  ;;  %v681_v39 = vunpack.c.l.b16 %v636_v34  ;;  %v630_v4 = vrot.slane %v628_v0, 4 }
  0x44   : > { %v639_v43 = vsel %vm1865_vm8, %v637_v38, %v638_v33  ;;  %v629_v62 = vsel %vm1865_vm8, %v1505_v2, %v628_v0  ;;  %v1507_v37 = vrot.slane %v1756_v28, 9  ;;  %v642_v7 = vrot.slane %v1759_v29, 5  ;;  %v1919_v28 = vld [vmem:[%s1650_s18 + $0x18] sm:$0xff]  ;;  %v1984_v33 = vld [vmem:[%s1650_s18 + $0x48] sm:$0xff] }
  0x45   : > { %1457 = vmatmul.msk.bf16.gmra.mxu0 %vm414_vm4, %v407_v20  ;;  %v682_v45 = vunpack.c.l.b16 %v639_v43  ;;  %v632_v47 = vsel %vm1865_vm8, %v630_v4, %v631_v5  ;;  %v679_v48 = vunpack.c.l.b16 %v629_v62  ;;  %v645_v51 = vrot.slane %v1765_v35, 5  ;;  %v1932_v35 = vld [vmem:[%s1650_s18 + $0x24] sm:$0xff] }
  0x46   : > { %v680_v49 = vunpack.c.l.b16 %v632_v47  ;;  %v643_v53 = vsel %vm1865_vm8, %v1507_v37, %v642_v7  ;;  %v644_v57 = vrot.slane %v642_v7, 4  ;;  %v649_v54 = vrot.slane %v1680_v15, 5  ;;  %v2020_v37 = vld [vmem:[%s1650_s18 + $0x54] sm:$0xff] }
  0x47   : > { %1496 = vmatmul.msk.bf16.vlgmr.msrb.gmra.mxu1 %vm414_vm4, %v1587_v22  ;;  %v1898_v46 = vpack.c.b16 %v682_v45, %v681_v39  ;;  %v683_v58 = vunpack.c.l.b16 %v643_v53  ;;  %v1508_v59 = vrot.slane %v1677_v12, 9  ;;  %v652_v10 = vrot.slane %v1683_v16, 5 }
  0x48   : > { %v1910_v52 = vpack.c.b16 %v680_v49, %v679_v48  ;;  %v646_v61 = vsel %vm1865_vm8, %v644_v57, %v645_v51  ;;  %v651_v9 = vrot.slane %v649_v54, 4  ;;  %v656_v16 = vrot.slane %v1781_v50, 5 }
  0x49   : > { %v684_v3 = vunpack.c.l.b16 %v646_v61  ;;  %v650_v11 = vsel %vm1865_vm8, %v1508_v59, %v649_v54  ;;  %v659_v23 = vrot.slane %v1786_v55, 5  ;;  %v663_v55 = vrot.slane %v1700_v30, 5  ;;  %v2027_v59 = vld [vmem:[%s1650_s18 + $0x68] sm:$0x1] }
  0x4a   : > { %v653_v15 = vsel %vm1865_vm8, %v651_v9, %v652_v10  ;;  %v685_v13 = vunpack.c.l.b16 %v650_v11  ;;  %v658_v22 = vrot.slane %v656_v16, 4  ;;  %v666_v34 = vrot.slane %v1707_v42, 5  ;;  %v2004_v42 = vld [vmem:[%s1650_s18 + $0x64] sm:$0xf] }
  0x4b   : > { %v1921_v29 = vpack.c.b16 %v684_v3, %v683_v58  ;;  %v686_v17 = vunpack.c.l.b16 %v653_v15  ;;  %v665_v0 = vrot.slane %v663_v55, 4  ;;  %v670_v2 = vrot.slane %v1801_v19, 5 }
  0x4c   : > { %1513 = vmatmul.msk.bf16.vlgmr.msrb.gmra.mxu2 %vm414_vm4, %v693_v36  ;;  %v660_v50 = vsel %vm1865_vm8, %v658_v22, %v659_v23  ;;  %v1510_v36 = vrot.slane %v1688_v21, 9  ;;  %v2001_v21 = vld [vmem:[%s1650_s18 + $0x60] sm:$0xf]  ;;  %v881_v47 = vshll.u32 %v2004_v42, 16  ;;  %v885_v48 = vshrl.u32 %v2004_v42, 16 }
  0x4d   : > { %v1958_v12 = vpack.c.b16 %v686_v17, %v685_v13  ;;  %v688_v32 = vunpack.c.l.b16 %v660_v50  ;;  %v667_v30 = vsel %vm1865_vm8, %v665_v0, %v666_v34  ;;  %v872_v5 = vshrl.u32 %v2001_v21, 16 }
  0x4e   : > { %v664_v39 = vsel %vm1865_vm8, %v1510_v36, %v663_v55  ;;  %v875_v62 = vshll.u32 %v2001_v21, 16  ;;  %v1511_v19 = vrot.slane %v1792_v63, 9  ;;  %v672_v7 = vrot.slane %v670_v2, 4  ;;  %v2055_v36 = vld [vmem:[%s1650_s18 + $0x60] sm:$0xff] }
  0x4f   : > { %v689_v43 = vunpack.c.l.b16 %v664_v39  ;;  %v673_v51 = vrot.slane %v1805_v27, 5  ;;  %v874_v53 = vrot.slane %v872_v5, 4  ;;  %v883_v58 = vrot.slane %v881_v47, 5 }
  0x50   : > { %1526 = vmatmul.msk.bf16.vlgmr.msrb.gmra.mxu3 %vm414_vm4, %v1588_v44  ;;  %v877_v57 = vrot.slane %v875_v62, 5  ;;  %v887_v61 = vrot.slane %v885_v48, 4  ;;  %v671_v9 = vsel %vm1865_vm8, %v1511_v19, %v670_v2  ;;  %v891_v11 = vshll.u32 %v2027_v59, 16 }
  0x51   : > { %v674_v63 = vsel %vm1865_vm8, %v672_v7, %v673_v51  ;;  %v691_v13 = vunpack.c.l.b16 %v671_v9  ;;  %vm1318_vm9 = vcmask 31744   ;;  %vm1357_vm10 = vcmask 24576  }
  0x52   : > { %v878_v10 = vor.u32 %v877_v57, %v874_v53  ;;  %v888_v27 = vor.u32 %v887_v61, %v883_v58  ;;  %v692_v17 = vunpack.c.l.b16 %v674_v63  ;;  %v893_v23 = vrot.slane %v891_v11, 5 }
  0x54   : > { %v889_v22 = vrot.slane %v888_v27, 4  ;;  %v2044_v50 = vpack.c.b16 %v692_v17, %v691_v13 }
  0x55   : > { %1535 = vmatmul.msk.bf16.vlgmr.msrb.gmra.mxu0 %vm414_vm4, %v407_v20  ;;  %v1509_v20 = vrot.slane %v1771_v40, 9 }
  0x56   : > { %v894_v55 = vsel %vm1695_vm5, %v889_v22, %v893_v23 }
  0x57   : > { %1497 = vmatmul.msk.bf16.gmra.mxu1 %vm414_vm4, %v1588_v44  ;;  %v657_v24 = vsel %vm1865_vm8, %v1509_v20, %v656_v16  ;;  %v690_v44 = vunpack.c.l.b16 %v667_v30  ;;  %v879_v20 = vrot.slane %v878_v10, 4  ;;  %v898_v39 = vunpack.c.l.b16 %v894_v55 }
  0x58   : > { %v687_v25 = vunpack.c.l.b16 %v657_v24 }
  0x59   : > { %v2006_v45 = vpack.c.b16 %v690_v44, %v689_v43 }
  0x5a   : > { %v1978_v40 = vpack.c.b16 %v688_v32, %v687_v25  ;;  %v884_v32 = vsel %vm1695_vm5, %v879_v20, %v883_v58 }
  0x5b   : > { %v897_v34 = vunpack.c.l.b16 %v884_v32 }
  0x5c   : > { %1514 = vmatmul.msk.bf16.gmra.mxu2 %vm414_vm4, %v1910_v52 }
  0x5d   : > { %v2063_v43 = vpack.c.b16 %v898_v39, %v897_v34 }
  0x60   : > { %1527 = vmatmul.msk.bf16.gmra.mxu3 %vm414_vm4, %v1919_v28 }
  0x65   : > { %1536 = vmatmul.msk.bf16.gmra.mxu0 %vm414_vm4, %v1726_v60 }
  0x67   : > { %1498 = vmatmul.msk.bf16.gmra.mxu1 %vm414_vm4, %v1919_v28 }
  0x6c   : > { %1515 = vmatmul.msk.bf16.gmra.mxu2 %vm414_vm4, %v1898_v46 }
  0x70   : > { %1528 = vmatmul.msk.bf16.gmra.mxu3 %vm414_vm4, %v1932_v35 }
  0x75   : > { %1537 = vmatmul.msk.bf16.gmra.mxu0 %vm414_vm4, %v1820_v56 }
  0x77   : > { %1499 = vmatmul.msk.bf16.gmra.mxu1 %vm414_vm4, %v1932_v35 }
  0x7c   : > { %1516 = vmatmul.msk.bf16.gmra.mxu2 %vm414_vm4, %v1921_v29 }
  0x80   : > { %1529 = vmatmul.msk.bf16.gmra.mxu3 %vm414_vm4, %v1944_v8 }
  0x85   : > { %1538 = vmatmul.msk.bf16.gmra.mxu0 %vm414_vm4, %v1742_v14 }
  0x87   : > { %1500 = vmatmul.msk.bf16.gmra.mxu1 %vm414_vm4, %v1944_v8 }
  0x8c   : > { %1517 = vmatmul.msk.bf16.gmra.mxu2 %vm414_vm4, %v1958_v12 }
  0x90   : > { %1530 = vmatmul.msk.bf16.gmra.mxu3 %vm414_vm4, %v1964_v18 }
  0x95   : > { %1539 = vmatmul.msk.bf16.gmra.mxu0 %vm414_vm4, %v1838_v31 }
  0x97   : > { %1501 = vmatmul.msk.bf16.gmra.mxu1 %vm414_vm4, %v1964_v18 }
  0x9c   : > { %1518 = vmatmul.msk.bf16.gmra.mxu2 %vm414_vm4, %v1978_v40 }
  0xa0   : > { %1531 = vmatmul.msk.bf16.gmra.mxu3 %vm414_vm4, %v1984_v33 }
  0xa1   : > { %v1990_v38 = vpop.f32.mrf.mxu1 }
  0xa5   : > { %1540 = vmatmul.msk.bf16.gmra.mxu0 %vm414_vm4, %v1773_v41 }
  0xa7   : > { %1502 = vmatmul.msk.bf16.gmra.mxu1 %vm414_vm4, %v1984_v33 }
  0xa9   : > { %v2009_v4 = vpop.f32.mrf.mxu1 }
  0xaa   : > { %v2015_v49 = vpop.f32.mrf.mxu2 }
  0xac   : > { %1519 = vmatmul.msk.bf16.gmra.mxu2 %vm414_vm4, %v2006_v45 }
  0xae   : > { %v2024_v54 = vpop.f32.mrf.mxu3 }
  0xaf   : > { %v452_v3 = vpop.f32.mrf.mxu0 }
  0xb0   : > { %1532 = vmatmul.msk.bf16.gmra.mxu3 %vm414_vm4, %v2020_v37 }
  0xb2   : > { %v2040_v16 = vpop.f32.mrf.mxu2 }
  0xb4   : > { %v2036_v15 = vpop.f32.mrf.mxu1 }
  0xb5   : > { %1541 = vmatmul.msk.bf16.gmra.mxu0 %vm414_vm4, %v1862_v1 }
  0xb6   : > { %v2046_v25 = vpop.f32.mrf.mxu3 }
  0xb7   : > { %1503 = vmatmul.msk.bf16.gmra.mxu1 %vm414_vm4, %v2020_v37  ;;  %v454_v24 = vpop.f32.mrf.mxu0 }
  0xbc   : > { %1520 = vmatmul.msk.bf16.gmra.mxu2 %vm414_vm4, %v2044_v50  ;;  %v2057_v0 = vpop.f32.mrf.mxu1 }
  0xbf   : > { %v2059_v30 = vpop.f32.mrf.mxu2 }
  0xc0   : > { %1533 = vmatmul.msk.bf16.gmra.mxu3 %vm414_vm4, %v2055_v36 }
  0xc2   : > { %v457_v44 = vpop.f32.mrf.mxu0 }
  0xc3   : > { %v2065_v2 = vpop.f32.mrf.mxu3 }
  0xc4   : > { %v568_v5 = vpop.f32.mrf.mxu1 }
  0xc5   : > { %1542 = vmatmul.msk.bf16.gmra.mxu0 %vm414_vm4, %v2063_v43  ;;  %v569_v62 = vadd.f32 %v568_v5, %v452_v3 }
  0xc7   : > { %v2069_v47 = vpop.f32.mrf.mxu2  ;;  %1545 = vmatmul.msk.bf16.vlgmr.msra.gmra.mxu1 %vm414_vm4, %v1910_v52 }
  0xca   : > { %v459_v48 = vpop.f32.mrf.mxu0 }
  0xcb   : > { %v2073_v19 = vpop.f32.mrf.mxu3 }
  0xcc   : > { %1558 = vmatmul.msk.bf16.vlgmr.msra.gmra.mxu2 %vm414_vm4, %v1919_v28  ;;  %v570_v7 = vpop.f32.mrf.mxu1 }
  0xcd   : > { %v571_v51 = vadd.f32 %v570_v7, %v454_v24 }
  0xcf   : > { %v737_v53 = vpop.f32.mrf.mxu2 }
  0xd0   : > { %1567 = vmatmul.msk.bf16.vlgmr.msra.gmra.mxu3 %vm414_vm4, %v1726_v60  ;;  %v777_v57 = vadd.f32 %v737_v53, %v569_v62 }
  0xd2   : > { %v915_v58 = vpop.f32.mrf.mxu0 }
  0xd3   : > { %v815_v61 = vpop.f32.mrf.mxu3 }
  0xd4   : > { %v855_v3 = vadd.f32 %v815_v61, %v777_v57  ;;  %v573_v9 = vpop.f32.mrf.mxu1 }
  0xd5   : > { %1577 = vmatmul.msk.bf16.vlgmr.msra.gmra.mxu0 %vm414_vm4, %v1898_v46  ;;  %v574_v52 = vadd.f32 %v573_v9, %v457_v44 }
  0xd6   : > { %v2081_v63 = vadd.f32 %v915_v58, %v855_v3 }
  0xd7   : > { %v739_v10 = vpop.f32.mrf.mxu2  ;;  %1546 = vmatmul.msk.bf16.gmra.mxu1 %vm414_vm4, %v1898_v46 }
  0xd8   : > { %v778_v28 = vadd.f32 %v739_v10, %v571_v51 }
  0xda   : > { %v917_v27 = vpop.f32.mrf.mxu0 }
  0xdb   : > { %v817_v11 = vpop.f32.mrf.mxu3 }
  0xdc   : > { %v856_v13 = vadd.f32 %v817_v11, %v778_v28  ;;  %1559 = vmatmul.msk.bf16.gmra.mxu2 %vm414_vm4, %v1932_v35  ;;  %v575_v60 = vpop.f32.mrf.mxu1 }
  0xdd   : > { %v576_v17 = vadd.f32 %v575_v60, %v459_v48 }
  0xde   : > { %v2087_v20 = vadd.f32 %v917_v27, %v856_v13 }
  0xdf   : > { %v742_v22 = vpop.f32.mrf.mxu2 }
  0xe0   : > { %1568 = vmatmul.msk.bf16.gmra.mxu3 %vm414_vm4, %v1820_v56  ;;  %v779_v23 = vadd.f32 %v742_v22, %v574_v52 }
  0xe2   : > { %v920_v24 = vpop.f32.mrf.mxu0 }
  0xe3   : > { %v820_v32 = vpop.f32.mrf.mxu3 }
  0xe4   : > { %v857_v55 = vadd.f32 %v820_v32, %v779_v23  ;;  %v578_v46 = vpop.f32.mrf.mxu1 }
  0xe5   : > { %1578 = vmatmul.msk.bf16.gmra.mxu0 %vm414_vm4, %v1921_v29  ;;  %v579_v34 = vadd.f32 %v578_v46, %v1990_v38 }
  0xe6   : > { %v2094_v39 = vadd.f32 %v920_v24, %v857_v55 }
  0xe7   : > { %v744_v35 = vpop.f32.mrf.mxu2  ;;  %1547 = vmatmul.msk.bf16.gmra.mxu1 %vm414_vm4, %v1921_v29 }
  0xe8   : > { %v780_v44 = vadd.f32 %v744_v35, %v576_v17 }
  0xea   : > { %v922_v5 = vpop.f32.mrf.mxu0 }
  0xeb   : > { %v822_v62 = vpop.f32.mrf.mxu3 }
  0xec   : > { %v858_v56 = vadd.f32 %v822_v62, %v780_v44  ;;  %1560 = vmatmul.msk.bf16.gmra.mxu2 %vm414_vm4, %v1944_v8  ;;  %v580_v48 = vpop.f32.mrf.mxu1 }
  0xed   : > { %v581_v7 = vadd.f32 %v580_v48, %v2009_v4 }
  0xee   : > { %v2101_v51 = vadd.f32 %v922_v5, %v858_v56 }
  0xef   : > { %v747_v53 = vpop.f32.mrf.mxu2 }
  0xf0   : > { %1569 = vmatmul.msk.bf16.gmra.mxu3 %vm414_vm4, %v1742_v14  ;;  %v781_v38 = vadd.f32 %v747_v53, %v579_v34 }
  0xf2   : > { %v925_v57 = vpop.f32.mrf.mxu0 }
  0xf3   : > { %v825_v58 = vpop.f32.mrf.mxu3 }
  0xf4   : > { %v859_v29 = vadd.f32 %v825_v58, %v781_v38  ;;  %v583_v61 = vpop.f32.mrf.mxu1 }
  0xf5   : > { %1579 = vmatmul.msk.bf16.gmra.mxu0 %vm414_vm4, %v1958_v12  ;;  %v584_v3 = vadd.f32 %v583_v61, %v2036_v15 }
  0xf6   : > { %v2108_v8 = vadd.f32 %v925_v57, %v859_v29 }
  0xf7   : > { %v749_v9 = vpop.f32.mrf.mxu2  ;;  %1548 = vmatmul.msk.bf16.gmra.mxu1 %vm414_vm4, %v1958_v12 }
  0xf8   : > { %v782_v4 = vadd.f32 %v749_v9, %v581_v7  ;;  %v2148_v9 = vld [vmem:[%s1650_s18 + $0x6c] sm:$0xf] }
  0xfa   : > { %v927_v52 = vpop.f32.mrf.mxu0 }
  0xfb   : > { %v827_v10 = vpop.f32.mrf.mxu3 }
  0xfc   : > { %v860_v14 = vadd.f32 %v827_v10, %v782_v4  ;;  %1561 = vmatmul.msk.bf16.gmra.mxu2 %vm414_vm4, %v1964_v18  ;;  %v585_v28 = vpop.f32.mrf.mxu1  ;;  %v2151_v4 = vld [vmem:[%s1650_s18 + $0x70] sm:$0xf] }
  0xfd   : > { %v586_v27 = vadd.f32 %v585_v28, %v2057_v0  ;;  %v1143_v28 = vshll.u32 %v2151_v4, 16 }
  0xfe   : > { %v2115_v11 = vadd.f32 %v927_v52, %v860_v14  ;;  %v1543_v14 = vrot.slane %v2001_v21, 9 }
  0xff   : > { %v752_v13 = vpop.f32.mrf.mxu2 }
 0x100   : > { %1570 = vmatmul.msk.bf16.gmra.mxu3 %vm414_vm4, %v1838_v31  ;;  %v783_v15 = vadd.f32 %v752_v13, %v584_v3  ;;  %v974_v3 = vrot.slane %v2004_v42, 5  ;;  %v1147_v42 = vshrl.u32 %v2151_v4, 16 }
 0x102   : > { %v930_v60 = vpop.f32.mrf.mxu0 }
 0x103   : > { %v830_v17 = vpop.f32.mrf.mxu3 }
 0x104   : > { %v861_v12 = vadd.f32 %v830_v17, %v783_v15  ;;  %v588_v22 = vpop.f32.mrf.mxu1  ;;  %v976_v15 = vrot.slane %v974_v3, 4 }
 0x105   : > { %1580 = vmatmul.msk.bf16.gmra.mxu0 %vm414_vm4, %v1978_v40  ;;  %v589_v46 = vadd.f32 %v588_v22, %v2015_v49 }
 0x106   : > { %v2121_v23 = vadd.f32 %v930_v60, %v861_v12  ;;  %v975_v12 = vsel %vm1865_vm8, %v1543_v14, %v974_v3 }
 0x107   : > { %v754_v18 = vpop.f32.mrf.mxu2  ;;  %1549 = vmatmul.msk.bf16.gmra.mxu1 %vm414_vm4, %v1978_v40 }
 0x108   : > { %v784_v0 = vadd.f32 %v754_v18, %v586_v27  ;;  %v977_v27 = vrot.slane %v2027_v59, 5 }
 0x10a   : > { %v932_v24 = vpop.f32.mrf.mxu0  ;;  %v978_v59 = vsel %vm1865_vm8, %v976_v15, %v977_v27 }
 0x10b   : > { %v832_v32 = vpop.f32.mrf.mxu3 }
 0x10c   : > { %v862_v55 = vadd.f32 %v832_v32, %v784_v0  ;;  %1562 = vmatmul.msk.bf16.gmra.mxu2 %vm414_vm4, %v1984_v33  ;;  %v590_v31 = vpop.f32.mrf.mxu1  ;;  %v1145_v0 = vrot.slane %v1143_v28, 5 }
 0x10d   : > { %v591_v48 = vadd.f32 %v590_v31, %v2040_v16 }
 0x10e   : > { %v2128_v34 = vadd.f32 %v932_v24, %v862_v55  ;;  %v1149_v24 = vrot.slane %v1147_v42, 4 }
 0x10f   : > { %v757_v35 = vpop.f32.mrf.mxu2 }
 0x110   : > { %1571 = vmatmul.msk.bf16.gmra.mxu3 %vm414_vm4, %v1773_v41  ;;  %v785_v44 = vadd.f32 %v757_v35, %v589_v46  ;;  %v981_v46 = vunpack.c.l.b16 %v975_v12  ;;  %v982_v35 = vunpack.c.l.b16 %v978_v59 }
 0x112   : > { %v935_v5 = vpop.f32.mrf.mxu0 }
 0x113   : > { %v835_v62 = vpop.f32.mrf.mxu3 }
 0x114   : > { %v863_v40 = vadd.f32 %v835_v62, %v785_v44  ;;  %v593_v56 = vpop.f32.mrf.mxu1 }
 0x115   : > { %1581 = vmatmul.msk.bf16.gmra.mxu0 %vm414_vm4, %v2006_v45  ;;  %v594_v58 = vadd.f32 %v593_v56, %v2059_v30  ;;  %v1134_v30 = vshrl.u32 %v2148_v9, 16 }
 0x116   : > { %v2137_v49 = vadd.f32 %v935_v5, %v863_v40  ;;  %v1150_v5 = vor.u32 %v1149_v24, %v1145_v0 }
 0x117   : > { %v759_v33 = vpop.f32.mrf.mxu2  ;;  %1550 = vmatmul.msk.bf16.gmra.mxu1 %vm414_vm4, %v2006_v45  ;;  %v1136_v22 = vrot.slane %v1134_v30, 4  ;;  %v1596_v30 = vld [vmem:[%s1650_s18 + $0x6c] sm:$0xff] }
 0x118   : > { %v786_v7 = vadd.f32 %v759_v33, %v591_v48 }
 0x11a   : > { %v937_v41 = vpop.f32.mrf.mxu0 }
 0x11b   : > { %v837_v53 = vpop.f32.mrf.mxu3 }
 0x11c   : > { %v864_v38 = vadd.f32 %v837_v53, %v786_v7  ;;  %1563 = vmatmul.msk.bf16.gmra.mxu2 %vm414_vm4, %v2020_v37  ;;  %v595_v57 = vpop.f32.mrf.mxu1  ;;  %v983_v7 = vpack.c.b16 %v982_v35, %v981_v46  ;;  %v1151_v53 = vrot.slane %v1150_v5, 4 }
 0x11d   : > { %v596_v13 = vadd.f32 %v595_v57, %v2069_v47  ;;  %v191_v47 = vld [vmem:[%s1650_s18 + $0x74] sm:$0x1]  ;;  %v1236_v57 = vrot.slane %v2151_v4, 5 }
 0x11e   : > { %v2142_v16 = vadd.f32 %v937_v41, %v864_v38  ;;  %v1153_v62 = vshll.u32 %v191_v47, 16 }
 0x11f   : > { %v762_v29 = vpop.f32.mrf.mxu2 }
 0x120   : > { %1572 = vmatmul.msk.bf16.gmra.mxu3 %vm414_vm4, %v1862_v1  ;;  %v787_v45 = vadd.f32 %v762_v29, %v594_v58  ;;  %v1137_v1 = vshll.u32 %v2148_v9, 16  ;;  %v1155_v38 = vrot.slane %v1153_v62, 5 }
 0x122   : > { %v940_v61 = vpop.f32.mrf.mxu0  ;;  %v1139_v18 = vrot.slane %v1137_v1, 5 }
 0x123   : > { %v840_v52 = vpop.f32.mrf.mxu3 }
 0x124   : > { %v865_v10 = vadd.f32 %v840_v52, %v787_v45  ;;  %v598_v37 = vpop.f32.mrf.mxu1  ;;  %v1140_v44 = vor.u32 %v1139_v18, %v1136_v22  ;;  %v1238_v52 = vrot.slane %v1236_v57, 4 }
 0x125   : > { %1582 = vmatmul.msk.bf16.gmra.mxu0 %vm414_vm4, %v2044_v50  ;;  %v599_v40 = vadd.f32 %v598_v37, %v2024_v54 }
 0x126   : > { %v2162_v60 = vadd.f32 %v940_v61, %v865_v10  ;;  %v1141_v41 = vrot.slane %v1140_v44, 4  ;;  %v1575_v61 = vrot.slane %v2148_v9, 9  ;;  %v1239_v10 = vrot.slane %v191_v47, 5 }
 0x127   : > { %v764_v21 = vpop.f32.mrf.mxu2  ;;  %1551 = vmatmul.msk.bf16.gmra.mxu1 %vm414_vm4, %v2044_v50 }
 0x128   : > { %v788_v17 = vadd.f32 %v764_v21, %v596_v13  ;;  %v1146_v54 = vsel %vm1695_vm5, %v1141_v41, %v1145_v0  ;;  %v1237_v26 = vsel %vm1865_vm8, %v1575_v61, %v1236_v57  ;;  %v1240_v9 = vsel %vm1865_vm8, %v1238_v52, %v1239_v10 }
 0x129   : > { %v1159_v1 = vunpack.c.l.b16 %v1146_v54  ;;  %v1243_v21 = vunpack.c.l.b16 %v1237_v26 }
 0x12a   : > { %v942_v32 = vpop.f32.mrf.mxu0 }
 0x12b   : > { %v842_v55 = vpop.f32.mrf.mxu3 }
 0x12c   : > { %v866_v31 = vadd.f32 %v842_v55, %v788_v17  ;;  %1564 = vmatmul.msk.bf16.gmra.mxu2 %vm414_vm4, %v2055_v36  ;;  %v600_v50 = vpop.f32.mrf.mxu1  ;;  %v1244_v17 = vunpack.c.l.b16 %v1240_v9 }
 0x12d   : > { %v601_v3 = vadd.f32 %v600_v50, %v2046_v25 }
 0x12e   : > { %v2174_v56 = vadd.f32 %v942_v32, %v866_v31  ;;  %v1245_v24 = vpack.c.b16 %v1244_v17, %v1243_v21 }
 0x12f   : > { %v767_v48 = vpop.f32.mrf.mxu2 }
 0x130   : > { %1573 = vmatmul.msk.bf16.gmra.mxu3 %vm414_vm4, %v2063_v43  ;;  %v789_v33 = vadd.f32 %v767_v48, %v599_v40  ;;  %v1156_v43 = vsel %vm1695_vm5, %v1151_v53, %v1155_v38 }
 0x131   : > { %v1160_v28 = vunpack.c.l.b16 %v1156_v43 }
 0x132   : > { %v945_v36 = vpop.f32.mrf.mxu0 }
 0x133   : > { %v845_v58 = vpop.f32.mrf.mxu3  ;;  %v1161_v13 = vpack.c.b16 %v1160_v28, %v1159_v1 }
 0x134   : > { %v867_v29 = vadd.f32 %v845_v58, %v789_v33  ;;  %v603_v45 = vpop.f32.mrf.mxu1 }
 0x135   : > { %1583 = vmatmul.msk.bf16.gmra.mxu0 %vm414_vm4, %v983_v7  ;;  %v604_v12 = vadd.f32 %v603_v45, %v2065_v2 }
 0x136   : > { %v2186_v37 = vadd.f32 %v945_v36, %v867_v29 }
 0x137   : > { %v769_v4 = vpop.f32.mrf.mxu2  ;;  %1552 = vmatmul.msk.bf16.gmra.mxu1 %vm414_vm4, %v983_v7 }
 0x138   : > { %v790_v14 = vadd.f32 %v769_v4, %v601_v3 }
 0x13a   : > { %v947_v42 = vpop.f32.mrf.mxu0 }
 0x13b   : > { %v847_v27 = vpop.f32.mrf.mxu3 }
 0x13c   : > { %v868_v25 = vadd.f32 %v847_v27, %v790_v14  ;;  %1565 = vmatmul.msk.bf16.gmra.mxu2 %vm414_vm4, %v1596_v30  ;;  %v605_v15 = vpop.f32.mrf.mxu1 }
 0x13d   : > { %v606_v31 = vadd.f32 %v605_v15, %v2073_v19 }
 0x13e   : > { %v2196_v22 = vadd.f32 %v947_v42, %v868_v25 }
 0x13f   : > { %v772_v18 = vpop.f32.mrf.mxu2 }
 0x140   : > { %1574 = vmatmul.msk.bf16.gmra.mxu3 %vm414_vm4, %v1161_v13  ;;  %v791_v0 = vadd.f32 %v772_v18, %v604_v12 }
 0x142   : > { %v950_v32 = vpop.f32.mrf.mxu0 }
 0x143   : > { %v850_v6 = vpop.f32.mrf.mxu3 }
 0x144   : > { %v869_v59 = vadd.f32 %v850_v6, %v791_v0  ;;  %v999_v47 = vpop.f32.mrf.mxu1 }
 0x145   : > { %1584 = vmatmul.msk.bf16.gmra.mxu0 %vm414_vm4, %v1245_v24  ;;  %v1039_v55 = vadd.f32 %v999_v47, %v2081_v63 }
 0x146   : > { %v2202_v46 = vadd.f32 %v950_v32, %v869_v59 }
 0x147   : > { %v774_v2 = vpop.f32.mrf.mxu2 }
 0x148   : > { %v792_v50 = vadd.f32 %v774_v2, %v606_v31 }
 0x14a   : > { %v952_v35 = vpop.f32.mrf.mxu0 }
 0x14b   : > { %v852_v44 = vpop.f32.mrf.mxu3 }
 0x14c   : > { %v870_v5 = vadd.f32 %v852_v44, %v792_v50  ;;  %v1001_v62 = vpop.f32.mrf.mxu1 }
 0x14d   : > { %v1040_v40 = vadd.f32 %v1001_v62, %v2087_v20 }
 0x14e   : > { %v2205_v48 = vadd.f32 %v952_v35, %v870_v5 }
 0x14f   : > { %v1077_v33 = vpop.f32.mrf.mxu2 }
 0x150   : > { %v1117_v7 = vadd.f32 %v1077_v33, %v1039_v55 }
 0x152   : > { %v1261_v41 = vpop.f32.mrf.mxu0 }
 0x153   : > { %v1177_v53 = vpop.f32.mrf.mxu3 }
 0x154   : > { %v1217_v38 = vadd.f32 %v1177_v53, %v1117_v7  ;;  %v1004_v63 = vpop.f32.mrf.mxu1 }
 0x155   : > { %v1041_v19 = vadd.f32 %v1004_v63, %v2094_v39 }
 0x156   : > { %v1301_v36 = vadd.f32 %v1261_v41, %v1217_v38 }
 0x157   : > { %v1079_v57 = vpop.f32.mrf.mxu2 }
 0x158   : > { %v1118_v58 = vadd.f32 %v1079_v57, %v1040_v40  ;;  %v1360_v61 = vmul.f32 %v1301_v36, %v1301_v36  ;;  %v1319_v10 = vsel %vm1318_vm9, %v1301_v36, 0.0 }
 0x15a   : > { %v1263_v29 = vpop.f32.mrf.mxu0  ;;  %v1376_v1 = vsel %vm1318_vm9, %v1360_v61, 0.0 }
 0x15b   : > { %v1179_v45 = vpop.f32.mrf.mxu3 }
 0x15c   : > { %v1218_v54 = vadd.f32 %v1179_v45, %v1118_v58  ;;  %v1006_v43 = vpop.f32.mrf.mxu1 }
 0x15d   : > { %v1042_v20 = vadd.f32 %v1006_v43, %v2101_v51 }
 0x15e   : > { %v1302_v3 = vadd.f32 %v1263_v29, %v1218_v54 }
 0x15f   : > { %v1082_v52 = vpop.f32.mrf.mxu2 }
 0x160   : > { %v1320_v4 = vsel %vm1318_vm9, %v1302_v3, 0.0  ;;  %v1361_v14 = vmul.f32 %v1302_v3, %v1302_v3  ;;  %v1119_v30 = vadd.f32 %v1082_v52, %v1041_v19 }
 0x161   : > { %v1321_v39 = vadd.f32 %v1320_v4, %v1319_v10 }
 0x162   : > { %v1377_v28 = vsel %vm1318_vm9, %v1361_v14, 0.0  ;;  %v1266_v42 = vpop.f32.mrf.mxu0 }
 0x163   : > { %v1378_v26 = vadd.f32 %v1377_v28, %v1376_v1  ;;  %v1182_v9 = vpop.f32.mrf.mxu3 }
 0x164   : > { %v1219_v27 = vadd.f32 %v1182_v9, %v1119_v30  ;;  %v1009_v25 = vpop.f32.mrf.mxu1 }
 0x165   : > { %v1043_v51 = vadd.f32 %v1009_v25, %v2108_v8 }
 0x166   : > { %v1303_v13 = vadd.f32 %v1266_v42, %v1219_v27 }
 0x167   : > { %v1084_v15 = vpop.f32.mrf.mxu2 }
 0x168   : > { %v1322_v21 = vsel %vm1318_vm9, %v1303_v13, 0.0  ;;  %v1362_v17 = vmul.f32 %v1303_v13, %v1303_v13  ;;  %v1120_v12 = vadd.f32 %v1084_v15, %v1042_v20 }
 0x169   : > { %v1323_v18 = vadd.f32 %v1322_v21, %v1321_v39 }
 0x16a   : > { %v1379_v0 = vsel %vm1318_vm9, %v1362_v17, 0.0  ;;  %v1268_v24 = vpop.f32.mrf.mxu0 }
 0x16b   : > { %v1380_v32 = vadd.f32 %v1379_v0, %v1378_v26  ;;  %v1184_v6 = vpop.f32.mrf.mxu3 }
 0x16c   : > { %v1220_v59 = vadd.f32 %v1184_v6, %v1120_v12  ;;  %v1011_v47 = vpop.f32.mrf.mxu1 }
 0x16d   : > { %v1044_v53 = vadd.f32 %v1011_v47, %v2115_v11 }
 0x16e   : > { %v1304_v55 = vadd.f32 %v1268_v24, %v1220_v59 }
 0x16f   : > { %v1087_v31 = vpop.f32.mrf.mxu2 }
 0x170   : > { %v1324_v2 = vsel %vm1318_vm9, %v1304_v55, 0.0  ;;  %v1363_v50 = vmul.f32 %v1304_v55, %v1304_v55  ;;  %v1121_v8 = vadd.f32 %v1087_v31, %v1043_v51 }
 0x171   : > { %v1325_v35 = vadd.f32 %v1324_v2, %v1323_v18 }
 0x172   : > { %v1381_v44 = vsel %vm1318_vm9, %v1363_v50, 0.0  ;;  %v1271_v5 = vpop.f32.mrf.mxu0 }
 0x173   : > { %v1382_v62 = vadd.f32 %v1381_v44, %v1380_v32  ;;  %v1187_v40 = vpop.f32.mrf.mxu3 }
 0x174   : > { %v1221_v33 = vadd.f32 %v1187_v40, %v1121_v8  ;;  %v1014_v7 = vpop.f32.mrf.mxu1 }
 0x175   : > { %v1045_v3 = vadd.f32 %v1014_v7, %v2121_v23 }
 0x176   : > { %v1305_v41 = vadd.f32 %v1271_v5, %v1221_v33 }
 0x177   : > { %v1089_v38 = vpop.f32.mrf.mxu2 }
 0x178   : > { %v1326_v63 = vsel %vm1318_vm9, %v1305_v41, 0.0  ;;  %v1364_v19 = vmul.f32 %v1305_v41, %v1305_v41  ;;  %v1122_v36 = vadd.f32 %v1089_v38, %v1044_v53 }
 0x179   : > { %v1327_v57 = vadd.f32 %v1326_v63, %v1325_v35 }
 0x17a   : > { %v1383_v58 = vsel %vm1318_vm9, %v1364_v19, 0.0  ;;  %v1273_v29 = vpop.f32.mrf.mxu0 }
 0x17b   : > { %v1384_v45 = vadd.f32 %v1383_v58, %v1382_v62  ;;  %v1189_v54 = vpop.f32.mrf.mxu3 }
 0x17c   : > { %v1222_v43 = vadd.f32 %v1189_v54, %v1122_v36  ;;  %v1016_v20 = vpop.f32.mrf.mxu1 }
 0x17d   : > { %v1046_v27 = vadd.f32 %v1016_v20, %v2128_v34 }
 0x17e   : > { %v1306_v61 = vadd.f32 %v1273_v29, %v1222_v43 }
 0x17f   : > { %v1092_v52 = vpop.f32.mrf.mxu2 }
 0x180   : > { %v1328_v10 = vsel %vm1318_vm9, %v1306_v61, 0.0  ;;  %v1365_v11 = vmul.f32 %v1306_v61, %v1306_v61  ;;  %v1123_v4 = vadd.f32 %v1092_v52, %v1045_v3 }
 0x181   : > { %v1329_v14 = vadd.f32 %v1328_v10, %v1327_v57 }
 0x182   : > { %v1385_v30 = vsel %vm1318_vm9, %v1365_v11, 0.0  ;;  %v1276_v39 = vpop.f32.mrf.mxu0 }
 0x183   : > { %v1386_v1 = vadd.f32 %v1385_v30, %v1384_v45  ;;  %v1192_v28 = vpop.f32.mrf.mxu3 }
 0x184   : > { %v1223_v42 = vadd.f32 %v1192_v28, %v1123_v4  ;;  %v1019_v26 = vpop.f32.mrf.mxu1 }
 0x185   : > { %v1047_v6 = vadd.f32 %v1019_v26, %v2137_v49 }
 0x186   : > { %v1307_v9 = vadd.f32 %v1276_v39, %v1223_v42 }
 0x187   : > { %v1094_v25 = vpop.f32.mrf.mxu2 }
 0x188   : > { %v1330_v51 = vsel %vm1318_vm9, %v1307_v9, 0.0  ;;  %v1366_v23 = vmul.f32 %v1307_v9, %v1307_v9  ;;  %v1124_v13 = vadd.f32 %v1094_v25, %v1046_v27 }
 0x189   : > { %v1331_v15 = vadd.f32 %v1330_v51, %v1329_v14 }
 0x18a   : > { %v1387_v21 = vsel %vm1318_vm9, %v1366_v23, 0.0  ;;  %v1278_v17 = vpop.f32.mrf.mxu0 }
 0x18b   : > { %v1388_v12 = vadd.f32 %v1387_v21, %v1386_v1  ;;  %v1194_v18 = vpop.f32.mrf.mxu3 }
 0x18c   : > { %v1224_v0 = vadd.f32 %v1194_v18, %v1124_v13  ;;  %v1021_v24 = vpop.f32.mrf.mxu1 }
 0x18d   : > { %v1048_v40 = vadd.f32 %v1021_v24, %v2142_v16 }
 0x18e   : > { %v1308_v32 = vadd.f32 %v1278_v17, %v1224_v0 }
 0x18f   : > { %v1097_v59 = vpop.f32.mrf.mxu2 }
 0x190   : > { %v1332_v47 = vsel %vm1318_vm9, %v1308_v32, 0.0  ;;  %v1367_v34 = vmul.f32 %v1308_v32, %v1308_v32  ;;  %v1125_v55 = vadd.f32 %v1097_v59, %v1047_v6 }
 0x191   : > { %v1333_v31 = vadd.f32 %v1332_v47, %v1331_v15 }
 0x192   : > { %v1389_v2 = vsel %vm1318_vm9, %v1367_v34, 0.0  ;;  %v1281_v50 = vpop.f32.mrf.mxu0 }
 0x193   : > { %v1390_v8 = vadd.f32 %v1389_v2, %v1388_v12  ;;  %v1197_v35 = vpop.f32.mrf.mxu3 }
 0x194   : > { %v1225_v44 = vadd.f32 %v1197_v35, %v1125_v55  ;;  %v1024_v5 = vpop.f32.mrf.mxu1 }
 0x195   : > { %v1049_v45 = vadd.f32 %v1024_v5, %v2162_v60 }
 0x196   : > { %v1309_v62 = vadd.f32 %v1281_v50, %v1225_v44 }
 0x197   : > { %v1099_v33 = vpop.f32.mrf.mxu2 }
 0x198   : > { %v1334_v7 = vsel %vm1318_vm9, %v1309_v62, 0.0  ;;  %v1368_v49 = vmul.f32 %v1309_v62, %v1309_v62  ;;  %v1126_v41 = vadd.f32 %v1099_v33, %v1048_v40 }
 0x199   : > { %v1335_v53 = vadd.f32 %v1334_v7, %v1333_v31 }
 0x19a   : > { %v1391_v38 = vsel %vm1318_vm9, %v1368_v49, 0.0  ;;  %v1283_v63 = vpop.f32.mrf.mxu0 }
 0x19b   : > { %v1392_v19 = vadd.f32 %v1391_v38, %v1390_v8  ;;  %v1199_v36 = vpop.f32.mrf.mxu3 }
 0x19c   : > { %v1226_v57 = vadd.f32 %v1199_v36, %v1126_v41  ;;  %v1026_v58 = vpop.f32.mrf.mxu1 }
 0x19d   : > { %v1050_v39 = vadd.f32 %v1026_v58, %v2174_v56 }
 0x19e   : > { %v1310_v29 = vadd.f32 %v1283_v63, %v1226_v57 }
 0x19f   : > { %v1102_v54 = vpop.f32.mrf.mxu2 }
 0x1a0   : > { %v1336_v43 = vsel %vm1318_vm9, %v1310_v29, 0.0  ;;  %v1369_v16 = vmul.f32 %v1310_v29, %v1310_v29  ;;  %v1127_v20 = vadd.f32 %v1102_v54, %v1049_v45 }
 0x1a1   : > { %v1337_v61 = vadd.f32 %v1336_v43, %v1335_v53 }
 0x1a2   : > { %v1393_v3 = vsel %vm1318_vm9, %v1369_v16, 0.0  ;;  %v1286_v52 = vpop.f32.mrf.mxu0 }
 0x1a3   : > { %v1394_v10 = vadd.f32 %v1393_v3, %v1392_v19  ;;  %v1202_v11 = vpop.f32.mrf.mxu3 }
 0x1a4   : > { %v1227_v4 = vadd.f32 %v1202_v11, %v1127_v20  ;;  %v1029_v14 = vpop.f32.mrf.mxu1 }
 0x1a5   : > { %v1051_v15 = vadd.f32 %v1029_v14, %v2186_v37 }
 0x1a6   : > { %v1311_v30 = vadd.f32 %v1286_v52, %v1227_v4 }
 0x1a7   : > { %v1104_v1 = vpop.f32.mrf.mxu2 }
 0x1a8   : > { %v1338_v28 = vsel %vm1318_vm9, %v1311_v30, 0.0  ;;  %v1370_v60 = vmul.f32 %v1311_v30, %v1311_v30  ;;  %v1128_v42 = vadd.f32 %v1104_v1, %v1050_v39 }
 0x1a9   : > { %v1339_v26 = vadd.f32 %v1338_v28, %v1337_v61 }
 0x1aa   : > { %v1395_v9 = vsel %vm1318_vm9, %v1370_v60, 0.0  ;;  %v1288_v27 = vpop.f32.mrf.mxu0 }
 0x1ab   : > { %v1396_v25 = vadd.f32 %v1395_v9, %v1394_v10  ;;  %v1204_v51 = vpop.f32.mrf.mxu3 }
 0x1ac   : > { %v1228_v23 = vadd.f32 %v1204_v51, %v1128_v42  ;;  %v1031_v21 = vpop.f32.mrf.mxu1 }
 0x1ad   : > { %v1052_v55 = vadd.f32 %v1031_v21, %v2196_v22  ;;  %v1317_v21 = vld [vmem:[%s2270_s2] sm:$0x1] }
 0x1ae   : > { %v1312_v13 = vadd.f32 %v1288_v27, %v1228_v23 }
 0x1af   : > { %v1107_v17 = vpop.f32.mrf.mxu2 }
 0x1b0   : > { %v1340_v12 = vsel %vm1318_vm9, %v1312_v13, 0.0  ;;  %v1371_v56 = vmul.f32 %v1312_v13, %v1312_v13  ;;  %v1129_v18 = vadd.f32 %v1107_v17, %v1051_v15 }
 0x1b1   : > { %v1341_v0 = vadd.f32 %v1340_v12, %v1339_v26 }
 0x1b2   : > { %v1397_v24 = vsel %vm1318_vm9, %v1371_v56, 0.0  ;;  %v1291_v32 = vpop.f32.mrf.mxu0  ;;  %v1359_v56 = vld [vmem:[%s2271_s3] sm:$0x1] }
 0x1b3   : > { %v1398_v6 = vadd.f32 %v1397_v24, %v1396_v25  ;;  %v1207_v59 = vpop.f32.mrf.mxu3 }
 0x1b4   : > { %v1229_v47 = vadd.f32 %v1207_v59, %v1129_v18  ;;  %v1034_v8 = vpop.f32.mrf.mxu1 }
 0x1b5   : > { %v1053_v49 = vadd.f32 %v1034_v8, %v2202_v46 }
 0x1b6   : > { %v1313_v34 = vadd.f32 %v1291_v32, %v1229_v47 }
 0x1b7   : > { %v1109_v31 = vpop.f32.mrf.mxu2 }
 0x1b8   : > { %v1342_v2 = vsel %vm1318_vm9, %v1313_v34, 0.0  ;;  %v1372_v37 = vmul.f32 %v1313_v34, %v1313_v34  ;;  %v1130_v50 = vadd.f32 %v1109_v31, %v1052_v55 }
 0x1b9   : > { %v1343_v35 = vadd.f32 %v1342_v2, %v1341_v0 }
 0x1ba   : > { %v1399_v44 = vsel %vm1318_vm9, %v1372_v37, 0.0  ;;  %v1293_v5 = vpop.f32.mrf.mxu0 }
 0x1bb   : > { %v1400_v62 = vadd.f32 %v1399_v44, %v1398_v6  ;;  %v1209_v40 = vpop.f32.mrf.mxu3 }
 0x1bc   : > { %v1230_v33 = vadd.f32 %v1209_v40, %v1130_v50  ;;  %v1036_v36 = vpop.f32.mrf.mxu1 }
 0x1bd   : > { %v1054_v43 = vadd.f32 %v1036_v36, %v2205_v48 }
 0x1be   : > { %v1314_v7 = vadd.f32 %v1293_v5, %v1230_v33 }
 0x1bf   : > { %v1112_v41 = vpop.f32.mrf.mxu2 }
 0x1c0   : > { %v1344_v53 = vsel %vm1318_vm9, %v1314_v7, 0.0  ;;  %v1373_v22 = vmul.f32 %v1314_v7, %v1314_v7  ;;  %v1131_v38 = vadd.f32 %v1112_v41, %v1053_v49 }
 0x1c1   : > { %v1345_v63 = vadd.f32 %v1344_v53, %v1343_v35 }
 0x1c2   : > { %v1401_v19 = vsel %vm1318_vm9, %v1373_v22, 0.0  ;;  %v1296_v58 = vpop.f32.mrf.mxu0 }
 0x1c3   : > { %v1402_v57 = vadd.f32 %v1401_v19, %v1400_v62  ;;  %v1212_v29 = vpop.f32.mrf.mxu3 }
 0x1c4   : > { %v1231_v45 = vadd.f32 %v1212_v29, %v1131_v38 }
 0x1c6   : > { %v1315_v54 = vadd.f32 %v1296_v58, %v1231_v45 }
 0x1c7   : > { %v1114_v16 = vpop.f32.mrf.mxu2 }
 0x1c8   : > { %v1346_v20 = vsel %vm1318_vm9, %v1315_v54, 0.0  ;;  %v1374_v46 = vmul.f32 %v1315_v54, %v1315_v54  ;;  %v1132_v61 = vadd.f32 %v1114_v16, %v1054_v43 }
 0x1c9   : > { %v1347_v3 = vadd.f32 %v1346_v20, %v1345_v63 }
 0x1ca   : > { %v1403_v52 = vsel %vm1318_vm9, %v1374_v46, 0.0  ;;  %v1298_v14 = vpop.f32.mrf.mxu0 }
 0x1cb   : > { %v1404_v10 = vadd.f32 %v1403_v52, %v1402_v57  ;;  %v1214_v11 = vpop.f32.mrf.mxu3 }
 0x1cc   : > { %v1232_v4 = vadd.f32 %v1214_v11, %v1132_v61 }
 0x1ce   : > { %v1316_v30 = vadd.f32 %v1298_v14, %v1232_v4 }
 0x1d0   : > { %v1348_v39 = vsel %vm1318_vm9, %v1316_v30, 0.0  ;;  %v1375_v1 = vmul.f32 %v1316_v30, %v1316_v30 }
 0x1d1   : > { %v1349_v28 = vadd.f32 %v1348_v39, %v1347_v3 }
 0x1d2   : > { %v1405_v60 = vsel %vm1318_vm9, %v1375_v1, 0.0 }
 0x1d3   : > { %v1350_v48 = vrot.slane %v1349_v28, 4  ;;  %v1406_v42 = vadd.f32 %v1405_v60, %v1404_v10 }
 0x1d5   : > { %v1351_v26 = vadd.f32 %v1350_v48, %v1349_v28  ;;  %v1407_v9 = vrot.slane %v1406_v42, 4 }
 0x1d7   : > { %v1352_v27 = vrot.slane %v1351_v26, 2  ;;  %v1408_v25 = vadd.f32 %v1407_v9, %v1406_v42 }
 0x1d9   : > { %v1353_v51 = vadd.f32 %v1352_v27, %v1351_v26  ;;  %v1409_v23 = vrot.slane %v1408_v25, 2 }
 0x1db   : > { %v1354_v13 = vrot.slane %v1353_v51, 1  ;;  %v1410_v15 = vadd.f32 %v1409_v23, %v1408_v25 }
 0x1dd   : > { %v1355_v17 = vadd.f32 %v1354_v13, %v1353_v51  ;;  %v1411_v12 = vrot.slane %v1410_v15, 1 }
 0x1df   : > { %v1356_v18 = vadd.f32 %v1355_v17, %v1317_v21  ;;  %v1412_v0 = vadd.f32 %v1411_v12, %v1410_v15 }
 0x1e1   : > { %1358 = vst.msk [vmem:[%s2270_s2] sm:$0x1] %vm1357_vm10, %v1356_v18  ;;  %v1413_v24 = vadd.f32 %v1412_v0, %v1359_v56 }
 0x1e3   : > { %1414 = vst.msk [vmem:[%s2271_s3] sm:$0x1] %vm1357_vm10, %v1413_v24 }
 0x1e4 PF: > { %s14_s12 = sadd.s32 1, %s1616_s12  }
 0x1e5   : > { %p11_p5 = scmp.ge.s32.totalorder %s14_s12, 6  }
 0x1e7   :  { %13 = sbr.rel (!%p11_p5) target bundleno = 1 (0x1), region = 74 }

// kernel: double_conv_forward.9
= control target key start
LH: loop header
LB: loop body
LE: loop exit
PB: predicated region body
PF: predicated region fallthrough
CT: control target
= control target key end

     0   :  { %s1827_s18 = smov 0   ;;  %s2511_s0 = inlined_call_operand.vmem [shape: bf16[4,10,18,8], index: 0, kind: input, shape index: {}]   ;;  %s2512_s1 = inlined_call_operand.vmem [shape: bf16[9,8,4], index: 1, kind: input, shape index: {}]   ;;  %s2513_s2 = inlined_call_operand.vmem [shape: f32[1,4], index: 2, kind: input, shape index: {}]   ;;  %s2514_s3 = inlined_call_operand.vmem [shape: f32[1,4], index: 3, kind: input, shape index: {}]   ;;  %s2515_s4 = inlined_call_operand.vmem [shape: f32[4,128,4], index: 4, kind: input, shape index: {}]   ;;  %s2516_s5 = inlined_call_operand.vmem [shape: bf16[4,128,4], index: 5, kind: output, shape index: {}]  }
   0x1 LB: > { %s1621_s19 = sadd.s32 4294967295, %s1795_s18   ;;  %p1625_p0 = scmp.ge.s32.totalorder %s1795_s18, 1  ;;  %s1795_s18 = sphi %s1827_s18, %s15_s18  }
   0x2   : > { %p197_p1 = scmp.lt.s32.totalorder %s1795_s18, 5 }
   0x4   : > { %p198_p2 = pnand %p1625_p0, %p197_p1 }
   0x5   : > { %p230_p3 = scmp.lt.s32.totalorder (!%p198_p2), %s1621_s19, 3 }
   0x6   : > { %201 = sbr.rel (%p198_p2) target bundleno = 470 (0x1d6), region = 40 }
   0xb   : > { %v1631_v0 = vld [vmem:[%s2512_s1 + $0x4] sm:$0xf]  ;;  %vm523_vm0 = vcmask 1043456   ;;  %v1688_v2 = vld [vmem:[%s2512_s1 + $0x8] sm:$0xf]  ;;  %s2522_s19 = smov (!%p230_p3, %s1621_s19), 3 }
   0xc   : > { %v525_v1 = vsel %vm523_vm0, %v1631_v0, 0  ;;  %v810_v3 = vsel %vm523_vm0, %v1688_v2, 0  ;;  %v1697_v4 = vld [vmem:[%s2512_s1 + $0xc] sm:$0xf]  ;;  %v276_v5 = vld [vmem:[%s2512_s1] sm:$0xf] }
   0xd   : > { %1775 = vmatpush.bf16.msra.mxu1 %v525_v1  ;;  %1776 = vmatpush.bf16.msra.mxu2 %v525_v1  ;;  %v1710_v6 = vld [vmem:[%s2512_s1 + $0x10] sm:$0xf]  ;;  %s1778_s30 = smul.u32 120, %s2522_s19  ;;  %v888_v7 = vsel %vm523_vm0, %v1697_v4, 0  ;;  %v641_v8 = vsel %vm523_vm0, %v276_v5, 0  ;;  %vm498_vm3 = vcmask 64512  }
   0xe   : > { %1777 = vmatpush.bf16.msra.mxu3 %v525_v1  ;;  %534 = vmatpush.bf16.msra.mxu0 %v525_v1  ;;  %v988_v9 = vsel %vm523_vm0, %v1710_v6, 0  ;;  %vm277_vm1 = vsmask.f32 3328  ;;  %vm278_vm2 = vsmask.f32 7440  ;;  %vm700_vm5 = vcmask 1042432  }
   0xf   : > { %s1861_s8 = scalar_lea.vmem %s2511_s0, %s1778_s30  ;;  %vm1899_vm4 = vmor %vm277_vm1, %vm278_vm2  ;;  %vm701_vm6 = vcmask 1046532   ;;  %s1763_s17 = sshll.u32 %s2522_s19, 7  ;;  %vm1537_vm9 = vcmask 27648  }
  0x10   : > { %v1864_v10 = vld [vmem:[%s1861_s8 + $0x18] sm:$0xf]  ;;  %v1867_v11 = vld [vmem:[%s1861_s8 + $0x1c] sm:$0xf]  ;;  %v1870_v12 = vld [vmem:[%s1861_s8 + $0x20] sm:$0x1]  ;;  %s2400_s24 = scalar_lea.vmem %s2515_s4, %s1763_s17 }
  0x11   : > { %819 = vmatpush.bf16.msrb.mxu2 %v810_v3  ;;  %650 = vmatpush.bf16.msrb.mxu1 %v641_v8  ;;  %v329_v13 = vshrl.u32 %v1864_v10, 16  ;;  %v332_v14 = vshll.u32 %v1864_v10, 16  ;;  %v338_v15 = vshll.u32 %v1867_v11, 16  ;;  %v342_v16 = vshrl.u32 %v1867_v11, 16  ;;  %v1877_v17 = vld [vmem:[%s1861_s8 + $0x30] sm:$0xf]  ;;  %vm2053_vm7 = vmor %vm700_vm5, %vm701_vm6 }
  0x12   : > { %897 = vmatpush.bf16.msrb.mxu3 %v888_v7  ;;  %997 = vmatpush.bf16.msrb.mxu0 %v988_v9  ;;  %v348_v18 = vshll.u32 %v1870_v12, 16  ;;  %v1881_v19 = vld [vmem:[%s1861_s8 + $0x34] sm:$0xf]  ;;  %v1884_v20 = vld [vmem:[%s1861_s8 + $0x38] sm:$0x1]  ;;  %v377_v21 = vshrl.u32 %v1877_v17, 16 }
  0x13   : > { %v331_v22 = vrot.slane %v329_v13, 4  ;;  %v334_v23 = vrot.slane %v332_v14, 5  ;;  %v340_v24 = vrot.slane %v338_v15, 5  ;;  %v344_v25 = vrot.slane %v342_v16, 4  ;;  %v1888_v26 = vld [vmem:[%s1861_s8 + $0x48] sm:$0xf] }
  0x14   : > { %v350_v27 = vrot.slane %v348_v18, 5  ;;  %v379_v28 = vrot.slane %v377_v21, 4  ;;  %v380_v29 = vshll.u32 %v1877_v17, 16  ;;  %v386_v30 = vshll.u32 %v1881_v19, 16  ;;  %v1895_v35 = vld [vmem:[%s1861_s8 + $0x4c] sm:$0xf] }
  0x15   : > { %v335_v31 = vor.u32 %v334_v23, %v331_v22  ;;  %v345_v32 = vor.u32 %v344_v25, %v340_v24  ;;  %v390_v33 = vshrl.u32 %v1881_v19, 16  ;;  %v396_v34 = vshll.u32 %v1884_v20, 16  ;;  %v1906_v46 = vld [vmem:[%s1861_s8 + $0x50] sm:$0x1]  ;;  %v1915_v54 = vld [vmem:[%s1861_s8] sm:$0xf] }
  0x16   : > { %v382_v37 = vrot.slane %v380_v29, 5  ;;  %v388_v38 = vrot.slane %v386_v30, 5  ;;  %v425_v39 = vshrl.u32 %v1888_v26, 16  ;;  %v428_v40 = vshll.u32 %v1888_v26, 16  ;;  %v1923_v2 = vld [vmem:[%s1861_s8 + $0x4] sm:$0xf] }
  0x17   : > { %v336_v41 = vrot.slane %v335_v31, 4  ;;  %v346_v42 = vrot.slane %v345_v32, 4  ;;  %v392_v43 = vrot.slane %v390_v33, 4  ;;  %v398_v44 = vrot.slane %v396_v34, 5  ;;  %v1929_v8 = vld [vmem:[%s1861_s8 + $0x8] sm:$0x1] }
  0x18   : > { %v383_v45 = vor.u32 %v382_v37, %v379_v28  ;;  %v427_v47 = vrot.slane %v425_v39, 4  ;;  %v430_v48 = vrot.slane %v428_v40, 5  ;;  %v434_v49 = vshll.u32 %v1895_v35, 16  ;;  %v1937_v16 = vld [vmem:[%s1861_s8 + $0x24] sm:$0xf]  ;;  %s1764_s27 = sshll.u32 %s2522_s19, 6 }
  0x19   : > { %v341_v50 = vsel %vm1899_vm4, %v336_v41, %v340_v24  ;;  %v351_v51 = vsel %vm1899_vm4, %v346_v42, %v350_v27  ;;  %v393_v52 = vor.u32 %v392_v43, %v388_v38  ;;  %v438_v53 = vshrl.u32 %v1895_v35, 16  ;;  %v1946_v29 = vld [vmem:[%s1861_s8 + $0x28] sm:$0xf]  ;;  %v1951_v33 = vld [vmem:[%s1861_s8 + $0x2c] sm:$0x1]  ;;  %s2416_s30 = scalar_lea.vmem %s2516_s5, %s1764_s27 }
  0x1a   : > { %v478_v55 = vunpack.c.l.b16 %v341_v50  ;;  %v479_v56 = vunpack.c.l.b16 %v351_v51  ;;  %v384_v57 = vrot.slane %v383_v45, 4  ;;  %v431_v58 = vor.u32 %v430_v48, %v427_v47  ;;  %v1958_v41 = vld [vmem:[%s1861_s8 + $0x3c] sm:$0xf] }
  0x1b   : > { %v394_v59 = vrot.slane %v393_v52, 4  ;;  %v436_v60 = vrot.slane %v434_v49, 5  ;;  %v440_v61 = vrot.slane %v438_v53, 4  ;;  %v444_v62 = vshll.u32 %v1906_v46, 16 }
  0x1c   : > { %v1918_v63 = vpack.c.b16 %v479_v56, %v478_v55  ;;  %v389_v0 = vsel %vm1899_vm4, %v384_v57, %v388_v38  ;;  %v432_v1 = vrot.slane %v431_v58, 4  ;;  %v281_v3 = vshrl.u32 %v1915_v54, 16  ;;  %v1966_v55 = vld [vmem:[%s1861_s8 + $0x40] sm:$0xf] }
  0x1d   : > { %v399_v4 = vsel %vm1899_vm4, %v394_v59, %v398_v44  ;;  %v482_v5 = vunpack.c.l.b16 %v389_v0  ;;  %v441_v6 = vor.u32 %v440_v61, %v436_v60  ;;  %v446_v7 = vrot.slane %v444_v62, 5  ;;  %v1978_v62 = vld [vmem:[%s1861_s8 + $0x54] sm:$0xf] }
  0x1e   : > { %1634 = vmatmul.msk.bf16.vlgmr.msra.gmra.mxu1 %vm498_vm3, %v1918_v63  ;;  %v483_v9 = vunpack.c.l.b16 %v399_v4  ;;  %v437_v13 = vsel %vm1899_vm4, %v432_v1, %v436_v60  ;;  %v283_v14 = vrot.slane %v281_v3, 4  ;;  %v284_v15 = vshll.u32 %v1915_v54, 16  ;;  %v1974_v60 = vld [vmem:[%s1861_s8 + $0x44] sm:$0x1] }
  0x1f   : > { %v442_v18 = vrot.slane %v441_v6, 4  ;;  %v486_v21 = vunpack.c.l.b16 %v437_v13  ;;  %v290_v22 = vshll.u32 %v1923_v2, 16  ;;  %v294_v23 = vshrl.u32 %v1923_v2, 16 }
  0x20   : > { %v1941_v24 = vpack.c.b16 %v483_v9, %v482_v5  ;;  %v286_v25 = vrot.slane %v284_v15, 5  ;;  %v300_v27 = vshll.u32 %v1929_v8, 16  ;;  %v708_v28 = vrot.slane %v1929_v8, 5 }
  0x21   : > { %v447_v30 = vsel %vm1899_vm4, %v442_v18, %v446_v7  ;;  %v292_v31 = vrot.slane %v290_v22, 5  ;;  %v296_v32 = vrot.slane %v294_v23, 4  ;;  %v353_v34 = vshrl.u32 %v1937_v16, 16 }
  0x22   : > { %1636 = vmatmul.msk.bf16.vlgmr.msra.gmra.mxu2 %vm498_vm3, %v1941_v24  ;;  %v487_v37 = vunpack.c.l.b16 %v447_v30  ;;  %v287_v38 = vor.u32 %v286_v25, %v283_v14  ;;  %v302_v39 = vrot.slane %v300_v27, 5  ;;  %v356_v40 = vshll.u32 %v1937_v16, 16  ;;  %v1989_v27 = vld [vmem:[%s1861_s8 + $0x58] sm:$0xf]  ;;  %v1992_v30 = vld [vmem:[%s1861_s8 + $0x5c] sm:$0x1] }
  0x23   : > { %v297_v42 = vor.u32 %v296_v32, %v292_v31  ;;  %v355_v43 = vrot.slane %v353_v34, 4  ;;  %v362_v44 = vshll.u32 %v1946_v29, 16  ;;  %v366_v45 = vshrl.u32 %v1946_v29, 16 }
  0x24   : > { %v1962_v47 = vpack.c.b16 %v487_v37, %v486_v21  ;;  %v288_v48 = vrot.slane %v287_v38, 4  ;;  %v358_v49 = vrot.slane %v356_v40, 5  ;;  %v372_v50 = vshll.u32 %v1951_v33, 16  ;;  %v1997_v38 = vld [vmem:[%s1861_s8 + $0xc] sm:$0xf] }
  0x25   : > { %v298_v51 = vrot.slane %v297_v42, 4  ;;  %v364_v52 = vrot.slane %v362_v44, 5  ;;  %v368_v53 = vrot.slane %v366_v45, 4  ;;  %v401_v56 = vshrl.u32 %v1958_v41, 16 }
  0x26   : > { %1638 = vmatmul.msk.bf16.vlgmr.msra.gmra.mxu3 %vm498_vm3, %v1962_v47  ;;  %v293_v57 = vsel %vm1899_vm4, %v288_v48, %v292_v31  ;;  %v359_v58 = vor.u32 %v358_v49, %v355_v43  ;;  %v374_v59 = vrot.slane %v372_v50, 5  ;;  %v404_v61 = vshll.u32 %v1958_v41, 16 }
  0x27   : > { %v303_v0 = vsel %vm1899_vm4, %v298_v51, %v302_v39  ;;  %v474_v1 = vunpack.c.l.b16 %v293_v57  ;;  %v369_v3 = vor.u32 %v368_v53, %v364_v52  ;;  %v403_v4 = vrot.slane %v401_v56, 4  ;;  %v2009_v53 = vld [vmem:[%s1861_s8 + $0x10] sm:$0xf] }
  0x28   : > { %v475_v5 = vunpack.c.l.b16 %v303_v0  ;;  %v360_v6 = vrot.slane %v359_v58, 4  ;;  %v406_v7 = vrot.slane %v404_v61, 5  ;;  %v410_v9 = vshll.u32 %v1966_v55, 16  ;;  %v2013_v0 = vld [vmem:[%s1861_s8 + $0x14] sm:$0x1] }
  0x29   : > { %v370_v13 = vrot.slane %v369_v3, 4  ;;  %v414_v14 = vshrl.u32 %v1966_v55, 16  ;;  %v420_v15 = vshll.u32 %v1974_v60, 16  ;;  %v449_v18 = vshrl.u32 %v1978_v62, 16 }
  0x2a   : > { %v490_v21 = vpack.c.b16 %v475_v5, %v474_v1  ;;  %v365_v22 = vsel %vm1899_vm4, %v360_v6, %v364_v52  ;;  %v407_v23 = vor.u32 %v406_v7, %v403_v4  ;;  %v412_v25 = vrot.slane %v410_v9, 5 }
  0x2b   : > { %v375_v31 = vsel %vm1899_vm4, %v370_v13, %v374_v59  ;;  %v480_v32 = vunpack.c.l.b16 %v365_v22  ;;  %v416_v34 = vrot.slane %v414_v14, 4  ;;  %v422_v37 = vrot.slane %v420_v15, 5 }
  0x2c   : > { %1632 = vmatmul.msk.bf16.vlgmr.msra.gmra.mxu0 %vm498_vm3, %v490_v21  ;;  %v481_v39 = vunpack.c.l.b16 %v375_v31  ;;  %v408_v40 = vrot.slane %v407_v23, 4  ;;  %v451_v42 = vrot.slane %v449_v18, 4  ;;  %v452_v43 = vshll.u32 %v1978_v62, 16  ;;  %v1729_v31 = vld [vmem:[%s2512_s1 + $0x18] sm:$0xf] }
  0x2d   : > { %v417_v44 = vor.u32 %v416_v34, %v412_v25  ;;  %v458_v45 = vshll.u32 %v1989_v27, 16  ;;  %v462_v48 = vshrl.u32 %v1989_v27, 16  ;;  %v468_v49 = vshll.u32 %v1992_v30, 16 }
  0x2e   : > { %v2004_v50 = vpack.c.b16 %v481_v39, %v480_v32  ;;  %v413_v51 = vsel %vm1899_vm4, %v408_v40, %v412_v25  ;;  %v454_v52 = vrot.slane %v452_v43, 5  ;;  %v305_v56 = vshrl.u32 %v1997_v38, 16  ;;  %v1742_v40 = vld [vmem:[%s2512_s1 + $0x1c] sm:$0xf] }
  0x2f   : > { %v418_v57 = vrot.slane %v417_v44, 4  ;;  %v484_v58 = vunpack.c.l.b16 %v413_v51  ;;  %v460_v59 = vrot.slane %v458_v45, 5  ;;  %v464_v61 = vrot.slane %v462_v48, 4 }
  0x30   : > { %1635 = vmatmul.msk.bf16.gmra.mxu1 %vm498_vm3, %v2004_v50  ;;  %v455_v1 = vor.u32 %v454_v52, %v451_v42  ;;  %v470_v3 = vrot.slane %v468_v49, 5  ;;  %v307_v4 = vrot.slane %v305_v56, 4  ;;  %v308_v5 = vshll.u32 %v1997_v38, 16  ;;  %v1720_v42 = vld [vmem:[%s2512_s1 + $0x14] sm:$0xf] }
  0x31   : > { %v423_v6 = vsel %vm1899_vm4, %v418_v57, %v422_v37  ;;  %v465_v7 = vor.u32 %v464_v61, %v460_v59  ;;  %v314_v9 = vshll.u32 %v2009_v53, 16  ;;  %v318_v13 = vshrl.u32 %v2009_v53, 16  ;;  %v1752_v56 = vld [vmem:[%s2512_s1 + $0x20] sm:$0xf] }
  0x32   : > { %v485_v14 = vunpack.c.l.b16 %v423_v6  ;;  %v456_v15 = vrot.slane %v455_v1, 4  ;;  %v310_v18 = vrot.slane %v308_v5, 5  ;;  %v324_v21 = vshll.u32 %v2013_v0, 16 }
  0x33   : > { %v466_v22 = vrot.slane %v465_v7, 4  ;;  %v316_v23 = vrot.slane %v314_v9, 5  ;;  %v320_v25 = vrot.slane %v318_v13, 4  ;;  %v1680_v51 = vrot.slane %v1915_v54, 9 }
  0x34   : > { %v2026_v32 = vpack.c.b16 %v485_v14, %v484_v58  ;;  %v461_v34 = vsel %vm1899_vm4, %v456_v15, %v460_v59  ;;  %v311_v37 = vor.u32 %v310_v18, %v307_v4  ;;  %v326_v39 = vrot.slane %v324_v21, 5  ;;  %v1765_v15 = vld [vmem:[%s1861_s8] sm:$0xff] }
  0x35   : > { %v471_v43 = vsel %vm1899_vm4, %v466_v22, %v470_v3  ;;  %v488_v44 = vunpack.c.l.b16 %v461_v34  ;;  %v321_v45 = vor.u32 %v320_v25, %v316_v23  ;;  %v705_v52 = vrot.slane %v1923_v2, 5 }
  0x36   : > { %1637 = vmatmul.msk.bf16.gmra.mxu2 %vm498_vm3, %v2026_v32  ;;  %v489_v48 = vunpack.c.l.b16 %v471_v43  ;;  %v312_v49 = vrot.slane %v311_v37, 4  ;;  %v1150_v58 = vsel %vm523_vm0, %v1729_v31, 0  ;;  %v1250_v59 = vsel %vm523_vm0, %v1742_v40, 0 }
  0x37   : > { %v322_v57 = vrot.slane %v321_v45, 4  ;;  %v1072_v61 = vsel %vm523_vm0, %v1720_v42, 0  ;;  %v707_v2 = vrot.slane %v705_v52, 4  ;;  %1159 = vmatpush.bf16.msra.mxu2 %v1150_v58  ;;  %1259 = vmatpush.bf16.msra.mxu3 %v1250_v59  ;;  %v1334_v6 = vsel %vm523_vm0, %v1752_v56, 0  ;;  %v1766_v42 = vld [vmem:[%s1861_s8 + $0xc] sm:$0xff] }
  0x38   : > { %v2048_v1 = vpack.c.b16 %v489_v48, %v488_v44  ;;  %v317_v3 = vsel %vm1899_vm4, %v312_v49, %v316_v23  ;;  %1081 = vmatpush.bf16.msra.mxu1 %v1072_v61  ;;  %1343 = vmatpush.bf16.msra.mxu0 %v1334_v6  ;;  %v706_v9 = vsel %vm2053_vm7, %v1680_v51, %v705_v52  ;;  %v1682_v22 = vrot.slane %v1864_v10, 9 }
  0x39   : > { %v327_v4 = vsel %vm1899_vm4, %v322_v57, %v326_v39  ;;  %v476_v5 = vunpack.c.l.b16 %v317_v3  ;;  %v709_v13 = vsel %vm2053_vm7, %v707_v2, %v708_v28  ;;  %v761_v18 = vunpack.c.l.b16 %v706_v9  ;;  %v2129_v3 = vld [vmem:[%s1861_s8 + $0x30] sm:$0xff] }
  0x3a   : > { %1639 = vmatmul.msk.bf16.gmra.mxu3 %vm498_vm3, %v2048_v1  ;;  %v477_v7 = vunpack.c.l.b16 %v327_v4  ;;  %v762_v21 = vunpack.c.l.b16 %v709_v13  ;;  %v719_v23 = vrot.slane %v1867_v11, 5  ;;  %v722_v25 = vrot.slane %v1870_v12, 5  ;;  %v2149_v13 = vld [vmem:[%s1861_s8 + $0x3c] sm:$0xff] }
  0x3b   : > { %v712_v34 = vrot.slane %v2009_v53, 5  ;;  %v1681_v10 = vrot.slane %v1997_v38, 9  ;;  %v715_v12 = vrot.slane %v2013_v0, 5  ;;  %v1683_v38 = vrot.slane %v1937_v16, 9  ;;  %v2104_v16 = vld [vmem:[%s1861_s8 + $0x18] sm:$0xff] }
  0x3c   : > { %v491_v14 = vpack.c.b16 %v477_v7, %v476_v5  ;;  %v777_v31 = vpack.c.b16 %v762_v21, %v761_v18  ;;  %v720_v8 = vsel %vm2053_vm7, %v1682_v22, %v719_v23  ;;  %v721_v28 = vrot.slane %v719_v23, 4 }
  0x3d   : > { %v765_v37 = vunpack.c.l.b16 %v720_v8  ;;  %v714_v11 = vrot.slane %v712_v34, 4  ;;  %v713_v53 = vsel %vm2053_vm7, %v1681_v10, %v712_v34  ;;  %v726_v0 = vrot.slane %v1946_v29, 5 }
  0x3e   : > { %1633 = vmatmul.msk.bf16.gmra.mxu0 %vm498_vm3, %v491_v14  ;;  %v723_v39 = vsel %vm2053_vm7, %v721_v28, %v722_v25  ;;  %v763_v45 = vunpack.c.l.b16 %v713_v53  ;;  %v729_v49 = vrot.slane %v1951_v33, 5  ;;  %v2117_v33 = vld [vmem:[%s1861_s8 + $0x24] sm:$0xff]  ;;  %v733_v61 = vrot.slane %v1881_v19, 5 }
  0x3f   : > { %v766_v40 = vunpack.c.l.b16 %v723_v39  ;;  %v716_v44 = vsel %vm2053_vm7, %v714_v11, %v715_v12  ;;  %v727_v52 = vsel %vm2053_vm7, %v1683_v38, %v726_v0  ;;  %v728_v56 = vrot.slane %v726_v0, 4  ;;  %v2169_v25 = vld [vmem:[%s1861_s8 + $0x48] sm:$0xff]  ;;  %v2205_v38 = vld [vmem:[%s1861_s8 + $0x54] sm:$0xff] }
  0x40   : > { %1672 = vmatmul.msk.bf16.vlgmr.msrb.gmra.mxu1 %vm498_vm3, %v1765_v15  ;;  %v764_v48 = vunpack.c.l.b16 %v716_v44  ;;  %v767_v57 = vunpack.c.l.b16 %v727_v52  ;;  %v1684_v2 = vrot.slane %v1877_v17, 9  ;;  %v735_v4 = vrot.slane %v733_v61, 4 }
  0x41   : > { %v2083_v43 = vpack.c.b16 %v766_v40, %v765_v37  ;;  %v730_v58 = vsel %vm2053_vm7, %v728_v56, %v729_v49  ;;  %v736_v5 = vrot.slane %v1884_v20, 5  ;;  %v740_v20 = vrot.slane %v1966_v55, 5  ;;  %v2184_v40 = vld [vmem:[%s1861_s8 + $0x60] sm:$0xf] }
  0x42   : > { %v2095_v51 = vpack.c.b16 %v764_v48, %v763_v45  ;;  %v768_v59 = vunpack.c.l.b16 %v730_v58  ;;  %v734_v6 = vsel %vm2053_vm7, %v1684_v2, %v733_v61  ;;  %v743_v18 = vrot.slane %v1974_v60, 5  ;;  %v2210_v61 = vld [vmem:[%s1861_s8 + $0x68] sm:$0x1] }
  0x43   : > { %v737_v19 = vsel %vm2053_vm7, %v735_v4, %v736_v5  ;;  %v769_v7 = vunpack.c.l.b16 %v734_v6  ;;  %v742_v15 = vrot.slane %v740_v20, 4  ;;  %v747_v60 = vrot.slane %v1895_v35, 5 }
  0x44   : > { %v2106_v29 = vpack.c.b16 %v768_v59, %v767_v57  ;;  %v770_v9 = vunpack.c.l.b16 %v737_v19  ;;  %v750_v28 = vrot.slane %v1906_v46, 5  ;;  %v2187_v46 = vld [vmem:[%s1861_s8 + $0x64] sm:$0xf]  ;;  %v956_v10 = vshrl.u32 %v2184_v40, 16 }
  0x45   : > { %v744_v55 = vsel %vm2053_vm7, %v742_v15, %v743_v18  ;;  %v749_v8 = vrot.slane %v747_v60, 4  ;;  %v959_v11 = vshll.u32 %v2184_v40, 16  ;;  %v965_v12 = vshll.u32 %v2187_v46, 16 }
  0x46   : > { %1689 = vmatmul.msk.bf16.vlgmr.msrb.gmra.mxu2 %vm498_vm3, %v777_v31  ;;  %v2143_v17 = vpack.c.b16 %v770_v9, %v769_v7  ;;  %v772_v23 = vunpack.c.l.b16 %v744_v55  ;;  %v1686_v31 = vrot.slane %v1888_v26, 9  ;;  %v754_v44 = vrot.slane %v1989_v27, 5 }
  0x47   : > { %v751_v35 = vsel %vm2053_vm7, %v749_v8, %v750_v28  ;;  %v969_v45 = vshrl.u32 %v2187_v46, 16  ;;  %v958_v0 = vrot.slane %v956_v10, 4  ;;  %v961_v49 = vrot.slane %v959_v11, 5  ;;  %v2242_v8 = vld [vmem:[%s1861_s8 + $0x60] sm:$0xff] }
  0x48   : > { %v748_v37 = vsel %vm2053_vm7, %v1686_v31, %v747_v60  ;;  %v774_v26 = vunpack.c.l.b16 %v751_v35  ;;  %v967_v52 = vrot.slane %v965_v12, 5  ;;  %v1687_v56 = vrot.slane %v1978_v62, 9 }
  0x49   : > { %v773_v39 = vunpack.c.l.b16 %v748_v37  ;;  %v756_v57 = vrot.slane %v754_v44, 4  ;;  %v757_v58 = vrot.slane %v1992_v30, 5  ;;  %v971_v59 = vrot.slane %v969_v45, 4 }
  0x4a   : > { %1702 = vmatmul.msk.bf16.vlgmr.msrb.gmra.mxu3 %vm498_vm3, %v1766_v42  ;;  %v962_v4 = vor.u32 %v961_v49, %v958_v0  ;;  %v755_v5 = vsel %vm2053_vm7, %v1687_v56, %v754_v44  ;;  %v975_v19 = vshll.u32 %v2210_v61, 16 }
  0x4b   : > { %v758_v6 = vsel %vm2053_vm7, %v756_v57, %v757_v58  ;;  %v972_v62 = vor.u32 %v971_v59, %v967_v52  ;;  %v775_v7 = vunpack.c.l.b16 %v755_v5 }
  0x4c   : > { %v776_v9 = vunpack.c.l.b16 %v758_v6  ;;  %v977_v18 = vrot.slane %v975_v19, 5 }
  0x4d   : > { %v973_v15 = vrot.slane %v972_v62, 4 }
  0x4e   : > { %1711 = vmatmul.msk.bf16.vlgmr.msrb.gmra.mxu0 %vm498_vm3, %v491_v14  ;;  %v1685_v14 = vrot.slane %v1958_v41, 9  ;;  %v2229_v55 = vpack.c.b16 %v776_v9, %v775_v7 }
  0x4f   : > { %v978_v60 = vsel %vm1899_vm4, %v973_v15, %v977_v18 }
  0x50   : > { %1673 = vmatmul.msk.bf16.gmra.mxu1 %vm498_vm3, %v1766_v42  ;;  %v741_v21 = vsel %vm2053_vm7, %v1685_v14, %v740_v20  ;;  %v2191_v42 = vpack.c.b16 %v774_v26, %v773_v39  ;;  %v963_v14 = vrot.slane %v962_v4, 4  ;;  %v982_v37 = vunpack.c.l.b16 %v978_v60 }
  0x51   : > { %v771_v22 = vunpack.c.l.b16 %v741_v21 }
  0x53   : > { %v2163_v41 = vpack.c.b16 %v772_v23, %v771_v22  ;;  %v968_v23 = vsel %vm1899_vm4, %v963_v14, %v967_v52 }
  0x54   : > { %v981_v28 = vunpack.c.l.b16 %v968_v23 }
  0x56   : > { %1690 = vmatmul.msk.bf16.gmra.mxu2 %vm498_vm3, %v2095_v51  ;;  %v2248_v39 = vpack.c.b16 %v982_v37, %v981_v28 }
  0x5a   : > { %1703 = vmatmul.msk.bf16.gmra.mxu3 %vm498_vm3, %v2104_v16 }
  0x5e   : > { %1712 = vmatmul.msk.bf16.gmra.mxu0 %vm498_vm3, %v1918_v63 }
  0x60   : > { %1674 = vmatmul.msk.bf16.gmra.mxu1 %vm498_vm3, %v2104_v16 }
  0x66   : > { %1691 = vmatmul.msk.bf16.gmra.mxu2 %vm498_vm3, %v2083_v43 }
  0x6a   : > { %1704 = vmatmul.msk.bf16.gmra.mxu3 %vm498_vm3, %v2117_v33 }
  0x6e   : > { %1713 = vmatmul.msk.bf16.gmra.mxu0 %vm498_vm3, %v2004_v50 }
  0x70   : > { %1675 = vmatmul.msk.bf16.gmra.mxu1 %vm498_vm3, %v2117_v33 }
  0x76   : > { %1692 = vmatmul.msk.bf16.gmra.mxu2 %vm498_vm3, %v2106_v29 }
  0x7a   : > { %1705 = vmatmul.msk.bf16.gmra.mxu3 %vm498_vm3, %v2129_v3 }
  0x7e   : > { %1714 = vmatmul.msk.bf16.gmra.mxu0 %vm498_vm3, %v1941_v24 }
  0x80   : > { %1676 = vmatmul.msk.bf16.gmra.mxu1 %vm498_vm3, %v2129_v3 }
  0x86   : > { %1693 = vmatmul.msk.bf16.gmra.mxu2 %vm498_vm3, %v2143_v17 }
  0x8a   : > { %1706 = vmatmul.msk.bf16.gmra.mxu3 %vm498_vm3, %v2149_v13 }
  0x8e   : > { %1715 = vmatmul.msk.bf16.gmra.mxu0 %vm498_vm3, %v2026_v32 }
  0x90   : > { %1677 = vmatmul.msk.bf16.gmra.mxu1 %vm498_vm3, %v2149_v13 }
  0x96   : > { %1694 = vmatmul.msk.bf16.gmra.mxu2 %vm498_vm3, %v2163_v41 }
  0x9a   : > { %1707 = vmatmul.msk.bf16.gmra.mxu3 %vm498_vm3, %v2169_v25 }
  0x9b   : > { %v2175_v34 = vpop.f32.mrf.mxu1 }
  0x9e   : > { %1716 = vmatmul.msk.bf16.gmra.mxu0 %vm498_vm3, %v1962_v47 }
  0xa0   : > { %1678 = vmatmul.msk.bf16.gmra.mxu1 %vm498_vm3, %v2169_v25 }
  0xa3   : > { %v2196_v53 = vpop.f32.mrf.mxu1 }
  0xa5   : > { %v2200_v48 = vpop.f32.mrf.mxu2 }
  0xa6   : > { %1695 = vmatmul.msk.bf16.gmra.mxu2 %vm498_vm3, %v2191_v42 }
  0xa9   : > { %v536_v27 = vpop.f32.mrf.mxu0  ;;  %v2212_v2 = vpop.f32.mrf.mxu3 }
  0xaa   : > { %1708 = vmatmul.msk.bf16.gmra.mxu3 %vm498_vm3, %v2205_v38 }
  0xad   : > { %v2221_v30 = vpop.f32.mrf.mxu1  ;;  %v2225_v20 = vpop.f32.mrf.mxu2 }
  0xae   : > { %1717 = vmatmul.msk.bf16.gmra.mxu0 %vm498_vm3, %v2048_v1 }
  0xb0   : > { %1679 = vmatmul.msk.bf16.gmra.mxu1 %vm498_vm3, %v2205_v38 }
  0xb1   : > { %v538_v21 = vpop.f32.mrf.mxu0  ;;  %v2231_v22 = vpop.f32.mrf.mxu3 }
  0xb5   : > { %v2237_v31 = vpop.f32.mrf.mxu1 }
  0xb6   : > { %1696 = vmatmul.msk.bf16.gmra.mxu2 %vm498_vm3, %v2229_v55 }
  0xb9   : > { %v2244_v35 = vpop.f32.mrf.mxu2 }
  0xba   : > { %1709 = vmatmul.msk.bf16.gmra.mxu3 %vm498_vm3, %v2242_v8 }
  0xbb   : > { %v541_v26 = vpop.f32.mrf.mxu0 }
  0xbd   : > { %v2250_v10 = vpop.f32.mrf.mxu3  ;;  %v652_v11 = vpop.f32.mrf.mxu1 }
  0xbe   : > { %1718 = vmatmul.msk.bf16.gmra.mxu0 %vm498_vm3, %v2248_v39  ;;  %v653_v12 = vadd.f32 %v652_v11, %v536_v27 }
  0xc0   : > { %1721 = vmatmul.msk.bf16.vlgmr.msra.gmra.mxu1 %vm498_vm3, %v2095_v51 }
  0xc1   : > { %v2256_v44 = vpop.f32.mrf.mxu2 }
  0xc3   : > { %v543_v45 = vpop.f32.mrf.mxu0 }
  0xc5   : > { %v2258_v0 = vpop.f32.mrf.mxu3  ;;  %v654_v49 = vpop.f32.mrf.mxu1 }
  0xc6   : > { %1734 = vmatmul.msk.bf16.vlgmr.msra.gmra.mxu2 %vm498_vm3, %v2104_v16  ;;  %v655_v52 = vadd.f32 %v654_v49, %v538_v21 }
  0xc9   : > { %v821_v56 = vpop.f32.mrf.mxu2 }
  0xca   : > { %1743 = vmatmul.msk.bf16.vlgmr.msra.gmra.mxu3 %vm498_vm3, %v1918_v63  ;;  %v861_v57 = vadd.f32 %v821_v56, %v653_v12 }
  0xcb   : > { %v999_v58 = vpop.f32.mrf.mxu0 }
  0xcd   : > { %v899_v59 = vpop.f32.mrf.mxu3  ;;  %v657_v27 = vpop.f32.mrf.mxu1 }
  0xce   : > { %1753 = vmatmul.msk.bf16.vlgmr.msra.gmra.mxu0 %vm498_vm3, %v2083_v43  ;;  %v939_v51 = vadd.f32 %v899_v59, %v861_v57  ;;  %v658_v4 = vadd.f32 %v657_v27, %v541_v26 }
  0xd0   : > { %1722 = vmatmul.msk.bf16.gmra.mxu1 %vm498_vm3, %v2083_v43  ;;  %v2268_v5 = vadd.f32 %v999_v58, %v939_v51 }
  0xd1   : > { %v823_v16 = vpop.f32.mrf.mxu2 }
  0xd2   : > { %v862_v6 = vadd.f32 %v823_v16, %v655_v52 }
  0xd3   : > { %v1001_v62 = vpop.f32.mrf.mxu0 }
  0xd5   : > { %v901_v19 = vpop.f32.mrf.mxu3  ;;  %v659_v7 = vpop.f32.mrf.mxu1 }
  0xd6   : > { %v940_v63 = vadd.f32 %v901_v19, %v862_v6  ;;  %1735 = vmatmul.msk.bf16.gmra.mxu2 %vm498_vm3, %v2117_v33  ;;  %v660_v9 = vadd.f32 %v659_v7, %v543_v45 }
  0xd8   : > { %v2272_v14 = vadd.f32 %v1001_v62, %v940_v63 }
  0xd9   : > { %v826_v15 = vpop.f32.mrf.mxu2 }
  0xda   : > { %1744 = vmatmul.msk.bf16.gmra.mxu3 %vm498_vm3, %v2004_v50  ;;  %v863_v18 = vadd.f32 %v826_v15, %v658_v4 }
  0xdb   : > { %v1004_v43 = vpop.f32.mrf.mxu0 }
  0xdd   : > { %v904_v21 = vpop.f32.mrf.mxu3  ;;  %v662_v23 = vpop.f32.mrf.mxu1 }
  0xde   : > { %1754 = vmatmul.msk.bf16.gmra.mxu0 %vm498_vm3, %v2106_v29  ;;  %v941_v60 = vadd.f32 %v904_v21, %v863_v18  ;;  %v663_v28 = vadd.f32 %v662_v23, %v2175_v34 }
  0xe0   : > { %1723 = vmatmul.msk.bf16.gmra.mxu1 %vm498_vm3, %v2106_v29  ;;  %v2281_v33 = vadd.f32 %v1004_v43, %v941_v60 }
  0xe1   : > { %v828_v37 = vpop.f32.mrf.mxu2 }
  0xe2   : > { %v864_v26 = vadd.f32 %v828_v37, %v660_v9 }
  0xe3   : > { %v1006_v11 = vpop.f32.mrf.mxu0 }
  0xe5   : > { %v906_v12 = vpop.f32.mrf.mxu3  ;;  %v664_v50 = vpop.f32.mrf.mxu1 }
  0xe6   : > { %v942_v45 = vadd.f32 %v906_v12, %v864_v26  ;;  %1736 = vmatmul.msk.bf16.gmra.mxu2 %vm498_vm3, %v2129_v3  ;;  %v665_v49 = vadd.f32 %v664_v50, %v2196_v53 }
  0xe8   : > { %v2286_v52 = vadd.f32 %v1006_v11, %v942_v45 }
  0xe9   : > { %v831_v56 = vpop.f32.mrf.mxu2 }
  0xea   : > { %1745 = vmatmul.msk.bf16.gmra.mxu3 %vm498_vm3, %v1941_v24  ;;  %v865_v29 = vadd.f32 %v831_v56, %v663_v28 }
  0xeb   : > { %v1009_v34 = vpop.f32.mrf.mxu0 }
  0xed   : > { %v909_v57 = vpop.f32.mrf.mxu3  ;;  %v667_v58 = vpop.f32.mrf.mxu1 }
  0xee   : > { %1755 = vmatmul.msk.bf16.gmra.mxu0 %vm498_vm3, %v2143_v17  ;;  %v943_v59 = vadd.f32 %v909_v57, %v865_v29  ;;  %v668_v27 = vadd.f32 %v667_v58, %v2221_v30 }
  0xf0   : > { %1724 = vmatmul.msk.bf16.gmra.mxu1 %vm498_vm3, %v2143_v17  ;;  %v2295_v3 = vadd.f32 %v1009_v34, %v943_v59 }
  0xf1   : > { %v833_v53 = vpop.f32.mrf.mxu2 }
  0xf2   : > { %v866_v51 = vadd.f32 %v833_v53, %v665_v49  ;;  %v2333_v53 = vld [vmem:[%s1861_s8 + $0x6c] sm:$0xf] }
  0xf3   : > { %v1011_v4 = vpop.f32.mrf.mxu0 }
  0xf5   : > { %v911_v16 = vpop.f32.mrf.mxu3  ;;  %v669_v24 = vpop.f32.mrf.mxu1 }
  0xf6   : > { %v944_v6 = vadd.f32 %v911_v16, %v866_v51  ;;  %1737 = vmatmul.msk.bf16.gmra.mxu2 %vm498_vm3, %v2149_v13  ;;  %v670_v62 = vadd.f32 %v669_v24, %v2237_v31  ;;  %v2336_v51 = vld [vmem:[%s1861_s8 + $0x70] sm:$0xf]  ;;  %v1218_v24 = vshrl.u32 %v2333_v53, 16 }
  0xf8   : > { %v2300_v19 = vadd.f32 %v1011_v4, %v944_v6  ;;  %v1719_v6 = vrot.slane %v2184_v40, 9 }
  0xf9   : > { %v836_v7 = vpop.f32.mrf.mxu2 }
  0xfa   : > { %1746 = vmatmul.msk.bf16.gmra.mxu3 %vm498_vm3, %v2026_v32  ;;  %v867_v17 = vadd.f32 %v836_v7, %v668_v27  ;;  %v1058_v27 = vrot.slane %v2187_v46, 5  ;;  %v1231_v7 = vshrl.u32 %v2336_v51, 16 }
  0xfb   : > { %v1014_v30 = vpop.f32.mrf.mxu0 }
  0xfc   : > { %v1060_v46 = vrot.slane %v1058_v27, 4  ;;  %v1059_v40 = vsel %vm2053_vm7, %v1719_v6, %v1058_v27 }
  0xfd   : > { %v914_v63 = vpop.f32.mrf.mxu3  ;;  %v672_v9 = vpop.f32.mrf.mxu1 }
  0xfe   : > { %1756 = vmatmul.msk.bf16.gmra.mxu0 %vm498_vm3, %v2163_v41  ;;  %v945_v15 = vadd.f32 %v914_v63, %v867_v17  ;;  %v673_v32 = vadd.f32 %v672_v9, %v2200_v48  ;;  %v1220_v9 = vrot.slane %v1218_v24, 4  ;;  %v1774_v24 = vld [vmem:[%s1861_s8 + $0x6c] sm:$0xff] }
 0x100   : > { %1725 = vmatmul.msk.bf16.gmra.mxu1 %vm498_vm3, %v2163_v41  ;;  %v2308_v13 = vadd.f32 %v1014_v30, %v945_v15 }
 0x101   : > { %v838_v31 = vpop.f32.mrf.mxu2 }
 0x102   : > { %v868_v18 = vadd.f32 %v838_v31, %v670_v62  ;;  %v1227_v62 = vshll.u32 %v2336_v51, 16 }
 0x103   : > { %v1016_v43 = vpop.f32.mrf.mxu0 }
 0x105   : > { %v916_v21 = vpop.f32.mrf.mxu3  ;;  %v674_v23 = vpop.f32.mrf.mxu1 }
 0x106   : > { %v946_v60 = vadd.f32 %v916_v21, %v868_v18  ;;  %1738 = vmatmul.msk.bf16.gmra.mxu2 %vm498_vm3, %v2169_v25  ;;  %v675_v45 = vadd.f32 %v674_v23, %v2225_v20  ;;  %v1233_v21 = vrot.slane %v1231_v7, 4  ;;  %v275_v23 = vld [vmem:[%s1861_s8 + $0x74] sm:$0x1] }
 0x108   : > { %v2313_v28 = vadd.f32 %v1016_v43, %v946_v60  ;;  %v1229_v43 = vrot.slane %v1227_v62, 5 }
 0x109   : > { %v841_v37 = vpop.f32.mrf.mxu2 }
 0x10a   : > { %1747 = vmatmul.msk.bf16.gmra.mxu3 %vm498_vm3, %v1962_v47  ;;  %v869_v41 = vadd.f32 %v841_v37, %v673_v32 }
 0x10b   : > { %v1019_v26 = vpop.f32.mrf.mxu0 }
 0x10d   : > { %v919_v11 = vpop.f32.mrf.mxu3  ;;  %v677_v12 = vpop.f32.mrf.mxu1 }
 0x10e   : > { %1757 = vmatmul.msk.bf16.gmra.mxu0 %vm498_vm3, %v2191_v42  ;;  %v947_v50 = vadd.f32 %v919_v11, %v869_v41  ;;  %v678_v57 = vadd.f32 %v677_v12, %v2244_v35  ;;  %v1237_v11 = vshll.u32 %v275_v23, 16 }
 0x110   : > { %1726 = vmatmul.msk.bf16.gmra.mxu1 %vm498_vm3, %v2191_v42  ;;  %v2322_v25 = vadd.f32 %v1019_v26, %v947_v50  ;;  %v1234_v26 = vor.u32 %v1233_v21, %v1229_v43 }
 0x111   : > { %v843_v48 = vpop.f32.mrf.mxu2 }
 0x112   : > { %v870_v49 = vadd.f32 %v843_v48, %v675_v45 }
 0x113   : > { %v1021_v47 = vpop.f32.mrf.mxu0 }
 0x115   : > { %v921_v56 = vpop.f32.mrf.mxu3  ;;  %v679_v29 = vpop.f32.mrf.mxu1 }
 0x116   : > { %v948_v34 = vadd.f32 %v921_v56, %v870_v49  ;;  %1739 = vmatmul.msk.bf16.gmra.mxu2 %vm498_vm3, %v2205_v38  ;;  %v1061_v38 = vrot.slane %v2210_v61, 5  ;;  %v680_v17 = vadd.f32 %v679_v29, %v2256_v44  ;;  %v1235_v29 = vrot.slane %v1234_v26, 4 }
 0x118   : > { %v2327_v58 = vadd.f32 %v1021_v47, %v948_v34  ;;  %v1062_v18 = vsel %vm2053_vm7, %v1060_v46, %v1061_v38  ;;  %v1239_v34 = vrot.slane %v1237_v11, 5 }
 0x119   : > { %v846_v20 = vpop.f32.mrf.mxu2  ;;  %v1066_v37 = vunpack.c.l.b16 %v1062_v18 }
 0x11a   : > { %1748 = vmatmul.msk.bf16.gmra.mxu3 %vm498_vm3, %v2048_v1  ;;  %v871_v42 = vadd.f32 %v846_v20, %v678_v57  ;;  %v1221_v1 = vshll.u32 %v2333_v53, 16 }
 0x11b   : > { %v1024_v59 = vpop.f32.mrf.mxu0 }
 0x11c   : > { %v1223_v15 = vrot.slane %v1221_v1, 5 }
 0x11d   : > { %v924_v4 = vpop.f32.mrf.mxu3  ;;  %v682_v16 = vpop.f32.mrf.mxu1 }
 0x11e   : > { %1758 = vmatmul.msk.bf16.gmra.mxu0 %vm498_vm3, %v2229_v55  ;;  %v949_v35 = vadd.f32 %v924_v4, %v871_v42  ;;  %v1224_v41 = vor.u32 %v1223_v15, %v1220_v9  ;;  %v683_v12 = vadd.f32 %v682_v16, %v2212_v2  ;;  %v1323_v4 = vrot.slane %v275_v23, 5 }
 0x120   : > { %1727 = vmatmul.msk.bf16.gmra.mxu1 %vm498_vm3, %v2229_v55  ;;  %v2349_v61 = vadd.f32 %v1024_v59, %v949_v35  ;;  %v1065_v55 = vunpack.c.l.b16 %v1059_v40  ;;  %v1225_v47 = vrot.slane %v1224_v41, 4  ;;  %v1751_v59 = vrot.slane %v2333_v53, 9 }
 0x121   : > { %v848_v30 = vpop.f32.mrf.mxu2 }
 0x122   : > { %v872_v63 = vadd.f32 %v848_v30, %v680_v17  ;;  %v1067_v48 = vpack.c.b16 %v1066_v37, %v1065_v55  ;;  %v1230_v42 = vsel %vm1899_vm4, %v1225_v47, %v1229_v43 }
 0x123   : > { %v1026_v31 = vpop.f32.mrf.mxu0  ;;  %v1243_v1 = vunpack.c.l.b16 %v1230_v42  ;;  %v1441_v42 = vld [vmem:[%s2400_s24] sm:$0xff] }
 0x125   : > { %v926_v44 = vpop.f32.mrf.mxu3  ;;  %v684_v60 = vpop.f32.mrf.mxu1 }
 0x126   : > { %v950_v32 = vadd.f32 %v926_v44, %v872_v63  ;;  %1740 = vmatmul.msk.bf16.gmra.mxu2 %vm498_vm3, %v2242_v8  ;;  %v1320_v8 = vrot.slane %v2336_v51, 5  ;;  %v685_v16 = vadd.f32 %v684_v60, %v2231_v22 }
 0x128   : > { %v2359_v50 = vadd.f32 %v1026_v31, %v950_v32  ;;  %v1322_v27 = vrot.slane %v1320_v8, 4  ;;  %v1321_v36 = vsel %vm2053_vm7, %v1751_v59, %v1320_v8 }
 0x129   : > { %v851_v45 = vpop.f32.mrf.mxu2  ;;  %v1327_v30 = vunpack.c.l.b16 %v1321_v36 }
 0x12a   : > { %1749 = vmatmul.msk.bf16.gmra.mxu3 %vm498_vm3, %v2248_v39  ;;  %v873_v49 = vadd.f32 %v851_v45, %v683_v12  ;;  %v1240_v39 = vsel %vm1899_vm4, %v1235_v29, %v1239_v34  ;;  %v1324_v53 = vsel %vm2053_vm7, %v1322_v27, %v1323_v4  ;;  %v2405_v34 = vld [vmem:[%s2514_s3] ss:$0 sm:$0xff] }
 0x12b   : > { %v1029_v56 = vpop.f32.mrf.mxu0  ;;  %v1244_v6 = vunpack.c.l.b16 %v1240_v39  ;;  %v1328_v63 = vunpack.c.l.b16 %v1324_v53 }
 0x12d   : > { %v929_v57 = vpop.f32.mrf.mxu3  ;;  %v687_v20 = vpop.f32.mrf.mxu1  ;;  %v1245_v22 = vpack.c.b16 %v1244_v6, %v1243_v1  ;;  %v1329_v40 = vpack.c.b16 %v1328_v63, %v1327_v30 }
 0x12e   : > { %1759 = vmatmul.msk.bf16.gmra.mxu0 %vm498_vm3, %v1067_v48  ;;  %v951_v2 = vadd.f32 %v929_v57, %v873_v49  ;;  %v688_v9 = vadd.f32 %v687_v20, %v2250_v10 }
 0x130   : > { %1728 = vmatmul.msk.bf16.gmra.mxu1 %vm498_vm3, %v1067_v48  ;;  %v2372_v51 = vadd.f32 %v1029_v56, %v951_v2 }
 0x131   : > { %v853_v38 = vpop.f32.mrf.mxu2 }
 0x132   : > { %v874_v35 = vadd.f32 %v853_v38, %v685_v16 }
 0x133   : > { %v1031_v46 = vpop.f32.mrf.mxu0 }
 0x135   : > { %v931_v62 = vpop.f32.mrf.mxu3  ;;  %v689_v7 = vpop.f32.mrf.mxu1 }
 0x136   : > { %v952_v17 = vadd.f32 %v931_v62, %v874_v35  ;;  %1741 = vmatmul.msk.bf16.gmra.mxu2 %vm498_vm3, %v1774_v24  ;;  %v690_v44 = vadd.f32 %v689_v7, %v2258_v0  ;;  %v2395_v0 = vld [vmem:[%s2513_s2] ss:$0 sm:$0xff]  ;;  %v1442_v62 = vld [vmem:[%s2400_s24 + $0x8] sm:$0xff] }
 0x138   : > { %v2381_v15 = vadd.f32 %v1031_v46, %v952_v17 }
 0x139   : > { %v856_v31 = vpop.f32.mrf.mxu2 }
 0x13a   : > { %1750 = vmatmul.msk.bf16.gmra.mxu3 %vm498_vm3, %v1245_v22  ;;  %v875_v18 = vadd.f32 %v856_v31, %v688_v9 }
 0x13b   : > { %v1034_v43 = vpop.f32.mrf.mxu0 }
 0x13d   : > { %v934_v54 = vpop.f32.mrf.mxu3  ;;  %v1083_v21 = vpop.f32.mrf.mxu1 }
 0x13e   : > { %1760 = vmatmul.msk.bf16.gmra.mxu0 %vm498_vm3, %v1329_v40  ;;  %v953_v23 = vadd.f32 %v934_v54, %v875_v18  ;;  %v1123_v11 = vadd.f32 %v1083_v21, %v2268_v5 }
 0x140   : > { %v2386_v60 = vadd.f32 %v1034_v43, %v953_v23 }
 0x141   : > { %v858_v32 = vpop.f32.mrf.mxu2 }
 0x142   : > { %v876_v10 = vadd.f32 %v858_v32, %v690_v44  ;;  %v1443_v44 = vld [vmem:[%s2400_s24 + $0x10] sm:$0xff] }
 0x143   : > { %v1036_v55 = vpop.f32.mrf.mxu0 }
 0x145   : > { %v936_v37 = vpop.f32.mrf.mxu3  ;;  %v1085_v41 = vpop.f32.mrf.mxu1 }
 0x146   : > { %v954_v26 = vadd.f32 %v936_v37, %v876_v10  ;;  %v1124_v8 = vadd.f32 %v1085_v41, %v2272_v14 }
 0x148   : > { %v2389_v12 = vadd.f32 %v1036_v55, %v954_v26 }
 0x149   : > { %v1161_v45 = vpop.f32.mrf.mxu2 }
 0x14a   : > { %v1201_v48 = vadd.f32 %v1161_v45, %v1123_v11 }
 0x14b   : > { %v1345_v49 = vpop.f32.mrf.mxu0 }
 0x14d   : > { %v1261_v47 = vpop.f32.mrf.mxu3  ;;  %v1088_v56 = vpop.f32.mrf.mxu1 }
 0x14e   : > { %v1301_v29 = vadd.f32 %v1261_v47, %v1201_v48  ;;  %v1125_v1 = vadd.f32 %v1088_v56, %v2281_v33 }
 0x150   : > { %v1385_v5 = vadd.f32 %v1345_v49, %v1301_v29 }
 0x151   : > { %v1163_v57 = vpop.f32.mrf.mxu2 }
 0x152   : > { %v1405_v20 = vmul.f32 %v2395_v0, %v1385_v5  ;;  %v1202_v2 = vadd.f32 %v1163_v57, %v1124_v8  ;;  %v1444_v5 = vld [vmem:[%s2400_s24 + $0x18] sm:$0xff] }
 0x153   : > { %v1347_v39 = vpop.f32.mrf.mxu0 }
 0x154   : > { %v1425_v59 = vadd.f32 %v2405_v34, %v1405_v20 }
 0x155   : > { %v1263_v27 = vpop.f32.mrf.mxu3  ;;  %v1090_v4 = vpop.f32.mrf.mxu1 }
 0x156   : > { %v1457_v16 = vadd.f32 %v1441_v42, %v1425_v59  ;;  %v1302_v38 = vadd.f32 %v1263_v27, %v1202_v2  ;;  %v1126_v40 = vadd.f32 %v1090_v4, %v2286_v52 }
 0x158   : > { %vm1473_vm8 = vcmp.ge.f32.partialorder %v1457_v16, 0.0  ;;  %v1489_v35 = vmul.f32 0.01, %v1457_v16  ;;  %v1386_v24 = vadd.f32 %v1347_v39, %v1302_v38 }
 0x159   : > { %v1166_v14 = vpop.f32.mrf.mxu2 }
 0x15a   : > { %v1505_v6 = vsel %vm1473_vm8, %v1457_v16, %v1489_v35  ;;  %v1406_v46 = vmul.f32 %v2395_v0, %v1386_v24  ;;  %v1203_v36 = vadd.f32 %v1166_v14, %v1125_v1  ;;  %v1445_v1 = vld [vmem:[%s2400_s24 + $0x20] sm:$0xff] }
 0x15b   : > { %v1521_v53 = vpack.c.bf16 %v1505_v6, %v1505_v6  ;;  %v1350_v7 = vpop.f32.mrf.mxu0 }
 0x15c   : > { %v1426_v17 = vadd.f32 %v2405_v34, %v1406_v46 }
 0x15d   : > { %1538 = vst.msk [vmem:[%s2416_s30] sm:$0xf] %vm1537_vm9, %v1521_v53  ;;  %v1266_v33 = vpop.f32.mrf.mxu3  ;;  %v1093_v22 = vpop.f32.mrf.mxu1 }
 0x15e   : > { %v1458_v30 = vadd.f32 %v1442_v62, %v1426_v17  ;;  %v1303_v63 = vadd.f32 %v1266_v33, %v1203_v36  ;;  %v1127_v45 = vadd.f32 %v1093_v22, %v2295_v3 }
 0x160   : > { %vm1474_vm10 = vcmp.ge.f32.partialorder %v1458_v30, 0.0  ;;  %v1490_v9 = vmul.f32 0.01, %v1458_v30  ;;  %v1387_v31 = vadd.f32 %v1350_v7, %v1303_v63 }
 0x161   : > { %v1168_v18 = vpop.f32.mrf.mxu2 }
 0x162   : > { %v1506_v43 = vsel %vm1474_vm10, %v1458_v30, %v1490_v9  ;;  %v1407_v54 = vmul.f32 %v2395_v0, %v1387_v31  ;;  %v1204_v21 = vadd.f32 %v1168_v18, %v1126_v40  ;;  %v1446_v31 = vld [vmem:[%s2400_s24 + $0x28] sm:$0xff] }
 0x163   : > { %v1522_v23 = vpack.c.bf16 %v1506_v43, %v1506_v43  ;;  %v1352_v32 = vpop.f32.mrf.mxu0 }
 0x164   : > { %v1427_v10 = vadd.f32 %v2405_v34, %v1407_v54 }
 0x165   : > { %1539 = vst.msk [vmem:[%s2416_s30 + $0x4] sm:$0xf] %vm1537_vm9, %v1522_v23  ;;  %v1268_v55 = vpop.f32.mrf.mxu3  ;;  %v1095_v37 = vpop.f32.mrf.mxu1 }
 0x166   : > { %v1459_v41 = vadd.f32 %v1443_v44, %v1427_v10  ;;  %v1304_v26 = vadd.f32 %v1268_v55, %v1204_v21  ;;  %v1128_v27 = vadd.f32 %v1095_v37, %v2300_v19 }
 0x168   : > { %vm1475_vm11 = vcmp.ge.f32.partialorder %v1459_v41, 0.0  ;;  %v1491_v52 = vmul.f32 0.01, %v1459_v41  ;;  %v1388_v11 = vadd.f32 %v1352_v32, %v1304_v26 }
 0x169   : > { %v1171_v48 = vpop.f32.mrf.mxu2 }
 0x16a   : > { %v1507_v49 = vsel %vm1475_vm11, %v1459_v41, %v1491_v52  ;;  %v1408_v47 = vmul.f32 %v2395_v0, %v1388_v11  ;;  %v1205_v56 = vadd.f32 %v1171_v48, %v1127_v45  ;;  %v1447_v52 = vld [vmem:[%s2400_s24 + $0x30] sm:$0xff] }
 0x16b   : > { %v1523_v29 = vpack.c.bf16 %v1507_v49, %v1507_v49  ;;  %v1355_v8 = vpop.f32.mrf.mxu0 }
 0x16c   : > { %v1428_v57 = vadd.f32 %v2405_v34, %v1408_v47 }
 0x16d   : > { %1540 = vst.msk [vmem:[%s2416_s30 + $0x8] sm:$0xf] %vm1537_vm9, %v1523_v29  ;;  %v1271_v20 = vpop.f32.mrf.mxu3  ;;  %v1098_v2 = vpop.f32.mrf.mxu1 }
 0x16e   : > { %v1460_v42 = vadd.f32 %v1444_v5, %v1428_v57  ;;  %v1305_v39 = vadd.f32 %v1271_v20, %v1205_v56  ;;  %v1129_v17 = vadd.f32 %v1098_v2, %v2308_v13 }
 0x170   : > { %vm1476_vm12 = vcmp.ge.f32.partialorder %v1460_v42, 0.0  ;;  %v1492_v3 = vmul.f32 0.01, %v1460_v42  ;;  %v1389_v59 = vadd.f32 %v1355_v8, %v1305_v39  ;;  %v1448_v39 = vld [vmem:[%s2400_s24 + $0x38] sm:$0xff] }
 0x171   : > { %v1173_v4 = vpop.f32.mrf.mxu2 }
 0x172   : > { %v1508_v16 = vsel %vm1476_vm12, %v1460_v42, %v1492_v3  ;;  %v1409_v38 = vmul.f32 %v2395_v0, %v1389_v59  ;;  %v1206_v35 = vadd.f32 %v1173_v4, %v1128_v27 }
 0x173   : > { %v1524_v24 = vpack.c.bf16 %v1508_v16, %v1508_v16  ;;  %v1357_v14 = vpop.f32.mrf.mxu0 }
 0x174   : > { %v1429_v6 = vadd.f32 %v2405_v34, %v1409_v38 }
 0x175   : > { %1541 = vst.msk [vmem:[%s2416_s30 + $0xc] sm:$0xf] %vm1537_vm9, %v1524_v24  ;;  %v1273_v46 = vpop.f32.mrf.mxu3  ;;  %v1100_v36 = vpop.f32.mrf.mxu1 }
 0x176   : > { %v1461_v53 = vadd.f32 %v1445_v1, %v1429_v6  ;;  %v1306_v62 = vadd.f32 %v1273_v46, %v1206_v35  ;;  %v1130_v32 = vadd.f32 %v1100_v36, %v2313_v28 }
 0x178   : > { %vm1477_vm13 = vcmp.ge.f32.partialorder %v1461_v53, 0.0  ;;  %v1493_v19 = vmul.f32 0.01, %v1461_v53  ;;  %v1390_v7 = vadd.f32 %v1357_v14, %v1306_v62 }
 0x179   : > { %v1176_v33 = vpop.f32.mrf.mxu2 }
 0x17a   : > { %v1509_v22 = vsel %vm1477_vm13, %v1461_v53, %v1493_v19  ;;  %v1410_v30 = vmul.f32 %v2395_v0, %v1390_v7  ;;  %v1207_v63 = vadd.f32 %v1176_v33, %v1129_v17  ;;  %v1449_v53 = vld [vmem:[%s2400_s24 + $0x40] sm:$0xff] }
 0x17b   : > { %v1525_v9 = vpack.c.bf16 %v1509_v22, %v1509_v22  ;;  %v1360_v40 = vpop.f32.mrf.mxu0 }
 0x17c   : > { %v1430_v18 = vadd.f32 %v2405_v34, %v1410_v30 }
 0x17d   : > { %1542 = vst.msk [vmem:[%s2416_s30 + $0x10] sm:$0xf] %vm1537_vm9, %v1525_v9  ;;  %v1276_v43 = vpop.f32.mrf.mxu3  ;;  %v1103_v54 = vpop.f32.mrf.mxu1 }
 0x17e   : > { %v1462_v21 = vadd.f32 %v1446_v31, %v1430_v18  ;;  %v1307_v23 = vadd.f32 %v1276_v43, %v1207_v63  ;;  %v1131_v5 = vadd.f32 %v1103_v54, %v2322_v25  ;;  %v1450_v54 = vld [vmem:[%s2400_s24 + $0x48] sm:$0xff] }
 0x180   : > { %vm1478_vm14 = vcmp.ge.f32.partialorder %v1462_v21, 0.0  ;;  %v1494_v13 = vmul.f32 0.01, %v1462_v21  ;;  %v1391_v44 = vadd.f32 %v1360_v40, %v1307_v23 }
 0x181   : > { %v1178_v10 = vpop.f32.mrf.mxu2 }
 0x182   : > { %v1510_v55 = vsel %vm1478_vm14, %v1462_v21, %v1494_v13  ;;  %v1411_v37 = vmul.f32 %v2395_v0, %v1391_v44  ;;  %v1208_v41 = vadd.f32 %v1178_v10, %v1130_v32 }
 0x183   : > { %v1526_v26 = vpack.c.bf16 %v1510_v55, %v1510_v55  ;;  %v1362_v11 = vpop.f32.mrf.mxu0 }
 0x184   : > { %v1431_v45 = vadd.f32 %v2405_v34, %v1411_v37 }
 0x185   : > { %1543 = vst.msk [vmem:[%s2416_s30 + $0x14] sm:$0xf] %vm1537_vm9, %v1526_v26  ;;  %v1278_v48 = vpop.f32.mrf.mxu3  ;;  %v1105_v49 = vpop.f32.mrf.mxu1 }
 0x186   : > { %v1463_v47 = vadd.f32 %v1447_v52, %v1431_v45  ;;  %v1308_v56 = vadd.f32 %v1278_v48, %v1208_v41  ;;  %v1132_v24 = vadd.f32 %v1105_v49, %v2327_v58  ;;  %v1451_v48 = vld [vmem:[%s2400_s24 + $0x50] sm:$0xff] }
 0x188   : > { %vm1479_vm15 = vcmp.ge.f32.partialorder %v1463_v47, 0.0  ;;  %v1495_v28 = vmul.f32 0.01, %v1463_v47  ;;  %v1392_v29 = vadd.f32 %v1362_v11, %v1308_v56 }
 0x189   : > { %v1181_v8 = vpop.f32.mrf.mxu2 }
 0x18a   : > { %v1511_v57 = vsel %vm1479_vm15, %v1463_v47, %v1495_v28  ;;  %v1412_v20 = vmul.f32 %v2395_v0, %v1392_v29  ;;  %v1209_v2 = vadd.f32 %v1181_v8, %v1131_v5 }
 0x18b   : > { %v1527_v42 = vpack.c.bf16 %v1511_v57, %v1511_v57  ;;  %v1365_v3 = vpop.f32.mrf.mxu0 }
 0x18c   : > { %v1432_v59 = vadd.f32 %v2405_v34, %v1412_v20 }
 0x18d   : > { %1544 = vst.msk [vmem:[%s2416_s30 + $0x18] sm:$0xf] %vm1537_vm9, %v1527_v42  ;;  %v1281_v27 = vpop.f32.mrf.mxu3  ;;  %v1108_v4 = vpop.f32.mrf.mxu1 }
 0x18e   : > { %v1464_v16 = vadd.f32 %v1448_v39, %v1432_v59  ;;  %v1309_v38 = vadd.f32 %v1281_v27, %v1209_v2  ;;  %v1133_v63 = vadd.f32 %v1108_v4, %v2349_v61  ;;  %v1452_v59 = vld [vmem:[%s2400_s24 + $0x58] sm:$0xff] }
 0x190   : > { %vm1480_vm0 = vcmp.ge.f32.partialorder %v1464_v16, 0.0  ;;  %v1496_v25 = vmul.f32 0.01, %v1464_v16  ;;  %v1393_v35 = vadd.f32 %v1365_v3, %v1309_v38 }
 0x191   : > { %v1183_v1 = vpop.f32.mrf.mxu2 }
 0x192   : > { %v1512_v14 = vsel %vm1480_vm0, %v1464_v16, %v1496_v25  ;;  %v1413_v6 = vmul.f32 %v2395_v0, %v1393_v35  ;;  %v1210_v46 = vadd.f32 %v1183_v1, %v1132_v24 }
 0x193   : > { %v1528_v36 = vpack.c.bf16 %v1512_v14, %v1512_v14  ;;  %v1367_v62 = vpop.f32.mrf.mxu0 }
 0x194   : > { %v1433_v19 = vadd.f32 %v2405_v34, %v1413_v6 }
 0x195   : > { %1545 = vst.msk [vmem:[%s2416_s30 + $0x1c] sm:$0xf] %vm1537_vm9, %v1528_v36  ;;  %v1283_v7 = vpop.f32.mrf.mxu3  ;;  %v1110_v17 = vpop.f32.mrf.mxu1 }
 0x196   : > { %v1465_v33 = vadd.f32 %v1449_v53, %v1433_v19  ;;  %v1310_v22 = vadd.f32 %v1283_v7, %v1210_v46  ;;  %v1134_v37 = vadd.f32 %v1110_v17, %v2359_v50 }
 0x198   : > { %vm1481_vm1 = vcmp.ge.f32.partialorder %v1465_v33, 0.0  ;;  %v1497_v58 = vmul.f32 0.01, %v1465_v33  ;;  %v1394_v30 = vadd.f32 %v1367_v62, %v1310_v22  ;;  %v1453_v62 = vld [vmem:[%s2400_s24 + $0x60] sm:$0xff] }
 0x199   : > { %v1186_v9 = vpop.f32.mrf.mxu2 }
 0x19a   : > { %v1513_v31 = vsel %vm1481_vm1, %v1465_v33, %v1497_v58  ;;  %v1414_v40 = vmul.f32 %v2395_v0, %v1394_v30  ;;  %v1211_v18 = vadd.f32 %v1186_v9, %v1133_v63 }
 0x19b   : > { %v1529_v43 = vpack.c.bf16 %v1513_v31, %v1513_v31  ;;  %v1370_v21 = vpop.f32.mrf.mxu0 }
 0x19c   : > { %v1434_v23 = vadd.f32 %v2405_v34, %v1414_v40 }
 0x19d   : > { %1546 = vst.msk [vmem:[%s2416_s30 + $0x20] sm:$0xf] %vm1537_vm9, %v1529_v43  ;;  %v1286_v13 = vpop.f32.mrf.mxu3  ;;  %v1113_v10 = vpop.f32.mrf.mxu1  ;;  %v1454_v43 = vld [vmem:[%s2400_s24 + $0x68] sm:$0xff] }
 0x19e   : > { %v1466_v44 = vadd.f32 %v1450_v54, %v1434_v23  ;;  %v1311_v32 = vadd.f32 %v1286_v13, %v1211_v18  ;;  %v1135_v8 = vadd.f32 %v1113_v10, %v2372_v51 }
 0x1a0   : > { %vm1482_vm2 = vcmp.ge.f32.partialorder %v1466_v44, 0.0  ;;  %v1498_v61 = vmul.f32 0.01, %v1466_v44  ;;  %v1395_v55 = vadd.f32 %v1370_v21, %v1311_v32 }
 0x1a1   : > { %v1188_v41 = vpop.f32.mrf.mxu2 }
 0x1a2   : > { %v1514_v26 = vsel %vm1482_vm2, %v1466_v44, %v1498_v61  ;;  %v1415_v52 = vmul.f32 %v2395_v0, %v1395_v55  ;;  %v1212_v11 = vadd.f32 %v1188_v41, %v1134_v37 }
 0x1a3   : > { %v1530_v45 = vpack.c.bf16 %v1514_v26, %v1514_v26  ;;  %v1372_v49 = vpop.f32.mrf.mxu0 }
 0x1a4   : > { %v1435_v47 = vadd.f32 %v2405_v34, %v1415_v52 }
 0x1a5   : > { %1547 = vst.msk [vmem:[%s2416_s30 + $0x24] sm:$0xf] %vm1537_vm9, %v1530_v45  ;;  %v1288_v56 = vpop.f32.mrf.mxu3  ;;  %v1115_v57 = vpop.f32.mrf.mxu1 }
 0x1a6   : > { %v1467_v28 = vadd.f32 %v1451_v48, %v1435_v47  ;;  %v1312_v29 = vadd.f32 %v1288_v56, %v1212_v11  ;;  %v1136_v24 = vadd.f32 %v1115_v57, %v2381_v15  ;;  %v1455_v11 = vld [vmem:[%s2400_s24 + $0x70] sm:$0xff] }
 0x1a8   : > { %vm1483_vm3 = vcmp.ge.f32.partialorder %v1467_v28, 0.0  ;;  %v1499_v5 = vmul.f32 0.01, %v1467_v28  ;;  %v1396_v50 = vadd.f32 %v1372_v49, %v1312_v29 }
 0x1a9   : > { %v1191_v20 = vpop.f32.mrf.mxu2 }
 0x1aa   : > { %v1515_v2 = vsel %vm1483_vm3, %v1467_v28, %v1499_v5  ;;  %v1416_v42 = vmul.f32 %v2395_v0, %v1396_v50  ;;  %v1213_v39 = vadd.f32 %v1191_v20, %v1135_v8  ;;  %v1456_v8 = vld [vmem:[%s2400_s24 + $0x78] sm:$0xff] }
 0x1ab   : > { %v1531_v3 = vpack.c.bf16 %v1515_v2, %v1515_v2  ;;  %v1375_v27 = vpop.f32.mrf.mxu0 }
 0x1ac   : > { %v1436_v4 = vadd.f32 %v2405_v34, %v1416_v42 }
 0x1ad   : > { %1548 = vst.msk [vmem:[%s2416_s30 + $0x28] sm:$0xf] %vm1537_vm9, %v1531_v3  ;;  %v1291_v16 = vpop.f32.mrf.mxu3  ;;  %v1118_v36 = vpop.f32.mrf.mxu1 }
 0x1ae   : > { %v1468_v38 = vadd.f32 %v1452_v59, %v1436_v4  ;;  %v1313_v25 = vadd.f32 %v1291_v16, %v1213_v39  ;;  %v1137_v30 = vadd.f32 %v1118_v36, %v2386_v60 }
 0x1b0   : > { %vm1484_vm4 = vcmp.ge.f32.partialorder %v1468_v38, 0.0  ;;  %v1500_v51 = vmul.f32 0.01, %v1468_v38  ;;  %v1397_v35 = vadd.f32 %v1375_v27, %v1313_v25 }
 0x1b1   : > { %v1193_v1 = vpop.f32.mrf.mxu2 }
 0x1b2   : > { %v1516_v14 = vsel %vm1484_vm4, %v1468_v38, %v1500_v51  ;;  %v1417_v6 = vmul.f32 %v2395_v0, %v1397_v35  ;;  %v1214_v46 = vadd.f32 %v1193_v1, %v1136_v24 }
 0x1b3   : > { %v1532_v53 = vpack.c.bf16 %v1516_v14, %v1516_v14  ;;  %v1377_v19 = vpop.f32.mrf.mxu0 }
 0x1b4   : > { %v1437_v7 = vadd.f32 %v2405_v34, %v1417_v6 }
 0x1b5   : > { %1549 = vst.msk [vmem:[%s2416_s30 + $0x2c] sm:$0xf] %vm1537_vm9, %v1532_v53  ;;  %v1293_v17 = vpop.f32.mrf.mxu3  ;;  %v1120_v21 = vpop.f32.mrf.mxu1 }
 0x1b6   : > { %v1469_v33 = vadd.f32 %v1453_v62, %v1437_v7  ;;  %v1314_v22 = vadd.f32 %v1293_v17, %v1214_v46  ;;  %v1138_v61 = vadd.f32 %v1120_v21, %v2389_v12 }
 0x1b8   : > { %vm1485_vm5 = vcmp.ge.f32.partialorder %v1469_v33, 0.0  ;;  %v1501_v15 = vmul.f32 0.01, %v1469_v33  ;;  %v1398_v58 = vadd.f32 %v1377_v19, %v1314_v22 }
 0x1b9   : > { %v1196_v63 = vpop.f32.mrf.mxu2 }
 0x1ba   : > { %v1517_v9 = vsel %vm1485_vm5, %v1469_v33, %v1501_v15  ;;  %v1418_v31 = vmul.f32 %v2395_v0, %v1398_v58  ;;  %v1215_v40 = vadd.f32 %v1196_v63, %v1137_v30 }
 0x1bb   : > { %v1533_v18 = vpack.c.bf16 %v1517_v9, %v1517_v9  ;;  %v1380_v23 = vpop.f32.mrf.mxu0 }
 0x1bc   : > { %v1438_v54 = vadd.f32 %v2405_v34, %v1418_v31 }
 0x1bd   : > { %1550 = vst.msk [vmem:[%s2416_s30 + $0x30] sm:$0xf] %vm1537_vm9, %v1533_v18  ;;  %v1296_v13 = vpop.f32.mrf.mxu3 }
 0x1be   : > { %v1470_v44 = vadd.f32 %v1454_v43, %v1438_v54  ;;  %v1315_v32 = vadd.f32 %v1296_v13, %v1215_v40 }
 0x1c0   : > { %vm1486_vm6 = vcmp.ge.f32.partialorder %v1470_v44, 0.0  ;;  %v1502_v60 = vmul.f32 0.01, %v1470_v44  ;;  %v1399_v10 = vadd.f32 %v1380_v23, %v1315_v32 }
 0x1c1   : > { %v1198_v55 = vpop.f32.mrf.mxu2 }
 0x1c2   : > { %v1518_v37 = vsel %vm1486_vm6, %v1470_v44, %v1502_v60  ;;  %v1419_v41 = vmul.f32 %v2395_v0, %v1399_v10  ;;  %v1216_v26 = vadd.f32 %v1198_v55, %v1138_v61 }
 0x1c3   : > { %v1534_v52 = vpack.c.bf16 %v1518_v37, %v1518_v37  ;;  %v1382_v56 = vpop.f32.mrf.mxu0 }
 0x1c4   : > { %v1439_v45 = vadd.f32 %v2405_v34, %v1419_v41 }
 0x1c5   : > { %1551 = vst.msk [vmem:[%s2416_s30 + $0x34] sm:$0xf] %vm1537_vm9, %v1534_v52  ;;  %v1298_v48 = vpop.f32.mrf.mxu3 }
 0x1c6   : > { %v1471_v49 = vadd.f32 %v1455_v11, %v1439_v45  ;;  %v1316_v47 = vadd.f32 %v1298_v48, %v1216_v26 }
 0x1c8   : > { %vm1487_vm7 = vcmp.ge.f32.partialorder %v1471_v49, 0.0  ;;  %v1503_v12 = vmul.f32 0.01, %v1471_v49  ;;  %v1400_v28 = vadd.f32 %v1382_v56, %v1316_v47 }
 0x1ca   : > { %v1519_v29 = vsel %vm1487_vm7, %v1471_v49, %v1503_v12  ;;  %v1420_v5 = vmul.f32 %v2395_v0, %v1400_v28 }
 0x1cb   : > { %v1535_v50 = vpack.c.bf16 %v1519_v29, %v1519_v29 }
 0x1cc   : > { %v1440_v57 = vadd.f32 %v2405_v34, %v1420_v5 }
 0x1cd   : > { %1552 = vst.msk [vmem:[%s2416_s30 + $0x38] sm:$0xf] %vm1537_vm9, %v1535_v50 }
 0x1ce   : > { %v1472_v20 = vadd.f32 %v1456_v8, %v1440_v57 }
 0x1d0   : > { %vm1488_vm8 = vcmp.ge.f32.partialorder %v1472_v20, 0.0  ;;  %v1504_v2 = vmul.f32 0.01, %v1472_v20 }
 0x1d2   : > { %v1520_v42 = vsel %vm1488_vm8, %v1472_v20, %v1504_v2 }
 0x1d3   : > { %v1536_v39 = vpack.c.bf16 %v1520_v42, %v1520_v42 }
 0x1d5   : > { %1553 = vst.msk [vmem:[%s2416_s30 + $0x3c] sm:$0xf] %vm1537_vm9, %v1536_v39 }
 0x1d6 PF: > { %s15_s18 = sadd.s32 1, %s1795_s18  }
 0x1d7   : > { %p12_p4 = scmp.ge.s32.totalorder %s15_s18, 6  }
 0x1d9   :  { %14 = sbr.rel (!%p12_p4) target bundleno = 1 (0x1), region = 81 }

// kernel: double_conv_forward.11
= control target key start
LH: loop header
LB: loop body
LE: loop exit
PB: predicated region body
PF: predicated region fallthrough
CT: control target
= control target key end

     0   :  { %s1712_s15 = smov 0   ;;  %s2374_s0 = inlined_call_operand.vmem [shape: bf16[4,10,18,4], index: 0, kind: input, shape index: {}]   ;;  %s2375_s1 = inlined_call_operand.vmem [shape: bf16[9,4,8], index: 1, kind: input, shape index: {}]   ;;  %s2376_s2 = inlined_call_operand.vmem [shape: f32[1,8], index: 2, kind: input, shape index: {}]   ;;  %s2377_s3 = inlined_call_operand.vmem [shape: f32[1,8], index: 3, kind: input, shape index: {}]   ;;  %s2378_s4 = inlined_call_operand.vmem [shape: f32[4,128,8], index: 4, kind: output, shape index: {}]  }
   0x1 LB: > { %s1514_s16 = sadd.s32 4294967295, %s1685_s15   ;;  %p1518_p0 = scmp.ge.s32.totalorder %s1685_s15, 1  ;;  %s1685_s15 = sphi %s1712_s15, %s14_s15  }
   0x2   : > { %p162_p1 = scmp.lt.s32.totalorder %s1685_s15, 5 }
   0x4   : > { %p163_p2 = pnand %p1518_p0, %p162_p1 }
   0x5   : > { %p188_p3 = scmp.lt.s32.totalorder (!%p163_p2), %s1514_s16, 3 }
   0x6   : > { %166 = sbr.rel (%p163_p2) target bundleno = 466 (0x1d2), region = 36 }
   0xb   : > { %v1522_v0 = vld [vmem:[%s2375_s1 + $0x2] sm:$0x3]  ;;  %vm476_vm0 = vcmask 1041408   ;;  %v1579_v2 = vld [vmem:[%s2375_s1 + $0x4] sm:$0x3]  ;;  %s2384_s16 = smov (!%p188_p3, %s1514_s16), 3 }
   0xc   : > { %v478_v1 = vsel %vm476_vm0, %v1522_v0, 0  ;;  %v763_v3 = vsel %vm476_vm0, %v1579_v2, 0  ;;  %v1588_v4 = vld [vmem:[%s2375_s1 + $0x6] sm:$0x3]  ;;  %v229_v5 = vld [vmem:[%s2375_s1] sm:$0x3] }
   0xd   : > { %1665 = vmatpush.bf16.msra.mxu1 %v478_v1  ;;  %1666 = vmatpush.bf16.msra.mxu2 %v478_v1  ;;  %v1601_v6 = vld [vmem:[%s2375_s1 + $0x8] sm:$0x3]  ;;  %s1668_s27 = smul.u32 120, %s2384_s16  ;;  %v841_v7 = vsel %vm476_vm0, %v1588_v4, 0  ;;  %v594_v8 = vsel %vm476_vm0, %v229_v5, 0  ;;  %vm451_vm3 = vcmask 31744  }
   0xe   : > { %1667 = vmatpush.bf16.msra.mxu3 %v478_v1  ;;  %487 = vmatpush.bf16.msra.mxu0 %v478_v1  ;;  %v941_v9 = vsel %vm476_vm0, %v1601_v6, 0  ;;  %vm230_vm1 = vsmask.f32 3328  ;;  %vm231_vm2 = vsmask.f32 7440  ;;  %vm653_vm5 = vcmask 1042432  }
   0xf   : > { %s1746_s30 = scalar_lea.vmem %s2374_s0, %s1668_s27  ;;  %vm1784_vm4 = vmor %vm230_vm1, %vm231_vm2  ;;  %vm654_vm6 = vcmask 1046532   ;;  %s1654_s19 = sshll.u32 %s2384_s16, 7  ;;  %vm1442_vm9 = vcmask 64512  }
  0x10   : > { %v1749_v10 = vld [vmem:[%s1746_s30 + $0x18] sm:$0xf]  ;;  %v1752_v11 = vld [vmem:[%s1746_s30 + $0x1c] sm:$0xf]  ;;  %v1755_v12 = vld [vmem:[%s1746_s30 + $0x20] sm:$0x1]  ;;  %s2293_s22 = scalar_lea.vmem %s2378_s4, %s1654_s19 }
  0x11   : > { %772 = vmatpush.bf16.msrb.mxu2 %v763_v3  ;;  %603 = vmatpush.bf16.msrb.mxu1 %v594_v8  ;;  %v282_v13 = vshrl.u32 %v1749_v10, 16  ;;  %v285_v14 = vshll.u32 %v1749_v10, 16  ;;  %v291_v15 = vshll.u32 %v1752_v11, 16  ;;  %v295_v16 = vshrl.u32 %v1752_v11, 16  ;;  %v1762_v17 = vld [vmem:[%s1746_s30 + $0x30] sm:$0xf]  ;;  %vm1938_vm7 = vmor %vm653_vm5, %vm654_vm6 }
  0x12   : > { %850 = vmatpush.bf16.msrb.mxu3 %v841_v7  ;;  %950 = vmatpush.bf16.msrb.mxu0 %v941_v9  ;;  %v301_v18 = vshll.u32 %v1755_v12, 16  ;;  %v1766_v19 = vld [vmem:[%s1746_s30 + $0x34] sm:$0xf]  ;;  %v1769_v20 = vld [vmem:[%s1746_s30 + $0x38] sm:$0x1]  ;;  %v330_v21 = vshrl.u32 %v1762_v17, 16 }
  0x13   : > { %v284_v22 = vrot.slane %v282_v13, 4  ;;  %v287_v23 = vrot.slane %v285_v14, 5  ;;  %v293_v24 = vrot.slane %v291_v15, 5  ;;  %v297_v25 = vrot.slane %v295_v16, 4  ;;  %v1773_v26 = vld [vmem:[%s1746_s30 + $0x48] sm:$0xf] }
  0x14   : > { %v303_v27 = vrot.slane %v301_v18, 5  ;;  %v332_v28 = vrot.slane %v330_v21, 4  ;;  %v333_v29 = vshll.u32 %v1762_v17, 16  ;;  %v339_v30 = vshll.u32 %v1766_v19, 16  ;;  %v1780_v35 = vld [vmem:[%s1746_s30 + $0x4c] sm:$0xf] }
  0x15   : > { %v288_v31 = vor.u32 %v287_v23, %v284_v22  ;;  %v298_v32 = vor.u32 %v297_v25, %v293_v24  ;;  %v343_v33 = vshrl.u32 %v1766_v19, 16  ;;  %v349_v34 = vshll.u32 %v1769_v20, 16  ;;  %v1791_v46 = vld [vmem:[%s1746_s30 + $0x50] sm:$0x1]  ;;  %v1800_v54 = vld [vmem:[%s1746_s30] sm:$0xf] }
  0x16   : > { %v335_v37 = vrot.slane %v333_v29, 5  ;;  %v341_v38 = vrot.slane %v339_v30, 5  ;;  %v378_v39 = vshrl.u32 %v1773_v26, 16  ;;  %v381_v40 = vshll.u32 %v1773_v26, 16  ;;  %v1808_v2 = vld [vmem:[%s1746_s30 + $0x4] sm:$0xf] }
  0x17   : > { %v289_v41 = vrot.slane %v288_v31, 4  ;;  %v299_v42 = vrot.slane %v298_v32, 4  ;;  %v345_v43 = vrot.slane %v343_v33, 4  ;;  %v351_v44 = vrot.slane %v349_v34, 5  ;;  %v1814_v8 = vld [vmem:[%s1746_s30 + $0x8] sm:$0x1] }
  0x18   : > { %v336_v45 = vor.u32 %v335_v37, %v332_v28  ;;  %v380_v47 = vrot.slane %v378_v39, 4  ;;  %v383_v48 = vrot.slane %v381_v40, 5  ;;  %v387_v49 = vshll.u32 %v1780_v35, 16  ;;  %v1822_v16 = vld [vmem:[%s1746_s30 + $0x24] sm:$0xf] }
  0x19   : > { %v294_v50 = vsel %vm1784_vm4, %v289_v41, %v293_v24  ;;  %v304_v51 = vsel %vm1784_vm4, %v299_v42, %v303_v27  ;;  %v346_v52 = vor.u32 %v345_v43, %v341_v38  ;;  %v391_v53 = vshrl.u32 %v1780_v35, 16  ;;  %v1831_v29 = vld [vmem:[%s1746_s30 + $0x28] sm:$0xf]  ;;  %v1836_v33 = vld [vmem:[%s1746_s30 + $0x2c] sm:$0x1] }
  0x1a   : > { %v431_v55 = vunpack.c.l.b16 %v294_v50  ;;  %v432_v56 = vunpack.c.l.b16 %v304_v51  ;;  %v337_v57 = vrot.slane %v336_v45, 4  ;;  %v384_v58 = vor.u32 %v383_v48, %v380_v47  ;;  %v1843_v41 = vld [vmem:[%s1746_s30 + $0x3c] sm:$0xf] }
  0x1b   : > { %v347_v59 = vrot.slane %v346_v52, 4  ;;  %v389_v60 = vrot.slane %v387_v49, 5  ;;  %v393_v61 = vrot.slane %v391_v53, 4  ;;  %v397_v62 = vshll.u32 %v1791_v46, 16 }
  0x1c   : > { %v1803_v63 = vpack.c.b16 %v432_v56, %v431_v55  ;;  %v342_v0 = vsel %vm1784_vm4, %v337_v57, %v341_v38  ;;  %v385_v1 = vrot.slane %v384_v58, 4  ;;  %v234_v3 = vshrl.u32 %v1800_v54, 16  ;;  %v1851_v55 = vld [vmem:[%s1746_s30 + $0x40] sm:$0xf] }
  0x1d   : > { %v352_v4 = vsel %vm1784_vm4, %v347_v59, %v351_v44  ;;  %v435_v5 = vunpack.c.l.b16 %v342_v0  ;;  %v394_v6 = vor.u32 %v393_v61, %v389_v60  ;;  %v399_v7 = vrot.slane %v397_v62, 5  ;;  %v1863_v62 = vld [vmem:[%s1746_s30 + $0x54] sm:$0xf] }
  0x1e   : > { %1525 = vmatmul.msk.bf16.vlgmr.msra.gmra.mxu1 %vm451_vm3, %v1803_v63  ;;  %v436_v9 = vunpack.c.l.b16 %v352_v4  ;;  %v390_v13 = vsel %vm1784_vm4, %v385_v1, %v389_v60  ;;  %v236_v14 = vrot.slane %v234_v3, 4  ;;  %v237_v15 = vshll.u32 %v1800_v54, 16  ;;  %v1859_v60 = vld [vmem:[%s1746_s30 + $0x44] sm:$0x1] }
  0x1f   : > { %v395_v18 = vrot.slane %v394_v6, 4  ;;  %v439_v21 = vunpack.c.l.b16 %v390_v13  ;;  %v243_v22 = vshll.u32 %v1808_v2, 16  ;;  %v247_v23 = vshrl.u32 %v1808_v2, 16 }
  0x20   : > { %v1826_v24 = vpack.c.b16 %v436_v9, %v435_v5  ;;  %v239_v25 = vrot.slane %v237_v15, 5  ;;  %v253_v27 = vshll.u32 %v1814_v8, 16  ;;  %v661_v28 = vrot.slane %v1814_v8, 5 }
  0x21   : > { %v400_v30 = vsel %vm1784_vm4, %v395_v18, %v399_v7  ;;  %v245_v31 = vrot.slane %v243_v22, 5  ;;  %v249_v32 = vrot.slane %v247_v23, 4  ;;  %v306_v34 = vshrl.u32 %v1822_v16, 16 }
  0x22   : > { %1527 = vmatmul.msk.bf16.vlgmr.msra.gmra.mxu2 %vm451_vm3, %v1826_v24  ;;  %v440_v37 = vunpack.c.l.b16 %v400_v30  ;;  %v240_v38 = vor.u32 %v239_v25, %v236_v14  ;;  %v255_v39 = vrot.slane %v253_v27, 5  ;;  %v309_v40 = vshll.u32 %v1822_v16, 16  ;;  %v1874_v27 = vld [vmem:[%s1746_s30 + $0x58] sm:$0xf]  ;;  %v1877_v30 = vld [vmem:[%s1746_s30 + $0x5c] sm:$0x1] }
  0x23   : > { %v250_v42 = vor.u32 %v249_v32, %v245_v31  ;;  %v308_v43 = vrot.slane %v306_v34, 4  ;;  %v315_v44 = vshll.u32 %v1831_v29, 16  ;;  %v319_v45 = vshrl.u32 %v1831_v29, 16 }
  0x24   : > { %v1847_v47 = vpack.c.b16 %v440_v37, %v439_v21  ;;  %v241_v48 = vrot.slane %v240_v38, 4  ;;  %v311_v49 = vrot.slane %v309_v40, 5  ;;  %v325_v50 = vshll.u32 %v1836_v33, 16  ;;  %v1882_v38 = vld [vmem:[%s1746_s30 + $0xc] sm:$0xf] }
  0x25   : > { %v251_v51 = vrot.slane %v250_v42, 4  ;;  %v317_v52 = vrot.slane %v315_v44, 5  ;;  %v321_v53 = vrot.slane %v319_v45, 4  ;;  %v354_v56 = vshrl.u32 %v1843_v41, 16 }
  0x26   : > { %1529 = vmatmul.msk.bf16.vlgmr.msra.gmra.mxu3 %vm451_vm3, %v1847_v47  ;;  %v246_v57 = vsel %vm1784_vm4, %v241_v48, %v245_v31  ;;  %v312_v58 = vor.u32 %v311_v49, %v308_v43  ;;  %v327_v59 = vrot.slane %v325_v50, 5  ;;  %v357_v61 = vshll.u32 %v1843_v41, 16 }
  0x27   : > { %v256_v0 = vsel %vm1784_vm4, %v251_v51, %v255_v39  ;;  %v427_v1 = vunpack.c.l.b16 %v246_v57  ;;  %v322_v3 = vor.u32 %v321_v53, %v317_v52  ;;  %v356_v4 = vrot.slane %v354_v56, 4  ;;  %v1894_v53 = vld [vmem:[%s1746_s30 + $0x10] sm:$0xf] }
  0x28   : > { %v428_v5 = vunpack.c.l.b16 %v256_v0  ;;  %v313_v6 = vrot.slane %v312_v58, 4  ;;  %v359_v7 = vrot.slane %v357_v61, 5  ;;  %v363_v9 = vshll.u32 %v1851_v55, 16  ;;  %v1898_v0 = vld [vmem:[%s1746_s30 + $0x14] sm:$0x1] }
  0x29   : > { %v323_v13 = vrot.slane %v322_v3, 4  ;;  %v367_v14 = vshrl.u32 %v1851_v55, 16  ;;  %v373_v15 = vshll.u32 %v1859_v60, 16  ;;  %v402_v18 = vshrl.u32 %v1863_v62, 16 }
  0x2a   : > { %v443_v21 = vpack.c.b16 %v428_v5, %v427_v1  ;;  %v318_v22 = vsel %vm1784_vm4, %v313_v6, %v317_v52  ;;  %v360_v23 = vor.u32 %v359_v7, %v356_v4  ;;  %v365_v25 = vrot.slane %v363_v9, 5 }
  0x2b   : > { %v328_v31 = vsel %vm1784_vm4, %v323_v13, %v327_v59  ;;  %v433_v32 = vunpack.c.l.b16 %v318_v22  ;;  %v369_v34 = vrot.slane %v367_v14, 4  ;;  %v375_v37 = vrot.slane %v373_v15, 5 }
  0x2c   : > { %1523 = vmatmul.msk.bf16.vlgmr.msra.gmra.mxu0 %vm451_vm3, %v443_v21  ;;  %v434_v39 = vunpack.c.l.b16 %v328_v31  ;;  %v361_v40 = vrot.slane %v360_v23, 4  ;;  %v404_v42 = vrot.slane %v402_v18, 4  ;;  %v405_v43 = vshll.u32 %v1863_v62, 16  ;;  %v1620_v31 = vld [vmem:[%s2375_s1 + $0xc] sm:$0x3] }
  0x2d   : > { %v370_v44 = vor.u32 %v369_v34, %v365_v25  ;;  %v411_v45 = vshll.u32 %v1874_v27, 16  ;;  %v415_v48 = vshrl.u32 %v1874_v27, 16  ;;  %v421_v49 = vshll.u32 %v1877_v30, 16 }
  0x2e   : > { %v1889_v50 = vpack.c.b16 %v434_v39, %v433_v32  ;;  %v366_v51 = vsel %vm1784_vm4, %v361_v40, %v365_v25  ;;  %v407_v52 = vrot.slane %v405_v43, 5  ;;  %v258_v56 = vshrl.u32 %v1882_v38, 16  ;;  %v1633_v40 = vld [vmem:[%s2375_s1 + $0xe] sm:$0x3] }
  0x2f   : > { %v371_v57 = vrot.slane %v370_v44, 4  ;;  %v437_v58 = vunpack.c.l.b16 %v366_v51  ;;  %v413_v59 = vrot.slane %v411_v45, 5  ;;  %v417_v61 = vrot.slane %v415_v48, 4 }
  0x30   : > { %1526 = vmatmul.msk.bf16.gmra.mxu1 %vm451_vm3, %v1889_v50  ;;  %v408_v1 = vor.u32 %v407_v52, %v404_v42  ;;  %v423_v3 = vrot.slane %v421_v49, 5  ;;  %v260_v4 = vrot.slane %v258_v56, 4  ;;  %v261_v5 = vshll.u32 %v1882_v38, 16  ;;  %v1611_v42 = vld [vmem:[%s2375_s1 + $0xa] sm:$0x3] }
  0x31   : > { %v376_v6 = vsel %vm1784_vm4, %v371_v57, %v375_v37  ;;  %v418_v7 = vor.u32 %v417_v61, %v413_v59  ;;  %v267_v9 = vshll.u32 %v1894_v53, 16  ;;  %v271_v13 = vshrl.u32 %v1894_v53, 16  ;;  %v1643_v56 = vld [vmem:[%s2375_s1 + $0x10] sm:$0x3] }
  0x32   : > { %v438_v14 = vunpack.c.l.b16 %v376_v6  ;;  %v409_v15 = vrot.slane %v408_v1, 4  ;;  %v263_v18 = vrot.slane %v261_v5, 5  ;;  %v277_v21 = vshll.u32 %v1898_v0, 16 }
  0x33   : > { %v419_v22 = vrot.slane %v418_v7, 4  ;;  %v269_v23 = vrot.slane %v267_v9, 5  ;;  %v273_v25 = vrot.slane %v271_v13, 4  ;;  %v1571_v51 = vrot.slane %v1800_v54, 9 }
  0x34   : > { %v1911_v32 = vpack.c.b16 %v438_v14, %v437_v58  ;;  %v414_v34 = vsel %vm1784_vm4, %v409_v15, %v413_v59  ;;  %v264_v37 = vor.u32 %v263_v18, %v260_v4  ;;  %v279_v39 = vrot.slane %v277_v21, 5  ;;  %v1655_v15 = vld [vmem:[%s1746_s30] sm:$0xff] }
  0x35   : > { %v424_v43 = vsel %vm1784_vm4, %v419_v22, %v423_v3  ;;  %v441_v44 = vunpack.c.l.b16 %v414_v34  ;;  %v274_v45 = vor.u32 %v273_v25, %v269_v23  ;;  %v658_v52 = vrot.slane %v1808_v2, 5 }
  0x36   : > { %1528 = vmatmul.msk.bf16.gmra.mxu2 %vm451_vm3, %v1911_v32  ;;  %v442_v48 = vunpack.c.l.b16 %v424_v43  ;;  %v265_v49 = vrot.slane %v264_v37, 4  ;;  %v1103_v58 = vsel %vm476_vm0, %v1620_v31, 0  ;;  %v1203_v59 = vsel %vm476_vm0, %v1633_v40, 0 }
  0x37   : > { %v275_v57 = vrot.slane %v274_v45, 4  ;;  %v1025_v61 = vsel %vm476_vm0, %v1611_v42, 0  ;;  %v660_v2 = vrot.slane %v658_v52, 4  ;;  %1112 = vmatpush.bf16.msra.mxu2 %v1103_v58  ;;  %1212 = vmatpush.bf16.msra.mxu3 %v1203_v59  ;;  %v1287_v6 = vsel %vm476_vm0, %v1643_v56, 0  ;;  %v1656_v42 = vld [vmem:[%s1746_s30 + $0xc] sm:$0xff] }
  0x38   : > { %v1933_v1 = vpack.c.b16 %v442_v48, %v441_v44  ;;  %v270_v3 = vsel %vm1784_vm4, %v265_v49, %v269_v23  ;;  %1034 = vmatpush.bf16.msra.mxu1 %v1025_v61  ;;  %1296 = vmatpush.bf16.msra.mxu0 %v1287_v6  ;;  %v659_v9 = vsel %vm1938_vm7, %v1571_v51, %v658_v52  ;;  %v1573_v22 = vrot.slane %v1749_v10, 9 }
  0x39   : > { %v280_v4 = vsel %vm1784_vm4, %v275_v57, %v279_v39  ;;  %v429_v5 = vunpack.c.l.b16 %v270_v3  ;;  %v662_v13 = vsel %vm1938_vm7, %v660_v2, %v661_v28  ;;  %v714_v18 = vunpack.c.l.b16 %v659_v9  ;;  %v2014_v3 = vld [vmem:[%s1746_s30 + $0x30] sm:$0xff] }
  0x3a   : > { %1530 = vmatmul.msk.bf16.gmra.mxu3 %vm451_vm3, %v1933_v1  ;;  %v430_v7 = vunpack.c.l.b16 %v280_v4  ;;  %v715_v21 = vunpack.c.l.b16 %v662_v13  ;;  %v672_v23 = vrot.slane %v1752_v11, 5  ;;  %v675_v25 = vrot.slane %v1755_v12, 5  ;;  %v2034_v13 = vld [vmem:[%s1746_s30 + $0x3c] sm:$0xff] }
  0x3b   : > { %v665_v34 = vrot.slane %v1894_v53, 5  ;;  %v1572_v10 = vrot.slane %v1882_v38, 9  ;;  %v668_v12 = vrot.slane %v1898_v0, 5  ;;  %v1574_v38 = vrot.slane %v1822_v16, 9  ;;  %v1989_v16 = vld [vmem:[%s1746_s30 + $0x18] sm:$0xff] }
  0x3c   : > { %v444_v14 = vpack.c.b16 %v430_v7, %v429_v5  ;;  %v730_v31 = vpack.c.b16 %v715_v21, %v714_v18  ;;  %v673_v8 = vsel %vm1938_vm7, %v1573_v22, %v672_v23  ;;  %v674_v28 = vrot.slane %v672_v23, 4 }
  0x3d   : > { %v718_v37 = vunpack.c.l.b16 %v673_v8  ;;  %v667_v11 = vrot.slane %v665_v34, 4  ;;  %v666_v53 = vsel %vm1938_vm7, %v1572_v10, %v665_v34  ;;  %v679_v0 = vrot.slane %v1831_v29, 5 }
  0x3e   : > { %1524 = vmatmul.msk.bf16.gmra.mxu0 %vm451_vm3, %v444_v14  ;;  %v676_v39 = vsel %vm1938_vm7, %v674_v28, %v675_v25  ;;  %v716_v45 = vunpack.c.l.b16 %v666_v53  ;;  %v682_v49 = vrot.slane %v1836_v33, 5  ;;  %v2002_v33 = vld [vmem:[%s1746_s30 + $0x24] sm:$0xff]  ;;  %v686_v61 = vrot.slane %v1766_v19, 5 }
  0x3f   : > { %v719_v40 = vunpack.c.l.b16 %v676_v39  ;;  %v669_v44 = vsel %vm1938_vm7, %v667_v11, %v668_v12  ;;  %v680_v52 = vsel %vm1938_vm7, %v1574_v38, %v679_v0  ;;  %v681_v56 = vrot.slane %v679_v0, 4  ;;  %v2054_v25 = vld [vmem:[%s1746_s30 + $0x48] sm:$0xff]  ;;  %v2090_v38 = vld [vmem:[%s1746_s30 + $0x54] sm:$0xff] }
  0x40   : > { %1563 = vmatmul.msk.bf16.vlgmr.msrb.gmra.mxu1 %vm451_vm3, %v1655_v15  ;;  %v717_v48 = vunpack.c.l.b16 %v669_v44  ;;  %v720_v57 = vunpack.c.l.b16 %v680_v52  ;;  %v1575_v2 = vrot.slane %v1762_v17, 9  ;;  %v688_v4 = vrot.slane %v686_v61, 4 }
  0x41   : > { %v1968_v43 = vpack.c.b16 %v719_v40, %v718_v37  ;;  %v683_v58 = vsel %vm1938_vm7, %v681_v56, %v682_v49  ;;  %v689_v5 = vrot.slane %v1769_v20, 5  ;;  %v693_v20 = vrot.slane %v1851_v55, 5  ;;  %v2069_v40 = vld [vmem:[%s1746_s30 + $0x60] sm:$0xf] }
  0x42   : > { %v1980_v51 = vpack.c.b16 %v717_v48, %v716_v45  ;;  %v721_v59 = vunpack.c.l.b16 %v683_v58  ;;  %v687_v6 = vsel %vm1938_vm7, %v1575_v2, %v686_v61  ;;  %v696_v18 = vrot.slane %v1859_v60, 5  ;;  %v2095_v61 = vld [vmem:[%s1746_s30 + $0x68] sm:$0x1] }
  0x43   : > { %v690_v19 = vsel %vm1938_vm7, %v688_v4, %v689_v5  ;;  %v722_v7 = vunpack.c.l.b16 %v687_v6  ;;  %v695_v15 = vrot.slane %v693_v20, 4  ;;  %v700_v60 = vrot.slane %v1780_v35, 5 }
  0x44   : > { %v1991_v29 = vpack.c.b16 %v721_v59, %v720_v57  ;;  %v723_v9 = vunpack.c.l.b16 %v690_v19  ;;  %v703_v28 = vrot.slane %v1791_v46, 5  ;;  %v2072_v46 = vld [vmem:[%s1746_s30 + $0x64] sm:$0xf]  ;;  %v909_v10 = vshrl.u32 %v2069_v40, 16 }
  0x45   : > { %v697_v55 = vsel %vm1938_vm7, %v695_v15, %v696_v18  ;;  %v702_v8 = vrot.slane %v700_v60, 4  ;;  %v912_v11 = vshll.u32 %v2069_v40, 16  ;;  %v918_v12 = vshll.u32 %v2072_v46, 16 }
  0x46   : > { %1580 = vmatmul.msk.bf16.vlgmr.msrb.gmra.mxu2 %vm451_vm3, %v730_v31  ;;  %v2028_v17 = vpack.c.b16 %v723_v9, %v722_v7  ;;  %v725_v23 = vunpack.c.l.b16 %v697_v55  ;;  %v1577_v31 = vrot.slane %v1773_v26, 9  ;;  %v707_v44 = vrot.slane %v1874_v27, 5 }
  0x47   : > { %v704_v35 = vsel %vm1938_vm7, %v702_v8, %v703_v28  ;;  %v922_v45 = vshrl.u32 %v2072_v46, 16  ;;  %v911_v0 = vrot.slane %v909_v10, 4  ;;  %v914_v49 = vrot.slane %v912_v11, 5  ;;  %v2127_v8 = vld [vmem:[%s1746_s30 + $0x60] sm:$0xff] }
  0x48   : > { %v701_v37 = vsel %vm1938_vm7, %v1577_v31, %v700_v60  ;;  %v727_v26 = vunpack.c.l.b16 %v704_v35  ;;  %v920_v52 = vrot.slane %v918_v12, 5  ;;  %v1578_v56 = vrot.slane %v1863_v62, 9 }
  0x49   : > { %v726_v39 = vunpack.c.l.b16 %v701_v37  ;;  %v709_v57 = vrot.slane %v707_v44, 4  ;;  %v710_v58 = vrot.slane %v1877_v30, 5  ;;  %v924_v59 = vrot.slane %v922_v45, 4 }
  0x4a   : > { %1593 = vmatmul.msk.bf16.vlgmr.msrb.gmra.mxu3 %vm451_vm3, %v1656_v42  ;;  %v915_v4 = vor.u32 %v914_v49, %v911_v0  ;;  %v708_v5 = vsel %vm1938_vm7, %v1578_v56, %v707_v44  ;;  %v928_v19 = vshll.u32 %v2095_v61, 16 }
  0x4b   : > { %v711_v6 = vsel %vm1938_vm7, %v709_v57, %v710_v58  ;;  %v925_v62 = vor.u32 %v924_v59, %v920_v52  ;;  %v728_v7 = vunpack.c.l.b16 %v708_v5 }
  0x4c   : > { %v729_v9 = vunpack.c.l.b16 %v711_v6  ;;  %v930_v18 = vrot.slane %v928_v19, 5 }
  0x4d   : > { %v926_v15 = vrot.slane %v925_v62, 4 }
  0x4e   : > { %1602 = vmatmul.msk.bf16.vlgmr.msrb.gmra.mxu0 %vm451_vm3, %v444_v14  ;;  %v1576_v14 = vrot.slane %v1843_v41, 9  ;;  %v2114_v55 = vpack.c.b16 %v729_v9, %v728_v7 }
  0x4f   : > { %v931_v60 = vsel %vm1784_vm4, %v926_v15, %v930_v18 }
  0x50   : > { %1564 = vmatmul.msk.bf16.gmra.mxu1 %vm451_vm3, %v1656_v42  ;;  %v694_v21 = vsel %vm1938_vm7, %v1576_v14, %v693_v20  ;;  %v2076_v42 = vpack.c.b16 %v727_v26, %v726_v39  ;;  %v916_v14 = vrot.slane %v915_v4, 4  ;;  %v935_v37 = vunpack.c.l.b16 %v931_v60 }
  0x51   : > { %v724_v22 = vunpack.c.l.b16 %v694_v21 }
  0x53   : > { %v2048_v41 = vpack.c.b16 %v725_v23, %v724_v22  ;;  %v921_v23 = vsel %vm1784_vm4, %v916_v14, %v920_v52 }
  0x54   : > { %v934_v28 = vunpack.c.l.b16 %v921_v23 }
  0x56   : > { %1581 = vmatmul.msk.bf16.gmra.mxu2 %vm451_vm3, %v1980_v51  ;;  %v2133_v39 = vpack.c.b16 %v935_v37, %v934_v28 }
  0x5a   : > { %1594 = vmatmul.msk.bf16.gmra.mxu3 %vm451_vm3, %v1989_v16 }
  0x5e   : > { %1603 = vmatmul.msk.bf16.gmra.mxu0 %vm451_vm3, %v1803_v63 }
  0x60   : > { %1565 = vmatmul.msk.bf16.gmra.mxu1 %vm451_vm3, %v1989_v16 }
  0x66   : > { %1582 = vmatmul.msk.bf16.gmra.mxu2 %vm451_vm3, %v1968_v43 }
  0x6a   : > { %1595 = vmatmul.msk.bf16.gmra.mxu3 %vm451_vm3, %v2002_v33 }
  0x6e   : > { %1604 = vmatmul.msk.bf16.gmra.mxu0 %vm451_vm3, %v1889_v50 }
  0x70   : > { %1566 = vmatmul.msk.bf16.gmra.mxu1 %vm451_vm3, %v2002_v33 }
  0x76   : > { %1583 = vmatmul.msk.bf16.gmra.mxu2 %vm451_vm3, %v1991_v29 }
  0x7a   : > { %1596 = vmatmul.msk.bf16.gmra.mxu3 %vm451_vm3, %v2014_v3 }
  0x7e   : > { %1605 = vmatmul.msk.bf16.gmra.mxu0 %vm451_vm3, %v1826_v24 }
  0x80   : > { %1567 = vmatmul.msk.bf16.gmra.mxu1 %vm451_vm3, %v2014_v3 }
  0x86   : > { %1584 = vmatmul.msk.bf16.gmra.mxu2 %vm451_vm3, %v2028_v17 }
  0x8a   : > { %1597 = vmatmul.msk.bf16.gmra.mxu3 %vm451_vm3, %v2034_v13 }
  0x8e   : > { %1606 = vmatmul.msk.bf16.gmra.mxu0 %vm451_vm3, %v1911_v32 }
  0x90   : > { %1568 = vmatmul.msk.bf16.gmra.mxu1 %vm451_vm3, %v2034_v13 }
  0x96   : > { %1585 = vmatmul.msk.bf16.gmra.mxu2 %vm451_vm3, %v2048_v41 }
  0x9a   : > { %1598 = vmatmul.msk.bf16.gmra.mxu3 %vm451_vm3, %v2054_v25 }
  0x9b   : > { %v2060_v34 = vpop.f32.mrf.mxu1 }
  0x9e   : > { %1607 = vmatmul.msk.bf16.gmra.mxu0 %vm451_vm3, %v1847_v47 }
  0xa0   : > { %1569 = vmatmul.msk.bf16.gmra.mxu1 %vm451_vm3, %v2054_v25 }
  0xa3   : > { %v2081_v53 = vpop.f32.mrf.mxu1 }
  0xa5   : > { %v2085_v48 = vpop.f32.mrf.mxu2 }
  0xa6   : > { %1586 = vmatmul.msk.bf16.gmra.mxu2 %vm451_vm3, %v2076_v42 }
  0xa9   : > { %v489_v27 = vpop.f32.mrf.mxu0  ;;  %v2097_v2 = vpop.f32.mrf.mxu3 }
  0xaa   : > { %1599 = vmatmul.msk.bf16.gmra.mxu3 %vm451_vm3, %v2090_v38 }
  0xad   : > { %v2106_v30 = vpop.f32.mrf.mxu1  ;;  %v2110_v20 = vpop.f32.mrf.mxu2 }
  0xae   : > { %1608 = vmatmul.msk.bf16.gmra.mxu0 %vm451_vm3, %v1933_v1 }
  0xb0   : > { %1570 = vmatmul.msk.bf16.gmra.mxu1 %vm451_vm3, %v2090_v38 }
  0xb1   : > { %v491_v21 = vpop.f32.mrf.mxu0  ;;  %v2116_v22 = vpop.f32.mrf.mxu3 }
  0xb5   : > { %v2122_v31 = vpop.f32.mrf.mxu1 }
  0xb6   : > { %1587 = vmatmul.msk.bf16.gmra.mxu2 %vm451_vm3, %v2114_v55 }
  0xb9   : > { %v2129_v35 = vpop.f32.mrf.mxu2 }
  0xba   : > { %1600 = vmatmul.msk.bf16.gmra.mxu3 %vm451_vm3, %v2127_v8 }
  0xbb   : > { %v494_v26 = vpop.f32.mrf.mxu0 }
  0xbd   : > { %v2135_v10 = vpop.f32.mrf.mxu3  ;;  %v605_v11 = vpop.f32.mrf.mxu1 }
  0xbe   : > { %1609 = vmatmul.msk.bf16.gmra.mxu0 %vm451_vm3, %v2133_v39  ;;  %v606_v12 = vadd.f32 %v605_v11, %v489_v27 }
  0xc0   : > { %1612 = vmatmul.msk.bf16.vlgmr.msra.gmra.mxu1 %vm451_vm3, %v1980_v51 }
  0xc1   : > { %v2141_v44 = vpop.f32.mrf.mxu2 }
  0xc3   : > { %v496_v45 = vpop.f32.mrf.mxu0 }
  0xc5   : > { %v2143_v0 = vpop.f32.mrf.mxu3  ;;  %v607_v49 = vpop.f32.mrf.mxu1 }
  0xc6   : > { %1625 = vmatmul.msk.bf16.vlgmr.msra.gmra.mxu2 %vm451_vm3, %v1989_v16  ;;  %v608_v52 = vadd.f32 %v607_v49, %v491_v21 }
  0xc9   : > { %v774_v56 = vpop.f32.mrf.mxu2 }
  0xca   : > { %1634 = vmatmul.msk.bf16.vlgmr.msra.gmra.mxu3 %vm451_vm3, %v1803_v63  ;;  %v814_v57 = vadd.f32 %v774_v56, %v606_v12 }
  0xcb   : > { %v952_v58 = vpop.f32.mrf.mxu0 }
  0xcd   : > { %v852_v59 = vpop.f32.mrf.mxu3  ;;  %v610_v27 = vpop.f32.mrf.mxu1 }
  0xce   : > { %1644 = vmatmul.msk.bf16.vlgmr.msra.gmra.mxu0 %vm451_vm3, %v1968_v43  ;;  %v892_v51 = vadd.f32 %v852_v59, %v814_v57  ;;  %v611_v4 = vadd.f32 %v610_v27, %v494_v26 }
  0xd0   : > { %1613 = vmatmul.msk.bf16.gmra.mxu1 %vm451_vm3, %v1968_v43  ;;  %v2153_v5 = vadd.f32 %v952_v58, %v892_v51 }
  0xd1   : > { %v776_v16 = vpop.f32.mrf.mxu2 }
  0xd2   : > { %v815_v6 = vadd.f32 %v776_v16, %v608_v52 }
  0xd3   : > { %v954_v62 = vpop.f32.mrf.mxu0 }
  0xd5   : > { %v854_v19 = vpop.f32.mrf.mxu3  ;;  %v612_v7 = vpop.f32.mrf.mxu1 }
  0xd6   : > { %v893_v63 = vadd.f32 %v854_v19, %v815_v6  ;;  %1626 = vmatmul.msk.bf16.gmra.mxu2 %vm451_vm3, %v2002_v33  ;;  %v613_v9 = vadd.f32 %v612_v7, %v496_v45 }
  0xd8   : > { %v2157_v14 = vadd.f32 %v954_v62, %v893_v63 }
  0xd9   : > { %v779_v15 = vpop.f32.mrf.mxu2 }
  0xda   : > { %1635 = vmatmul.msk.bf16.gmra.mxu3 %vm451_vm3, %v1889_v50  ;;  %v816_v18 = vadd.f32 %v779_v15, %v611_v4 }
  0xdb   : > { %v957_v43 = vpop.f32.mrf.mxu0 }
  0xdd   : > { %v857_v21 = vpop.f32.mrf.mxu3  ;;  %v615_v23 = vpop.f32.mrf.mxu1 }
  0xde   : > { %1645 = vmatmul.msk.bf16.gmra.mxu0 %vm451_vm3, %v1991_v29  ;;  %v894_v60 = vadd.f32 %v857_v21, %v816_v18  ;;  %v616_v28 = vadd.f32 %v615_v23, %v2060_v34 }
  0xe0   : > { %1614 = vmatmul.msk.bf16.gmra.mxu1 %vm451_vm3, %v1991_v29  ;;  %v2166_v33 = vadd.f32 %v957_v43, %v894_v60 }
  0xe1   : > { %v781_v37 = vpop.f32.mrf.mxu2 }
  0xe2   : > { %v817_v26 = vadd.f32 %v781_v37, %v613_v9 }
  0xe3   : > { %v959_v11 = vpop.f32.mrf.mxu0 }
  0xe5   : > { %v859_v12 = vpop.f32.mrf.mxu3  ;;  %v617_v50 = vpop.f32.mrf.mxu1 }
  0xe6   : > { %v895_v45 = vadd.f32 %v859_v12, %v817_v26  ;;  %1627 = vmatmul.msk.bf16.gmra.mxu2 %vm451_vm3, %v2014_v3  ;;  %v618_v49 = vadd.f32 %v617_v50, %v2081_v53 }
  0xe8   : > { %v2171_v52 = vadd.f32 %v959_v11, %v895_v45 }
  0xe9   : > { %v784_v56 = vpop.f32.mrf.mxu2 }
  0xea   : > { %1636 = vmatmul.msk.bf16.gmra.mxu3 %vm451_vm3, %v1826_v24  ;;  %v818_v29 = vadd.f32 %v784_v56, %v616_v28 }
  0xeb   : > { %v962_v34 = vpop.f32.mrf.mxu0 }
  0xed   : > { %v862_v57 = vpop.f32.mrf.mxu3  ;;  %v620_v58 = vpop.f32.mrf.mxu1 }
  0xee   : > { %1646 = vmatmul.msk.bf16.gmra.mxu0 %vm451_vm3, %v2028_v17  ;;  %v896_v59 = vadd.f32 %v862_v57, %v818_v29  ;;  %v621_v27 = vadd.f32 %v620_v58, %v2106_v30 }
  0xf0   : > { %1615 = vmatmul.msk.bf16.gmra.mxu1 %vm451_vm3, %v2028_v17  ;;  %v2180_v3 = vadd.f32 %v962_v34, %v896_v59 }
  0xf1   : > { %v786_v53 = vpop.f32.mrf.mxu2 }
  0xf2   : > { %v819_v51 = vadd.f32 %v786_v53, %v618_v49  ;;  %v2218_v53 = vld [vmem:[%s1746_s30 + $0x6c] sm:$0xf] }
  0xf3   : > { %v964_v4 = vpop.f32.mrf.mxu0 }
  0xf5   : > { %v864_v16 = vpop.f32.mrf.mxu3  ;;  %v622_v24 = vpop.f32.mrf.mxu1 }
  0xf6   : > { %v897_v6 = vadd.f32 %v864_v16, %v819_v51  ;;  %1628 = vmatmul.msk.bf16.gmra.mxu2 %vm451_vm3, %v2034_v13  ;;  %v623_v62 = vadd.f32 %v622_v24, %v2122_v31  ;;  %v2221_v51 = vld [vmem:[%s1746_s30 + $0x70] sm:$0xf]  ;;  %v1171_v24 = vshrl.u32 %v2218_v53, 16 }
  0xf8   : > { %v2185_v19 = vadd.f32 %v964_v4, %v897_v6  ;;  %v1610_v6 = vrot.slane %v2069_v40, 9 }
  0xf9   : > { %v789_v7 = vpop.f32.mrf.mxu2 }
  0xfa   : > { %1637 = vmatmul.msk.bf16.gmra.mxu3 %vm451_vm3, %v1911_v32  ;;  %v820_v17 = vadd.f32 %v789_v7, %v621_v27  ;;  %v1011_v27 = vrot.slane %v2072_v46, 5  ;;  %v1184_v7 = vshrl.u32 %v2221_v51, 16 }
  0xfb   : > { %v967_v30 = vpop.f32.mrf.mxu0 }
  0xfc   : > { %v1013_v46 = vrot.slane %v1011_v27, 4  ;;  %v1012_v40 = vsel %vm1938_vm7, %v1610_v6, %v1011_v27 }
  0xfd   : > { %v867_v63 = vpop.f32.mrf.mxu3  ;;  %v625_v9 = vpop.f32.mrf.mxu1 }
  0xfe   : > { %1647 = vmatmul.msk.bf16.gmra.mxu0 %vm451_vm3, %v2048_v41  ;;  %v898_v15 = vadd.f32 %v867_v63, %v820_v17  ;;  %v626_v32 = vadd.f32 %v625_v9, %v2085_v48  ;;  %v1173_v9 = vrot.slane %v1171_v24, 4  ;;  %v1664_v24 = vld [vmem:[%s1746_s30 + $0x6c] sm:$0xff] }
 0x100   : > { %1616 = vmatmul.msk.bf16.gmra.mxu1 %vm451_vm3, %v2048_v41  ;;  %v2193_v13 = vadd.f32 %v967_v30, %v898_v15 }
 0x101   : > { %v791_v31 = vpop.f32.mrf.mxu2 }
 0x102   : > { %v821_v18 = vadd.f32 %v791_v31, %v623_v62  ;;  %v1180_v62 = vshll.u32 %v2221_v51, 16 }
 0x103   : > { %v969_v43 = vpop.f32.mrf.mxu0 }
 0x105   : > { %v869_v21 = vpop.f32.mrf.mxu3  ;;  %v627_v23 = vpop.f32.mrf.mxu1 }
 0x106   : > { %v899_v60 = vadd.f32 %v869_v21, %v821_v18  ;;  %1629 = vmatmul.msk.bf16.gmra.mxu2 %vm451_vm3, %v2054_v25  ;;  %v628_v45 = vadd.f32 %v627_v23, %v2110_v20  ;;  %v1186_v21 = vrot.slane %v1184_v7, 4  ;;  %v228_v23 = vld [vmem:[%s1746_s30 + $0x74] sm:$0x1] }
 0x108   : > { %v2198_v28 = vadd.f32 %v969_v43, %v899_v60  ;;  %v1182_v43 = vrot.slane %v1180_v62, 5 }
 0x109   : > { %v794_v37 = vpop.f32.mrf.mxu2 }
 0x10a   : > { %1638 = vmatmul.msk.bf16.gmra.mxu3 %vm451_vm3, %v1847_v47  ;;  %v822_v41 = vadd.f32 %v794_v37, %v626_v32 }
 0x10b   : > { %v972_v26 = vpop.f32.mrf.mxu0 }
 0x10d   : > { %v872_v11 = vpop.f32.mrf.mxu3  ;;  %v630_v12 = vpop.f32.mrf.mxu1 }
 0x10e   : > { %1648 = vmatmul.msk.bf16.gmra.mxu0 %vm451_vm3, %v2076_v42  ;;  %v900_v50 = vadd.f32 %v872_v11, %v822_v41  ;;  %v631_v57 = vadd.f32 %v630_v12, %v2129_v35  ;;  %v1190_v11 = vshll.u32 %v228_v23, 16 }
 0x110   : > { %1617 = vmatmul.msk.bf16.gmra.mxu1 %vm451_vm3, %v2076_v42  ;;  %v2207_v25 = vadd.f32 %v972_v26, %v900_v50  ;;  %v1187_v26 = vor.u32 %v1186_v21, %v1182_v43 }
 0x111   : > { %v796_v48 = vpop.f32.mrf.mxu2 }
 0x112   : > { %v823_v49 = vadd.f32 %v796_v48, %v628_v45 }
 0x113   : > { %v974_v47 = vpop.f32.mrf.mxu0 }
 0x115   : > { %v874_v56 = vpop.f32.mrf.mxu3  ;;  %v632_v29 = vpop.f32.mrf.mxu1 }
 0x116   : > { %v901_v34 = vadd.f32 %v874_v56, %v823_v49  ;;  %1630 = vmatmul.msk.bf16.gmra.mxu2 %vm451_vm3, %v2090_v38  ;;  %v1014_v38 = vrot.slane %v2095_v61, 5  ;;  %v633_v17 = vadd.f32 %v632_v29, %v2141_v44  ;;  %v1188_v29 = vrot.slane %v1187_v26, 4 }
 0x118   : > { %v2212_v58 = vadd.f32 %v974_v47, %v901_v34  ;;  %v1015_v18 = vsel %vm1938_vm7, %v1013_v46, %v1014_v38  ;;  %v1192_v34 = vrot.slane %v1190_v11, 5 }
 0x119   : > { %v799_v20 = vpop.f32.mrf.mxu2  ;;  %v1019_v37 = vunpack.c.l.b16 %v1015_v18 }
 0x11a   : > { %1639 = vmatmul.msk.bf16.gmra.mxu3 %vm451_vm3, %v1933_v1  ;;  %v824_v42 = vadd.f32 %v799_v20, %v631_v57  ;;  %v1174_v1 = vshll.u32 %v2218_v53, 16 }
 0x11b   : > { %v977_v59 = vpop.f32.mrf.mxu0 }
 0x11c   : > { %v1176_v15 = vrot.slane %v1174_v1, 5 }
 0x11d   : > { %v877_v4 = vpop.f32.mrf.mxu3  ;;  %v635_v16 = vpop.f32.mrf.mxu1 }
 0x11e   : > { %1649 = vmatmul.msk.bf16.gmra.mxu0 %vm451_vm3, %v2114_v55  ;;  %v902_v35 = vadd.f32 %v877_v4, %v824_v42  ;;  %v1177_v41 = vor.u32 %v1176_v15, %v1173_v9  ;;  %v636_v12 = vadd.f32 %v635_v16, %v2097_v2  ;;  %v1276_v4 = vrot.slane %v228_v23, 5 }
 0x120   : > { %1618 = vmatmul.msk.bf16.gmra.mxu1 %vm451_vm3, %v2114_v55  ;;  %v2234_v61 = vadd.f32 %v977_v59, %v902_v35  ;;  %v1018_v55 = vunpack.c.l.b16 %v1012_v40  ;;  %v1178_v47 = vrot.slane %v1177_v41, 4  ;;  %v1642_v59 = vrot.slane %v2218_v53, 9 }
 0x121   : > { %v801_v30 = vpop.f32.mrf.mxu2 }
 0x122   : > { %v825_v63 = vadd.f32 %v801_v30, %v633_v17  ;;  %v1020_v48 = vpack.c.b16 %v1019_v37, %v1018_v55  ;;  %v1183_v42 = vsel %vm1784_vm4, %v1178_v47, %v1182_v43 }
 0x123   : > { %v979_v31 = vpop.f32.mrf.mxu0  ;;  %v1196_v1 = vunpack.c.l.b16 %v1183_v42 }
 0x125   : > { %v879_v44 = vpop.f32.mrf.mxu3  ;;  %v637_v60 = vpop.f32.mrf.mxu1 }
 0x126   : > { %v903_v32 = vadd.f32 %v879_v44, %v825_v63  ;;  %1631 = vmatmul.msk.bf16.gmra.mxu2 %vm451_vm3, %v2127_v8  ;;  %v1273_v8 = vrot.slane %v2221_v51, 5  ;;  %v638_v16 = vadd.f32 %v637_v60, %v2116_v22 }
 0x128   : > { %v2244_v50 = vadd.f32 %v979_v31, %v903_v32  ;;  %v1275_v27 = vrot.slane %v1273_v8, 4  ;;  %v1274_v36 = vsel %vm1938_vm7, %v1642_v59, %v1273_v8  ;;  %v2284_v8 = vld [vmem:[%s2377_s3] ss:$0 sm:$0xff] }
 0x129   : > { %v804_v45 = vpop.f32.mrf.mxu2  ;;  %v1280_v30 = vunpack.c.l.b16 %v1274_v36 }
 0x12a   : > { %1640 = vmatmul.msk.bf16.gmra.mxu3 %vm451_vm3, %v2133_v39  ;;  %v826_v49 = vadd.f32 %v804_v45, %v636_v12  ;;  %v1193_v39 = vsel %vm1784_vm4, %v1188_v29, %v1192_v34  ;;  %v1277_v53 = vsel %vm1938_vm7, %v1275_v27, %v1276_v4 }
 0x12b   : > { %v982_v56 = vpop.f32.mrf.mxu0  ;;  %v1197_v6 = vunpack.c.l.b16 %v1193_v39  ;;  %v1281_v63 = vunpack.c.l.b16 %v1277_v53 }
 0x12d   : > { %v882_v57 = vpop.f32.mrf.mxu3  ;;  %v640_v20 = vpop.f32.mrf.mxu1  ;;  %v1198_v22 = vpack.c.b16 %v1197_v6, %v1196_v1  ;;  %v1282_v40 = vpack.c.b16 %v1281_v63, %v1280_v30 }
 0x12e   : > { %1650 = vmatmul.msk.bf16.gmra.mxu0 %vm451_vm3, %v1020_v48  ;;  %v904_v2 = vadd.f32 %v882_v57, %v826_v49  ;;  %v641_v9 = vadd.f32 %v640_v20, %v2135_v10 }
 0x130   : > { %1619 = vmatmul.msk.bf16.gmra.mxu1 %vm451_vm3, %v1020_v48  ;;  %v2257_v51 = vadd.f32 %v982_v56, %v904_v2 }
 0x131   : > { %v806_v38 = vpop.f32.mrf.mxu2 }
 0x132   : > { %v827_v35 = vadd.f32 %v806_v38, %v638_v16 }
 0x133   : > { %v984_v46 = vpop.f32.mrf.mxu0 }
 0x135   : > { %v884_v62 = vpop.f32.mrf.mxu3  ;;  %v642_v7 = vpop.f32.mrf.mxu1 }
 0x136   : > { %v905_v17 = vadd.f32 %v884_v62, %v827_v35  ;;  %1632 = vmatmul.msk.bf16.gmra.mxu2 %vm451_vm3, %v1664_v24  ;;  %v643_v44 = vadd.f32 %v642_v7, %v2143_v0  ;;  %v2279_v0 = vld [vmem:[%s2376_s2] ss:$0 sm:$0xff] }
 0x138   : > { %v2266_v15 = vadd.f32 %v984_v46, %v905_v17 }
 0x139   : > { %v809_v31 = vpop.f32.mrf.mxu2 }
 0x13a   : > { %1641 = vmatmul.msk.bf16.gmra.mxu3 %vm451_vm3, %v1198_v22  ;;  %v828_v18 = vadd.f32 %v809_v31, %v641_v9 }
 0x13b   : > { %v987_v43 = vpop.f32.mrf.mxu0 }
 0x13d   : > { %v887_v54 = vpop.f32.mrf.mxu3  ;;  %v1036_v21 = vpop.f32.mrf.mxu1 }
 0x13e   : > { %1651 = vmatmul.msk.bf16.gmra.mxu0 %vm451_vm3, %v1282_v40  ;;  %v906_v23 = vadd.f32 %v887_v54, %v828_v18  ;;  %v1076_v11 = vadd.f32 %v1036_v21, %v2153_v5 }
 0x140   : > { %v2271_v60 = vadd.f32 %v987_v43, %v906_v23 }
 0x141   : > { %v811_v32 = vpop.f32.mrf.mxu2 }
 0x142   : > { %v829_v55 = vadd.f32 %v811_v32, %v643_v44 }
 0x143   : > { %v989_v10 = vpop.f32.mrf.mxu0 }
 0x145   : > { %v889_v37 = vpop.f32.mrf.mxu3  ;;  %v1038_v41 = vpop.f32.mrf.mxu1 }
 0x146   : > { %v907_v26 = vadd.f32 %v889_v37, %v829_v55  ;;  %v1077_v5 = vadd.f32 %v1038_v41, %v2157_v14 }
 0x148   : > { %v2274_v12 = vadd.f32 %v989_v10, %v907_v26 }
 0x149   : > { %v1114_v45 = vpop.f32.mrf.mxu2 }
 0x14a   : > { %v1154_v48 = vadd.f32 %v1114_v45, %v1076_v11 }
 0x14b   : > { %v1298_v49 = vpop.f32.mrf.mxu0 }
 0x14d   : > { %v1214_v47 = vpop.f32.mrf.mxu3  ;;  %v1041_v56 = vpop.f32.mrf.mxu1 }
 0x14e   : > { %v1254_v29 = vadd.f32 %v1214_v47, %v1154_v48  ;;  %v1078_v35 = vadd.f32 %v1041_v56, %v2166_v33 }
 0x150   : > { %v1338_v34 = vadd.f32 %v1298_v49, %v1254_v29 }
 0x151   : > { %v1116_v57 = vpop.f32.mrf.mxu2 }
 0x152   : > { %v1358_v20 = vmul.f32 %v2279_v0, %v1338_v34  ;;  %v1155_v2 = vadd.f32 %v1116_v57, %v1077_v5 }
 0x153   : > { %v1300_v42 = vpop.f32.mrf.mxu0 }
 0x154   : > { %v1378_v39 = vadd.f32 %v2284_v8, %v1358_v20 }
 0x155   : > { %v1216_v59 = vpop.f32.mrf.mxu3  ;;  %v1043_v27 = vpop.f32.mrf.mxu1 }
 0x156   : > { %vm1394_vm8 = vcmp.ge.f32.partialorder %v1378_v39, 0.0  ;;  %v1410_v4 = vmul.f32 0.01, %v1378_v39  ;;  %v1255_v14 = vadd.f32 %v1216_v59, %v1155_v2  ;;  %v1079_v63 = vadd.f32 %v1043_v27, %v2171_v52 }
 0x158   : > { %v1426_v16 = vsel %vm1394_vm8, %v1378_v39, %v1410_v4  ;;  %v1339_v38 = vadd.f32 %v1300_v42, %v1255_v14 }
 0x159   : > { %1443 = vst.msk [vmem:[%s2293_s22] sm:$0xff] %vm1442_vm9, %v1426_v16  ;;  %v1119_v24 = vpop.f32.mrf.mxu2 }
 0x15a   : > { %v1359_v1 = vmul.f32 %v2279_v0, %v1339_v38  ;;  %v1156_v6 = vadd.f32 %v1119_v24, %v1078_v35 }
 0x15b   : > { %v1303_v46 = vpop.f32.mrf.mxu0 }
 0x15c   : > { %v1379_v36 = vadd.f32 %v2284_v8, %v1359_v1 }
 0x15d   : > { %v1219_v53 = vpop.f32.mrf.mxu3  ;;  %v1046_v62 = vpop.f32.mrf.mxu1 }
 0x15e   : > { %vm1395_vm10 = vcmp.ge.f32.partialorder %v1379_v36, 0.0  ;;  %v1411_v7 = vmul.f32 0.01, %v1379_v36  ;;  %v1256_v17 = vadd.f32 %v1219_v53, %v1156_v6  ;;  %v1080_v55 = vadd.f32 %v1046_v62, %v2180_v3 }
 0x160   : > { %v1427_v22 = vsel %vm1395_vm10, %v1379_v36, %v1411_v7  ;;  %v1340_v30 = vadd.f32 %v1303_v46, %v1256_v17 }
 0x161   : > { %1444 = vst.msk [vmem:[%s2293_s22 + $0x8] sm:$0xff] %vm1442_vm9, %v1427_v22  ;;  %v1121_v33 = vpop.f32.mrf.mxu2 }
 0x162   : > { %v1360_v9 = vmul.f32 %v2279_v0, %v1340_v30  ;;  %v1157_v31 = vadd.f32 %v1121_v33, %v1079_v63 }
 0x163   : > { %v1305_v40 = vpop.f32.mrf.mxu0 }
 0x164   : > { %v1380_v18 = vadd.f32 %v2284_v8, %v1360_v9 }
 0x165   : > { %v1221_v43 = vpop.f32.mrf.mxu3  ;;  %v1048_v54 = vpop.f32.mrf.mxu1 }
 0x166   : > { %vm1396_vm11 = vcmp.ge.f32.partialorder %v1380_v18, 0.0  ;;  %v1412_v21 = vmul.f32 0.01, %v1380_v18  ;;  %v1257_v23 = vadd.f32 %v1221_v43, %v1157_v31  ;;  %v1081_v29 = vadd.f32 %v1048_v54, %v2185_v19 }
 0x168   : > { %v1428_v44 = vsel %vm1396_vm11, %v1380_v18, %v1412_v21  ;;  %v1341_v32 = vadd.f32 %v1305_v40, %v1257_v23 }
 0x169   : > { %1445 = vst.msk [vmem:[%s2293_s22 + $0x10] sm:$0xff] %vm1442_vm9, %v1428_v44  ;;  %v1124_v52 = vpop.f32.mrf.mxu2 }
 0x16a   : > { %v1361_v10 = vmul.f32 %v2279_v0, %v1341_v32  ;;  %v1158_v37 = vadd.f32 %v1124_v52, %v1080_v55 }
 0x16b   : > { %v1308_v41 = vpop.f32.mrf.mxu0 }
 0x16c   : > { %v1381_v26 = vadd.f32 %v2284_v8, %v1361_v10 }
 0x16d   : > { %v1224_v11 = vpop.f32.mrf.mxu3  ;;  %v1051_v45 = vpop.f32.mrf.mxu1 }
 0x16e   : > { %vm1397_vm12 = vcmp.ge.f32.partialorder %v1381_v26, 0.0  ;;  %v1413_v48 = vmul.f32 0.01, %v1381_v26  ;;  %v1258_v49 = vadd.f32 %v1224_v11, %v1158_v37  ;;  %v1082_v14 = vadd.f32 %v1051_v45, %v2193_v13 }
 0x170   : > { %v1429_v47 = vsel %vm1397_vm12, %v1381_v26, %v1413_v48  ;;  %v1342_v56 = vadd.f32 %v1308_v41, %v1258_v49 }
 0x171   : > { %1446 = vst.msk [vmem:[%s2293_s22 + $0x18] sm:$0xff] %vm1442_vm9, %v1429_v47  ;;  %v1126_v3 = vpop.f32.mrf.mxu2 }
 0x172   : > { %v1362_v34 = vmul.f32 %v2279_v0, %v1342_v56  ;;  %v1159_v5 = vadd.f32 %v1126_v3, %v1081_v29 }
 0x173   : > { %v1310_v57 = vpop.f32.mrf.mxu0 }
 0x174   : > { %v1382_v20 = vadd.f32 %v2284_v8, %v1362_v34 }
 0x175   : > { %v1226_v2 = vpop.f32.mrf.mxu3  ;;  %v1053_v42 = vpop.f32.mrf.mxu1 }
 0x176   : > { %vm1398_vm13 = vcmp.ge.f32.partialorder %v1382_v20, 0.0  ;;  %v1414_v39 = vmul.f32 0.01, %v1382_v20  ;;  %v1259_v59 = vadd.f32 %v1226_v2, %v1159_v5  ;;  %v1083_v7 = vadd.f32 %v1053_v42, %v2198_v28 }
 0x178   : > { %v1430_v27 = vsel %vm1398_vm13, %v1382_v20, %v1414_v39  ;;  %v1343_v4 = vadd.f32 %v1310_v57, %v1259_v59 }
 0x179   : > { %1447 = vst.msk [vmem:[%s2293_s22 + $0x20] sm:$0xff] %vm1442_vm9, %v1430_v27  ;;  %v1129_v19 = vpop.f32.mrf.mxu2 }
 0x17a   : > { %v1363_v16 = vmul.f32 %v2279_v0, %v1343_v4  ;;  %v1160_v38 = vadd.f32 %v1129_v19, %v1082_v14 }
 0x17b   : > { %v1313_v35 = vpop.f32.mrf.mxu0 }
 0x17c   : > { %v1383_v24 = vadd.f32 %v2284_v8, %v1363_v16 }
 0x17d   : > { %v1229_v1 = vpop.f32.mrf.mxu3  ;;  %v1056_v6 = vpop.f32.mrf.mxu1 }
 0x17e   : > { %vm1399_vm14 = vcmp.ge.f32.partialorder %v1383_v24, 0.0  ;;  %v1415_v46 = vmul.f32 0.01, %v1383_v24  ;;  %v1260_v36 = vadd.f32 %v1229_v1, %v1160_v38  ;;  %v1084_v54 = vadd.f32 %v1056_v6, %v2207_v25 }
 0x180   : > { %v1431_v53 = vsel %vm1399_vm14, %v1383_v24, %v1415_v46  ;;  %v1344_v62 = vadd.f32 %v1313_v35, %v1260_v36 }
 0x181   : > { %1448 = vst.msk [vmem:[%s2293_s22 + $0x28] sm:$0xff] %vm1442_vm9, %v1431_v53  ;;  %v1131_v13 = vpop.f32.mrf.mxu2 }
 0x182   : > { %v1364_v17 = vmul.f32 %v2279_v0, %v1344_v62  ;;  %v1161_v22 = vadd.f32 %v1131_v13, %v1083_v7 }
 0x183   : > { %v1315_v30 = vpop.f32.mrf.mxu0 }
 0x184   : > { %v1384_v63 = vadd.f32 %v2284_v8, %v1364_v17 }
 0x185   : > { %v1231_v33 = vpop.f32.mrf.mxu3  ;;  %v1058_v9 = vpop.f32.mrf.mxu1 }
 0x186   : > { %vm1400_vm15 = vcmp.ge.f32.partialorder %v1384_v63, 0.0  ;;  %v1416_v31 = vmul.f32 0.01, %v1384_v63  ;;  %v1261_v40 = vadd.f32 %v1231_v33, %v1161_v22  ;;  %v1085_v11 = vadd.f32 %v1058_v9, %v2212_v58 }
 0x188   : > { %v1432_v18 = vsel %vm1400_vm15, %v1384_v63, %v1416_v31  ;;  %v1345_v43 = vadd.f32 %v1315_v30, %v1261_v40 }
 0x189   : > { %1449 = vst.msk [vmem:[%s2293_s22 + $0x30] sm:$0xff] %vm1442_vm9, %v1432_v18  ;;  %v1134_v28 = vpop.f32.mrf.mxu2 }
 0x18a   : > { %v1365_v21 = vmul.f32 %v2279_v0, %v1345_v43  ;;  %v1162_v23 = vadd.f32 %v1134_v28, %v1084_v54 }
 0x18b   : > { %v1318_v44 = vpop.f32.mrf.mxu0 }
 0x18c   : > { %v1385_v32 = vadd.f32 %v2284_v8, %v1365_v21 }
 0x18d   : > { %v1234_v55 = vpop.f32.mrf.mxu3  ;;  %v1061_v52 = vpop.f32.mrf.mxu1 }
 0x18e   : > { %vm1401_vm0 = vcmp.ge.f32.partialorder %v1385_v32, 0.0  ;;  %v1417_v10 = vmul.f32 0.01, %v1385_v32  ;;  %v1262_v37 = vadd.f32 %v1234_v55, %v1162_v23  ;;  %v1086_v20 = vadd.f32 %v1061_v52, %v2234_v61 }
 0x190   : > { %v1433_v41 = vsel %vm1401_vm0, %v1385_v32, %v1417_v10  ;;  %v1346_v26 = vadd.f32 %v1318_v44, %v1262_v37 }
 0x191   : > { %1450 = vst.msk [vmem:[%s2293_s22 + $0x38] sm:$0xff] %vm1442_vm9, %v1433_v41  ;;  %v1136_v25 = vpop.f32.mrf.mxu2 }
 0x192   : > { %v1366_v45 = vmul.f32 %v2279_v0, %v1346_v26  ;;  %v1163_v48 = vadd.f32 %v1136_v25, %v1085_v11 }
 0x193   : > { %v1320_v49 = vpop.f32.mrf.mxu0 }
 0x194   : > { %v1386_v47 = vadd.f32 %v2284_v8, %v1366_v45 }
 0x195   : > { %v1236_v56 = vpop.f32.mrf.mxu3  ;;  %v1063_v29 = vpop.f32.mrf.mxu1 }
 0x196   : > { %vm1402_vm1 = vcmp.ge.f32.partialorder %v1386_v47, 0.0  ;;  %v1418_v3 = vmul.f32 0.01, %v1386_v47  ;;  %v1263_v34 = vadd.f32 %v1236_v56, %v1163_v48  ;;  %v1087_v35 = vadd.f32 %v1063_v29, %v2244_v50 }
 0x198   : > { %v1434_v5 = vsel %vm1402_vm1, %v1386_v47, %v1418_v3  ;;  %v1347_v57 = vadd.f32 %v1320_v49, %v1263_v34 }
 0x199   : > { %1451 = vst.msk [vmem:[%s2293_s22 + $0x40] sm:$0xff] %vm1442_vm9, %v1434_v5  ;;  %v1139_v58 = vpop.f32.mrf.mxu2 }
 0x19a   : > { %v1367_v2 = vmul.f32 %v2279_v0, %v1347_v57  ;;  %v1164_v42 = vadd.f32 %v1139_v58, %v1086_v20 }
 0x19b   : > { %v1323_v39 = vpop.f32.mrf.mxu0 }
 0x19c   : > { %v1387_v59 = vadd.f32 %v2284_v8, %v1367_v2 }
 0x19d   : > { %v1239_v27 = vpop.f32.mrf.mxu3  ;;  %v1066_v19 = vpop.f32.mrf.mxu1 }
 0x19e   : > { %vm1403_vm2 = vcmp.ge.f32.partialorder %v1387_v59, 0.0  ;;  %v1419_v4 = vmul.f32 0.01, %v1387_v59  ;;  %v1264_v14 = vadd.f32 %v1239_v27, %v1164_v42  ;;  %v1088_v17 = vadd.f32 %v1066_v19, %v2257_v51 }
 0x1a0   : > { %v1435_v16 = vsel %vm1403_vm2, %v1387_v59, %v1419_v4  ;;  %v1348_v38 = vadd.f32 %v1323_v39, %v1264_v14 }
 0x1a1   : > { %1452 = vst.msk [vmem:[%s2293_s22 + $0x48] sm:$0xff] %vm1442_vm9, %v1435_v16  ;;  %v1141_v61 = vpop.f32.mrf.mxu2 }
 0x1a2   : > { %v1368_v24 = vmul.f32 %v2279_v0, %v1348_v38  ;;  %v1165_v1 = vadd.f32 %v1141_v61, %v1087_v35 }
 0x1a3   : > { %v1325_v6 = vpop.f32.mrf.mxu0 }
 0x1a4   : > { %v1388_v46 = vadd.f32 %v2284_v8, %v1368_v24 }
 0x1a5   : > { %v1241_v36 = vpop.f32.mrf.mxu3  ;;  %v1068_v22 = vpop.f32.mrf.mxu1 }
 0x1a6   : > { %vm1404_vm3 = vcmp.ge.f32.partialorder %v1388_v46, 0.0  ;;  %v1420_v53 = vmul.f32 0.01, %v1388_v46  ;;  %v1265_v62 = vadd.f32 %v1241_v36, %v1165_v1  ;;  %v1089_v28 = vadd.f32 %v1068_v22, %v2266_v15 }
 0x1a8   : > { %v1436_v7 = vsel %vm1404_vm3, %v1388_v46, %v1420_v53  ;;  %v1349_v13 = vadd.f32 %v1325_v6, %v1265_v62 }
 0x1a9   : > { %1453 = vst.msk [vmem:[%s2293_s22 + $0x50] sm:$0xff] %vm1442_vm9, %v1436_v7  ;;  %v1144_v50 = vpop.f32.mrf.mxu2 }
 0x1aa   : > { %v1369_v30 = vmul.f32 %v2279_v0, %v1349_v13  ;;  %v1166_v63 = vadd.f32 %v1144_v50, %v1088_v17 }
 0x1ab   : > { %v1328_v33 = vpop.f32.mrf.mxu0 }
 0x1ac   : > { %v1389_v9 = vadd.f32 %v2284_v8, %v1369_v30 }
 0x1ad   : > { %v1244_v31 = vpop.f32.mrf.mxu3  ;;  %v1071_v44 = vpop.f32.mrf.mxu1 }
 0x1ae   : > { %vm1405_vm4 = vcmp.ge.f32.partialorder %v1389_v9, 0.0  ;;  %v1421_v40 = vmul.f32 0.01, %v1389_v9  ;;  %v1266_v18 = vadd.f32 %v1244_v31, %v1166_v63  ;;  %v1090_v11 = vadd.f32 %v1071_v44, %v2271_v60 }
 0x1b0   : > { %v1437_v43 = vsel %vm1405_vm4, %v1389_v9, %v1421_v40  ;;  %v1350_v54 = vadd.f32 %v1328_v33, %v1266_v18 }
 0x1b1   : > { %1454 = vst.msk [vmem:[%s2293_s22 + $0x58] sm:$0xff] %vm1442_vm9, %v1437_v43  ;;  %v1146_v51 = vpop.f32.mrf.mxu2 }
 0x1b2   : > { %v1370_v21 = vmul.f32 %v2279_v0, %v1350_v54  ;;  %v1167_v23 = vadd.f32 %v1146_v51, %v1089_v28 }
 0x1b3   : > { %v1330_v32 = vpop.f32.mrf.mxu0 }
 0x1b4   : > { %v1390_v55 = vadd.f32 %v2284_v8, %v1370_v21 }
 0x1b5   : > { %v1246_v52 = vpop.f32.mrf.mxu3  ;;  %v1073_v49 = vpop.f32.mrf.mxu1 }
 0x1b6   : > { %vm1406_vm5 = vcmp.ge.f32.partialorder %v1390_v55, 0.0  ;;  %v1422_v10 = vmul.f32 0.01, %v1390_v55  ;;  %v1267_v37 = vadd.f32 %v1246_v52, %v1167_v23  ;;  %v1091_v57 = vadd.f32 %v1073_v49, %v2274_v12 }
 0x1b8   : > { %v1438_v41 = vsel %vm1406_vm5, %v1390_v55, %v1422_v10  ;;  %v1351_v26 = vadd.f32 %v1330_v32, %v1267_v37 }
 0x1b9   : > { %1455 = vst.msk [vmem:[%s2293_s22 + $0x60] sm:$0xff] %vm1442_vm9, %v1438_v41  ;;  %v1149_v15 = vpop.f32.mrf.mxu2 }
 0x1ba   : > { %v1371_v25 = vmul.f32 %v2279_v0, %v1351_v26  ;;  %v1168_v45 = vadd.f32 %v1149_v15, %v1090_v11 }
 0x1bb   : > { %v1333_v47 = vpop.f32.mrf.mxu0 }
 0x1bc   : > { %v1391_v48 = vadd.f32 %v2284_v8, %v1371_v25 }
 0x1bd   : > { %v1249_v56 = vpop.f32.mrf.mxu3 }
 0x1be   : > { %vm1407_vm6 = vcmp.ge.f32.partialorder %v1391_v48, 0.0  ;;  %v1423_v29 = vmul.f32 0.01, %v1391_v48  ;;  %v1268_v3 = vadd.f32 %v1249_v56, %v1168_v45 }
 0x1c0   : > { %v1439_v34 = vsel %vm1407_vm6, %v1391_v48, %v1423_v29  ;;  %v1352_v5 = vadd.f32 %v1333_v47, %v1268_v3 }
 0x1c1   : > { %1456 = vst.msk [vmem:[%s2293_s22 + $0x68] sm:$0xff] %vm1442_vm9, %v1439_v34  ;;  %v1151_v60 = vpop.f32.mrf.mxu2 }
 0x1c2   : > { %v1372_v20 = vmul.f32 %v2279_v0, %v1352_v5  ;;  %v1169_v58 = vadd.f32 %v1151_v60, %v1091_v57 }
 0x1c3   : > { %v1335_v27 = vpop.f32.mrf.mxu0 }
 0x1c4   : > { %v1392_v2 = vadd.f32 %v2284_v8, %v1372_v20 }
 0x1c5   : > { %v1251_v42 = vpop.f32.mrf.mxu3 }
 0x1c6   : > { %vm1408_vm7 = vcmp.ge.f32.partialorder %v1392_v2, 0.0  ;;  %v1424_v39 = vmul.f32 0.01, %v1392_v2  ;;  %v1269_v59 = vadd.f32 %v1251_v42, %v1169_v58 }
 0x1c8   : > { %v1440_v4 = vsel %vm1408_vm7, %v1392_v2, %v1424_v39  ;;  %v1353_v14 = vadd.f32 %v1335_v27, %v1269_v59 }
 0x1c9   : > { %1457 = vst.msk [vmem:[%s2293_s22 + $0x70] sm:$0xff] %vm1442_vm9, %v1440_v4 }
 0x1ca   : > { %v1373_v12 = vmul.f32 %v2279_v0, %v1353_v14 }
 0x1cc   : > { %v1393_v19 = vadd.f32 %v2284_v8, %v1373_v12 }
 0x1ce   : > { %vm1409_vm8 = vcmp.ge.f32.partialorder %v1393_v19, 0.0  ;;  %v1425_v16 = vmul.f32 0.01, %v1393_v19 }
 0x1d0   : > { %v1441_v38 = vsel %vm1409_vm8, %v1393_v19, %v1425_v16 }
 0x1d1   : > { %1458 = vst.msk [vmem:[%s2293_s22 + $0x78] sm:$0xff] %vm1442_vm9, %v1441_v38 }
 0x1d2 PF: > { %s14_s15 = sadd.s32 1, %s1685_s15  }
 0x1d3   : > { %p11_p4 = scmp.ge.s32.totalorder %s14_s15, 6  }
 0x1d5   :  { %13 = sbr.rel (!%p11_p4) target bundleno = 1 (0x1), region = 74 }

</bundles_post_ra>
